<compile_context>
chip_gen: v7x
topology: tpu7x:2x2x1
jax: 0.10.0
libtpu: 0.0.40
codegen_flags: <defaults>
</compile_context>

<pallas_src>
import functools
import math

import jax
import jax.numpy as jnp
from jax.experimental import pallas as pl
from jax.experimental.pallas import tpu as pltpu

BN_EPS = 1e-5      # PyTorch BatchNorm2d default eps
SIG_CLAMP = 1e-4   # _sigmoid clamp used by CenterNet-style codebases


def _round_up(x, m):
    return (x + m - 1) // m * m


# ----------------------------------------------------------------------------
# Fused head kernel
#
# Flat padded layout (per batch image): each image row is W real pixels plus
# one zero "junk" column (width WP = W + 1), rows are concatenated, and LEAD /
# trailing zero rows are added. Pixel (h, w) lives at flat row LEAD + h*WP + w.
# A 3x3 tap (dh, dw) is then just a contiguous row slice shifted by dh*WP + dw,
# and the junk column + pad rows provide the conv zero padding for free.
#
# Invariants the scratch relies on (document per review):
#   - halo rows [0:LEAD) and [LEAD+MQ:MP) of y1/y2 scratch are zero whenever
#     they are read (re-established at the top of every step),
#   - junk-column rows inside [LEAD:LEAD+MQ) are zeroed by the rmask multiply
#     every step, so they act as horizontal conv zero padding.
# ----------------------------------------------------------------------------
def _head_kernel(x_ref, rmask_ref, lin_ref, w1_ref, b1_ref, w2_ref, b2_ref,
                 w3_ref, b3_ref, out_ref, p1_ref, p2_ref, y1_ref, y2_ref,
                 *, W, C_IN, CH, LEAD, MQ, MP):
    WP = W + 1
    taps = [dh * WP + dw for dh in (-1, 0, 1) for dw in (-1, 0, 1)]
    C1 = 2 * CH
    rmask = rmask_ref[...]                                    # (MQ, 1): 1.0 = real pixel row

    # Zero ONLY the halo rows (conv vertical zero padding); interior rows are
    # fully overwritten below.
    y1_ref[0:LEAD, :] = jnp.zeros((LEAD, C1), y1_ref.dtype)
    y1_ref[LEAD + MQ:MP, :] = jnp.zeros((MP - LEAD - MQ, C1), y1_ref.dtype)
    y2_ref[0:LEAD, :] = jnp.zeros((LEAD, CH), y2_ref.dtype)
    y2_ref[LEAD + MQ:MP, :] = jnp.zeros((MP - LEAD - MQ, CH), y2_ref.dtype)

    # ---- conv1(3x3)+bn1 packed with downsample(1x1)+bn:
    #      one (MQ, 9*C_IN) @ (9*C_IN, 2CH) bf16 MXU matmul ----
    for t, s in enumerate(taps):
        p1_ref[:, t * C_IN:(t + 1) * C_IN] = x_ref[LEAD + s:LEAD + s + MQ, :]
    acc1 = jnp.dot(p1_ref[...], w1_ref[...], preferred_element_type=jnp.float32)
    acc1 = acc1 + b1_ref[...]                                 # folded BN shifts
    # lanes [0, CH): conv1+bn1 path (ReLU); lanes [CH, 2CH): downsample path
    # (linear). lin_ref is 1.0 on the linear lanes, 0.0 on the ReLU lanes, so
    # max(x, x*lin) == relu(x) on the first half and x on the second half.
    y1 = jnp.maximum(acc1, acc1 * lin_ref[...]) * rmask
    y1_ref[LEAD:LEAD + MQ, :] = y1.astype(y1_ref.dtype)       # bf16 for the next MXU pass

    # ---- conv2(3x3)+bn2 + residual add (identity folded into the centre tap):
    #      one (MQ, 9*2CH) @ (9*2CH, CH) bf16 MXU matmul ----
    for t, s in enumerate(taps):
        p2_ref[:, t * C1:(t + 1) * C1] = y1_ref[LEAD + s:LEAD + s + MQ, :]
    acc2 = jnp.dot(p2_ref[...], w2_ref[...], preferred_element_type=jnp.float32)
    y2 = jnp.maximum(acc2 + b2_ref[...], 0.0) * rmask          # BasicBlock output
    y2_ref[LEAD:LEAD + MQ, :] = y2.astype(y2_ref.dtype)        # bf16 (widened per tap below)

    # ---- final 3x3 conv, C_out == 1: VPU multiply + lane reduction (avoids a
    #      (MQ, 288) @ (288, 1) MXU matmul with ~0% column utilization), then
    #      bias + sigmoid + clamp. bf16 tap loads are widened to f32 in-loop
    #      to keep the f32 accumulator while halving load bytes/vregs. ----
    acc3 = jnp.zeros((MQ, CH), jnp.float32)
    for t, s in enumerate(taps):
        acc3 = acc3 + y2_ref[LEAD + s:LEAD + s + MQ, :].astype(jnp.float32) * w3_ref[t]
    center = jnp.sum(acc3, axis=-1, keepdims=True) + b3_ref[...]
    center = jax.nn.sigmoid(center)
    out_ref[...] = jnp.clip(center, SIG_CLAMP, 1.0 - SIG_CLAMP)


# ----------------------------------------------------------------------------
# Parameter prep: BN folding + weight packing (plain JAX, done once)
# ----------------------------------------------------------------------------
def fold_and_pack_params(raw):
    """raw: torch-layout conv weights + BN stats -> packed, BN-folded kernel operands."""
    def bn_fold(bn):
        gamma, beta, mean, var = bn
        s = gamma * jax.lax.rsqrt(var + BN_EPS)
        return s, beta - mean * s

    s1, t1 = bn_fold(raw["bn1"])
    s2, t2 = bn_fold(raw["bn2"])
    sd, td = bn_fold(raw["bnd"])

    ch, c_in = raw["w1"].shape[0], raw["w1"].shape[1]
    c_out = raw["w3"].shape[0]
    assert c_out == 1, "fused conv3 epilogue assumes OUT_CHANNELS == 1 (center map)"

    def to_taps(w):  # (Cout, Cin, 3, 3) -> (9, Cin, Cout), tap index = kh*3 + kw
        co, ci = w.shape[0], w.shape[1]
        return jnp.transpose(w, (2, 3, 1, 0)).reshape(9, ci, co)

    # conv1 taps (scale-folded) packed with the 1x1 downsample on the centre tap.
    w1_taps = to_taps(raw["w1"]) * s1                            # (9, c_in, ch)
    wd_mat = jnp.transpose(raw["wd"][:, :, 0, 0], (1, 0)) * sd   # (c_in, ch)
    w1d = jnp.zeros((9, c_in, 2 * ch), jnp.float32)
    w1d = w1d.at[:, :, :ch].set(w1_taps).at[4, :, ch:].set(wd_mat)
    b1d = jnp.concatenate([t1, td]).reshape(1, 2 * ch)

    # conv2 taps (scale-folded); the residual add is an identity block on the centre tap.
    w2_taps = to_taps(raw["w2"]) * s2                            # (9, ch, ch)
    w2aug = jnp.zeros((9, 2 * ch, ch), jnp.float32)
    w2aug = w2aug.at[:, :ch, :].set(w2_taps).at[4, ch:, :].set(jnp.eye(ch))
    b2 = t2.reshape(1, ch)

    # final 3x3 conv (bias, no BN): kept f32 for the VPU epilogue.
    w3t = jnp.transpose(to_taps(raw["w3"]), (0, 2, 1))           # (9, 1, ch)
    b3 = raw["b3"].reshape(1, 1)

    # 0.0 on ReLU (conv1) lanes, 1.0 on linear (downsample) lanes.
    lin_row = jnp.concatenate([jnp.zeros((ch,), jnp.float32),
                               jnp.ones((ch,), jnp.float32)]).reshape(1, 2 * ch)

    return dict(
        # K-flattened for the single-matmul-per-conv kernel (K index = tap*Cin + c).
        w1k=w1d.reshape(9 * c_in, 2 * ch).astype(jnp.bfloat16),
        b1d=b1d.astype(jnp.float32),
        w2k=w2aug.reshape(9 * 2 * ch, ch).astype(jnp.bfloat16),
        b2=b2.astype(jnp.float32),
        w3t=w3t.astype(jnp.float32), b3=b3.astype(jnp.float32),
        lin_row=lin_row,
    )


def init_head_raw_params(key, c_in, ch, c_out, *, w_std=1e-3, random_bn=False):
    """Module-faithful init: conv weights ~N(0, std), final bias = -log((1-p)/p), BN eval defaults."""
    k1, k2, kd, k3, kbn = jax.random.split(key, 5)
    prior_prob = 0.01
    bias_value = -math.log((1.0 - prior_prob) / prior_prob)

    def conv_w(k, cout, cin, ksz):
        return w_std * jax.random.normal(k, (cout, cin, ksz, ksz), jnp.float32)

    def bn_params(k, c):
        if not random_bn:
            return (jnp.ones((c,), jnp.float32), jnp.zeros((c,), jnp.float32),
                    jnp.zeros((c,), jnp.float32), jnp.ones((c,), jnp.float32))
        ka, kb, kc, kv = jax.random.split(k, 4)
        return (jax.random.uniform(ka, (c,), jnp.float32, 0.5, 1.5),
                0.1 * jax.random.normal(kb, (c,), jnp.float32),
                0.1 * jax.random.normal(kc, (c,), jnp.float32),
                jax.random.uniform(kv, (c,), jnp.float32, 0.5, 1.5))

    kb1, kb2, kbd = jax.random.split(kbn, 3)
    return {
        "w1": conv_w(k1, ch, c_in, 3), "bn1": bn_params(kb1, ch),
        "w2": conv_w(k2, ch, ch, 3),   "bn2": bn_params(kb2, ch),
        "wd": conv_w(kd, ch, c_in, 1), "bnd": bn_params(kbd, ch),
        "w3": conv_w(k3, c_out, ch, 3),
        "b3": jnp.full((c_out,), bias_value, jnp.float32),
    }


# ----------------------------------------------------------------------------
# Forward wrappers
# ----------------------------------------------------------------------------
def head_forward(feat_nhwc, params):
    n, h, w, c_in = feat_nhwc.shape
    ch = params["w2k"].shape[1]
    wp = w + 1
    mq = h * wp                                   # rows computed per image (incl. junk cols)
    lead = _round_up(wp + 1, 16)                  # aligned lead pad (covers most-negative tap)
    mp = _round_up(lead + mq + wp + 1, 16)        # total flat rows (trailing pad >= wp+1)

    # Flat padded layout in bf16: one zero column per row, then lead/trail zero rows.
    x = jnp.pad(feat_nhwc.astype(jnp.bfloat16), ((0, 0), (0, 0), (0, 1), (0, 0)))
    x = x.reshape(n, mq, c_in)
    x = jnp.pad(x, ((0, 0), (lead, mp - lead - mq), (0, 0)))

    # 1.0 at real-pixel rows, 0.0 at the junk-column rows (they must stay zero
    # inside y1/y2 so they act as the conv zero padding for their neighbours).
    rmask = ((jnp.arange(mq) % wp) != w).astype(jnp.float32).reshape(mq, 1)

    kern = functools.partial(_head_kernel, W=w, C_IN=c_in, CH=ch,
                             LEAD=lead, MQ=mq, MP=mp)
    out = pl.pallas_call(
        kern,
        out_shape=jax.ShapeDtypeStruct((n, mq, 1), jnp.float32),
        grid=(n,),
        in_specs=[
            pl.BlockSpec((None, mp, c_in), lambda i: (i, 0, 0)),        # x (flat, padded)
            pl.BlockSpec((mq, 1), lambda i: (0, 0)),                    # rmask
            pl.BlockSpec((1, 2 * ch), lambda i: (0, 0)),                # linear-lane row
            pl.BlockSpec((9 * c_in, 2 * ch), lambda i: (0, 0)),         # conv1 + downsample (K-flat)
            pl.BlockSpec((1, 2 * ch), lambda i: (0, 0)),                # bn1 | bn_d shifts
            pl.BlockSpec((9 * 2 * ch, ch), lambda i: (0, 0)),           # conv2 + identity (K-flat)
            pl.BlockSpec((1, ch), lambda i: (0, 0)),                    # bn2 shift
            pl.BlockSpec((9, 1, ch), lambda i: (0, 0, 0)),              # conv3 taps
            pl.BlockSpec((1, 1), lambda i: (0, 0)),                     # conv3 bias
        ],
        out_specs=pl.BlockSpec((None, mq, 1), lambda i: (i, 0, 0)),
        scratch_shapes=[
            pltpu.VMEM((mq, 9 * c_in), jnp.bfloat16),    # conv1 K-concat patches
            pltpu.VMEM((mq, 9 * 2 * ch), jnp.bfloat16),  # conv2 K-concat patches
            pltpu.VMEM((mp, 2 * ch), jnp.bfloat16),      # padded y1 | downsample (bf16 -> MXU)
            pltpu.VMEM((mp, ch), jnp.bfloat16),          # padded y2 (bf16, widened in conv3)
        ],
        compiler_params=pltpu.CompilerParams(
            dimension_semantics=("parallel",),
            vmem_limit_bytes=32 * 1024 * 1024),
    )(x, rmask, params["lin_row"], params["w1k"], params["b1d"],
      params["w2k"], params["b2"], params["w3t"], params["b3"])

    return out.reshape(n, h, wp)[:, :, :w]        # drop junk columns -> (n, h, w)


def multi_head_wrapper_forward(features_nchw, center_head_params):
    """Eval-path forward of MultiHeadWrapper: returns {'center_map': clamped sigmoid(center)}."""
    # TODO(synk): ASPP neck modules are not defined in the reference source; neck == identity.
    x = jnp.transpose(features_nchw, (0, 2, 3, 1))          # NCHW -> NHWC
    center = head_forward(x, center_head_params)            # (N, H, W)
    return {"center_map": center[:, None, :, :]}            # NCHW (N, 1, H, W)


# ----------------------------------------------------------------------------
# Pure-JAX reference (for a numerical self-check of the fused kernel)
# ----------------------------------------------------------------------------
def _conv_nhwc(x, w_torch, padding):
    w = jnp.transpose(w_torch, (2, 3, 1, 0))                # (Cout,Cin,KH,KW) -> HWIO
    return jax.lax.conv_general_dilated(
        x, w, window_strides=(1, 1), padding=padding,
        dimension_numbers=("NHWC", "HWIO", "NHWC"))


def reference_forward(features_nchw, raw):
    def bn(v, gamma, beta, mean, var):
        return (v - mean) * (gamma / jnp.sqrt(var + BN_EPS)) + beta

    x = jnp.transpose(features_nchw, (0, 2, 3, 1))
    y1 = jax.nn.relu(bn(_conv_nhwc(x, raw["w1"], "SAME"), *raw["bn1"]))
    y2 = bn(_conv_nhwc(y1, raw["w2"], "SAME"), *raw["bn2"])
    yd = bn(_conv_nhwc(x, raw["wd"], "VALID"), *raw["bnd"])
    y = jax.nn.relu(y2 + yd)
    out = _conv_nhwc(y, raw["w3"], "SAME") + raw["b3"]
    out = jnp.clip(jax.nn.sigmoid(out), SIG_CLAMP, 1.0 - SIG_CLAMP)
    return jnp.transpose(out, (0, 3, 1, 2))


# ----------------------------------------------------------------------------
if __name__ == "__main__":
    key = jax.random.PRNGKey(0)
    k_feat, k_params, k_check = jax.random.split(key, 3)

    # cfg-like small shapes: batch=2, CenterHead.IN_CHANNELS=16, CHANNELS=32,
    # OUT_CHANNELS=1, spatial 16x16.
    N, C_IN, H, W = 2, 16, 16, 16
    CH, C_OUT = 32, 1

    features = jax.random.normal(k_feat, (N, C_IN, H, W), jnp.float32)   # NCHW

    fwd = jax.jit(multi_head_wrapper_forward)

    # Module-faithful parameters (std=0.001 conv weights, BN eval defaults, prior bias).
    raw = init_head_raw_params(k_params, C_IN, CH, C_OUT, w_std=1e-3)
    params = fold_and_pack_params(raw)
    out = fwd(features, params)
    center_map = jax.block_until_ready(out["center_map"])
    assert center_map.shape == (N, C_OUT, H, W), center_map.shape
    assert bool(jnp.all(center_map >= SIG_CLAMP)) and bool(jnp.all(center_map <= 1.0 - SIG_CLAMP))

    # Numerical self-check against a pure-JAX reference, with larger weights and
    # non-trivial BN stats so the spatial structure (and the BN folding) is exercised.
    # bf16 activations/weights (incl. the bf16 y2 scratch) -> modest tolerance.
    raw_c = init_head_raw_params(k_check, C_IN, CH, C_OUT, w_std=5e-2, random_bn=True)
    got = jax.block_until_ready(fwd(features, fold_and_pack_params(raw_c))["center_map"])
    want = reference_forward(features, raw_c)
    assert bool(jnp.allclose(got, want, atol=1e-3, rtol=2e-2)), float(jnp.max(jnp.abs(got - want)))

    print("KERNEL_OK")
</pallas_src>

<mosaic_0001>
module attributes {stable_mosaic.version = 11 : i64} {
  func.func @_head_kernel(%arg0: i32, %arg1: memref<1x336x16xbf16, #tpu.memory_space<vmem>>, %arg2: memref<272x1xf32, #tpu.memory_space<vmem>>, %arg3: memref<1x64xf32, #tpu.memory_space<vmem>>, %arg4: memref<144x64xbf16, #tpu.memory_space<vmem>>, %arg5: memref<1x64xf32, #tpu.memory_space<vmem>>, %arg6: memref<576x32xbf16, #tpu.memory_space<vmem>>, %arg7: memref<1x32xf32, #tpu.memory_space<vmem>>, %arg8: memref<9x1x32xf32, #tpu.memory_space<vmem>>, %arg9: memref<1x1xf32, #tpu.memory_space<vmem>>, %arg10: memref<1x272x1xf32, #tpu.memory_space<vmem>>, %arg11: memref<272x144xbf16, #tpu.memory_space<vmem>>, %arg12: memref<272x576xbf16, #tpu.memory_space<vmem>>, %arg13: memref<336x64xbf16, #tpu.memory_space<vmem>>, %arg14: memref<336x32xbf16, #tpu.memory_space<vmem>>) attributes {dimension_semantics = [#tpu.dimension_semantics<parallel>], iteration_bounds = array<i64: 2>, scalar_prefetch = 0 : i64, scratch_operands = 4 : i64, tpu.core_type = #tpu.core_type<tc>, window_params = [{transform_indices = @transform_0, window_bounds = array<i64: 1, 336, 16>}, {pipeline_mode = #tpu.pipeline_mode<synchronous>, transform_indices = @transform_1, window_bounds = array<i64: 272, 1>}, {pipeline_mode = #tpu.pipeline_mode<synchronous>, transform_indices = @transform_2, window_bounds = array<i64: 1, 64>}, {pipeline_mode = #tpu.pipeline_mode<synchronous>, transform_indices = @transform_3, window_bounds = array<i64: 144, 64>}, {pipeline_mode = #tpu.pipeline_mode<synchronous>, transform_indices = @transform_4, window_bounds = array<i64: 1, 64>}, {pipeline_mode = #tpu.pipeline_mode<synchronous>, transform_indices = @transform_5, window_bounds = array<i64: 576, 32>}, {pipeline_mode = #tpu.pipeline_mode<synchronous>, transform_indices = @transform_6, window_bounds = array<i64: 1, 32>}, {pipeline_mode = #tpu.pipeline_mode<synchronous>, transform_indices = @transform_7, window_bounds = array<i64: 9, 1, 32>}, {pipeline_mode = #tpu.pipeline_mode<synchronous>, transform_indices = @transform_8, window_bounds = array<i64: 1, 1>}, {transform_indices = @transform_9, window_bounds = array<i64: 1, 272, 1>}]} {
    %c0 = arith.constant 0 : index
    %c0_0 = arith.constant 0 : index
    %0 = vector.load %arg2[%c0, %c0_0] : memref<272x1xf32, #tpu.memory_space<vmem>>, vector<272x1xf32>
    %cst = arith.constant 0.000000e+00 : bf16
    %1 = vector.broadcast %cst : bf16 to vector<32x64xbf16>
    %c0_1 = arith.constant 0 : index
    %c0_2 = arith.constant 0 : index
    %2 = vector.load %arg13[%c0_1, %c0_2] : memref<336x64xbf16, #tpu.memory_space<vmem>>, vector<32x64xbf16>
    tpu.vector_store %arg13[%c0_1, %c0_2], %1 {strides = array<i32>} : memref<336x64xbf16, #tpu.memory_space<vmem>>, vector<32x64xbf16>,
    %cst_3 = arith.constant 0.000000e+00 : bf16
    %3 = vector.broadcast %cst_3 : bf16 to vector<32x64xbf16>
    %c304 = arith.constant 304 : index
    %c0_4 = arith.constant 0 : index
    %4 = vector.load %arg13[%c304, %c0_4] : memref<336x64xbf16, #tpu.memory_space<vmem>>, vector<32x64xbf16>
    tpu.vector_store %arg13[%c304, %c0_4], %3 {strides = array<i32>} : memref<336x64xbf16, #tpu.memory_space<vmem>>, vector<32x64xbf16>,
    %cst_5 = arith.constant 0.000000e+00 : bf16
    %5 = vector.broadcast %cst_5 : bf16 to vector<32x32xbf16>
    %c0_6 = arith.constant 0 : index
    %c0_7 = arith.constant 0 : index
    %6 = vector.load %arg14[%c0_6, %c0_7] : memref<336x32xbf16, #tpu.memory_space<vmem>>, vector<32x32xbf16>
    tpu.vector_store %arg14[%c0_6, %c0_7], %5 {strides = array<i32>} : memref<336x32xbf16, #tpu.memory_space<vmem>>, vector<32x32xbf16>,
    %cst_8 = arith.constant 0.000000e+00 : bf16
    %7 = vector.broadcast %cst_8 : bf16 to vector<32x32xbf16>
    %c304_9 = arith.constant 304 : index
    %c0_10 = arith.constant 0 : index
    %8 = vector.load %arg14[%c304_9, %c0_10] : memref<336x32xbf16, #tpu.memory_space<vmem>>, vector<32x32xbf16>
    tpu.vector_store %arg14[%c304_9, %c0_10], %7 {strides = array<i32>} : memref<336x32xbf16, #tpu.memory_space<vmem>>, vector<32x32xbf16>,
    %c0_11 = arith.constant 0 : index
    %c14 = arith.constant 14 : index
    %c0_12 = arith.constant 0 : index
    %9 = vector.load %arg1[%c0_11, %c14, %c0_12] : memref<1x336x16xbf16, #tpu.memory_space<vmem>>, vector<1x272x16xbf16>
    %10 = vector.shape_cast %9 : vector<1x272x16xbf16> to vector<272x16xbf16>
    %c0_13 = arith.constant 0 : index
    %c0_14 = arith.constant 0 : index
    %11 = vector.load %arg11[%c0_13, %c0_14] : memref<272x144xbf16, #tpu.memory_space<vmem>>, vector<272x16xbf16>
    tpu.vector_store %arg11[%c0_13, %c0_14], %10 {strides = array<i32>} : memref<272x144xbf16, #tpu.memory_space<vmem>>, vector<272x16xbf16>,
    %c0_15 = arith.constant 0 : index
    %c15 = arith.constant 15 : index
    %c0_16 = arith.constant 0 : index
    %12 = vector.load %arg1[%c0_15, %c15, %c0_16] : memref<1x336x16xbf16, #tpu.memory_space<vmem>>, vector<1x272x16xbf16>
    %13 = vector.shape_cast %12 : vector<1x272x16xbf16> to vector<272x16xbf16>
    %c0_17 = arith.constant 0 : index
    %c16 = arith.constant 16 : index
    %14 = vector.load %arg11[%c0_17, %c16] : memref<272x144xbf16, #tpu.memory_space<vmem>>, vector<272x16xbf16>
    tpu.vector_store %arg11[%c0_17, %c16], %13 {strides = array<i32>} : memref<272x144xbf16, #tpu.memory_space<vmem>>, vector<272x16xbf16>,
    %c0_18 = arith.constant 0 : index
    %c16_19 = arith.constant 16 : index
    %c0_20 = arith.constant 0 : index
    %15 = vector.load %arg1[%c0_18, %c16_19, %c0_20] : memref<1x336x16xbf16, #tpu.memory_space<vmem>>, vector<1x272x16xbf16>
    %16 = vector.shape_cast %15 : vector<1x272x16xbf16> to vector<272x16xbf16>
    %c0_21 = arith.constant 0 : index
    %c32 = arith.constant 32 : index
    %17 = vector.load %arg11[%c0_21, %c32] : memref<272x144xbf16, #tpu.memory_space<vmem>>, vector<272x16xbf16>
    tpu.vector_store %arg11[%c0_21, %c32], %16 {strides = array<i32>} : memref<272x144xbf16, #tpu.memory_space<vmem>>, vector<272x16xbf16>,
    %c0_22 = arith.constant 0 : index
    %c31 = arith.constant 31 : index
    %c0_23 = arith.constant 0 : index
    %18 = vector.load %arg1[%c0_22, %c31, %c0_23] : memref<1x336x16xbf16, #tpu.memory_space<vmem>>, vector<1x272x16xbf16>
    %19 = vector.shape_cast %18 : vector<1x272x16xbf16> to vector<272x16xbf16>
    %c0_24 = arith.constant 0 : index
    %c48 = arith.constant 48 : index
    %20 = vector.load %arg11[%c0_24, %c48] : memref<272x144xbf16, #tpu.memory_space<vmem>>, vector<272x16xbf16>
    tpu.vector_store %arg11[%c0_24, %c48], %19 {strides = array<i32>} : memref<272x144xbf16, #tpu.memory_space<vmem>>, vector<272x16xbf16>,
    %c0_25 = arith.constant 0 : index
    %c32_26 = arith.constant 32 : index
    %c0_27 = arith.constant 0 : index
    %21 = vector.load %arg1[%c0_25, %c32_26, %c0_27] : memref<1x336x16xbf16, #tpu.memory_space<vmem>>, vector<1x272x16xbf16>
    %22 = vector.shape_cast %21 : vector<1x272x16xbf16> to vector<272x16xbf16>
    %c0_28 = arith.constant 0 : index
    %c64 = arith.constant 64 : index
    %23 = vector.load %arg11[%c0_28, %c64] : memref<272x144xbf16, #tpu.memory_space<vmem>>, vector<272x16xbf16>
    tpu.vector_store %arg11[%c0_28, %c64], %22 {strides = array<i32>} : memref<272x144xbf16, #tpu.memory_space<vmem>>, vector<272x16xbf16>,
    %c0_29 = arith.constant 0 : index
    %c33 = arith.constant 33 : index
    %c0_30 = arith.constant 0 : index
    %24 = vector.load %arg1[%c0_29, %c33, %c0_30] : memref<1x336x16xbf16, #tpu.memory_space<vmem>>, vector<1x272x16xbf16>
    %25 = vector.shape_cast %24 : vector<1x272x16xbf16> to vector<272x16xbf16>
    %c0_31 = arith.constant 0 : index
    %c80 = arith.constant 80 : index
    %26 = vector.load %arg11[%c0_31, %c80] : memref<272x144xbf16, #tpu.memory_space<vmem>>, vector<272x16xbf16>
    tpu.vector_store %arg11[%c0_31, %c80], %25 {strides = array<i32>} : memref<272x144xbf16, #tpu.memory_space<vmem>>, vector<272x16xbf16>,
    %c0_32 = arith.constant 0 : index
    %c48_33 = arith.constant 48 : index
    %c0_34 = arith.constant 0 : index
    %27 = vector.load %arg1[%c0_32, %c48_33, %c0_34] : memref<1x336x16xbf16, #tpu.memory_space<vmem>>, vector<1x272x16xbf16>
    %28 = vector.shape_cast %27 : vector<1x272x16xbf16> to vector<272x16xbf16>
    %c0_35 = arith.constant 0 : index
    %c96 = arith.constant 96 : index
    %29 = vector.load %arg11[%c0_35, %c96] : memref<272x144xbf16, #tpu.memory_space<vmem>>, vector<272x16xbf16>
    tpu.vector_store %arg11[%c0_35, %c96], %28 {strides = array<i32>} : memref<272x144xbf16, #tpu.memory_space<vmem>>, vector<272x16xbf16>,
    %c0_36 = arith.constant 0 : index
    %c49 = arith.constant 49 : index
    %c0_37 = arith.constant 0 : index
    %30 = vector.load %arg1[%c0_36, %c49, %c0_37] : memref<1x336x16xbf16, #tpu.memory_space<vmem>>, vector<1x272x16xbf16>
    %31 = vector.shape_cast %30 : vector<1x272x16xbf16> to vector<272x16xbf16>
    %c0_38 = arith.constant 0 : index
    %c112 = arith.constant 112 : index
    %32 = vector.load %arg11[%c0_38, %c112] : memref<272x144xbf16, #tpu.memory_space<vmem>>, vector<272x16xbf16>
    tpu.vector_store %arg11[%c0_38, %c112], %31 {strides = array<i32>} : memref<272x144xbf16, #tpu.memory_space<vmem>>, vector<272x16xbf16>,
    %c0_39 = arith.constant 0 : index
    %c50 = arith.constant 50 : index
    %c0_40 = arith.constant 0 : index
    %33 = vector.load %arg1[%c0_39, %c50, %c0_40] : memref<1x336x16xbf16, #tpu.memory_space<vmem>>, vector<1x272x16xbf16>
    %34 = vector.shape_cast %33 : vector<1x272x16xbf16> to vector<272x16xbf16>
    %c0_41 = arith.constant 0 : index
    %c128 = arith.constant 128 : index
    %35 = vector.load %arg11[%c0_41, %c128] : memref<272x144xbf16, #tpu.memory_space<vmem>>, vector<272x16xbf16>
    tpu.vector_store %arg11[%c0_41, %c128], %34 {strides = array<i32>} : memref<272x144xbf16, #tpu.memory_space<vmem>>, vector<272x16xbf16>,
    %c0_42 = arith.constant 0 : index
    %c0_43 = arith.constant 0 : index
    %36 = vector.load %arg11[%c0_42, %c0_43] : memref<272x144xbf16, #tpu.memory_space<vmem>>, vector<272x144xbf16>
    %c0_44 = arith.constant 0 : index
    %c0_45 = arith.constant 0 : index
    %37 = vector.load %arg4[%c0_44, %c0_45] : memref<144x64xbf16, #tpu.memory_space<vmem>>, vector<144x64xbf16>
    %cst_46 = arith.constant dense<0.000000e+00> : vector<272x64xf32>
    %38 = tpu.matmul %36, %37, %cst_46 {dimension_numbers = #tpu.dot_dimension_numbers<[1], [0], [0], [1], [0, 0, 1, 1], [], []>} : vector<272x144xbf16>, vector<144x64xbf16>, vector<272x64xf32> -> vector<272x64xf32>
    %c0_47 = arith.constant 0 : index
    %c0_48 = arith.constant 0 : index
    %39 = vector.load %arg5[%c0_47, %c0_48] : memref<1x64xf32, #tpu.memory_space<vmem>>, vector<1x64xf32>
    %40 = vector.broadcast %39 : vector<1x64xf32> to vector<272x64xf32>
    %41 = arith.addf %38, %40 : vector<272x64xf32>
    %c0_49 = arith.constant 0 : index
    %c0_50 = arith.constant 0 : index
    %42 = vector.load %arg3[%c0_49, %c0_50] : memref<1x64xf32, #tpu.memory_space<vmem>>, vector<1x64xf32>
    %43 = vector.broadcast %42 : vector<1x64xf32> to vector<272x64xf32>
    %44 = arith.mulf %41, %43 : vector<272x64xf32>
    %45 = arith.maximumf %41, %44 : vector<272x64xf32>
    %46 = vector.broadcast %0 : vector<272x1xf32> to vector<272x64xf32>
    %47 = arith.mulf %45, %46 : vector<272x64xf32>
    %48 = arith.truncf %47 : vector<272x64xf32> to vector<272x64xbf16>
    %c32_51 = arith.constant 32 : index
    %c0_52 = arith.constant 0 : index
    %49 = vector.load %arg13[%c32_51, %c0_52] : memref<336x64xbf16, #tpu.memory_space<vmem>>, vector<272x64xbf16>
    tpu.vector_store %arg13[%c32_51, %c0_52], %48 {strides = array<i32>} : memref<336x64xbf16, #tpu.memory_space<vmem>>, vector<272x64xbf16>,
    %c14_53 = arith.constant 14 : index
    %c0_54 = arith.constant 0 : index
    %50 = vector.load %arg13[%c14_53, %c0_54] : memref<336x64xbf16, #tpu.memory_space<vmem>>, vector<272x64xbf16>
    %c0_55 = arith.constant 0 : index
    %c0_56 = arith.constant 0 : index
    %51 = vector.load %arg12[%c0_55, %c0_56] : memref<272x576xbf16, #tpu.memory_space<vmem>>, vector<272x64xbf16>
    tpu.vector_store %arg12[%c0_55, %c0_56], %50 {strides = array<i32>} : memref<272x576xbf16, #tpu.memory_space<vmem>>, vector<272x64xbf16>,
    %c15_57 = arith.constant 15 : index
    %c0_58 = arith.constant 0 : index
    %52 = vector.load %arg13[%c15_57, %c0_58] : memref<336x64xbf16, #tpu.memory_space<vmem>>, vector<272x64xbf16>
    %c0_59 = arith.constant 0 : index
    %c64_60 = arith.constant 64 : index
    %53 = vector.load %arg12[%c0_59, %c64_60] : memref<272x576xbf16, #tpu.memory_space<vmem>>, vector<272x64xbf16>
    tpu.vector_store %arg12[%c0_59, %c64_60], %52 {strides = array<i32>} : memref<272x576xbf16, #tpu.memory_space<vmem>>, vector<272x64xbf16>,
    %c16_61 = arith.constant 16 : index
    %c0_62 = arith.constant 0 : index
    %54 = vector.load %arg13[%c16_61, %c0_62] : memref<336x64xbf16, #tpu.memory_space<vmem>>, vector<272x64xbf16>
    %c0_63 = arith.constant 0 : index
    %c128_64 = arith.constant 128 : index
    %55 = vector.load %arg12[%c0_63, %c128_64] : memref<272x576xbf16, #tpu.memory_space<vmem>>, vector<272x64xbf16>
    tpu.vector_store %arg12[%c0_63, %c128_64], %54 {strides = array<i32>} : memref<272x576xbf16, #tpu.memory_space<vmem>>, vector<272x64xbf16>,
    %c31_65 = arith.constant 31 : index
    %c0_66 = arith.constant 0 : index
    %56 = vector.load %arg13[%c31_65, %c0_66] : memref<336x64xbf16, #tpu.memory_space<vmem>>, vector<272x64xbf16>
    %c0_67 = arith.constant 0 : index
    %c192 = arith.constant 192 : index
    %57 = vector.load %arg12[%c0_67, %c192] : memref<272x576xbf16, #tpu.memory_space<vmem>>, vector<272x64xbf16>
    tpu.vector_store %arg12[%c0_67, %c192], %56 {strides = array<i32>} : memref<272x576xbf16, #tpu.memory_space<vmem>>, vector<272x64xbf16>,
    %c32_68 = arith.constant 32 : index
    %c0_69 = arith.constant 0 : index
    %58 = vector.load %arg13[%c32_68, %c0_69] : memref<336x64xbf16, #tpu.memory_space<vmem>>, vector<272x64xbf16>
    %c0_70 = arith.constant 0 : index
    %c256 = arith.constant 256 : index
    %59 = vector.load %arg12[%c0_70, %c256] : memref<272x576xbf16, #tpu.memory_space<vmem>>, vector<272x64xbf16>
    tpu.vector_store %arg12[%c0_70, %c256], %58 {strides = array<i32>} : memref<272x576xbf16, #tpu.memory_space<vmem>>, vector<272x64xbf16>,
    %c33_71 = arith.constant 33 : index
    %c0_72 = arith.constant 0 : index
    %60 = vector.load %arg13[%c33_71, %c0_72] : memref<336x64xbf16, #tpu.memory_space<vmem>>, vector<272x64xbf16>
    %c0_73 = arith.constant 0 : index
    %c320 = arith.constant 320 : index
    %61 = vector.load %arg12[%c0_73, %c320] : memref<272x576xbf16, #tpu.memory_space<vmem>>, vector<272x64xbf16>
    tpu.vector_store %arg12[%c0_73, %c320], %60 {strides = array<i32>} : memref<272x576xbf16, #tpu.memory_space<vmem>>, vector<272x64xbf16>,
    %c48_74 = arith.constant 48 : index
    %c0_75 = arith.constant 0 : index
    %62 = vector.load %arg13[%c48_74, %c0_75] : memref<336x64xbf16, #tpu.memory_space<vmem>>, vector<272x64xbf16>
    %c0_76 = arith.constant 0 : index
    %c384 = arith.constant 384 : index
    %63 = vector.load %arg12[%c0_76, %c384] : memref<272x576xbf16, #tpu.memory_space<vmem>>, vector<272x64xbf16>
    tpu.vector_store %arg12[%c0_76, %c384], %62 {strides = array<i32>} : memref<272x576xbf16, #tpu.memory_space<vmem>>, vector<272x64xbf16>,
    %c49_77 = arith.constant 49 : index
    %c0_78 = arith.constant 0 : index
    %64 = vector.load %arg13[%c49_77, %c0_78] : memref<336x64xbf16, #tpu.memory_space<vmem>>, vector<272x64xbf16>
    %c0_79 = arith.constant 0 : index
    %c448 = arith.constant 448 : index
    %65 = vector.load %arg12[%c0_79, %c448] : memref<272x576xbf16, #tpu.memory_space<vmem>>, vector<272x64xbf16>
    tpu.vector_store %arg12[%c0_79, %c448], %64 {strides = array<i32>} : memref<272x576xbf16, #tpu.memory_space<vmem>>, vector<272x64xbf16>,
    %c50_80 = arith.constant 50 : index
    %c0_81 = arith.constant 0 : index
    %66 = vector.load %arg13[%c50_80, %c0_81] : memref<336x64xbf16, #tpu.memory_space<vmem>>, vector<272x64xbf16>
    %c0_82 = arith.constant 0 : index
    %c512 = arith.constant 512 : index
    %67 = vector.load %arg12[%c0_82, %c512] : memref<272x576xbf16, #tpu.memory_space<vmem>>, vector<272x64xbf16>
    tpu.vector_store %arg12[%c0_82, %c512], %66 {strides = array<i32>} : memref<272x576xbf16, #tpu.memory_space<vmem>>, vector<272x64xbf16>,
    %c0_83 = arith.constant 0 : index
    %c0_84 = arith.constant 0 : index
    %68 = vector.load %arg12[%c0_83, %c0_84] : memref<272x576xbf16, #tpu.memory_space<vmem>>, vector<272x576xbf16>
    %c0_85 = arith.constant 0 : index
    %c0_86 = arith.constant 0 : index
    %69 = vector.load %arg6[%c0_85, %c0_86] : memref<576x32xbf16, #tpu.memory_space<vmem>>, vector<576x32xbf16>
    %cst_87 = arith.constant dense<0.000000e+00> : vector<272x32xf32>
    %70 = tpu.matmul %68, %69, %cst_87 {dimension_numbers = #tpu.dot_dimension_numbers<[1], [0], [0], [1], [0, 0, 1, 1], [], []>} : vector<272x576xbf16>, vector<576x32xbf16>, vector<272x32xf32> -> vector<272x32xf32>
    %c0_88 = arith.constant 0 : index
    %c0_89 = arith.constant 0 : index
    %71 = vector.load %arg7[%c0_88, %c0_89] : memref<1x32xf32, #tpu.memory_space<vmem>>, vector<1x32xf32>
    %72 = vector.broadcast %71 : vector<1x32xf32> to vector<272x32xf32>
    %73 = arith.addf %70, %72 : vector<272x32xf32>
    %cst_90 = arith.constant 0.000000e+00 : f32
    %74 = vector.broadcast %cst_90 : f32 to vector<272x32xf32>
    %75 = arith.maximumf %73, %74 : vector<272x32xf32>
    %76 = vector.broadcast %0 : vector<272x1xf32> to vector<272x32xf32>
    %77 = arith.mulf %75, %76 : vector<272x32xf32>
    %78 = arith.truncf %77 : vector<272x32xf32> to vector<272x32xbf16>
    %c32_91 = arith.constant 32 : index
    %c0_92 = arith.constant 0 : index
    %79 = vector.load %arg14[%c32_91, %c0_92] : memref<336x32xbf16, #tpu.memory_space<vmem>>, vector<272x32xbf16>
    tpu.vector_store %arg14[%c32_91, %c0_92], %78 {strides = array<i32>} : memref<336x32xbf16, #tpu.memory_space<vmem>>, vector<272x32xbf16>,
    %cst_93 = arith.constant 0.000000e+00 : f32
    %80 = vector.broadcast %cst_93 : f32 to vector<272x32xf32>
    %c14_94 = arith.constant 14 : index
    %c0_95 = arith.constant 0 : index
    %81 = vector.load %arg14[%c14_94, %c0_95] : memref<336x32xbf16, #tpu.memory_space<vmem>>, vector<272x32xbf16>
    %82 = arith.extf %81 : vector<272x32xbf16> to vector<272x32xf32>
    %c0_96 = arith.constant 0 : index
    %c0_97 = arith.constant 0 : index
    %c0_98 = arith.constant 0 : index
    %83 = vector.load %arg8[%c0_96, %c0_97, %c0_98] : memref<9x1x32xf32, #tpu.memory_space<vmem>>, vector<1x1x32xf32>
    %84 = vector.shape_cast %83 : vector<1x1x32xf32> to vector<1x32xf32>
    %85 = vector.broadcast %84 : vector<1x32xf32> to vector<272x32xf32>
    %86 = arith.mulf %82, %85 : vector<272x32xf32>
    %87 = arith.addf %80, %86 : vector<272x32xf32>
    %c15_99 = arith.constant 15 : index
    %c0_100 = arith.constant 0 : index
    %88 = vector.load %arg14[%c15_99, %c0_100] : memref<336x32xbf16, #tpu.memory_space<vmem>>, vector<272x32xbf16>
    %89 = arith.extf %88 : vector<272x32xbf16> to vector<272x32xf32>
    %c1 = arith.constant 1 : index
    %c0_101 = arith.constant 0 : index
    %c0_102 = arith.constant 0 : index
    %90 = vector.load %arg8[%c1, %c0_101, %c0_102] : memref<9x1x32xf32, #tpu.memory_space<vmem>>, vector<1x1x32xf32>
    %91 = vector.shape_cast %90 : vector<1x1x32xf32> to vector<1x32xf32>
    %92 = vector.broadcast %91 : vector<1x32xf32> to vector<272x32xf32>
    %93 = arith.mulf %89, %92 : vector<272x32xf32>
    %94 = arith.addf %87, %93 : vector<272x32xf32>
    %c16_103 = arith.constant 16 : index
    %c0_104 = arith.constant 0 : index
    %95 = vector.load %arg14[%c16_103, %c0_104] : memref<336x32xbf16, #tpu.memory_space<vmem>>, vector<272x32xbf16>
    %96 = arith.extf %95 : vector<272x32xbf16> to vector<272x32xf32>
    %c2 = arith.constant 2 : index
    %c0_105 = arith.constant 0 : index
    %c0_106 = arith.constant 0 : index
    %97 = vector.load %arg8[%c2, %c0_105, %c0_106] : memref<9x1x32xf32, #tpu.memory_space<vmem>>, vector<1x1x32xf32>
    %98 = vector.shape_cast %97 : vector<1x1x32xf32> to vector<1x32xf32>
    %99 = vector.broadcast %98 : vector<1x32xf32> to vector<272x32xf32>
    %100 = arith.mulf %96, %99 : vector<272x32xf32>
    %101 = arith.addf %94, %100 : vector<272x32xf32>
    %c31_107 = arith.constant 31 : index
    %c0_108 = arith.constant 0 : index
    %102 = vector.load %arg14[%c31_107, %c0_108] : memref<336x32xbf16, #tpu.memory_space<vmem>>, vector<272x32xbf16>
    %103 = arith.extf %102 : vector<272x32xbf16> to vector<272x32xf32>
    %c3 = arith.constant 3 : index
    %c0_109 = arith.constant 0 : index
    %c0_110 = arith.constant 0 : index
    %104 = vector.load %arg8[%c3, %c0_109, %c0_110] : memref<9x1x32xf32, #tpu.memory_space<vmem>>, vector<1x1x32xf32>
    %105 = vector.shape_cast %104 : vector<1x1x32xf32> to vector<1x32xf32>
    %106 = vector.broadcast %105 : vector<1x32xf32> to vector<272x32xf32>
    %107 = arith.mulf %103, %106 : vector<272x32xf32>
    %108 = arith.addf %101, %107 : vector<272x32xf32>
    %c32_111 = arith.constant 32 : index
    %c0_112 = arith.constant 0 : index
    %109 = vector.load %arg14[%c32_111, %c0_112] : memref<336x32xbf16, #tpu.memory_space<vmem>>, vector<272x32xbf16>
    %110 = arith.extf %109 : vector<272x32xbf16> to vector<272x32xf32>
    %c4 = arith.constant 4 : index
    %c0_113 = arith.constant 0 : index
    %c0_114 = arith.constant 0 : index
    %111 = vector.load %arg8[%c4, %c0_113, %c0_114] : memref<9x1x32xf32, #tpu.memory_space<vmem>>, vector<1x1x32xf32>
    %112 = vector.shape_cast %111 : vector<1x1x32xf32> to vector<1x32xf32>
    %113 = vector.broadcast %112 : vector<1x32xf32> to vector<272x32xf32>
    %114 = arith.mulf %110, %113 : vector<272x32xf32>
    %115 = arith.addf %108, %114 : vector<272x32xf32>
    %c33_115 = arith.constant 33 : index
    %c0_116 = arith.constant 0 : index
    %116 = vector.load %arg14[%c33_115, %c0_116] : memref<336x32xbf16, #tpu.memory_space<vmem>>, vector<272x32xbf16>
    %117 = arith.extf %116 : vector<272x32xbf16> to vector<272x32xf32>
    %c5 = arith.constant 5 : index
    %c0_117 = arith.constant 0 : index
    %c0_118 = arith.constant 0 : index
    %118 = vector.load %arg8[%c5, %c0_117, %c0_118] : memref<9x1x32xf32, #tpu.memory_space<vmem>>, vector<1x1x32xf32>
    %119 = vector.shape_cast %118 : vector<1x1x32xf32> to vector<1x32xf32>
    %120 = vector.broadcast %119 : vector<1x32xf32> to vector<272x32xf32>
    %121 = arith.mulf %117, %120 : vector<272x32xf32>
    %122 = arith.addf %115, %121 : vector<272x32xf32>
    %c48_119 = arith.constant 48 : index
    %c0_120 = arith.constant 0 : index
    %123 = vector.load %arg14[%c48_119, %c0_120] : memref<336x32xbf16, #tpu.memory_space<vmem>>, vector<272x32xbf16>
    %124 = arith.extf %123 : vector<272x32xbf16> to vector<272x32xf32>
    %c6 = arith.constant 6 : index
    %c0_121 = arith.constant 0 : index
    %c0_122 = arith.constant 0 : index
    %125 = vector.load %arg8[%c6, %c0_121, %c0_122] : memref<9x1x32xf32, #tpu.memory_space<vmem>>, vector<1x1x32xf32>
    %126 = vector.shape_cast %125 : vector<1x1x32xf32> to vector<1x32xf32>
    %127 = vector.broadcast %126 : vector<1x32xf32> to vector<272x32xf32>
    %128 = arith.mulf %124, %127 : vector<272x32xf32>
    %129 = arith.addf %122, %128 : vector<272x32xf32>
    %c49_123 = arith.constant 49 : index
    %c0_124 = arith.constant 0 : index
    %130 = vector.load %arg14[%c49_123, %c0_124] : memref<336x32xbf16, #tpu.memory_space<vmem>>, vector<272x32xbf16>
    %131 = arith.extf %130 : vector<272x32xbf16> to vector<272x32xf32>
    %c7 = arith.constant 7 : index
    %c0_125 = arith.constant 0 : index
    %c0_126 = arith.constant 0 : index
    %132 = vector.load %arg8[%c7, %c0_125, %c0_126] : memref<9x1x32xf32, #tpu.memory_space<vmem>>, vector<1x1x32xf32>
    %133 = vector.shape_cast %132 : vector<1x1x32xf32> to vector<1x32xf32>
    %134 = vector.broadcast %133 : vector<1x32xf32> to vector<272x32xf32>
    %135 = arith.mulf %131, %134 : vector<272x32xf32>
    %136 = arith.addf %129, %135 : vector<272x32xf32>
    %c50_127 = arith.constant 50 : index
    %c0_128 = arith.constant 0 : index
    %137 = vector.load %arg14[%c50_127, %c0_128] : memref<336x32xbf16, #tpu.memory_space<vmem>>, vector<272x32xbf16>
    %138 = arith.extf %137 : vector<272x32xbf16> to vector<272x32xf32>
    %c8 = arith.constant 8 : index
    %c0_129 = arith.constant 0 : index
    %c0_130 = arith.constant 0 : index
    %139 = vector.load %arg8[%c8, %c0_129, %c0_130] : memref<9x1x32xf32, #tpu.memory_space<vmem>>, vector<1x1x32xf32>
    %140 = vector.shape_cast %139 : vector<1x1x32xf32> to vector<1x32xf32>
    %141 = vector.broadcast %140 : vector<1x32xf32> to vector<272x32xf32>
    %142 = arith.mulf %138, %141 : vector<272x32xf32>
    %143 = arith.addf %136, %142 : vector<272x32xf32>
    %cst_131 = arith.constant dense<0.000000e+00> : vector<272xf32>
    %144 = vector.multi_reduction <add>, %143, %cst_131 [1] : vector<272x32xf32> to vector<272xf32>
    %145 = vector.shape_cast %144 : vector<272xf32> to vector<272x1xf32>
    %c0_132 = arith.constant 0 : index
    %c0_133 = arith.constant 0 : index
    %146 = vector.load %arg9[%c0_132, %c0_133] : memref<1x1xf32, #tpu.memory_space<vmem>>, vector<1x1xf32>
    %147 = vector.broadcast %146 : vector<1x1xf32> to vector<272x1xf32>
    %148 = arith.addf %145, %147 : vector<272x1xf32>
    %149 = arith.negf %148 : vector<272x1xf32>
    %150 = math.exp %149 : vector<272x1xf32>
    %cst_134 = arith.constant 1.000000e+00 : f32
    %151 = vector.broadcast %cst_134 : f32 to vector<272x1xf32>
    %152 = arith.addf %151, %150 : vector<272x1xf32>
    %153 = arith.divf %151, %152 : vector<272x1xf32>
    %cst_135 = arith.constant 9.99999974E-5 : f32
    %cst_136 = arith.constant 0.999899983 : f32
    %154 = vector.broadcast %cst_135 : f32 to vector<272x1xf32>
    %155 = arith.maximumf %154, %153 : vector<272x1xf32>
    %156 = vector.broadcast %cst_136 : f32 to vector<272x1xf32>
    %157 = arith.minimumf %156, %155 : vector<272x1xf32>
    %c0_137 = arith.constant 0 : index
    %c0_138 = arith.constant 0 : index
    %c0_139 = arith.constant 0 : index
    %158 = vector.load %arg10[%c0_137, %c0_138, %c0_139] : memref<1x272x1xf32, #tpu.memory_space<vmem>>, vector<1x272x1xf32>
    %159 = vector.shape_cast %158 : vector<1x272x1xf32> to vector<272x1xf32>
    %160 = vector.shape_cast %157 : vector<272x1xf32> to vector<1x272x1xf32>
    tpu.vector_store %arg10[%c0_137, %c0_138, %c0_139], %160 {strides = array<i32>} : memref<1x272x1xf32, #tpu.memory_space<vmem>>, vector<1x272x1xf32>,
    return
  }
  func.func @transform_0(%arg0: i32) -> (i32, i32, i32) {
    %c0_i32 = arith.constant 0 : i32
    %c0_i32_0 = arith.constant 0 : i32
    %c0_i32_1 = arith.constant 0 : i32
    return %arg0, %c0_i32, %c0_i32_0 : i32, i32, i32
  }
  func.func @transform_1(%arg0: i32) -> (i32, i32) {
    %c0_i32 = arith.constant 0 : i32
    %c0_i32_0 = arith.constant 0 : i32
    %c0_i32_1 = arith.constant 0 : i32
    return %c0_i32, %c0_i32_0 : i32, i32
  }
  func.func @transform_2(%arg0: i32) -> (i32, i32) {
    %c0_i32 = arith.constant 0 : i32
    %c0_i32_0 = arith.constant 0 : i32
    %c0_i32_1 = arith.constant 0 : i32
    return %c0_i32, %c0_i32_0 : i32, i32
  }
  func.func @transform_3(%arg0: i32) -> (i32, i32) {
    %c0_i32 = arith.constant 0 : i32
    %c0_i32_0 = arith.constant 0 : i32
    %c0_i32_1 = arith.constant 0 : i32
    return %c0_i32, %c0_i32_0 : i32, i32
  }
  func.func @transform_4(%arg0: i32) -> (i32, i32) {
    %c0_i32 = arith.constant 0 : i32
    %c0_i32_0 = arith.constant 0 : i32
    %c0_i32_1 = arith.constant 0 : i32
    return %c0_i32, %c0_i32_0 : i32, i32
  }
  func.func @transform_5(%arg0: i32) -> (i32, i32) {
    %c0_i32 = arith.constant 0 : i32
    %c0_i32_0 = arith.constant 0 : i32
    %c0_i32_1 = arith.constant 0 : i32
    return %c0_i32, %c0_i32_0 : i32, i32
  }
  func.func @transform_6(%arg0: i32) -> (i32, i32) {
    %c0_i32 = arith.constant 0 : i32
    %c0_i32_0 = arith.constant 0 : i32
    %c0_i32_1 = arith.constant 0 : i32
    return %c0_i32, %c0_i32_0 : i32, i32
  }
  func.func @transform_7(%arg0: i32) -> (i32, i32, i32) {
    %c0_i32 = arith.constant 0 : i32
    %c0_i32_0 = arith.constant 0 : i32
    %c0_i32_1 = arith.constant 0 : i32
    %c0_i32_2 = arith.constant 0 : i32
    return %c0_i32, %c0_i32_0, %c0_i32_1 : i32, i32, i32
  }
  func.func @transform_8(%arg0: i32) -> (i32, i32) {
    %c0_i32 = arith.constant 0 : i32
    %c0_i32_0 = arith.constant 0 : i32
    %c0_i32_1 = arith.constant 0 : i32
    return %c0_i32, %c0_i32_0 : i32, i32
  }
  func.func @transform_9(%arg0: i32) -> (i32, i32, i32) {
    %c0_i32 = arith.constant 0 : i32
    %c0_i32_0 = arith.constant 0 : i32
    %c0_i32_1 = arith.constant 0 : i32
    return %arg0, %c0_i32, %c0_i32_0 : i32, i32, i32
  }
}

</mosaic_0001>

<bundles_post_ra>
// kernel: multi_head_wrapper_forward.1
= control target key start
LH: loop header
LB: loop body
LE: loop exit
PB: predicated region body
PF: predicated region fallthrough
CT: control target
= control target key end

     0   :  { %s9174_s11 = smov 0   ;;  %s13903_s0 = inlined_call_operand.vmem [shape: bf16[2,336,16], index: 0, kind: input, shape index: {}]   ;;  %s13904_s1 = inlined_call_operand.vmem [shape: f32[272,1], index: 1, kind: input, shape index: {}]   ;;  %s13905_s2 = inlined_call_operand.vmem [shape: f32[1,64], index: 2, kind: input, shape index: {}]   ;;  %s13906_s3 = inlined_call_operand.vmem [shape: bf16[144,64], index: 3, kind: input, shape index: {}]   ;;  %s13907_s4 = inlined_call_operand.vmem [shape: f32[1,64], index: 4, kind: input, shape index: {}]   ;;  %s13908_s5 = inlined_call_operand.vmem [shape: bf16[576,32], index: 5, kind: input, shape index: {}]   ;;  %s13909_s6 = inlined_call_operand.vmem [shape: f32[1,32], index: 6, kind: input, shape index: {}]   ;;  %s13910_s7 = inlined_call_operand.vmem [shape: f32[9,1,32], index: 7, kind: input, shape index: {}]   ;;  %s13911_s8 = inlined_call_operand.<no memory space> [shape: f32[1,1], index: 8, kind: input, shape index: {}]   ;;  %s13912_s9 = inlined_call_operand.vmem [shape: f32[2,272,1], index: 9, kind: output, shape index: {}]  }
   0x1   :  { %v14_v0 = vstv %s13911_s8 }
   0x2   :  { %15 = vst [vmem:[#allocation6] sm:$0x1] %v14_v0 }
   0x3 LB: > { %s8131_s12 = sadd.s32 4294967295, %s9109_s11   ;;  %p8135_p0 = scmp.ge.s32.totalorder %s9109_s11, 1  ;;  %s9109_s11 = sphi %s9174_s11, %s21_s11  }
   0x4   : > { %p289_p1 = scmp.lt.s32.totalorder %s9109_s11, 3 }
   0x6   : > { %p290_p2 = pnand %p8135_p0, %p289_p1 }
   0x8   : > { %293 = sbr.rel (%p290_p2) target bundleno = 1559 (0x617), region = 56 }
   0xf   : > { %p325_p3 = scmp.lt.s32.totalorder %s8131_s12, 1  ;;  %v8777_v1 = vld [vmem:[%s13906_s3] sm:$0xff]   ;;  %v13915_v2 = vmov 0   ;;  %v8780_v3 = vld [vmem:[%s13906_s3 + $0x8] sm:$0xff]   ;;  %v8783_v4 = vld [vmem:[%s13906_s3 + $0x10] sm:$0xff]   ;;  %s9112_s22 = smov 64  }
  0x10   : > { %2867 = vmatprep.subr.bf16.mxu0 %v13915_v2  ;;  %8719 = vset.pattern.permute.xlu1 %v13915_v2  ;;  %vm697_vm0 = vsmask.f32 4352  ;;  %v8786_v8 = vld [vmem:[%s13906_s3 + $0x18] sm:$0xff]   ;;  %s9113_s25 = smov 32   ;;  %s9114_s26 = smov 96   ;;  %v8789_v12 = vld [vmem:[%s13906_s3 + $0x20] sm:$0xff]  }
  0x11   : > { %s14230_s12 = smov (!%p325_p3, %s8131_s12), 1  ;;  %2868 = vmatpush1.bf16.msra.mxu0 %v8777_v1  ;;  %8720 = vset.pattern.permute.xlu0 %v13915_v2  ;;  %vm1780_vm1 = vsmask.f32 7424  ;;  %s9115_s29 = smov 48   ;;  %vm503_vm2 = vcmask 1044480   ;;  %vm556_vm3 = vcmask 130048  }
  0x12   : > { %s8699_s16 = smul.u32 168, %s14230_s12  ;;  %2869 = vmatprep.subr.bf16.mxu0 %v13915_v2  ;;  %8531 = vmatprep.subr.bf16.mxu1 %v13915_v2  ;;  %s9116_s30 = smov 16   ;;  %vm2633_vm4 = vcmask 1046528   ;;  %vm910_vm5 = vcmask 261248   ;;  %vm1098_vm6 = vcmask 392448   ;;  %vm1451_vm7 = vcmask 523648  }
  0x13   : > { %s9117_s10 = smov 80   ;;  %s9118_s13 = smov 112   ;;  %vm1639_vm8 = vcmask 654848   ;;  %vm1972_vm9 = vcmask 786048   ;;  %vm2160_vm10 = vcmask 917248   ;;  %vm2492_vm11 = vcmask 1048448  }
  0x14   : > { %s9202_s21 = scalar_lea.vmem %s13903_s0, %s8699_s16  ;;  %vm370_vm12 = vcmask 523264   ;;  %vm3385_vm13 = vcmask 1040384   ;;  %vm3473_vm14 = vsmask.f32 256  ;;  %vm3665_vm15 = vcmask 1048064  }
  0x15   : > { %v8721_v5 = vld [vmem:[%s9202_s21 + $0x10] sm:$0xff]   ;;  %2870 = vmatpush1.bf16.msra.mxu0 %v8780_v3  ;;  %v8722_v6 = vld [vmem:[%s9202_s21 + $0x8] sm:$0xff]   ;;  %v8723_v7 = vld [vmem:[%s9202_s21 + $0x18] sm:$0xff]   ;;  %371 = vst.msk [vmem:[#allocation4] sm:$0xff] %vm370_vm12, %v13915_v2 }
  0x16   : > { %2871 = vmatprep.subr.bf16.mxu0 %v13915_v2  ;;  %1588 = vrot.lane.b32.xlu1 %v8721_v5, %s9112_s22  ;;  %v8724_v9 = vld [vmem:[%s9202_s21 + $0x10] sm:$0xff]   ;;  %v8727_v17 = vld [vmem:[%s9202_s21 + $0x4] sm:$0xf8]   ;;  %v8731_v38 = vld [vmem:[%s9202_s21 + $0x18] sm:$0xff]   ;;  %372 = vst.msk [vmem:[#allocation4 + $0x8] sm:$0xff] %vm370_vm12, %v13915_v2 }
  0x17   : > { %1047 = vrot.lane.b32.xlu0 %v8722_v6, %s9113_s25  ;;  %v8725_v10 = vld [vmem:[%s9202_s21 + $0xc] sm:$0xf8]   ;;  %v8726_v11 = vld [vmem:[%s9202_s21 + $0x14] sm:$0xff]   ;;  %v699_v23 = vshrl.u32 %v8727_v17, 16  ;;  %v702_v24 = vshll.u32 %v8727_v17, 16  ;;  %v8732_v43 = vld [vmem:[%s9202_s21 + $0x1c] sm:$0xff]  }
  0x18   : > { %v1240_v13 = vshrl.u32 %v8725_v10, 16  ;;  %v1243_v14 = vshll.u32 %v8725_v10, 16  ;;  %v1248_v15 = vshrl.u32 %v8726_v11, 16  ;;  %v1251_v16 = vshll.u32 %v8726_v11, 16  ;;  %v8728_v18 = vld [vmem:[%s9202_s21 + $0xc] sm:$0xff]   ;;  %v8729_v27 = vld [vmem:[%s9202_s21 + $0x14] sm:$0xff]  }
  0x19   : > { %2872 = vmatpush1.bf16.msra.mxu0 %v8783_v4  ;;  %v707_v25 = vshrl.u32 %v8728_v18, 16  ;;  %v710_v26 = vshll.u32 %v8728_v18, 16  ;;  %v8730_v28 = vld [vmem:[%s9202_s21 + $0x10] sm:$0xff]   ;;  %v701_v31 = vrot.slane %v699_v23, 3  ;;  %v704_v32 = vrot.slane %v702_v24, 4  ;;  %v8733_v47 = vld [vmem:[%s9202_s21 + $0x18] sm:$0xff]  }
  0x1a   : > { %2873 = vmatprep.subr.bf16.mxu0 %v13915_v2  ;;  %2109 = vrot.lane.b32.xlu1 %v8723_v7, %s9114_s26  ;;  %v1242_v19 = vrot.slane %v1240_v13, 3  ;;  %v1245_v20 = vrot.slane %v1243_v14, 4  ;;  %v1250_v21 = vrot.slane %v1248_v15, 3  ;;  %v1253_v22 = vrot.slane %v1251_v16, 4  ;;  %v8734_v52 = vld [vmem:[%s9202_s21 + $0x20] sm:$0xff]   ;;  %v9242_v3 = vld [vmem:[%s9202_s21 + $0x28] sm:$0xff]  }
  0x1b   : > { %1049 = vrot.lane.b32.xlu0 %v8724_v9, %s9113_s25  ;;  %v709_v33 = vrot.slane %v707_v25, 3  ;;  %v712_v34 = vrot.slane %v710_v26, 4  ;;  %v716_v36 = vshrl.u32 %v8729_v27, 16  ;;  %v719_v37 = vshll.u32 %v8729_v27, 16  ;;  %v9237_v57 = vld [vmem:[%s9202_s21 + $0x20] sm:$0xff]   ;;  %v8736_v16 = vld [vmem:[%s9202_s21 + $0x18] sm:$0xff]  }
  0x1c   : > { %v1246_v29 = vor.u32 %v1245_v20, %v1242_v19  ;;  %v1254_v30 = vor.u32 %v1253_v22, %v1250_v21  ;;  %v1782_v39 = vshrl.u32 %v8730_v28, 16  ;;  %v705_v40 = vor.u32 %v704_v32, %v701_v31  ;;  %v8740_v14 = vld [vmem:[%s9202_s21 + $0x1c] sm:$0xff]   ;;  %v8742_v21 = vld [vmem:[%s9202_s21 + $0x24] sm:$0xff]   ;;  %373 = vst.msk [vmem:[#allocation4 + $0x98] sm:$0xff] %vm370_vm12, %v13915_v2  ;;  %374 = vst.msk [vmem:[#allocation4 + $0xa0] sm:$0xff] %vm370_vm12, %v13915_v2 }
  0x1d   : > { %2874 = vmatpush1.bf16.msra.mxu0 %v8786_v8  ;;  %v713_v41 = vor.u32 %v712_v34, %v709_v33  ;;  %v1784_v42 = vshll.u32 %v8730_v28, 16  ;;  %v718_v44 = vrot.slane %v716_v36, 3  ;;  %v721_v45 = vrot.slane %v719_v37, 4  ;;  %v8738_v22 = vld [vmem:[%s9202_s21 + $0x20] sm:$0xff]   ;;  %v8744_v25 = vld [vmem:[%s9202_s21 + $0x28] sm:$0xff]   ;;  %v8739_v34 = vld [vmem:[%s9202_s21 + $0x18] sm:$0xff]  }
  0x1e   : > { %2875 = vmatprep.subr.bf16.mxu0 %v13915_v2  ;;  %v1255_v35 = vsel %vm697_vm0, %v1246_v29, %v1254_v30  ;;  %v1789_v46 = vshll.u32 %v8731_v38, 16  ;;  %v1257_v50 = vshrl.u32 %v8732_v43, 16  ;;  %v1260_v51 = vshll.u32 %v8732_v43, 16  ;;  %v8747_v33 = vld [vmem:[%s9202_s21 + $0x2c] sm:$0xff]  }
  0x1f   : > { %1400 = vrot.lane.b32.xlu1 %v1255_v35, %s9115_s29  ;;  %v714_v48 = vsel %vm697_vm0, %v705_v40, %v713_v41  ;;  %v1786_v49 = vrot.slane %v1784_v42, 1  ;;  %v722_v53 = vor.u32 %v721_v45, %v718_v44  ;;  %v2302_v55 = vshrl.u32 %v8733_v47, 16  ;;  %v8741_v42 = vld [vmem:[%s9202_s21 + $0x20] sm:$0xff]  }
  0x20   : > { %859 = vrot.lane.b32.xlu0 %v714_v48, %s9116_s30  ;;  %v1791_v54 = vrot.slane %v1789_v46, 1  ;;  %v2304_v56 = vshll.u32 %v8733_v47, 16  ;;  %v1259_v59 = vrot.slane %v1257_v50, 3  ;;  %v1262_v60 = vrot.slane %v1260_v51, 4 }
  0x21   : > { %2876 = vmatpush1.bf16.msra.mxu0 %v8789_v12  ;;  %v1787_v58 = vor.u32 %v1786_v49, %v1782_v39  ;;  %v2309_v61 = vshll.u32 %v8734_v52, 16  ;;  %v723_v62 = vsel %vm697_vm0, %v713_v41, %v722_v53  ;;  %v1793_v0 = vshrl.u32 %v8731_v38, 16  ;;  %v8746_v41 = vld [vmem:[%s9202_s21 + $0x30] sm:$0xff]  }
  0x22   : > { %2877 = vmatprep.subr.bf16.mxu0 %v13915_v2  ;;  %v2306_v63 = vrot.slane %v2304_v56, 1  ;;  %v1797_v1 = vshll.u32 %v9237_v57, 16  ;;  %v1263_v5 = vor.u32 %v1262_v60, %v1259_v59  ;;  %v2313_v7 = vshrl.u32 %v8734_v52, 16  ;;  %v9275_v52 = vld [vmem:[%s9202_s21 + $0x30] sm:$0xff]  }
  0x23   : > { %861 = vrot.lane.b32.xlu1 %v723_v62, %s9116_s30  ;;  %v1792_v4 = vsel %vm1780_vm1, %v1787_v58, %v1791_v54  ;;  %v2311_v6 = vrot.slane %v2309_v61, 1  ;;  %v1795_v9 = vor.u32 %v1793_v0, %v1791_v54  ;;  %v2317_v11 = vshll.u32 %v9242_v3, 16  ;;  %v9283_v61 = vld [vmem:[%s9202_s21 + $0x38] sm:$0xff]  }
  0x24   : > { %1921 = vrot.lane.b32.xlu0 %v1792_v4, %s9117_s10  ;;  %v2307_v8 = vor.u32 %v2306_v63, %v2302_v55  ;;  %v1799_v10 = vrot.slane %v1797_v1, 1  ;;  %v1264_v12 = vsel %vm697_vm0, %v1254_v30, %v1263_v5  ;;  %v725_v19 = vshrl.u32 %v8740_v14, 16  ;;  %v8745_v30 = vld [vmem:[%s9202_s21 + $0x24] sm:$0xff]   ;;  %v8754_v1 = vld [vmem:[%s9202_s21 + $0x2c] sm:$0xff]  }
  0x25   : > { %v2315_v17 = vor.u32 %v2313_v7, %v2311_v6  ;;  %v2319_v18 = vrot.slane %v2317_v11, 1  ;;  %v728_v20 = vshll.u32 %v8740_v14, 16  ;;  %v1266_v27 = vshrl.u32 %v8742_v21, 16  ;;  %v8748_v4 = vld [vmem:[%s9202_s21 + $0x20] sm:$0xff]  }
  0x26   : > { %v2312_v13 = vsel %vm1780_vm1, %v2307_v8, %v2311_v6  ;;  %v1800_v15 = vsel %vm1780_vm1, %v1795_v9, %v1799_v10  ;;  %v727_v23 = vrot.slane %v725_v19, 3  ;;  %v1269_v28 = vshll.u32 %v8742_v21, 16  ;;  %v8759_v21 = vld [vmem:[%s9202_s21 + $0x34] sm:$0xff]  }
  0x27   : > { %1402 = vrot.lane.b32.xlu1 %v1264_v12, %s9115_s29  ;;  %v730_v24 = vrot.slane %v728_v20, 4  ;;  %v2320_v26 = vsel %vm1780_vm1, %v2315_v17, %v2319_v18  ;;  %v1268_v31 = vrot.slane %v1266_v27, 3  ;;  %v734_v35 = vshrl.u32 %v8745_v30, 16  ;;  %v8756_v12 = vld [vmem:[%s9202_s21 + $0x34] sm:$0xff]  }
  0x28   : > { %2441 = vrot.lane.b32.xlu0 %v2312_v13, %s9118_s13  ;;  %v1271_v32 = vrot.slane %v1269_v28, 4  ;;  %v737_v36 = vshll.u32 %v8745_v30, 16  ;;  %v1801_v37 = vshrl.u32 %v9237_v57, 16  ;;  %v1805_v40 = vshll.u32 %v8744_v25, 16  ;;  %v8750_v13 = vld [vmem:[%s9202_s21 + $0x28] sm:$0xff]   ;;  %v8761_v30 = vld [vmem:[%s9202_s21 + $0x3c] sm:$0xff]  }
  0x29   : > { %v731_v29 = vor.u32 %v730_v24, %v727_v23  ;;  %v1275_v43 = vshrl.u32 %v8747_v33, 16  ;;  %v1278_v44 = vshll.u32 %v8747_v33, 16  ;;  %v736_v45 = vrot.slane %v734_v35, 3  ;;  %v8758_v24 = vld [vmem:[%s9202_s21 + $0x38] sm:$0xff]   ;;  %v8753_v28 = vld [vmem:[%s9202_s21 + $0x28] sm:$0xff]  }
  0x2a   : > { %v1272_v39 = vor.u32 %v1271_v32, %v1268_v31  ;;  %v739_v46 = vrot.slane %v737_v36, 4  ;;  %v1803_v47 = vor.u32 %v1801_v37, %v1799_v10  ;;  %v1807_v49 = vrot.slane %v1805_v40, 1  ;;  %v8760_v36 = vld [vmem:[%s9202_s21 + $0x40] sm:$0xff]   ;;  %v8755_v37 = vld [vmem:[%s9202_s21 + $0x30] sm:$0xff]  }
  0x2b   : > { %1923 = vrot.lane.b32.xlu1 %v1800_v15, %s9117_s10  ;;  %v732_v38 = vsel %vm697_vm0, %v722_v53, %v731_v29  ;;  %v2321_v50 = vshrl.u32 %v9242_v3, 16  ;;  %v2325_v51 = vshll.u32 %v8746_v41, 16  ;;  %v8743_v53 = vld [vmem:[%s9202_s21 + $0x28] sm:$0xff]   ;;  %v1277_v55 = vrot.slane %v1275_v43, 3 }
  0x2c   : > { %1590 = vrot.lane.b32.xlu0 %v8736_v16, %s9112_s22  ;;  %v1273_v48 = vsel %vm697_vm0, %v1263_v5, %v1272_v39  ;;  %v740_v54 = vor.u32 %v739_v46, %v736_v45  ;;  %v1280_v56 = vrot.slane %v1278_v44, 4  ;;  %v1808_v57 = vsel %vm1780_vm1, %v1803_v47, %v1807_v49  ;;  %v8757_v47 = vld [vmem:[%s9202_s21 + $0x38] sm:$0xff]  }
  0x2d   : > { %v2323_v58 = vor.u32 %v2321_v50, %v2319_v18  ;;  %v2327_v59 = vrot.slane %v2325_v51, 1  ;;  %v1813_v60 = vshll.u32 %v9275_v52, 16  ;;  %v1809_v0 = vshrl.u32 %v8744_v25, 16  ;;  %v9324_v51 = vld [vmem:[%s9202_s21 + $0x40] sm:$0xff]  }
  0x2e   : > { %v741_v62 = vsel %vm697_vm0, %v731_v29, %v740_v54  ;;  %v1281_v63 = vor.u32 %v1280_v56, %v1277_v55  ;;  %v2329_v6 = vshrl.u32 %v8746_v41, 16  ;;  %v2333_v7 = vshll.u32 %v9283_v61, 16  ;;  %v9328_v55 = vld [vmem:[%s9202_s21 + $0x48] sm:$0xff]   ;;  %v8768_v56 = vld [vmem:[%s9202_s21 + $0x3c] sm:$0xff]  }
  0x2f   : > { %2443 = vrot.lane.b32.xlu1 %v2320_v26, %s9118_s13  ;;  %v2328_v3 = vsel %vm1780_vm1, %v2323_v58, %v2327_v59  ;;  %v1815_v5 = vrot.slane %v1813_v60, 1  ;;  %v1811_v9 = vor.u32 %v1809_v0, %v1807_v49  ;;  %v743_v10 = vshrl.u32 %v8754_v1, 16 }
  0x30   : > { %2111 = vrot.lane.b32.xlu0 %v8738_v22, %s9114_s26  ;;  %v1282_v8 = vsel %vm697_vm0, %v1272_v39, %v1281_v63  ;;  %v746_v11 = vshll.u32 %v8754_v1, 16  ;;  %v2335_v14 = vrot.slane %v2333_v7, 1  ;;  %v2331_v16 = vor.u32 %v2329_v6, %v2327_v59  ;;  %v8752_v22 = vld [vmem:[%s9202_s21 + $0x30] sm:$0xff]   ;;  %v8770_v1 = vld [vmem:[%s9202_s21 + $0x44] sm:$0xff]  }
  0x31   : > { %v1816_v15 = vsel %vm1780_vm1, %v1811_v9, %v1815_v5  ;;  %v745_v17 = vrot.slane %v743_v10, 3  ;;  %v1284_v19 = vshrl.u32 %v8756_v12, 16  ;;  %v1287_v20 = vshll.u32 %v8756_v12, 16  ;;  %v8793_v10 = vld [vmem:[%s9202_s21 + $0xc] sm:$0xff]  }
  0x32   : > { %v748_v18 = vrot.slane %v746_v11, 4  ;;  %v2336_v23 = vsel %vm1780_vm1, %v2331_v16, %v2335_v14  ;;  %v752_v29 = vshrl.u32 %v8759_v21, 16  ;;  %v1817_v31 = vshrl.u32 %v9275_v52, 16 }
  0x33   : > { %1051 = vrot.lane.b32.xlu1 %v8739_v34, %s9113_s25  ;;  %v1286_v26 = vrot.slane %v1284_v19, 3  ;;  %v1289_v27 = vrot.slane %v1287_v20, 4  ;;  %v755_v32 = vshll.u32 %v8759_v21, 16  ;;  %v1821_v35 = vshll.u32 %v8758_v24, 16  ;;  %v8794_v19 = vld [vmem:[%s13906_s3 + $0x28] sm:$0xff]  }
  0x34   : > { %863 = vrot.lane.b32.xlu0 %v732_v38, %s9116_s30  ;;  %v749_v25 = vor.u32 %v748_v18, %v745_v17  ;;  %v754_v38 = vrot.slane %v752_v29, 3  ;;  %v1293_v39 = vshrl.u32 %v8761_v30, 16  ;;  %v1819_v40 = vor.u32 %v1817_v31, %v1815_v5  ;;  %v9361_v20 = vld [vmem:[%s9202_s21 + $0x48] sm:$0xff]   ;;  %2878 = vmatpush1.bf16.msra.mxu0 %v8794_v19  ;;  %v9375_v29 = vld [vmem:[%s9202_s21 + $0x50] sm:$0xff]  }
  0x35   : > { %v1290_v34 = vor.u32 %v1289_v27, %v1286_v26  ;;  %v757_v41 = vrot.slane %v755_v32, 4  ;;  %v1823_v44 = vrot.slane %v1821_v35, 1  ;;  %v2337_v45 = vshrl.u32 %v9283_v61, 16  ;;  %v9368_v26 = vld [vmem:[%s9202_s21 + $0x14] sm:$0xff]   ;;  %2879 = vmatprep.subr.bf16.mxu0 %v13915_v2  ;;  %v8775_v32 = vld [vmem:[%s9202_s21 + $0x4c] sm:$0xff]  }
  0x36   : > { %v750_v33 = vsel %vm697_vm0, %v740_v54, %v749_v25  ;;  %v2341_v46 = vshll.u32 %v8760_v36, 16  ;;  %v1825_v59 = vshrl.u32 %v8758_v24, 16  ;;  %v1829_v60 = vshll.u32 %v9324_v51, 16  ;;  %v8767_v35 = vld [vmem:[%s9202_s21 + $0x38] sm:$0xff]  }
  0x37   : > { %1592 = vrot.lane.b32.xlu1 %v8741_v42, %s9112_s22  ;;  %v1296_v42 = vshll.u32 %v8761_v30, 16  ;;  %v1291_v43 = vsel %vm697_vm0, %v1281_v63, %v1290_v34  ;;  %v9321_v49 = vor.u32 %v757_v41, %v754_v38  ;;  %v1824_v52 = vsel %vm1780_vm1, %v1819_v40, %v1823_v44 }
  0x38   : > { %1404 = vrot.lane.b32.xlu0 %v1273_v48, %s9115_s29  ;;  %v1295_v48 = vrot.slane %v1293_v39, 3  ;;  %v2343_v54 = vrot.slane %v2341_v46, 1  ;;  %v2349_v63 = vshll.u32 %v9328_v55, 16  ;;  %v761_v0 = vshrl.u32 %v8768_v56, 16  ;;  %v8801_v39 = vld [vmem:[%s13906_s3 + $0x38] sm:$0xff]  }
  0x39   : > { %v1298_v50 = vrot.slane %v1296_v42, 4  ;;  %v1827_v5 = vor.u32 %v1825_v59, %v1823_v44  ;;  %v9346_v6 = vrot.slane %v1829_v60, 1  ;;  %v764_v7 = vshll.u32 %v8768_v56, 16  ;;  %v8808_v60 = vld [vmem:[%s9202_s21 + $0x20] sm:$0xff]  }
  0x3a   : > { %v9349_v9 = vrot.slane %v2349_v63, 1  ;;  %v763_v12 = vrot.slane %v761_v0, 3  ;;  %v1305_v17 = vshll.u32 %v8770_v1, 16  ;;  %v505_v18 = vrot.slane %v8793_v10, 3 }
  0x3b   : > { %2113 = vrot.lane.b32.xlu1 %v8743_v53, %s9114_s26  ;;  %v2339_v53 = vor.u32 %v2337_v45, %v2335_v14  ;;  %v9335_v58 = vor.u32 %v1298_v50, %v1295_v48  ;;  %v8792_v14 = vld [vmem:[%s9202_s21 + $0x4] sm:$0xf8]   ;;  %v766_v16 = vrot.slane %v764_v7, 4  ;;  %v1837_v31 = vshll.u32 %v9361_v20, 16  ;;  %v8811_v7 = vld [vmem:[%s9202_s21 + $0x1c] sm:$0xff]  }
  0x3c   : > { %1925 = vrot.lane.b32.xlu0 %v1808_v57, %s9117_s10  ;;  %v759_v57 = vsel %vm697_vm0, %v749_v25, %v9321_v49  ;;  %v504_v21 = vrot.slane %v8792_v14, 3  ;;  %v2353_v41 = vshrl.u32 %v9328_v55, 16  ;;  %v2357_v45 = vshll.u32 %v9375_v29, 16  ;;  %v8776_v14 = vld [vmem:[%s9202_s21 + $0x40] sm:$0xff]  }
  0x3d   : > { %v2344_v61 = vsel %vm1780_vm1, %v2339_v53, %v2343_v54  ;;  %v767_v30 = vor.u32 %v766_v16, %v763_v12  ;;  %v1311_v46 = vshrl.u32 %v8775_v32, 16  ;;  %v1314_v48 = vshll.u32 %v8775_v32, 16 }
  0x3e   : > { %v506_v25 = vsel %vm503_vm2, %v504_v21, %v505_v18  ;;  %v2359_v56 = vrot.slane %v2357_v45, 1  ;;  %v2355_v0 = vor.u32 %v2353_v41, %v9349_v9  ;;  %v509_v12 = vrot.slane %v8811_v7, 3  ;;  %v9472_v41 = vld [vmem:[%s9202_s21 + $0x58] sm:$0xff]  }
  0x3f   : > { %865 = vrot.lane.b32.xlu1 %v741_v62, %s9116_s30  ;;  %v2345_v62 = vshrl.u32 %v8760_v36, 16  ;;  %557 = vst.msk [vmem:[#allocation2] sm:$0xff] %vm556_vm3, %v506_v25  ;;  %v1833_v36 = vshrl.u32 %v9324_v51, 16  ;;  %v768_v42 = vsel %vm697_vm0, %v9321_v49, %v767_v30  ;;  %v8804_v51 = vld [vmem:[%s13906_s3 + $0x40] sm:$0xff]   ;;  %v1316_v59 = vrot.slane %v1314_v48, 4  ;;  %v8824_v48 = vld [vmem:[%s9202_s21 + $0x30] sm:$0xff]  }
  0x40   : > { %2445 = vrot.lane.b32.xlu0 %v2328_v3, %s9118_s13  ;;  %v1300_v3 = vsel %vm697_vm0, %v1290_v34, %v9335_v58  ;;  %v8798_v34 = vld [vmem:[%s13906_s3 + $0x30] sm:$0xff]   ;;  %v2361_v16 = vshrl.u32 %v9375_v29, 16 }
  0x41   : > { %v2347_v11 = vor.u32 %v2345_v62, %v2343_v54  ;;  %2880 = vmatpush1.bf16.msra.mxu0 %v8798_v34  ;;  %v8771_v54 = vld [vmem:[%s9202_s21 + $0x48] sm:$0xff]   ;;  %v1835_v55 = vor.u32 %v1833_v36, %v9346_v6  ;;  %v8795_v36 = vld [vmem:[%s9202_s21 + $0x54] sm:$0xff]  }
  0x42   : > { %2881 = vmatprep.subr.bf16.mxu0 %v13915_v2  ;;  %v8819_v34 = vld [vmem:[%s9202_s21 + $0x24] sm:$0xff]  }
  0x43   : > { %1406 = vrot.lane.b32.xlu1 %v1282_v8, %s9115_s29  ;;  %v8764_v8 = vld [vmem:[%s9202_s21 + $0x38] sm:$0xff]   ;;  %v2352_v27 = vsel %vm1780_vm1, %v2347_v11, %v9349_v9  ;;  %v1841_v9 = vshrl.u32 %v9361_v20, 16  ;;  %v2360_v11 = vsel %vm1780_vm1, %v2355_v0, %v2359_v56 }
  0x44   : > { %1053 = vrot.lane.b32.xlu0 %v8748_v4, %s9113_s25  ;;  %v8762_v4 = vld [vmem:[%s9202_s21 + $0x30] sm:$0xff]  }
  0x45   : > { %2882 = vmatpush1.bf16.msra.mxu0 %v8801_v39 }
  0x46   : > { %2883 = vmatprep.subr.bf16.mxu0 %v13915_v2 }
  0x47   : > { %1927 = vrot.lane.b32.xlu1 %v1816_v15, %s9117_s10  ;;  %v1832_v15 = vsel %vm1780_vm1, %v1827_v5, %v9346_v6  ;;  %v8785_v5 = vld [vmem:[%s9202_s21 + $0x4c] sm:$0xff]  }
  0x48   : > { %1594 = vrot.lane.b32.xlu0 %v8750_v13, %s9112_s22  ;;  %v1302_v13 = vshrl.u32 %v8770_v1, 16  ;;  %v9424_v1 = vld [vmem:[%s9202_s21 + $0x58] sm:$0xff]  }
  0x49   : > { %2884 = vmatpush1.bf16.msra.mxu0 %v8804_v51  ;;  %v8799_v51 = vld [vmem:[%s9202_s21 + $0x5c] sm:$0xff]   ;;  %v2369_v7 = vshrl.u32 %v9424_v1, 16 }
  0x4a   : > { %v1304_v24 = vrot.slane %v1302_v13, 3  ;;  %4999 = vmatprep.subr.bf16.mxu0 %v13915_v2  ;;  %v8814_v13 = vld [vmem:[%s9202_s21 + $0x28] sm:$0xff]   ;;  %v1332_v0 = vshll.u32 %v8799_v51, 16 }
  0x4b   : > { %2447 = vrot.lane.b32.xlu1 %v2336_v23, %s9118_s13  ;;  %v8773_v23 = vld [vmem:[%s9202_s21 + $0x44] sm:$0xff]   ;;  %v2637_v20 = vrot.slane %v8814_v13, 1 }
  0x4c   : > { %2115 = vrot.lane.b32.xlu0 %v8752_v22, %s9114_s26  ;;  %v8766_v22 = vld [vmem:[%s9202_s21 + $0x40] sm:$0xff]   ;;  %v773_v40 = vshll.u32 %v8773_v23, 16 }
  0x4e   : > { %v775_v49 = vrot.slane %v773_v40, 4 }
  0x4f   : > { %1055 = vrot.lane.b32.xlu1 %v8753_v28, %s9113_s25  ;;  %v1307_v28 = vrot.slane %v1305_v17, 4  ;;  %v2365_v17 = vshll.u32 %v9424_v1, 16 }
  0x50   : > { %867 = vrot.lane.b32.xlu0 %v750_v33, %s9116_s30  ;;  %v507_v33 = vrot.slane %v9368_v26, 3  ;;  %v8779_v26 = vld [vmem:[%s9202_s21 + $0x48] sm:$0xff]  }
  0x51   : > { %v1308_v44 = vor.u32 %v1307_v28, %v1304_v24  ;;  %v8788_v24 = vld [vmem:[%s9202_s21 + $0x54] sm:$0xff]   ;;  %v9458_v28 = vrot.slane %v2365_v17, 1 }
  0x52   : > { %v508_v38 = vsel %vm503_vm2, %v505_v18, %v507_v33  ;;  %v779_v18 = vshrl.u32 %v8785_v5, 16  ;;  %v510_v19 = vsel %vm503_vm2, %v507_v33, %v509_v12  ;;  %v1320_v33 = vshrl.u32 %v8788_v24, 16 }
  0x53   : > { %1596 = vrot.lane.b32.xlu1 %v8755_v37, %s9112_s22  ;;  %v770_v37 = vshrl.u32 %v8773_v23, 16  ;;  %558 = vst.msk [vmem:[#allocation2 + $0x10] sm:$0xff] %vm556_vm3, %v508_v38  ;;  %v1309_v53 = vsel %vm697_vm0, %v9335_v58, %v1308_v44  ;;  %v2635_v58 = vrot.slane %v8808_v60, 1  ;;  %v782_v23 = vshll.u32 %v8785_v5, 16  ;;  %559 = vst.msk [vmem:[#allocation2 + $0x20] sm:$0xff] %vm556_vm3, %v510_v19  ;;  %v8782_v38 = vld [vmem:[%s9202_s21 + $0x50] sm:$0xff]  }
  0x54   : > { %1408 = vrot.lane.b32.xlu0 %v1291_v43, %s9115_s29  ;;  %v8769_v43 = vld [vmem:[%s9202_s21 + $0x40] sm:$0xff]   ;;  %v1322_v40 = vrot.slane %v1320_v33, 3  ;;  %v2371_v19 = vor.u32 %v2369_v7, %v9458_v28  ;;  %v8800_v33 = vld [vmem:[%s9202_s21 + $0x50] sm:$0xff]  }
  0x55   : > { %v772_v50 = vrot.slane %v770_v37, 3  ;;  %v2638_v25 = vsel %vm2633_vm4, %v2635_v58, %v2637_v20  ;;  %v784_v32 = vrot.slane %v782_v23, 4  ;;  %v511_v37 = vrot.slane %v8819_v34, 3 }
  0x56   : > { %2687 = vst.msk [vmem:[#allocation2 + $0x18] sm:$0xff] %vm556_vm3, %v2638_v25 }
  0x57   : > { %2117 = vrot.lane.b32.xlu1 %v8757_v47, %s9114_s26  ;;  %v1839_v47 = vrot.slane %v1837_v31, 1  ;;  %v9418_v62 = vor.u32 %v775_v49, %v772_v50  ;;  %v781_v31 = vrot.slane %v779_v18, 3  ;;  %v2639_v49 = vrot.slane %v8824_v48, 1 }
  0x58   : > { %1929 = vrot.lane.b32.xlu0 %v1824_v52, %s9117_s10  ;;  %v9407_v52 = vld [vmem:[%s9202_s21 + $0x50] sm:$0xff]  }
  0x59   : > { %v1840_v63 = vsel %vm1780_vm1, %v1835_v55, %v1839_v47 }
  0x5b   : > { %869 = vrot.lane.b32.xlu1 %v759_v57, %s9116_s30  ;;  %v1313_v57 = vrot.slane %v1311_v46, 3  ;;  %v788_v46 = vshrl.u32 %v8795_v36, 16 }
  0x5c   : > { %2449 = vrot.lane.b32.xlu0 %v2344_v61, %s9118_s13  ;;  %v8807_v61 = vld [vmem:[%s9202_s21 + $0x18] sm:$0xfe]  }
  0x5d   : > { %v9434_v10 = vor.u32 %v1316_v59, %v1313_v57  ;;  %v9490_v57 = vld [vmem:[%s9202_s21 + $0x60] sm:$0xff]   ;;  %v2640_v59 = vsel %vm2633_vm4, %v2637_v20, %v2639_v49 }
  0x5e   : > { %2688 = vst.msk [vmem:[#allocation2 + $0x28] sm:$0xff] %vm556_vm3, %v2640_v59 }
  0x5f   : > { %1410 = vrot.lane.b32.xlu1 %v1300_v3, %s9115_s29  ;;  %v2634_v3 = vrot.slane %v8807_v61, 1  ;;  %v1318_v21 = vsel %vm697_vm0, %v1308_v44, %v9434_v10  ;;  %v785_v44 = vor.u32 %v784_v32, %v781_v31  ;;  %v8787_v61 = vld [vmem:[%s9202_s21 + $0x50] sm:$0xff]  }
  0x60   : > { %1057 = vrot.lane.b32.xlu0 %v8762_v4, %s9113_s25  ;;  %v1845_v4 = vshll.u32 %v9407_v52, 16 }
  0x61   : > { %v2636_v6 = vsel %vm2633_vm4, %v2634_v3, %v2635_v58  ;;  %v790_v58 = vrot.slane %v788_v46, 3  ;;  %v8829_v3 = vld [vmem:[%s9202_s21 + $0x2c] sm:$0xff]  }
  0x62   : > { %2686 = vst.msk [vmem:[#allocation2 + $0x8] sm:$0xff] %vm556_vm3, %v2636_v6 }
  0x63   : > { %1931 = vrot.lane.b32.xlu1 %v1832_v15, %s9117_s10  ;;  %v9441_v15 = vrot.slane %v1845_v4, 1 }
  0x64   : > { %1598 = vrot.lane.b32.xlu0 %v8764_v8, %s9112_s22  ;;  %v777_v8 = vsel %vm697_vm0, %v767_v30, %v9418_v62 }
  0x67   : > { %2451 = vrot.lane.b32.xlu1 %v2352_v27, %s9118_s13  ;;  %v2363_v27 = vor.u32 %v2361_v16, %v2359_v56  ;;  %v1853_v56 = vshll.u32 %v9472_v41, 16  ;;  %v1334_v16 = vrot.slane %v1332_v0, 4  ;;  %v8809_v0 = vld [vmem:[%s9202_s21 + $0x58] sm:$0xff]  }
  0x68   : > { %2119 = vrot.lane.b32.xlu0 %v8766_v22, %s9114_s26  ;;  %v1843_v22 = vor.u32 %v1841_v9, %v1839_v47  ;;  %v791_v47 = vshll.u32 %v8795_v36, 16  ;;  %v513_v9 = vrot.slane %v8829_v3, 3  ;;  %v2377_v36 = vshrl.u32 %v9490_v57, 16 }
  0x69   : > { %v2704_v29 = vld [vmem:[#allocation2 + $0x8] sm:$0xff]  ;;  %v2368_v39 = vsel %vm1780_vm1, %v2363_v27, %v9458_v28  ;;  %v1855_v6 = vrot.slane %v1853_v56, 1  ;;  %v8810_v28 = vld [vmem:[%s9202_s21 + $0x5c] sm:$0xff]  }
  0x6a   : > { %v1848_v30 = vsel %vm1780_vm1, %v1843_v22, %v9441_v15  ;;  %8307 = vmatprep.mubr.msk.bf16.mxu0 %vm556_vm3, %v2704_v29  ;;  %v514_v1 = vsel %vm503_vm2, %v511_v37, %v513_v9 }
  0x6b   : > { %1059 = vrot.lane.b32.xlu1 %v8767_v35, %s9113_s25  ;;  %v1323_v35 = vshll.u32 %v8788_v24, 16  ;;  %561 = vst.msk [vmem:[#allocation2 + $0x40] sm:$0xff] %vm556_vm3, %v514_v1  ;;  %v1857_v24 = vshrl.u32 %v9472_v41, 16  ;;  %v8813_v41 = vld [vmem:[%s9202_s21 + $0x64] sm:$0xff]  }
  0x6c   : > { %871 = vrot.lane.b32.xlu0 %v768_v42, %s9116_s30  ;;  %v512_v42 = vsel %vm503_vm2, %v509_v12, %v511_v37  ;;  %v8790_v12 = vld [vmem:[%s9202_s21 + $0x58] sm:$0xff]   ;;  %v1341_v56 = vshll.u32 %v8813_v41, 16 }
  0x6d   : > { %v1325_v45 = vrot.slane %v1323_v35, 4  ;;  %560 = vst.msk [vmem:[#allocation2 + $0x30] sm:$0xff] %vm556_vm3, %v512_v42  ;;  %v1859_v34 = vor.u32 %v1857_v24, %v1855_v6 }
  0x6f   : > { %1600 = vrot.lane.b32.xlu1 %v8769_v43, %s9112_s22  ;;  %v8784_v43 = vld [vmem:[%s9202_s21 + $0x48] sm:$0xff]   ;;  %v9486_v55 = vor.u32 %v1325_v45, %v1322_v40  ;;  %v800_v40 = vshll.u32 %v8810_v28, 16  ;;  %v8803_v45 = vld [vmem:[%s9202_s21 + $0x58] sm:$0xff]  }
  0x70   : > { %1412 = vrot.lane.b32.xlu0 %v1309_v53, %s9115_s29  ;;  %v1849_v53 = vshrl.u32 %v9407_v52, 16  ;;  %v793_v52 = vrot.slane %v791_v47, 4  ;;  %v9568_v47 = vld [vmem:[%s9202_s21 + $0x40] sm:$0xff]  }
  0x71   : > { %v1327_v4 = vsel %vm697_vm0, %v9434_v10, %v9486_v55 }
  0x73   : > { %2121 = vrot.lane.b32.xlu1 %v8771_v54, %s9114_s26  ;;  %v786_v54 = vsel %vm697_vm0, %v9418_v62, %v785_v44  ;;  %v1329_v62 = vshrl.u32 %v8799_v51, 16 }
  0x74   : > { %1933 = vrot.lane.b32.xlu0 %v1840_v63, %s9117_s10  ;;  %v1851_v63 = vor.u32 %v1849_v53, %v9441_v15  ;;  %v9515_v15 = vor.u32 %v793_v52, %v790_v58  ;;  %v1338_v53 = vshrl.u32 %v8813_v41, 16  ;;  %v9588_v58 = vld [vmem:[%s9202_s21 + $0x68] sm:$0xff]  }
  0x75   : > { %v1331_v13 = vrot.slane %v1329_v62, 3  ;;  %v9595_v62 = vld [vmem:[%s9202_s21 + $0x3c] sm:$0xff]  }
  0x76   : > { %v1856_v18 = vsel %vm1780_vm1, %v1851_v63, %v1855_v6 }
  0x77   : > { %873 = vrot.lane.b32.xlu1 %v777_v8, %s9116_s30  ;;  %v2373_v8 = vshll.u32 %v9490_v57, 16  ;;  %v9535_v27 = vor.u32 %v1334_v16, %v1331_v13  ;;  %v8817_v57 = vld [vmem:[%s9202_s21 + $0x64] sm:$0xff]   ;;  %v2706_v13 = vld [vmem:[#allocation2 + $0x18] sm:$0xff]  ;;  %v1869_v16 = vshll.u32 %v9588_v58, 16 }
  0x78   : > { %2453 = vrot.lane.b32.xlu0 %v2360_v11, %s9118_s13  ;;  %v9507_v11 = vld [vmem:[%s9202_s21 + $0x38] sm:$0xff]   ;;  %v806_v6 = vshrl.u32 %v8817_v57, 16 }
  0x79   : > { %v2641_v17 = vrot.slane %v9507_v11, 1  ;;  %v2375_v20 = vrot.slane %v2373_v8, 1  ;;  %v809_v8 = vshll.u32 %v8817_v57, 16  ;;  %v9604_v11 = vld [vmem:[%s9202_s21 + $0x70] sm:$0xff]  }
  0x7a   : > { %v808_v24 = vrot.slane %v806_v6, 3  ;;  %v8828_v57 = vld [vmem:[%s9202_s21 + $0x6c] sm:$0xff]  }
  0x7b   : > { %1414 = vrot.lane.b32.xlu1 %v1318_v21, %s9115_s29  ;;  %v9522_v21 = vld [vmem:[%s9202_s21 + $0x68] sm:$0xff]   ;;  %v2642_v22 = vsel %vm2633_vm4, %v2639_v49, %v2641_v17  ;;  %v2376_v29 = vsel %vm1780_vm1, %v2371_v19, %v2375_v20  ;;  %v802_v49 = vrot.slane %v800_v40, 4  ;;  %v815_v6 = vshrl.u32 %v8828_v57, 16 }
  0x7c   : > { %1061 = vrot.lane.b32.xlu0 %v8776_v14, %s9113_s25  ;;  %v9512_v14 = vld [vmem:[%s9202_s21 + $0x60] sm:$0xff]   ;;  %2689 = vst.msk [vmem:[#allocation2 + $0x38] sm:$0xff] %vm556_vm3, %v2642_v22  ;;  %v2381_v32 = vshll.u32 %v9522_v21, 16 }
  0x7d   : > { %v1861_v25 = vshll.u32 %v9512_v14, 16 }
  0x7e   : > { %v9564_v46 = vrot.slane %v2381_v32, 1 }
  0x7f   : > { %1935 = vrot.lane.b32.xlu1 %v1848_v30, %s9117_s10  ;;  %v9540_v30 = vld [vmem:[%s9202_s21 + $0x34] sm:$0xff]   ;;  %v9546_v35 = vrot.slane %v1861_v25, 1  ;;  %v811_v25 = vrot.slane %v809_v8, 4 }
  0x80   : > { %1602 = vrot.lane.b32.xlu0 %v8779_v26, %s9112_s22  ;;  %v795_v26 = vsel %vm697_vm0, %v785_v44, %v9515_v15  ;;  %v515_v37 = vrot.slane %v9540_v30, 3  ;;  %v8831_v8 = vld [vmem:[%s9202_s21 + $0x74] sm:$0xff]  }
  0x81   : > { %v1864_v48 = vsel %vm1780_vm1, %v1859_v34, %v9546_v35  ;;  %v2389_v34 = vshll.u32 %v9604_v11, 16 }
  0x83   : > { %2455 = vrot.lane.b32.xlu1 %v2368_v39, %s9118_s13  ;;  %v797_v39 = vshrl.u32 %v8810_v28, 16 }
  0x84   : > { %2123 = vrot.lane.b32.xlu0 %v8782_v38, %s9114_s26  ;;  %v1336_v38 = vsel %vm697_vm0, %v9486_v55, %v9535_v27 }
  0x85   : > { %v799_v51 = vrot.slane %v797_v39, 3  ;;  %v9645_v39 = vld [vmem:[%s9202_s21 + $0x70] sm:$0xff]  }
  0x87   : > { %1063 = vrot.lane.b32.xlu1 %v8784_v43, %s9113_s25  ;;  %v516_v43 = vsel %vm503_vm2, %v513_v9, %v515_v37  ;;  %v9598_v3 = vor.u32 %v802_v49, %v799_v51  ;;  %v517_v9 = vrot.slane %v9595_v62, 3  ;;  %v1873_v49 = vshrl.u32 %v9588_v58, 16 }
  0x88   : > { %v9479_v50 = vpop.permute.xlu1 %1588  ;;  %875 = vrot.lane.b32.xlu0 %v786_v54, %s9116_s30  ;;  %562 = vst.msk [vmem:[#allocation2 + $0x50] sm:$0xff] %vm556_vm3, %v516_v43  ;;  %v2643_v54 = vrot.slane %v9568_v47, 1  ;;  %v2708_v47 = vld [vmem:[#allocation2 + $0x28] sm:$0xff] }
  0x89   : > { %v1048_v60 = vpop.permute.xlu0 %1047  ;;  %v518_v1 = vsel %vm503_vm2, %v515_v37, %v517_v9  ;;  %v804_v19 = vsel %vm697_vm0, %v9515_v15, %v9598_v3  ;;  %v8815_v37 = vld [vmem:[%s9202_s21 + $0x68] sm:$0xff]  }
  0x8a   : > { %563 = vst.msk [vmem:[#allocation2 + $0x60] sm:$0xff] %vm556_vm3, %v518_v1 }
  0x8b   : > { %1604 = vrot.lane.b32.xlu1 %v8787_v61, %s9112_s22  ;;  %v2644_v61 = vsel %vm2633_vm4, %v2641_v17, %v2643_v54  ;;  %v9615_v17 = vld [vmem:[%s9202_s21 + $0x48] sm:$0xff]  }
  0x8c   : > { %v9502_v5 = vpop.permute.xlu1 %2109  ;;  %1416 = vrot.lane.b32.xlu0 %v1327_v4, %s9115_s29  ;;  %2690 = vst.msk [vmem:[#allocation2 + $0x48] sm:$0xff] %vm556_vm3, %v2644_v61  ;;  %v1340_v4 = vrot.slane %v1338_v53, 3  ;;  %v2645_v28 = vrot.slane %v9615_v17, 1  ;;  %v1877_v53 = vshll.u32 %v9645_v39, 16  ;;  %v9700_v17 = vld [vmem:[%s9202_s21 + $0x58] sm:$0xff]  }
  0x8d   : > { %v1050_v10 = vpop.permute.xlu0 %1049 }
  0x8f   : > { %2125 = vrot.lane.b32.xlu1 %v8790_v12, %s9114_s26  ;;  %v8820_v12 = vld [vmem:[%s9202_s21 + $0x6c] sm:$0xff]  }
  0x90   : > { %1937 = vrot.lane.b32.xlu0 %v1856_v18, %s9117_s10  ;;  %v1347_v15 = vshrl.u32 %v8820_v12, 16 }
  0x91   : > { %v1401_v23 = vpop.permute.xlu1 %1400 }
  0x92   : > { %v860_v31 = vpop.permute.xlu0 %859 }
  0x93   : > { %911 = vst.msk [vmem:[#allocation2] sm:$0xff] %vm910_vm5, %v860_v31  ;;  %877 = vrot.lane.b32.xlu1 %v795_v26, %s9116_s30  ;;  %v2385_v26 = vshrl.u32 %v9522_v21, 16  ;;  %v2646_v21 = vsel %vm2633_vm4, %v2643_v54, %v2645_v28  ;;  %v9660_v54 = vld [vmem:[%s9202_s21 + $0x78] sm:$0xff]  }
  0x94   : > { %1099 = vst.msk [vmem:[#allocation2] sm:$0xff] %vm1098_vm6, %v1048_v60  ;;  %2457 = vrot.lane.b32.xlu0 %v2376_v29, %s9118_s13  ;;  %v8806_v60 = vld [vmem:[%s9202_s21 + $0x60] sm:$0xff]   ;;  %v1350_v29 = vshll.u32 %v8820_v12, 16 }
  0x95   : > { %v862_v42 = vpop.permute.xlu1 %861  ;;  %1452 = vst.msk [vmem:[#allocation2] sm:$0xff] %vm1451_vm7, %v1401_v23 }
  0x96   : > { %912 = vst.msk [vmem:[#allocation2 + $0x10] sm:$0xff] %vm910_vm5, %v862_v42  ;;  %v1922_v44 = vpop.permute.xlu0 %1921  ;;  %v1352_v40 = vrot.slane %v1350_v29, 4  ;;  %v8835_v29 = vld [vmem:[%s9202_s21 + $0x74] sm:$0xff]  }
  0x97   : > { %1640 = vst.msk [vmem:[#allocation2] sm:$0xff] %vm1639_vm8, %v9479_v50  ;;  %1418 = vrot.lane.b32.xlu1 %v1336_v38, %s9115_s29  ;;  %v2379_v50 = vor.u32 %v2377_v36, %v2375_v20  ;;  %v9640_v38 = vld [vmem:[%s9202_s21 + $0x44] sm:$0xff]  }
  0x98   : > { %1100 = vst.msk [vmem:[#allocation2 + $0x10] sm:$0xff] %vm1098_vm6, %v1050_v10  ;;  %1065 = vrot.lane.b32.xlu0 %v8800_v33, %s9113_s25  ;;  %v1865_v10 = vshrl.u32 %v9512_v14, 16  ;;  %v8812_v14 = vld [vmem:[%s9202_s21 + $0x60] sm:$0xff]   ;;  %v1871_v33 = vrot.slane %v1869_v16, 1  ;;  %v519_v41 = vrot.slane %v9640_v38, 3 }
  0x99   : > { %1973 = vst.msk [vmem:[#allocation2] sm:$0xff] %vm1972_vm9, %v1922_v44  ;;  %v1403_v55 = vpop.permute.xlu1 %1402  ;;  %v2384_v52 = vsel %vm1780_vm1, %v2379_v50, %v9564_v46  ;;  %v2387_v44 = vor.u32 %v2385_v26, %v9564_v46  ;;  %v8860_v46 = vld [vmem:[%s9202_s21 + $0x50] sm:$0xff]   ;;  %v8838_v38 = vld [vmem:[%s9202_s21 + $0x7c] sm:$0xff]  }
  0x9a   : > { %2161 = vst.msk [vmem:[#allocation2] sm:$0xff] %vm2160_vm10, %v9502_v5  ;;  %v2442_v59 = vpop.permute.xlu0 %2441  ;;  %v1343_v5 = vrot.slane %v1341_v56, 4  ;;  %v1867_v32 = vor.u32 %v1865_v10, %v9546_v35  ;;  %v1349_v35 = vrot.slane %v1347_v15, 3  ;;  %v520_v50 = vsel %vm503_vm2, %v517_v9, %v519_v41  ;;  %v9712_v15 = vld [vmem:[%s9202_s21 + $0x78] sm:$0xff]  }
  0x9b   : > { %1453 = vst.msk [vmem:[#allocation2 + $0x10] sm:$0xff] %vm1451_vm7, %v1403_v55  ;;  %1939 = vrot.lane.b32.xlu1 %v1864_v48, %s9117_s10  ;;  %v2647_v61 = vrot.slane %v8860_v46, 1  ;;  %v1875_v62 = vor.u32 %v1873_v49, %v1871_v33  ;;  %v8873_v49 = vld [vmem:[%s9202_s21 + $0x60] sm:$0xff]  }
  0x9c   : > { %2493 = vst.msk [vmem:[#allocation2] sm:$0xff] %vm2492_vm11, %v2442_v59  ;;  %1606 = vrot.lane.b32.xlu0 %v8803_v45, %s9112_s22  ;;  %v9620_v20 = vor.u32 %v1343_v5, %v1340_v4  ;;  %v1872_v43 = vsel %vm1780_vm1, %v1867_v32, %v1871_v33  ;;  %v2391_v45 = vrot.slane %v2389_v34, 1  ;;  %v9669_v56 = vor.u32 %v1352_v40, %v1349_v35  ;;  %v9725_v32 = vld [vmem:[%s9202_s21 + $0x80] sm:$0xff]  }
  0x9d   : > { %v1924_v63 = vpop.permute.xlu1 %1923  ;;  %2691 = vst.msk [vmem:[#allocation2 + $0x58] sm:$0xff] %vm556_vm3, %v2646_v21  ;;  %564 = vst.msk [vmem:[#allocation2 + $0x70] sm:$0xff] %vm556_vm3, %v520_v50  ;;  %v2397_v5 = vshll.u32 %v9660_v54, 16 }
  0x9e   : > { %v1591_v7 = vpop.permute.xlu0 %1590  ;;  %v1345_v31 = vsel %vm697_vm0, %v9535_v27, %v9620_v20  ;;  %v9649_v27 = vor.u32 %v811_v25, %v808_v24  ;;  %v1354_v4 = vsel %vm697_vm0, %v9620_v20, %v9669_v56  ;;  %v2649_v25 = vrot.slane %v9700_v17, 1 }
  0x9f   : > { %1641 = vst.msk [vmem:[#allocation2 + $0x10] sm:$0xff] %vm1639_vm8, %v1591_v7  ;;  %2459 = vrot.lane.b32.xlu1 %v2384_v52, %s9118_s13  ;;  %v8821_v52 = vld [vmem:[%s9202_s21 + $0x60] sm:$0xff]   ;;  %v818_v7 = vshll.u32 %v8828_v57, 16  ;;  %v1365_v57 = vshrl.u32 %v8838_v38, 16 }
  0xa0   : > { %1974 = vst.msk [vmem:[#allocation2 + $0x10] sm:$0xff] %vm1972_vm9, %v1924_v63  ;;  %2127 = vrot.lane.b32.xlu0 %v8806_v60, %s9114_s26  ;;  %v813_v55 = vsel %vm697_vm0, %v9598_v3, %v9649_v27  ;;  %v2392_v60 = vsel %vm1780_vm1, %v2387_v44, %v2391_v45  ;;  %v9677_v63 = vrot.slane %v1877_v53, 1  ;;  %v2648_v3 = vsel %vm2633_vm4, %v2645_v28, %v2647_v61  ;;  %v8826_v28 = vld [vmem:[%s9202_s21 + $0x70] sm:$0xff]  }
  0xa1   : > { %v2444_v18 = vpop.permute.xlu1 %2443  ;;  %2692 = vst.msk [vmem:[#allocation2 + $0x68] sm:$0xff] %vm556_vm3, %v2648_v3  ;;  %v820_v20 = vrot.slane %v818_v7, 4  ;;  %v2650_v21 = vsel %vm2633_vm4, %v2647_v61, %v2649_v25  ;;  %v824_v44 = vshrl.u32 %v8835_v29, 16  ;;  %v8830_v53 = vld [vmem:[%s9202_s21 + $0x70] sm:$0xff]   ;;  %v2651_v61 = vrot.slane %v8873_v49, 1  ;;  %v9758_v3 = vld [vmem:[%s9202_s21 + $0x7c] sm:$0xff]  }
  0xa2   : > { %v2112_v22 = vpop.permute.xlu0 %2111  ;;  %v1880_v10 = vsel %vm1780_vm1, %v1875_v62, %v9677_v63  ;;  %2693 = vst.msk [vmem:[#allocation2 + $0x78] sm:$0xff] %vm556_vm3, %v2650_v21  ;;  %v9767_v7 = vld [vmem:[%s9202_s21 + $0x84] sm:$0xff]   ;;  %v1367_v17 = vrot.slane %v1365_v57, 3 }
  0xa3   : > { %v2703_v23 = vld [vmem:[#allocation2] sm:$0xff]  ;;  %2162 = vst.msk [vmem:[#allocation2 + $0x10] sm:$0xff] %vm2160_vm10, %v2112_v22  ;;  %1067 = vrot.lane.b32.xlu1 %v8809_v0, %s9113_s25  ;;  %v2393_v0 = vshrl.u32 %v9604_v11, 16  ;;  %v9690_v11 = vld [vmem:[%s9202_s21 + $0x4c] sm:$0xff]   ;;  %v1356_v22 = vshrl.u32 %v8831_v8, 16 }
  0xa4   : > { %2900 = vmatmul.mubr.bf16.vlgmr.msra.gmra.mrb[0].mxu0 %v2703_v23  ;;  %2494 = vst.msk [vmem:[#allocation2 + $0x10] sm:$0xff] %vm2492_vm11, %v2444_v18  ;;  %879 = vrot.lane.b32.xlu0 %v804_v19, %s9116_s30  ;;  %v521_v1 = vrot.slane %v9690_v11, 3  ;;  %v9703_v18 = vrot.slane %v2397_v5, 1  ;;  %v817_v19 = vrot.slane %v815_v6, 3 }
  0xa5   : > { %8308 = vmatprep.mubr.msk.bf16.mxu0 %vm556_vm3, %v2706_v13  ;;  %v1052_v30 = vpop.permute.xlu1 %1051  ;;  %v8823_v13 = vld [vmem:[%s9202_s21 + $0x68] sm:$0xff]   ;;  %v2395_v16 = vor.u32 %v2393_v0, %v2391_v45  ;;  %v1358_v34 = vrot.slane %v1356_v22, 3  ;;  %v827_v45 = vshll.u32 %v8835_v29, 16 }
  0xa6   : > { %v864_v36 = vpop.permute.xlu0 %863  ;;  %v522_v24 = vsel %vm503_vm2, %v519_v41, %v521_v1  ;;  %v8872_v41 = vld [vmem:[%s9202_s21 + $0x54] sm:$0xff]   ;;  %v9755_v0 = vld [vmem:[%s9202_s21 + $0x88] sm:$0xff]  }
  0xa7   : > { %913 = vst.msk [vmem:[#allocation2 + $0x20] sm:$0xff] %vm910_vm5, %v864_v36  ;;  %1608 = vrot.lane.b32.xlu1 %v8812_v14, %s9112_s22  ;;  %v1359_v14 = vshll.u32 %v8831_v8, 16  ;;  %v2652_v8 = vsel %vm2633_vm4, %v2649_v25, %v2651_v61  ;;  %v9790_v22 = vld [vmem:[%s9202_s21 + $0x88] sm:$0xff]   ;;  %v2413_v25 = vshll.u32 %v9755_v0, 16 }
  0xa8   : > { %1101 = vst.msk [vmem:[#allocation2 + $0x20] sm:$0xff] %vm1098_vm6, %v1052_v30  ;;  %1420 = vrot.lane.b32.xlu0 %v1345_v31, %s9115_s29  ;;  %v2400_v30 = vsel %vm1780_vm1, %v2395_v16, %v9703_v18  ;;  %v9722_v31 = vor.u32 %v820_v20, %v817_v19  ;;  %v1889_v19 = vshrl.u32 %v9712_v15, 16  ;;  %v8853_v29 = vld [vmem:[%s9202_s21 + $0x84] sm:$0xff]  }
  0xa9   : > { %v1593_v42 = vpop.permute.xlu1 %1592  ;;  %565 = vst.msk [vmem:[#allocation2 + $0x80] sm:$0xff] %vm556_vm3, %v522_v24  ;;  %v1361_v36 = vrot.slane %v1359_v14, 4  ;;  %2694 = vst.msk [vmem:[#allocation2 + $0x88] sm:$0xff] %vm556_vm3, %v2652_v8  ;;  %v8876_v24 = vld [vmem:[%s9202_s21 + $0x64] sm:$0xff]  }
  0xaa   : > { %v1405_v48 = vpop.permute.xlu0 %1404  ;;  %v822_v50 = vsel %vm697_vm0, %v9649_v27, %v9722_v31 }
  0xab   : > { %1454 = vst.msk [vmem:[#allocation2 + $0x20] sm:$0xff] %vm1451_vm7, %v1405_v48  ;;  %2129 = vrot.lane.b32.xlu1 %v8815_v37, %s9114_s26  ;;  %v2705_v51 = vld [vmem:[#allocation2 + $0x10] sm:$0xff]  ;;  %v2710_v37 = vld [vmem:[#allocation2 + $0x38] sm:$0xff]  ;;  %v9736_v48 = vld [vmem:[%s9202_s21 + $0x80] sm:$0xff]   ;;  %v9746_v46 = vor.u32 %v1361_v36, %v1358_v34  ;;  %v527_v36 = vrot.slane %v8876_v24, 3 }
  0xac   : > { %1642 = vst.msk [vmem:[#allocation2 + $0x20] sm:$0xff] %vm1639_vm8, %v1593_v42  ;;  %1941 = vrot.lane.b32.xlu0 %v1872_v43, %s9117_s10  ;;  %2908 = vmatmul.mubr.bf16.gmra.mrb[4].mxu0 %v2705_v51  ;;  %v8827_v42 = vld [vmem:[%s9202_s21 + $0x68] sm:$0xff]   ;;  %v1881_v43 = vshrl.u32 %v9645_v39, 16  ;;  %v523_v51 = vrot.slane %v8872_v41, 3  ;;  %v1893_v62 = vshll.u32 %v9736_v48, 16  ;;  %v1377_v41 = vshll.u32 %v9767_v7, 16 }
  0xad   : > { %v2114_v59 = vpop.permute.xlu1 %2113  ;;  %8309 = vmatprep.mubr.msk.bf16.mxu0 %vm556_vm3, %v2708_v47  ;;  %v2401_v47 = vshrl.u32 %v9660_v54, 16  ;;  %v1885_v54 = vshll.u32 %v9712_v15, 16  ;;  %v1363_v11 = vsel %vm697_vm0, %v9669_v56, %v9746_v46  ;;  %v1374_v15 = vshrl.u32 %v9767_v7, 16  ;;  %v9869_v24 = vld [vmem:[%s9202_s21 + $0x7c] sm:$0xff]  }
  0xae   : > { %v1926_v58 = vpop.permute.xlu0 %1925  ;;  %v524_v27 = vsel %vm503_vm2, %v521_v1, %v523_v51  ;;  %v1883_v5 = vor.u32 %v1881_v43, %v9677_v63  ;;  %v8833_v1 = vld [vmem:[%s9202_s21 + $0x78] sm:$0xff]   ;;  %v9787_v20 = vrot.slane %v1893_v62, 1  ;;  %v2417_v43 = vshrl.u32 %v9755_v0, 16 }
  0xaf   : > { %1975 = vst.msk [vmem:[#allocation2 + $0x20] sm:$0xff] %vm1972_vm9, %v1926_v58  ;;  %881 = vrot.lane.b32.xlu1 %v813_v55, %s9116_s30  ;;  %v2405_v55 = vshll.u32 %v9725_v32, 16  ;;  %v826_v58 = vrot.slane %v824_v44, 3  ;;  %v2403_v6 = vor.u32 %v2401_v47, %v9703_v18  ;;  %v1901_v47 = vshll.u32 %v9790_v22, 16 }
  0xb0   : > { %2163 = vst.msk [vmem:[#allocation2 + $0x20] sm:$0xff] %vm2160_vm10, %v2114_v59  ;;  %2461 = vrot.lane.b32.xlu0 %v2392_v60, %s9118_s13  ;;  %v1368_v60 = vshll.u32 %v8838_v38, 16  ;;  %v9840_v62 = vrot.slane %v1377_v41, 4 }
  0xb1   : > { %v866_v9 = vpop.permute.xlu1 %865  ;;  %566 = vst.msk [vmem:[#allocation2 + $0x90] sm:$0xff] %vm556_vm3, %v524_v27  ;;  %v845_v27 = vshll.u32 %v8853_v29, 16  ;;  %v9848_v7 = vrot.slane %v1901_v47, 1 }
  0xb2   : > { %v2446_v12 = vpop.permute.xlu0 %2445  ;;  %914 = vst.msk [vmem:[#allocation2 + $0x30] sm:$0xff] %vm910_vm5, %v866_v9  ;;  %v1370_v18 = vrot.slane %v1368_v60, 4  ;;  %v842_v60 = vshrl.u32 %v8853_v29, 16 }
  0xb3   : > { %2495 = vst.msk [vmem:[#allocation2 + $0x20] sm:$0xff] %vm2492_vm11, %v2446_v12  ;;  %1422 = vrot.lane.b32.xlu1 %v1354_v4, %s9115_s29  ;;  %v8874_v4 = vld [vmem:[%s9202_s21 + $0x5c] sm:$0xff]   ;;  %v9775_v12 = vrot.slane %v1885_v54, 1 }
  0xb4   : > { %1069 = vrot.lane.b32.xlu0 %v8821_v52, %s9113_s25  ;;  %v829_v52 = vrot.slane %v827_v45, 4  ;;  %v525_v63 = vrot.slane %v8874_v4, 3 }
  0xb5   : > { %v1407_v23 = vpop.permute.xlu1 %1406 }
  0xb6   : > { %v1054_v26 = vpop.permute.xlu0 %1053  ;;  %v9785_v56 = vor.u32 %v829_v52, %v826_v58  ;;  %v8839_v52 = vld [vmem:[%s9202_s21 + $0x70] sm:$0xff]  }
  0xb7   : > { %1102 = vst.msk [vmem:[#allocation2 + $0x30] sm:$0xff] %vm1098_vm6, %v1054_v26  ;;  %1943 = vrot.lane.b32.xlu1 %v1880_v10, %s9117_s10  ;;  %v8875_v10 = vld [vmem:[%s9202_s21 + $0x68] sm:$0xff]   ;;  %v833_v26 = vshrl.u32 %v9758_v3, 16 }
  0xb8   : > { %1455 = vst.msk [vmem:[#allocation2 + $0x30] sm:$0xff] %vm1451_vm7, %v1407_v23  ;;  %1610 = vrot.lane.b32.xlu0 %v8823_v13, %s9112_s22  ;;  %v9777_v13 = vrot.slane %v2405_v55, 1  ;;  %v526_v23 = vsel %vm503_vm2, %v523_v51, %v525_v63  ;;  %v2653_v14 = vrot.slane %v8875_v10, 1  ;;  %v831_v45 = vsel %vm697_vm0, %v9722_v31, %v9785_v56  ;;  %v8878_v55 = vld [vmem:[%s9202_s21 + $0x6c] sm:$0xff]   ;;  %v8880_v10 = vld [vmem:[%s9202_s21 + $0x74] sm:$0xff]  }
  0xb9   : > { %v1928_v33 = vpop.permute.xlu1 %1927  ;;  %567 = vst.msk [vmem:[#allocation2 + $0xa0] sm:$0xff] %vm556_vm3, %v526_v23  ;;  %v528_v51 = vsel %vm503_vm2, %v525_v63, %v527_v36  ;;  %v9829_v54 = vrot.slane %v833_v26, 3  ;;  %v529_v4 = vrot.slane %v8878_v55, 3  ;;  %v8841_v23 = vld [vmem:[%s9202_s21 + $0x78] sm:$0xff]   ;;  %v9910_v55 = vld [vmem:[%s9202_s21 + $0x90] sm:$0xff]  }
  0xba   : > { %v1595_v35 = vpop.permute.xlu0 %1594  ;;  %v2707_v40 = vld [vmem:[#allocation2 + $0x20] sm:$0xff]  ;;  %v2654_v34 = vsel %vm2633_vm4, %v2651_v61, %v2653_v14  ;;  %568 = vst.msk [vmem:[#allocation2 + $0xb0] sm:$0xff] %vm556_vm3, %v528_v51  ;;  %v8845_v51 = vld [vmem:[%s9202_s21 + $0x78] sm:$0xff]  }
  0xbb   : > { %1643 = vst.msk [vmem:[#allocation2 + $0x30] sm:$0xff] %vm1639_vm8, %v1595_v35  ;;  %2916 = vmatmul.mubr.bf16.gmra.mrb[8].mxu0 %v2707_v40  ;;  %2463 = vrot.lane.b32.xlu1 %v2400_v30, %s9118_s13  ;;  %v1888_v30 = vsel %vm1780_vm1, %v1883_v5, %v9775_v12  ;;  %v2712_v35 = vld [vmem:[#allocation2 + $0x48] sm:$0xff]  ;;  %v2409_v40 = vshrl.u32 %v9725_v32, 16  ;;  %v8879_v5 = vld [vmem:[%s9202_s21 + $0x78] sm:$0xff]  }
  0xbc   : > { %1976 = vst.msk [vmem:[#allocation2 + $0x30] sm:$0xff] %vm1972_vm9, %v1928_v33  ;;  %2131 = vrot.lane.b32.xlu0 %v8826_v28, %s9114_s26  ;;  %8310 = vmatprep.mubr.msk.bf16.mxu0 %vm556_vm3, %v2710_v37  ;;  %v836_v28 = vshll.u32 %v9758_v3, 16  ;;  %v2408_v33 = vsel %vm1780_vm1, %v2403_v6, %v9777_v13  ;;  %v8877_v37 = vld [vmem:[%s9202_s21 + $0x70] sm:$0xff]   ;;  %v1905_v3 = vshrl.u32 %v9790_v22, 16  ;;  %v1891_v6 = vor.u32 %v1889_v19, %v9775_v12 }
  0xbd   : > { %v2448_v39 = vpop.permute.xlu1 %2447  ;;  %2695 = vst.msk [vmem:[#allocation2 + $0x98] sm:$0xff] %vm556_vm3, %v2654_v34  ;;  %v2655_v49 = vrot.slane %v8877_v37, 1  ;;  %v2657_v63 = vrot.slane %v8879_v5, 1  ;;  %v9858_v12 = vrot.slane %v842_v60, 3 }
  0xbe   : > { %v2116_v59 = vpop.permute.xlu0 %2115  ;;  %v9831_v31 = vrot.slane %v836_v28, 4  ;;  %v8883_v28 = vld [vmem:[%s9202_s21 + $0x88] sm:$0xff]  }
  0xbf   : > { %2164 = vst.msk [vmem:[#allocation2 + $0x30] sm:$0xff] %vm2160_vm10, %v2116_v59  ;;  %1071 = vrot.lane.b32.xlu1 %v8827_v42, %s9113_s25  ;;  %v1897_v42 = vshrl.u32 %v9736_v48, 16  ;;  %v9836_v59 = vrot.slane %v1374_v15, 3  ;;  %v2656_v61 = vsel %vm2633_vm4, %v2653_v14, %v2655_v49  ;;  %v531_v14 = vrot.slane %v8880_v10, 3 }
  0xc0   : > { %2496 = vst.msk [vmem:[#allocation2 + $0x30] sm:$0xff] %vm2492_vm11, %v2448_v39  ;;  %883 = vrot.lane.b32.xlu0 %v822_v50, %s9116_s30  ;;  %v9820_v50 = vld [vmem:[%s9202_s21 + $0x90] sm:$0xff]   ;;  %v9825_v39 = vor.u32 %v1370_v18, %v1367_v17  ;;  %v8881_v18 = vld [vmem:[%s9202_s21 + $0x80] sm:$0xff]   ;;  %v2411_v15 = vor.u32 %v2409_v40, %v9777_v13  ;;  %v2661_v37 = vrot.slane %v8883_v28, 1  ;;  %v2714_v13 = vld [vmem:[#allocation2 + $0x58] sm:$0xff] }
  0xc1   : > { %v1056_v9 = vpop.permute.xlu1 %1055  ;;  %2696 = vst.msk [vmem:[#allocation2 + $0xa8] sm:$0xff] %vm556_vm3, %v2656_v61  ;;  %v2421_v8 = vshll.u32 %v9820_v50, 16  ;;  %v8856_v17 = vld [vmem:[%s9202_s21 + $0x8c] sm:$0xff]   ;;  %v2659_v26 = vrot.slane %v8881_v18, 1  ;;  %v1380_v5 = vor.u32 %v9840_v62, %v9836_v59  ;;  %v1899_v18 = vor.u32 %v1897_v42, %v9787_v20 }
  0xc2   : > { %v868_v16 = vpop.permute.xlu0 %867  ;;  %v1383_v34 = vshrl.u32 %v8856_v17, 16  ;;  %v9895_v40 = vld [vmem:[%s9202_s21 + $0x90] sm:$0xff]   ;;  %v8864_v61 = vld [vmem:[%s9202_s21 + $0x8c] ss:$0 sps:$4 sm:$0xff]  }
  0xc3   : > { %915 = vst.msk [vmem:[#allocation2 + $0x40] sm:$0xff] %vm910_vm5, %v868_v16  ;;  %1612 = vrot.lane.b32.xlu1 %v8830_v53, %s9112_s22  ;;  %v9827_v53 = vrot.slane %v2413_v25, 1  ;;  %v1896_v25 = vsel %vm1780_vm1, %v1891_v6, %v9787_v20  ;;  %v9881_v29 = vrot.slane %v2421_v8, 1  ;;  %v2662_v41 = vsel %vm2633_vm4, %v2659_v26, %v2661_v37 }
  0xc4   : > { %1103 = vst.msk [vmem:[#allocation2 + $0x40] sm:$0xff] %vm1098_vm6, %v1056_v9  ;;  %1424 = vrot.lane.b32.xlu0 %v1363_v11, %s9115_s29  ;;  %v1372_v9 = vsel %vm697_vm0, %v9746_v46, %v9825_v39  ;;  %v530_v11 = vsel %vm503_vm2, %v527_v36, %v529_v4  ;;  %v2658_v46 = vsel %vm2633_vm4, %v2655_v49, %v2657_v63  ;;  %v1386_v49 = vshll.u32 %v8856_v17, 16  ;;  %v8851_v17 = vld [vmem:[%s9202_s21 + $0x88] sm:$0xff]  }
  0xc5   : > { %v1597_v21 = vpop.permute.xlu1 %1596  ;;  %569 = vst.msk [vmem:[#allocation2 + $0xc0] sm:$0xff] %vm556_vm3, %v530_v11  ;;  %2697 = vst.msk [vmem:[#allocation2 + $0xb8] sm:$0xff] %vm556_vm3, %v2658_v46  ;;  %v2660_v36 = vsel %vm2633_vm4, %v2657_v63, %v2659_v26  ;;  %v1909_v8 = vshll.u32 %v9895_v40, 16  ;;  %v851_v10 = vshrl.u32 %v8864_v61, 16  ;;  %v1381_v62 = vsel %vm697_vm0, %v9825_v39, %v1380_v5 }
  0xc6   : > { %v1409_v38 = vpop.permute.xlu0 %1408  ;;  %2698 = vst.msk [vmem:[#allocation2 + $0xc8] sm:$0xff] %vm556_vm3, %v2660_v36  ;;  %2699 = vst.msk [vmem:[#allocation2 + $0xd8] sm:$0xff] %vm556_vm3, %v2662_v41  ;;  %v1388_v6 = vrot.slane %v1386_v49, 4  ;;  %v1904_v42 = vsel %vm1780_vm1, %v1899_v18, %v9848_v7  ;;  %v2419_v39 = vor.u32 %v2417_v43, %v9827_v53  ;;  %v8886_v41 = vld [vmem:[%s9202_s21 + $0x8c] ss:$0 sps:$4 sm:$0x77]  }
  0xc7   : > { %1456 = vst.msk [vmem:[#allocation2 + $0x40] sm:$0xff] %vm1451_vm7, %v1409_v38  ;;  %2133 = vrot.lane.b32.xlu1 %v8833_v1, %s9114_s26  ;;  %v2709_v44 = vld [vmem:[#allocation2 + $0x30] sm:$0xff]  ;;  %v9860_v1 = vrot.slane %v845_v27, 4  ;;  %v1385_v27 = vrot.slane %v1383_v34, 3  ;;  %v537_v49 = vrot.slane %v8886_v41, 3  ;;  %v2722_v41 = vld [vmem:[#allocation2 + $0x98] sm:$0xff] }
  0xc8   : > { %1644 = vst.msk [vmem:[#allocation2 + $0x40] sm:$0xff] %vm1639_vm8, %v1597_v21  ;;  %1945 = vrot.lane.b32.xlu0 %v1888_v30, %s9117_s10  ;;  %2924 = vmatmul.mubr.bf16.gmra.mrb[12].mxu0 %v2709_v44  ;;  %v532_v21 = vsel %vm503_vm2, %v529_v4, %v531_v14  ;;  %v533_v30 = vrot.slane %v9869_v24, 3  ;;  %v2416_v44 = vsel %vm1780_vm1, %v2411_v15, %v9827_v53  ;;  %v8848_v4 = vld [vmem:[%s9202_s21 + $0x80] sm:$0xff]   ;;  %v9964_v24 = vrot.slane %v1909_v8, 1  ;;  %v8867_v15 = vld [vmem:[%s9202_s21 + $0x94] ss:$0 sps:$4 sm:$0xff]  }
  0xc9   : > { %v2118_v57 = vpop.permute.xlu1 %2117  ;;  %8311 = vmatprep.mubr.msk.bf16.mxu0 %vm556_vm3, %v2712_v35  ;;  %570 = vst.msk [vmem:[#allocation2 + $0xd0] sm:$0xff] %vm556_vm3, %v532_v21  ;;  %v8844_v35 = vld [vmem:[%s9202_s21 + $0x80] sm:$0xff]   ;;  %v9956_v48 = vor.u32 %v9860_v1, %v9858_v12  ;;  %v9970_v21 = vld [vmem:[%s9202_s21 + $0x98] sm:$0xff]   ;;  %v9974_v1 = vrot.slane %v851_v10, 3  ;;  %v9981_v43 = vor.u32 %v1388_v6, %v1385_v27  ;;  %v2424_v34 = vsel %vm1780_vm1, %v2419_v39, %v9881_v29  ;;  %v8863_v8 = vld [vmem:[%s9202_s21 + $0x88] sm:$0xff]  }
  0xca   : > { %v1930_v58 = vpop.permute.xlu0 %1929  ;;  %v534_v32 = vsel %vm503_vm2, %v531_v14, %v533_v30  ;;  %v8866_v18 = vld [vmem:[%s9202_s21 + $0x90] sm:$0xff]  }
  0xcb   : > { %1977 = vst.msk [vmem:[#allocation2 + $0x40] sm:$0xff] %vm1972_vm9, %v1930_v58  ;;  %885 = vrot.lane.b32.xlu1 %v831_v45, %s9116_s30  ;;  %v9905_v45 = vor.u32 %v9831_v31, %v9829_v54  ;;  %v9916_v58 = vld [vmem:[%s9202_s21 + $0x98] sm:$0xff]   ;;  %v2663_v54 = vrot.slane %v9910_v55, 1 }
  0xcc   : > { %2165 = vst.msk [vmem:[#allocation2 + $0x40] sm:$0xff] %vm2160_vm10, %v2118_v57  ;;  %2465 = vrot.lane.b32.xlu0 %v2408_v33, %s9118_s13  ;;  %v2429_v63 = vshll.u32 %v9916_v58, 16 }
  0xcd   : > { %v870_v16 = vpop.permute.xlu1 %869  ;;  %571 = vst.msk [vmem:[#allocation2 + $0xe0] sm:$0xff] %vm556_vm3, %v534_v32  ;;  %v840_v31 = vsel %vm697_vm0, %v9785_v56, %v9905_v45  ;;  %v2425_v56 = vshrl.u32 %v9820_v50, 16  ;;  %v849_v0 = vsel %vm697_vm0, %v9905_v45, %v9956_v48  ;;  %v1907_v32 = vor.u32 %v1905_v3, %v9848_v7 }
  0xce   : > { %v2450_v19 = vpop.permute.xlu0 %2449  ;;  %916 = vst.msk [vmem:[#allocation2 + $0x50] sm:$0xff] %vm910_vm5, %v870_v16  ;;  %v9936_v16 = vld [vmem:[%s9202_s21 + $0x84] sm:$0xff]   ;;  %v9966_v28 = vrot.slane %v2429_v63, 1 }
  0xcf   : > { %2497 = vst.msk [vmem:[#allocation2 + $0x40] sm:$0xff] %vm2492_vm11, %v2450_v19  ;;  %1426 = vrot.lane.b32.xlu1 %v1372_v9, %s9115_s29  ;;  %v2664_v9 = vsel %vm2633_vm4, %v2661_v37, %v2663_v54  ;;  %v854_v19 = vshll.u32 %v8864_v61, 16  ;;  %v8857_v37 = vld [vmem:[%s9202_s21 + $0x80] sm:$0xff]   ;;  %v1912_v22 = vsel %vm1780_vm1, %v1907_v32, %v9964_v24  ;;  %v2427_v3 = vor.u32 %v2425_v56, %v9881_v29  ;;  %v8862_v29 = vld [vmem:[%s9202_s21 + $0x90] sm:$0xff]  }
  0xd0   : > { %1073 = vrot.lane.b32.xlu0 %v8839_v52, %s9113_s25  ;;  %2700 = vst.msk [vmem:[#allocation2 + $0xe8] sm:$0xff] %vm556_vm3, %v2664_v9 }
  0xd1   : > { %v1411_v33 = vpop.permute.xlu1 %1410  ;;  %v856_v53 = vrot.slane %v854_v19, 4  ;;  %v2432_v50 = vsel %vm1780_vm1, %v2427_v3, %v9966_v28  ;;  %v347_v3 = vld [vmem:[%s13904_s1 + $0x58] sm:$0xff] }
  0xd2   : > { %v1058_v38 = vpop.permute.xlu0 %1057 }
  0xd3   : > { %1104 = vst.msk [vmem:[#allocation2 + $0x50] sm:$0xff] %vm1098_vm6, %v1058_v38  ;;  %1947 = vrot.lane.b32.xlu1 %v1896_v25, %s9117_s10  ;;  %v2716_v25 = vld [vmem:[#allocation2 + $0x68] sm:$0xff]  ;;  %v857_v61 = vor.u32 %v856_v53, %v9974_v1 }
  0xd4   : > { %1457 = vst.msk [vmem:[#allocation2 + $0x50] sm:$0xff] %vm1451_vm7, %v1411_v33  ;;  %1614 = vrot.lane.b32.xlu0 %v8841_v23, %s9112_s22  ;;  %v535_v23 = vrot.slane %v9936_v16, 3 }
  0xd5   : > { %v1932_v47 = vpop.permute.xlu1 %1931  ;;  %v858_v63 = vsel %vm697_vm0, %v9956_v48, %v857_v61  ;;  %v2724_v61 = vld [vmem:[#allocation2 + $0xa8] sm:$0xff] }
  0xd6   : > { %v1599_v57 = vpop.permute.xlu0 %1598  ;;  %v2711_v60 = vld [vmem:[#allocation2 + $0x40] sm:$0xff]  ;;  %v536_v14 = vsel %vm503_vm2, %v533_v30, %v535_v23  ;;  %v2665_v30 = vrot.slane %v9970_v21, 1  ;;  %v538_v7 = vsel %vm503_vm2, %v535_v23, %v537_v49  ;;  %v2720_v21 = vld [vmem:[#allocation2 + $0x88] sm:$0xff]  ;;  %v346_v49 = vld [vmem:[%s13904_s1 + $0x50] sm:$0xff] }
  0xd7   : > { %1645 = vst.msk [vmem:[#allocation2 + $0x50] sm:$0xff] %vm1639_vm8, %v1599_v57  ;;  %2932 = vmatmul.mubr.bf16.gmra.mrb[16].mxu0 %v2711_v60  ;;  %2467 = vrot.lane.b32.xlu1 %v2416_v44, %s9118_s13  ;;  %v8870_v60 = vld [vmem:[%s9202_s21 + $0x98] ss:$0 sps:$4 sm:$0x11]  }
  0xd8   : > { %1978 = vst.msk [vmem:[#allocation2 + $0x50] sm:$0xff] %vm1972_vm9, %v1932_v47  ;;  %2135 = vrot.lane.b32.xlu0 %v8844_v35, %s9114_s26  ;;  %8312 = vmatprep.mubr.msk.bf16.mxu0 %vm556_vm3, %v2714_v13  ;;  %v2666_v38 = vsel %vm2633_vm4, %v2663_v54, %v2665_v30  ;;  %v1390_v35 = vsel %vm697_vm0, %v1380_v5, %v9981_v43  ;;  %v1392_v13 = vshrl.u32 %v8867_v15, 16  ;;  %v8859_v47 = vld [vmem:[%s9202_s21 + $0x88] sm:$0xff]   ;;  %v1917_v16 = vshll.u32 %v8870_v60, 16  ;;  %v350_v60 = vld [vmem:[%s13904_s1 + $0x70] sm:$0xff] }
  0xd9   : > { %v2452_v52 = vpop.permute.xlu1 %2451  ;;  %572 = vst.msk [vmem:[#allocation2 + $0xf0] sm:$0xff] %vm556_vm3, %v536_v14  ;;  %2701 = vst.msk [vmem:[#allocation2 + $0xf8] sm:$0xff] %vm556_vm3, %v2666_v38  ;;  %v2433_v14 = vshrl.u32 %v9916_v58, 16 }
  0xda   : > { %v2120_v11 = vpop.permute.xlu0 %2119  ;;  %573 = vst.msk [vmem:[#allocation2 + $0x100] sm:$0xff] %vm556_vm3, %v538_v7  ;;  %v1394_v54 = vrot.slane %v1392_v13, 3  ;;  %v344_v13 = vld [vmem:[%s13904_s1 + $0x40] sm:$0xff] }
  0xdb   : > { %2166 = vst.msk [vmem:[#allocation2 + $0x50] sm:$0xff] %vm2160_vm10, %v2120_v11  ;;  %1075 = vrot.lane.b32.xlu1 %v8845_v51, %s9113_s25  ;;  %v1395_v51 = vshll.u32 %v8867_v15, 16  ;;  %v1913_v11 = vshrl.u32 %v9895_v40, 16 }
  0xdc   : > { %2498 = vst.msk [vmem:[#allocation2 + $0x50] sm:$0xff] %vm2492_vm11, %v2452_v52  ;;  %887 = vrot.lane.b32.xlu0 %v840_v31, %s9116_s30  ;;  %v2718_v52 = vld [vmem:[#allocation2 + $0x78] sm:$0xff] }
  0xdd   : > { %v1060_v59 = vpop.permute.xlu1 %1059  ;;  %v1397_v31 = vrot.slane %v1395_v51, 4  ;;  %v1915_v40 = vor.u32 %v1913_v11, %v9964_v24 }
  0xde   : > { %v872_v46 = vpop.permute.xlu0 %871 }
  0xdf   : > { %917 = vst.msk [vmem:[#allocation2 + $0x60] sm:$0xff] %vm910_vm5, %v872_v46  ;;  %1616 = vrot.lane.b32.xlu1 %v8848_v4, %s9112_s22  ;;  %v8888_v4 = vld [vmem:[%s9202_s21 + $0xa0] ss:$0 sps:$4 sm:$0x11]   ;;  %v1398_v10 = vor.u32 %v1397_v31, %v1394_v54  ;;  %v1919_v46 = vrot.slane %v1917_v16, 1  ;;  %v351_v31 = vld [vmem:[%s13904_s1 + $0x78] sm:$0xff] }
  0xe0   : > { %1105 = vst.msk [vmem:[#allocation2 + $0x60] sm:$0xff] %vm1098_vm6, %v1060_v59  ;;  %1428 = vrot.lane.b32.xlu0 %v1381_v62, %s9115_s29  ;;  %v2667_v9 = vrot.slane %v8888_v4, 1  ;;  %v8871_v59 = vld [vmem:[%s9202_s21 + $0xa0] ss:$0 sps:$4 sm:$0x11]  }
  0xe1   : > { %v1601_v20 = vpop.permute.xlu1 %1600  ;;  %v1399_v23 = vsel %vm697_vm0, %v9981_v43, %v1398_v10  ;;  %v2437_v48 = vshll.u32 %v8871_v59, 16  ;;  %v1920_v24 = vsel %vm1780_vm1, %v1915_v40, %v1919_v46  ;;  %v338_v43 = vld [vmem:[%s13904_s1 + $0x10] sm:$0xff]  ;;  %v352_v4 = vld [vmem:[%s13904_s1 + $0x80] sm:$0xff]  ;;  %v357_v59 = vld [vmem:[%s13904_s1 + $0xa8] sm:$0xff]  ;;  %vm9120_vm0 = vmmov 0  }
  0xe2   : > { %v1413_v26 = vpop.permute.xlu0 %1412  ;;  %v2668_v62 = vsel %vm2633_vm4, %v2665_v30, %v2667_v9  ;;  %v341_v30 = vld [vmem:[%s13904_s1 + $0x28] sm:$0xff]  ;;  %v354_v9 = vld [vmem:[%s13904_s1 + $0x90] sm:$0xff]  ;;  %v356_v10 = vld [vmem:[%s13904_s1 + $0xa0] sm:$0xff] }
  0xe3   : > { %1458 = vst.msk [vmem:[#allocation2 + $0x60] sm:$0xff] %vm1451_vm7, %v1413_v26  ;;  %2137 = vrot.lane.b32.xlu1 %v8851_v17, %s9114_s26  ;;  %v2713_v12 = vld [vmem:[#allocation2 + $0x50] sm:$0xff]  ;;  %v2439_v26 = vrot.slane %v2437_v48, 1 }
  0xe4   : > { %1646 = vst.msk [vmem:[#allocation2 + $0x60] sm:$0xff] %vm1639_vm8, %v1601_v20  ;;  %1949 = vrot.lane.b32.xlu0 %v1904_v42, %s9117_s10  ;;  %2940 = vmatmul.mubr.bf16.gmra.mrb[20].mxu0 %v2713_v12  ;;  %v8869_v42 = vld [vmem:[%s9202_s21 + $0x98] sm:$0xff]   ;;  %v340_v12 = vld [vmem:[%s13904_s1 + $0x20] sm:$0xff] }
  0xe5   : > { %v2122_v33 = vpop.permute.xlu1 %2121  ;;  %8313 = vmatprep.mubr.msk.bf16.mxu0 %vm556_vm3, %v2716_v25  ;;  %2702 = vst.msk [vmem:[#allocation2 + $0x108] sm:$0xff] %vm556_vm3, %v2668_v62  ;;  %v2435_v25 = vor.u32 %v2433_v14, %v9966_v28  ;;  %v360_v14 = vld [vmem:[%s13904_s1 + $0xc0] sm:$0xff] }
  0xe6   : > { %v1934_v36 = vpop.permute.xlu0 %1933 }
  0xe7   : > { %1979 = vst.msk [vmem:[#allocation2 + $0x60] sm:$0xff] %vm1972_vm9, %v1934_v36  ;;  %889 = vrot.lane.b32.xlu1 %v849_v0, %s9116_s30  ;;  %v2440_v28 = vsel %vm1780_vm1, %v2435_v25, %v2439_v26  ;;  %v363_v25 = vld [vmem:[%s13904_s1 + $0xd8] sm:$0xff] }
  0xe8   : > { %2167 = vst.msk [vmem:[#allocation2 + $0x60] sm:$0xff] %vm2160_vm10, %v2122_v33  ;;  %2469 = vrot.lane.b32.xlu0 %v2424_v34, %s9118_s13  ;;  %v339_v34 = vld [vmem:[%s13904_s1 + $0x18] sm:$0xff] }
  0xe9   : > { %v874_v44 = vpop.permute.xlu1 %873 }
  0xea   : > { %v2454_v45 = vpop.permute.xlu0 %2453  ;;  %918 = vst.msk [vmem:[#allocation2 + $0x70] sm:$0xff] %vm910_vm5, %v874_v44 }
  0xeb   : > { %2499 = vst.msk [vmem:[#allocation2 + $0x60] sm:$0xff] %vm2492_vm11, %v2454_v45  ;;  %1430 = vrot.lane.b32.xlu1 %v1390_v35, %s9115_s29  ;;  %v343_v35 = vld [vmem:[%s13904_s1 + $0x38] sm:$0xff] }
  0xec   : > { %1077 = vrot.lane.b32.xlu0 %v8857_v37, %s9113_s25  ;;  %v342_v37 = vld [vmem:[%s13904_s1 + $0x30] sm:$0xff] }
  0xed   : > { %v1415_v55 = vpop.permute.xlu1 %1414 }
  0xee   : > { %v1062_v57 = vpop.permute.xlu0 %1061 }
  0xef   : > { %1106 = vst.msk [vmem:[#allocation2 + $0x70] sm:$0xff] %vm1098_vm6, %v1062_v57  ;;  %1951 = vrot.lane.b32.xlu1 %v1912_v22, %s9117_s10 }
  0xf0   : > { %1459 = vst.msk [vmem:[#allocation2 + $0x70] sm:$0xff] %vm1451_vm7, %v1415_v55  ;;  %1618 = vrot.lane.b32.xlu0 %v8859_v47, %s9112_s22  ;;  %v345_v47 = vld [vmem:[%s13904_s1 + $0x48] sm:$0xff]  ;;  %v348_v55 = vld [vmem:[%s13904_s1 + $0x60] sm:$0xff] }
  0xf1   : > { %v1936_v27 = vpop.permute.xlu1 %1935 }
  0xf2   : > { %v1603_v5 = vpop.permute.xlu0 %1602  ;;  %v2715_v6 = vld [vmem:[#allocation2 + $0x60] sm:$0xff] }
  0xf3   : > { %1647 = vst.msk [vmem:[#allocation2 + $0x70] sm:$0xff] %vm1639_vm8, %v1603_v5  ;;  %2948 = vmatmul.mubr.bf16.gmra.mrb[24].mxu0 %v2715_v6  ;;  %2471 = vrot.lane.b32.xlu1 %v2432_v50, %s9118_s13  ;;  %v349_v50 = vld [vmem:[%s13904_s1 + $0x68] sm:$0xff] }
  0xf4   : > { %1980 = vst.msk [vmem:[#allocation2 + $0x70] sm:$0xff] %vm1972_vm9, %v1936_v27  ;;  %2139 = vrot.lane.b32.xlu0 %v8862_v29, %s9114_s26  ;;  %8314 = vmatprep.mubr.msk.bf16.mxu0 %vm556_vm3, %v2718_v52  ;;  %v353_v6 = vld [vmem:[%s13904_s1 + $0x88] sm:$0xff] }
  0xf5   : > { %v2456_v56 = vpop.permute.xlu1 %2455 }
  0xf6   : > { %v2124_v17 = vpop.permute.xlu0 %2123 }
  0xf7   : > { %2168 = vst.msk [vmem:[#allocation2 + $0x70] sm:$0xff] %vm2160_vm10, %v2124_v17  ;;  %1079 = vrot.lane.b32.xlu1 %v8863_v8, %s9113_s25  ;;  %v358_v17 = vld [vmem:[%s13904_s1 + $0xb0] sm:$0xff] }
  0xf8   : > { %2500 = vst.msk [vmem:[#allocation2 + $0x70] sm:$0xff] %vm2492_vm11, %v2456_v56  ;;  %891 = vrot.lane.b32.xlu0 %v858_v63, %s9116_s30  ;;  %v355_v56 = vld [vmem:[%s13904_s1 + $0x98] sm:$0xff] }
  0xf9   : > { %v1064_v19 = vpop.permute.xlu1 %1063 }
  0xfa   : > { %v876_v20 = vpop.permute.xlu0 %875 }
  0xfb   : > { %919 = vst.msk [vmem:[#allocation2 + $0x80] sm:$0xff] %vm910_vm5, %v876_v20  ;;  %1620 = vrot.lane.b32.xlu1 %v8866_v18, %s9112_s22  ;;  %v2726_v18 = vld [vmem:[#allocation2 + $0xb8] sm:$0xff]  ;;  %v361_v20 = vld [vmem:[%s13904_s1 + $0xc8] sm:$0xff] }
  0xfc   : > { %1107 = vst.msk [vmem:[#allocation2 + $0x80] sm:$0xff] %vm1098_vm6, %v1064_v19  ;;  %1432 = vrot.lane.b32.xlu0 %v1399_v23, %s9115_s29  ;;  %v359_v23 = vld [vmem:[%s13904_s1 + $0xb8] sm:$0xff]  ;;  %s8700_s29 = smul.u32 272, %s14230_s12 }
  0xfd   : > { %v1605_v39 = vpop.permute.xlu1 %1604 }
  0xfe   : > { %v1417_v15 = vpop.permute.xlu0 %1416 }
  0xff   : > { %1460 = vst.msk [vmem:[#allocation2 + $0x80] sm:$0xff] %vm1451_vm7, %v1417_v15  ;;  %2141 = vrot.lane.b32.xlu1 %v8869_v42, %s9114_s26  ;;  %v2717_v58 = vld [vmem:[#allocation2 + $0x70] sm:$0xff]  ;;  %v364_v15 = vld [vmem:[%s13904_s1 + $0xe0] sm:$0xff] }
 0x100   : > { %1648 = vst.msk [vmem:[#allocation2 + $0x80] sm:$0xff] %vm1639_vm8, %v1605_v39  ;;  %1953 = vrot.lane.b32.xlu0 %v1920_v24, %s9117_s10  ;;  %2956 = vmatmul.mubr.bf16.gmra.mrb[28].mxu0 %v2717_v58  ;;  %v362_v39 = vld [vmem:[%s13904_s1 + $0xd0] sm:$0xff]  ;;  %v2728_v58 = vld [vmem:[#allocation2 + $0xc8] sm:$0xff]  ;;  %s13813_s10 = scalar_lea.vmem %s13912_s9, %s8700_s29 }
 0x101   : > { %v2126_v1 = vpop.permute.xlu1 %2125  ;;  %8315 = vmatprep.mubr.msk.bf16.mxu0 %vm556_vm3, %v2720_v21 }
 0x102   : > { %v1938_v0 = vpop.permute.xlu0 %1937 }
 0x103   : > { %1981 = vst.msk [vmem:[#allocation2 + $0x80] sm:$0xff] %vm1972_vm9, %v1938_v0  ;;  %3133 = vperm.xlu1 %8719, %v340_v12  }
 0x104   : > { %2169 = vst.msk [vmem:[#allocation2 + $0x80] sm:$0xff] %vm2160_vm10, %v2126_v1  ;;  %2473 = vrot.lane.b32.xlu0 %v2440_v28, %s9118_s13 }
 0x105   : > { %v878_v53 = vpop.permute.xlu1 %877 }
 0x106   : > { %v2458_v33 = vpop.permute.xlu0 %2457  ;;  %920 = vst.msk [vmem:[#allocation2 + $0x90] sm:$0xff] %vm910_vm5, %v878_v53 }
 0x107   : > { %2501 = vst.msk [vmem:[#allocation2 + $0x80] sm:$0xff] %vm2492_vm11, %v2458_v33  ;;  %3123 = vperm.xlu1 %8719, %v338_v43  }
 0x108   : > { %3138 = vperm.xlu0 %8720, %v341_v30  }
 0x109   : > { %v1419_v36 = vpop.permute.xlu1 %1418 }
 0x10a   : > { %v1066_v38 = vpop.permute.xlu0 %1065 }
 0x10b   : > { %1108 = vst.msk [vmem:[#allocation2 + $0x90] sm:$0xff] %vm1098_vm6, %v1066_v38  ;;  %3128 = vperm.xlu1 %8719, %v339_v34   ;;  %v2730_v34 = vld [vmem:[#allocation2 + $0xd8] sm:$0xff] }
 0x10c   : > { %1461 = vst.msk [vmem:[#allocation2 + $0x90] sm:$0xff] %vm1451_vm7, %v1419_v36  ;;  %3143 = vperm.xlu0 %8720, %v342_v37  }
 0x10d   : > { %v1940_v32 = vpop.permute.xlu1 %1939 }
 0x10e   : > { %v1607_v44 = vpop.permute.xlu0 %1606  ;;  %v2719_v45 = vld [vmem:[#allocation2 + $0x80] sm:$0xff] }
 0x10f   : > { %1649 = vst.msk [vmem:[#allocation2 + $0x90] sm:$0xff] %vm1639_vm8, %v1607_v44  ;;  %2964 = vmatmul.mubr.bf16.gmra.mrb[32].mxu0 %v2719_v45  ;;  %3148 = vperm.xlu1 %8719, %v343_v35   ;;  %v2732_v45 = vld [vmem:[#allocation2 + $0xe8] sm:$0xff] }
 0x110   : > { %1982 = vst.msk [vmem:[#allocation2 + $0x90] sm:$0xff] %vm1972_vm9, %v1940_v32  ;;  %3153 = vperm.xlu0 %8720, %v344_v13   ;;  %8316 = vmatprep.mubr.msk.bf16.mxu0 %vm556_vm3, %v2722_v41 }
 0x111   : > { %v2460_v51 = vpop.permute.xlu1 %2459 }
 0x112   : > { %v2128_v22 = vpop.permute.xlu0 %2127 }
 0x113   : > { %2170 = vst.msk [vmem:[#allocation2 + $0x90] sm:$0xff] %vm2160_vm10, %v2128_v22  ;;  %3158 = vperm.xlu1 %8719, %v345_v47  }
 0x114   : > { %2502 = vst.msk [vmem:[#allocation2 + $0x90] sm:$0xff] %vm2492_vm11, %v2460_v51  ;;  %3163 = vperm.xlu0 %8720, %v346_v49  }
 0x115   : > { %v1068_v7 = vpop.permute.xlu1 %1067 }
 0x116   : > { %v880_v57 = vpop.permute.xlu0 %879 }
 0x117   : > { %921 = vst.msk [vmem:[#allocation2 + $0xa0] sm:$0xff] %vm910_vm5, %v880_v57  ;;  %3168 = vperm.xlu1 %8719, %v347_v3  }
 0x118   : > { %1109 = vst.msk [vmem:[#allocation2 + $0xa0] sm:$0xff] %vm1098_vm6, %v1068_v7  ;;  %3173 = vperm.xlu0 %8720, %v348_v55  }
 0x119   : > { %v1609_v29 = vpop.permute.xlu1 %1608 }
 0x11a   : > { %v1421_v27 = vpop.permute.xlu0 %1420 }
 0x11b   : > { %1462 = vst.msk [vmem:[#allocation2 + $0xa0] sm:$0xff] %vm1451_vm7, %v1421_v27  ;;  %3178 = vperm.xlu1 %8719, %v349_v50   ;;  %v2721_v54 = vld [vmem:[#allocation2 + $0x90] sm:$0xff]  ;;  %v2734_v50 = vld [vmem:[#allocation2 + $0xf8] sm:$0xff] }
 0x11c   : > { %1650 = vst.msk [vmem:[#allocation2 + $0xa0] sm:$0xff] %vm1639_vm8, %v1609_v29  ;;  %3183 = vperm.xlu0 %8720, %v350_v60   ;;  %2972 = vmatmul.mubr.bf16.gmra.mrb[36].mxu0 %v2721_v54 }
 0x11d   : > { %v2130_v52 = vpop.permute.xlu1 %2129  ;;  %8317 = vmatprep.mubr.msk.bf16.mxu0 %vm556_vm3, %v2724_v61 }
 0x11e   : > { %v1942_v5 = vpop.permute.xlu0 %1941 }
 0x11f   : > { %1983 = vst.msk [vmem:[#allocation2 + $0xa0] sm:$0xff] %vm1972_vm9, %v1942_v5  ;;  %3188 = vperm.xlu1 %8719, %v351_v31   ;;  %v2736_v5 = vld [vmem:[#allocation2 + $0x108] sm:$0xff] }
 0x120   : > { %2171 = vst.msk [vmem:[#allocation2 + $0xa0] sm:$0xff] %vm2160_vm10, %v2130_v52  ;;  %3193 = vperm.xlu0 %8720, %v352_v4  }
 0x121   : > { %v882_v8 = vpop.permute.xlu1 %881 }
 0x122   : > { %v2462_v11 = vpop.permute.xlu0 %2461  ;;  %922 = vst.msk [vmem:[#allocation2 + $0xb0] sm:$0xff] %vm910_vm5, %v882_v8  ;;  %v8889_v8 = vld [vmem:[%s13908_s5 + $0x80] sm:$0xff]  }
 0x123   : > { %2503 = vst.msk [vmem:[#allocation2 + $0xa0] sm:$0xff] %vm2492_vm11, %v2462_v11  ;;  %3198 = vperm.xlu1 %8719, %v353_v6   ;;  %8547 = vmatpush1.bf16.msra.mxu1 %v8889_v8 }
 0x124   : > { %3203 = vperm.xlu0 %8720, %v354_v9   ;;  %8532 = vmatprep.subr.bf16.mxu1 %v13915_v2 }
 0x125   : > { %v1423_v63 = vpop.permute.xlu1 %1422 }
 0x126   : > { %v1070_v16 = vpop.permute.xlu0 %1069 }
 0x127   : > { %1110 = vst.msk [vmem:[#allocation2 + $0xb0] sm:$0xff] %vm1098_vm6, %v1070_v16  ;;  %3208 = vperm.xlu1 %8719, %v355_v56   ;;  %v8890_v56 = vld [vmem:[%s13908_s5 + $0x88] sm:$0xff]  }
 0x128   : > { %1463 = vst.msk [vmem:[#allocation2 + $0xb0] sm:$0xff] %vm1451_vm7, %v1423_v63  ;;  %3213 = vperm.xlu0 %8720, %v356_v10   ;;  %8548 = vmatpush1.bf16.msra.mxu1 %v8890_v56 }
 0x129   : > { %v1944_v62 = vpop.permute.xlu1 %1943  ;;  %8533 = vmatprep.subr.bf16.mxu1 %v13915_v2 }
 0x12a   : > { %v1611_v40 = vpop.permute.xlu0 %1610  ;;  %v2723_v19 = vld [vmem:[#allocation2 + $0xa0] sm:$0xff] }
 0x12b   : > { %1651 = vst.msk [vmem:[#allocation2 + $0xb0] sm:$0xff] %vm1639_vm8, %v1611_v40  ;;  %2980 = vmatmul.mubr.bf16.gmra.mrb[40].mxu0 %v2723_v19  ;;  %3218 = vperm.xlu1 %8719, %v357_v59  }
 0x12c   : > { %1984 = vst.msk [vmem:[#allocation2 + $0xb0] sm:$0xff] %vm1972_vm9, %v1944_v62  ;;  %3223 = vperm.xlu0 %8720, %v358_v17   ;;  %8318 = vmatprep.mubr.msk.bf16.mxu0 %vm556_vm3, %v2726_v18  ;;  %v8891_v62 = vld [vmem:[%s13908_s5 + $0x90] sm:$0xff]   ;;  %v8892_v18 = vld [vmem:[%s13908_s5 + $0x98] sm:$0xff]  }
 0x12d   : > { %v2464_v46 = vpop.permute.xlu1 %2463  ;;  %8549 = vmatpush1.bf16.msra.mxu1 %v8891_v62 }
 0x12e   : > { %v2132_v48 = vpop.permute.xlu0 %2131  ;;  %8534 = vmatprep.subr.bf16.mxu1 %v13915_v2 }
 0x12f   : > { %2172 = vst.msk [vmem:[#allocation2 + $0xb0] sm:$0xff] %vm2160_vm10, %v2132_v48  ;;  %3228 = vperm.xlu1 %8719, %v359_v23   ;;  %v10236_v23 = vld [vmem:[%s13907_s4] ss:$0 sm:$0xff] }
 0x130   : > { %2504 = vst.msk [vmem:[#allocation2 + $0xb0] sm:$0xff] %vm2492_vm11, %v2464_v46  ;;  %3233 = vperm.xlu0 %8720, %v360_v14   ;;  %v8893_v14 = vld [vmem:[%s13908_s5 + $0xa0] sm:$0xff]  }
 0x131   : > { %v1072_v42 = vpop.permute.xlu1 %1071  ;;  %8550 = vmatpush1.bf16.msra.mxu1 %v8892_v18  ;;  %v8901_v18 = vld [vmem:[%s13908_s5 + $0xe0] sm:$0xff]  }
 0x132   : > { %v884_v24 = vpop.permute.xlu0 %883  ;;  %8535 = vmatprep.subr.bf16.mxu1 %v13915_v2 }
 0x133   : > { %923 = vst.msk [vmem:[#allocation2 + $0xc0] sm:$0xff] %vm910_vm5, %v884_v24  ;;  %3238 = vperm.xlu1 %8719, %v361_v20  }
 0x134   : > { %1111 = vst.msk [vmem:[#allocation2 + $0xc0] sm:$0xff] %vm1098_vm6, %v1072_v42  ;;  %3243 = vperm.xlu0 %8720, %v362_v39  }
 0x135   : > { %v1613_v26 = vpop.permute.xlu1 %1612  ;;  %8551 = vmatpush1.bf16.msra.mxu1 %v8893_v14 }
 0x136   : > { %v1425_v21 = vpop.permute.xlu0 %1424  ;;  %8536 = vmatprep.subr.bf16.mxu1 %v13915_v2 }
 0x137   : > { %1464 = vst.msk [vmem:[#allocation2 + $0xc0] sm:$0xff] %vm1451_vm7, %v1425_v21  ;;  %3248 = vperm.xlu1 %8719, %v363_v25   ;;  %v2725_v12 = vld [vmem:[#allocation2 + $0xb0] sm:$0xff]  ;;  %v10249_v25 = vld [vmem:[%s13905_s2] ss:$0 sm:$0xff] }
 0x138   : > { %1652 = vst.msk [vmem:[#allocation2 + $0xc0] sm:$0xff] %vm1639_vm8, %v1613_v26  ;;  %3253 = vperm.xlu0 %8720, %v364_v15   ;;  %2988 = vmatmul.mubr.bf16.gmra.mrb[44].mxu0 %v2725_v12  ;;  %v8894_v26 = vld [vmem:[%s13908_s5 + $0xa8] sm:$0xff]   ;;  %v8895_v12 = vld [vmem:[%s13908_s5 + $0xb0] sm:$0xff]  }
 0x139   : > { %v2134_v1 = vpop.permute.xlu1 %2133  ;;  %8319 = vmatprep.mubr.msk.bf16.mxu0 %vm556_vm3, %v2728_v58  ;;  %8552 = vmatpush1.bf16.msra.mxu1 %v8894_v26 }
 0x13a   : > { %v1946_v28 = vpop.permute.xlu0 %1945  ;;  %8537 = vmatprep.subr.bf16.mxu1 %v13915_v2 }
 0x13b   : > { %1985 = vst.msk [vmem:[#allocation2 + $0xc0] sm:$0xff] %vm1972_vm9, %v1946_v28 }
 0x13c   : > { %2173 = vst.msk [vmem:[#allocation2 + $0xc0] sm:$0xff] %vm2160_vm10, %v2134_v1 }
 0x13d   : > { %v886_v0 = vpop.permute.xlu1 %885  ;;  %8553 = vmatpush1.bf16.msra.mxu1 %v8895_v12 }
 0x13e   : > { %v2466_v43 = vpop.permute.xlu0 %2465  ;;  %924 = vst.msk [vmem:[#allocation2 + $0xd0] sm:$0xff] %vm910_vm5, %v886_v0  ;;  %8538 = vmatprep.subr.bf16.mxu1 %v13915_v2 }
 0x13f   : > { %2505 = vst.msk [vmem:[#allocation2 + $0xc0] sm:$0xff] %vm2492_vm11, %v2466_v43 }
 0x141   : > { %v1427_v53 = vpop.permute.xlu1 %1426 }
 0x142   : > { %v1074_v30 = vpop.permute.xlu0 %1073 }
 0x143   : > { %1112 = vst.msk [vmem:[#allocation2 + $0xd0] sm:$0xff] %vm1098_vm6, %v1074_v30  ;;  %v8896_v30 = vld [vmem:[%s13908_s5 + $0xb8] sm:$0xff]  }
 0x144   : > { %1465 = vst.msk [vmem:[#allocation2 + $0xd0] sm:$0xff] %vm1451_vm7, %v1427_v53  ;;  %8554 = vmatpush1.bf16.msra.mxu1 %v8896_v30 }
 0x145   : > { %v1948_v33 = vpop.permute.xlu1 %1947  ;;  %8539 = vmatprep.subr.bf16.mxu1 %v13915_v2 }
 0x146   : > { %v1615_v36 = vpop.permute.xlu0 %1614  ;;  %v2727_v37 = vld [vmem:[#allocation2 + $0xc0] sm:$0xff] }
 0x147   : > { %1653 = vst.msk [vmem:[#allocation2 + $0xd0] sm:$0xff] %vm1639_vm8, %v1615_v36  ;;  %2996 = vmatmul.mubr.bf16.gmra.mrb[48].mxu0 %v2727_v37 }
 0x148   : > { %1986 = vst.msk [vmem:[#allocation2 + $0xd0] sm:$0xff] %vm1972_vm9, %v1948_v33  ;;  %8320 = vmatprep.mubr.msk.bf16.mxu0 %vm556_vm3, %v2730_v34 }
 0x149   : > { %v2468_v38 = vpop.permute.xlu1 %2467 }
 0x14a   : > { %v2136_v35 = vpop.permute.xlu0 %2135 }
 0x14b   : > { %2174 = vst.msk [vmem:[#allocation2 + $0xd0] sm:$0xff] %vm2160_vm10, %v2136_v35  ;;  %v8897_v35 = vld [vmem:[%s13908_s5 + $0xc0] sm:$0xff]  }
 0x14c   : > { %2506 = vst.msk [vmem:[#allocation2 + $0xd0] sm:$0xff] %vm2492_vm11, %v2468_v38  ;;  %8555 = vmatpush1.bf16.msra.mxu1 %v8897_v35 }
 0x14d   : > { %v1076_v32 = vpop.permute.xlu1 %1075  ;;  %8540 = vmatprep.subr.bf16.mxu1 %v13915_v2 }
 0x14e   : > { %v888_v13 = vpop.permute.xlu0 %887 }
 0x14f   : > { %925 = vst.msk [vmem:[#allocation2 + $0xe0] sm:$0xff] %vm910_vm5, %v888_v13 }
 0x150   : > { %1113 = vst.msk [vmem:[#allocation2 + $0xe0] sm:$0xff] %vm1098_vm6, %v1076_v32 }
 0x151   : > { %v1617_v41 = vpop.permute.xlu1 %1616 }
 0x152   : > { %v1429_v44 = vpop.permute.xlu0 %1428 }
 0x153   : > { %1466 = vst.msk [vmem:[#allocation2 + $0xe0] sm:$0xff] %vm1451_vm7, %v1429_v44  ;;  %v2729_v47 = vld [vmem:[#allocation2 + $0xd0] sm:$0xff] }
 0x154   : > { %1654 = vst.msk [vmem:[#allocation2 + $0xe0] sm:$0xff] %vm1639_vm8, %v1617_v41  ;;  %3004 = vmatmul.mubr.bf16.gmra.mrb[52].mxu0 %v2729_v47  ;;  %v8898_v47 = vld [vmem:[%s13908_s5 + $0xc8] sm:$0xff]  }
 0x155   : > { %v2138_v51 = vpop.permute.xlu1 %2137  ;;  %8321 = vmatprep.mubr.msk.bf16.mxu0 %vm556_vm3, %v2732_v45  ;;  %8556 = vmatpush1.bf16.msra.mxu1 %v8898_v47 }
 0x156   : > { %v1950_v49 = vpop.permute.xlu0 %1949  ;;  %8541 = vmatprep.subr.bf16.mxu1 %v13915_v2 }
 0x157   : > { %1987 = vst.msk [vmem:[#allocation2 + $0xe0] sm:$0xff] %vm1972_vm9, %v1950_v49 }
 0x158   : > { %2175 = vst.msk [vmem:[#allocation2 + $0xe0] sm:$0xff] %vm2160_vm10, %v2138_v51 }
 0x159   : > { %v890_v22 = vpop.permute.xlu1 %889 }
 0x15a   : > { %v2470_v3 = vpop.permute.xlu0 %2469  ;;  %926 = vst.msk [vmem:[#allocation2 + $0xf0] sm:$0xff] %vm910_vm5, %v890_v22 }
 0x15b   : > { %2507 = vst.msk [vmem:[#allocation2 + $0xe0] sm:$0xff] %vm2492_vm11, %v2470_v3 }
 0x15d   : > { %v1431_v7 = vpop.permute.xlu1 %1430 }
 0x15e   : > { %v1078_v55 = vpop.permute.xlu0 %1077 }
 0x15f   : > { %1114 = vst.msk [vmem:[#allocation2 + $0xf0] sm:$0xff] %vm1098_vm6, %v1078_v55 }
 0x160   : > { %1467 = vst.msk [vmem:[#allocation2 + $0xf0] sm:$0xff] %vm1451_vm7, %v1431_v7 }
 0x161   : > { %v1952_v57 = vpop.permute.xlu1 %1951 }
 0x162   : > { %v1619_v29 = vpop.permute.xlu0 %1618  ;;  %v2731_v60 = vld [vmem:[#allocation2 + $0xe0] sm:$0xff] }
 0x163   : > { %1655 = vst.msk [vmem:[#allocation2 + $0xf0] sm:$0xff] %vm1639_vm8, %v1619_v29  ;;  %3012 = vmatmul.mubr.bf16.gmra.mrb[56].mxu0 %v2731_v60 }
 0x164   : > { %1988 = vst.msk [vmem:[#allocation2 + $0xf0] sm:$0xff] %vm1972_vm9, %v1952_v57  ;;  %8322 = vmatprep.mubr.msk.bf16.mxu0 %vm556_vm3, %v2734_v50  ;;  %v8899_v50 = vld [vmem:[%s13908_s5 + $0xd0] sm:$0xff]  }
 0x165   : > { %v2472_v27 = vpop.permute.xlu1 %2471  ;;  %8557 = vmatpush1.bf16.msra.mxu1 %v8899_v50 }
 0x166   : > { %v2140_v61 = vpop.permute.xlu0 %2139  ;;  %8542 = vmatprep.subr.bf16.mxu1 %v13915_v2 }
 0x167   : > { %2176 = vst.msk [vmem:[#allocation2 + $0xf0] sm:$0xff] %vm2160_vm10, %v2140_v61 }
 0x168   : > { %2508 = vst.msk [vmem:[#allocation2 + $0xf0] sm:$0xff] %vm2492_vm11, %v2472_v27 }
 0x169   : > { %v1080_v54 = vpop.permute.xlu1 %1079 }
 0x16a   : > { %v892_v31 = vpop.permute.xlu0 %891 }
 0x16b   : > { %927 = vst.msk [vmem:[#allocation2 + $0x100] sm:$0xff] %vm910_vm5, %v892_v31  ;;  %vm6147_vm5 = vcmask 1045504  }
 0x16c   : > { %1115 = vst.msk [vmem:[#allocation2 + $0x100] sm:$0xff] %vm1098_vm6, %v1080_v54  ;;  %vm7609_vm6 = vcmask 261126  }
 0x16d   : > { %v1621_v52 = vpop.permute.xlu1 %1620 }
 0x16e   : > { %v1433_v4 = vpop.permute.xlu0 %1432 }
 0x16f   : > { %1468 = vst.msk [vmem:[#allocation2 + $0x100] sm:$0xff] %vm1451_vm7, %v1433_v4  ;;  %v2733_v6 = vld [vmem:[#allocation2 + $0xf0] sm:$0xff]  ;;  %vm8040_vm7 = vcmask 7168  }
 0x170   : > { %3020 = vmatmul.mubr.bf16.gmra.mrb[60].mxu0 %v2733_v6  ;;  %1656 = vst.msk [vmem:[#allocation2 + $0x100] sm:$0xff] %vm1639_vm8, %v1621_v52  ;;  %vm8074_vm8 = vcmask 5120  }
 0x171   : > { %v2142_v9 = vpop.permute.xlu1 %2141  ;;  %8323 = vmatprep.mubr.msk.bf16.mxu0 %vm556_vm3, %v2736_v5  ;;  %v8900_v5 = vld [vmem:[%s13908_s5 + $0xd8] sm:$0xff]   ;;  %vm5644_vm3 = vcmask 1043456  }
 0x172   : > { %v1954_v11 = vpop.permute.xlu0 %1953  ;;  %8558 = vmatpush1.bf16.msra.mxu1 %v8900_v5 }
 0x173   : > { %1989 = vst.msk [vmem:[#allocation2 + $0x100] sm:$0xff] %vm1972_vm9, %v1954_v11  ;;  %8543 = vmatprep.subr.bf16.mxu1 %v13915_v2 }
 0x174   : > { %2177 = vst.msk [vmem:[#allocation2 + $0x100] sm:$0xff] %vm2160_vm10, %v2142_v9 }
 0x176   : > { %v2474_v63 = vpop.permute.xlu0 %2473  ;;  %8559 = vmatpush1.bf16.msra.mxu1 %v8901_v18 }
 0x177   : > { %v10219_v10 = vpop.f32.mrb[0].mxu0  ;;  %2509 = vst.msk [vmem:[#allocation2 + $0x100] sm:$0xff] %vm2492_vm11, %v2474_v63  ;;  %8544 = vmatprep.subr.bf16.mxu1 %v13915_v2 }
 0x178   : > { %v2903_v16 = vpop.f32.mrb[1].mxu0 }
 0x179   : > { %v10223_v59 = vpop.f32.mrb[2].mxu0 }
 0x17a   : > { %v2906_v17 = vpop.f32.mrb[3].mxu0 }
 0x17e   : > { %v2735_v40 = vld [vmem:[#allocation2 + $0x100] sm:$0xff] }
 0x17f   : > { %v2909_v19 = vpop.f32.mrb[4].mxu0  ;;  %3028 = vmatmul.mubr.bf16.gmra.mrb[64].mxu0 %v2735_v40 }
 0x180   : > { %v2911_v46 = vpop.f32.mrb[5].mxu0  ;;  %v2910_v48 = vadd.f32 %v10236_v23, %v2909_v19 }
 0x181   : > { %v2912_v20 = vpop.f32.mrb[6].mxu0 }
 0x182   : > { %v2913_v42 = vadd.f32 %v10236_v23, %v2912_v20  ;;  %v2914_v39 = vpop.f32.mrb[7].mxu0  ;;  %v10243_v24 = vpop.permute.xlu1 %3133  ;;  %v3045_v15 = vmul.f32 %v10249_v25, %v2910_v48 }
 0x184   : > { %v3046_v21 = vmul.f32 %v10249_v25, %v2913_v42  ;;  %v3079_v1 = vmax.f32 %v2910_v48, %v3045_v15 }
 0x186   : > { %v10256_v58 = vpop.permute.xlu1 %3123  ;;  %v3080_v28 = vmax.f32 %v2913_v42, %v3046_v21 }
 0x187   : > { %v3283_v43 = vmul.f32 %v10256_v58, %v3079_v1  ;;  %v10283_v49 = vpop.permute.xlu0 %3138 }
 0x18a   : > { %v10262_v0 = vpop.permute.xlu1 %3128 }
 0x18b   : > { %v3284_v53 = vmul.f32 %v10262_v0, %v3080_v28  ;;  %v10320_v20 = vpop.permute.xlu0 %3143 }
 0x18d   : > { %v3316_v33 = vpack.c.bf16 %v3284_v53, %v3283_v43  ;;  %v8902_v43 = vld [vmem:[%s13908_s5 + $0xe8] sm:$0xff]  }
 0x18e   : > { %v2917_v34 = vpop.f32.mrb[8].mxu0  ;;  %v10322_v42 = vpop.permute.xlu1 %3148  ;;  %8560 = vmatpush1.bf16.msra.mxu1 %v8902_v43 }
 0x18f   : > { %3333 = vst.msk [vmem:[#allocation4 + $0x18] sm:$0xff] %vm370_vm12, %v3316_v33  ;;  %v2918_v36 = vadd.f32 %v10236_v23, %v2917_v34  ;;  %v2919_v37 = vpop.f32.mrb[9].mxu0  ;;  %8545 = vmatprep.subr.bf16.mxu1 %v13915_v2 }
 0x190   : > { %v2920_v38 = vpop.f32.mrb[10].mxu0 }
 0x191   : > { %v3047_v32 = vmul.f32 %v10249_v25, %v2918_v36  ;;  %v2921_v13 = vadd.f32 %v10236_v23, %v2920_v38  ;;  %v2922_v41 = vpop.f32.mrb[11].mxu0 }
 0x193   : > { %v3081_v44 = vmax.f32 %v2918_v36, %v3047_v32  ;;  %v3048_v45 = vmul.f32 %v10249_v25, %v2921_v13 }
 0x195   : > { %v3082_v51 = vmax.f32 %v2921_v13, %v3048_v45  ;;  %v3285_v7 = vmul.f32 %v10243_v24, %v3081_v44  ;;  %v8903_v44 = vld [vmem:[%s13908_s5 + $0xf0] sm:$0xff]   ;;  %v365_v45 = vld [vmem:[%s13904_s1 + $0xe8] sm:$0xff] }
 0x196   : > { %v3978_v22 = vld [vmem:[#allocation4 + $0x18] sm:$0xff]  ;;  %8561 = vmatpush1.bf16.msra.mxu1 %v8903_v44 }
 0x197   : > { %v10285_v3 = vld [vmem:[#allocation4 + $0x18] sm:$0xff]  ;;  %v3286_v55 = vmul.f32 %v10283_v49, %v3082_v51  ;;  %3961 = vst.msk [vmem:[#allocation3 + $0x38] sm:$0xff] %vm370_vm12, %v3978_v22  ;;  %v4003_v4 = vshll.u32 %v3978_v22, 16  ;;  %v4007_v14 = vshrl.u32 %v3978_v22, 16  ;;  %8546 = vmatprep.subr.bf16.mxu1 %v13915_v2 }
 0x198   : > { %3702 = vst.msk [vmem:[#allocation3 + $0x58] sm:$0xff] %vm370_vm12, %v10285_v3  ;;  %v4203_v57 = vld [vmem:[#allocation4 + $0x18] sm:$0xff]  ;;  %v13913_v29 = vshll.u32 %v10285_v3, 16  ;;  %v3495_v27 = vshrl.u32 %v10285_v3, 16  ;;  %v13914_v21 = vrot.slane %v10285_v3, 7 }
 0x199   : > { %4220 = vst.msk [vmem:[#allocation3 + $0x18] sm:$0xff] %vm370_vm12, %v4203_v57  ;;  %v3317_v60 = vpack.c.bf16 %v3286_v55, %v3285_v7  ;;  %v4463_v63 = vld [vmem:[#allocation4 + $0x18] sm:$0xfe]  ;;  %v10311_v17 = vrot.slane %v4003_v4, 1  ;;  %v8904_v57 = vld [vmem:[%s13908_s5 + $0xf8] sm:$0xff]  }
 0x19a   : > { %v4260_v61 = vrot.slane %v13913_v29, 1  ;;  %v4499_v40 = vrot.slane %v4463_v63, 1  ;;  %v10354_v32 = vrot.slane %v3495_v27, 7  ;;  %8562 = vmatpush1.bf16.msra.mxu1 %v8904_v57  ;;  %v10396_v63 = vpop.permute.xlu0 %3153 }
 0x19b   : > { %3334 = vst.msk [vmem:[#allocation4 + $0x20] sm:$0xff] %vm370_vm12, %v3317_v60  ;;  %v2925_v54 = vpop.f32.mrb[12].mxu0  ;;  %v4009_v28 = vor.u32 %v4007_v14, %v10311_v17 }
 0x19c   : > { %v2926_v31 = vadd.f32 %v10236_v23, %v2925_v54  ;;  %v2927_v52 = vpop.f32.mrb[13].mxu0  ;;  %v4261_v6 = vor.u32 %v4260_v61, %v3495_v27 }
 0x19d   : > { %v2928_v8 = vpop.f32.mrb[14].mxu0 }
 0x19e   : > { %v3049_v9 = vmul.f32 %v10249_v25, %v2926_v31  ;;  %v2929_v11 = vadd.f32 %v10236_v23, %v2928_v8  ;;  %v2930_v56 = vpop.f32.mrb[15].mxu0 }
 0x1a0   : > { %v3083_v16 = vmax.f32 %v2926_v31, %v3049_v9  ;;  %v3050_v62 = vmul.f32 %v10249_v25, %v2929_v11 }
 0x1a2   : > { %v10316_v19 = vld [vmem:[#allocation4 + $0x20] sm:$0xff]  ;;  %v3084_v46 = vmax.f32 %v2929_v11, %v3050_v62  ;;  %v3287_v12 = vmul.f32 %v10320_v20, %v3083_v16  ;;  %v10398_v16 = vpop.permute.xlu1 %3158 }
 0x1a3   : > { %v10318_v48 = vld [vmem:[#allocation4 + $0x20] sm:$0xff]  ;;  %v4500_v39 = vrot.slane %v10316_v19, 1  ;;  %v4011_v26 = vshll.u32 %v10316_v19, 16  ;;  %4221 = vst.msk [vmem:[#allocation3 + $0x40] sm:$0xff] %vm370_vm12, %v10316_v19  ;;  %3962 = vst.msk [vmem:[#allocation3 + $0x60] sm:$0xff] %vm370_vm12, %v10316_v19  ;;  %v4267_v52 = vshrl.u32 %v10316_v19, 16 }
 0x1a4   : > { %v3503_v15 = vshrl.u32 %v10318_v48, 16  ;;  %3703 = vst.msk [vmem:[#allocation3 + $0x80] sm:$0xff] %vm370_vm12, %v10318_v48  ;;  %v3288_v1 = vmul.f32 %v10322_v42, %v3084_v46  ;;  %v3393_v53 = vrot.slane %v10318_v48, 7  ;;  %v3506_v34 = vshll.u32 %v10318_v48, 16  ;;  %v366_v19 = vld [vmem:[%s13904_s1 + $0xf0] sm:$0xff] }
 0x1a5   : > { %v4013_v30 = vrot.slane %v4011_v26, 1  ;;  %v4501_v36 = vsel %vm2633_vm4, %v4499_v40, %v4500_v39 }
 0x1a6   : > { %v10342_v33 = vrot.slane %v3503_v15, 7  ;;  %v3318_v37 = vpack.c.bf16 %v3288_v1, %v3287_v12  ;;  %v3394_v38 = vsel %vm3385_vm13, %v13914_v21, %v3393_v53  ;;  %4551 = vst.msk [vmem:[#allocation3 + $0x20] sm:$0xff] %vm370_vm12, %v4501_v36 }
 0x1a7   : > { %v4014_v35 = vsel %vm1780_vm1, %v4009_v28, %v4013_v30  ;;  %v10358_v41 = vsel %vm1780_vm1, %v4261_v6, %v4013_v30  ;;  %3441 = vst.msk [vmem:[#allocation3 + $0x78] sm:$0xff] %vm370_vm12, %v3394_v38  ;;  %v4269_v11 = vor.u32 %v4267_v52, %v4013_v30 }
 0x1a8   : > { %v3508_v13 = vor.u32 %v3506_v34, %v10342_v33  ;;  %3335 = vst.msk [vmem:[#allocation4 + $0x28] sm:$0xff] %vm370_vm12, %v3318_v37  ;;  %4137 = vrot.lane.b32.xlu1 %v4014_v35, %s9112_s22 }
 0x1aa   : > { %v10371_v47 = vsel %vm3473_vm14, %v10354_v32, %v3508_v13  ;;  %v2933_v51 = vpop.f32.mrb[16].mxu0 }
 0x1ab   : > { %v2934_v22 = vadd.f32 %v10236_v23, %v2933_v51  ;;  %v2935_v7 = vpop.f32.mrb[17].mxu0 }
 0x1ac   : > { %v2936_v55 = vpop.f32.mrb[18].mxu0  ;;  %3258 = vperm.xlu1 %8719, %v365_v45   ;;  %v10430_v7 = vpop.permute.xlu1 %3168 }
 0x1ad   : > { %v3051_v50 = vmul.f32 %v10249_v25, %v2934_v22  ;;  %v2937_v60 = vadd.f32 %v10236_v23, %v2936_v55  ;;  %v2938_v27 = vpop.f32.mrb[19].mxu0 }
 0x1af   : > { %v10380_v61 = vld [vmem:[#allocation4 + $0x28] sm:$0xff]  ;;  %v3085_v54 = vmax.f32 %v2934_v22, %v3051_v50  ;;  %v3052_v31 = vmul.f32 %v10249_v25, %v2937_v60  ;;  %v10428_v22 = vpop.permute.xlu0 %3163 }
 0x1b0   : > { %v10384_v4 = vld [vmem:[#allocation4 + $0x28] sm:$0xff]  ;;  %v4502_v5 = vrot.slane %v10380_v61, 1  ;;  %v4271_v6 = vshll.u32 %v10380_v61, 16  ;;  %4222 = vst.msk [vmem:[#allocation3 + $0x68] sm:$0xff] %vm370_vm12, %v10380_v61  ;;  %3963 = vst.msk [vmem:[#allocation3 + $0x88] sm:$0xff] %vm370_vm12, %v10380_v61  ;;  %v4275_v45 = vshrl.u32 %v10380_v61, 16 }
 0x1b1   : > { %v3511_v8 = vshrl.u32 %v10384_v4, 16  ;;  %3704 = vst.msk [vmem:[#allocation3 + $0xa8] sm:$0xff] %vm370_vm12, %v10384_v4  ;;  %v3086_v9 = vmax.f32 %v2937_v60, %v3052_v31  ;;  %v3395_v56 = vrot.slane %v10384_v4, 7  ;;  %v3514_v40 = vshll.u32 %v10384_v4, 16 }
 0x1b2   : > { %v4273_v62 = vrot.slane %v4271_v6, 1  ;;  %v4503_v46 = vsel %vm2633_vm4, %v4500_v39, %v4502_v5  ;;  %v3289_v14 = vmul.f32 %v10396_v63, %v3085_v54  ;;  %v367_v39 = vld [vmem:[%s13904_s1 + $0xf8] sm:$0xff] }
 0x1b3   : > { %v3513_v18 = vrot.slane %v3511_v8, 7  ;;  %v3290_v48 = vmul.f32 %v10398_v16, %v3086_v9  ;;  %v3396_v26 = vsel %vm3385_vm13, %v3393_v53, %v3395_v56  ;;  %4552 = vst.msk [vmem:[#allocation3 + $0x48] sm:$0xff] %vm370_vm12, %v4503_v46 }
 0x1b4   : > { %v4274_v15 = vsel %vm1780_vm1, %v4269_v11, %v4273_v62  ;;  %3442 = vst.msk [vmem:[#allocation3 + $0xa0] sm:$0xff] %vm370_vm12, %v3396_v26  ;;  %v4277_v54 = vor.u32 %v4275_v45, %v4273_v62 }
 0x1b5   : > { %v3516_v12 = vor.u32 %v3514_v40, %v3513_v18  ;;  %v3319_v1 = vpack.c.bf16 %v3290_v48, %v3289_v14  ;;  %4397 = vrot.lane.b32.xlu0 %v4274_v15, %s9112_s22  ;;  %4139 = vrot.lane.b32.xlu1 %v4274_v15, %s9112_s22 }
 0x1b7   : > { %v10420_v28 = vsel %vm3473_vm14, %v10342_v33, %v3516_v12  ;;  %3336 = vst.msk [vmem:[#allocation4 + $0x30] sm:$0xff] %vm370_vm12, %v3319_v1  ;;  %v2941_v43 = vpop.f32.mrb[20].mxu0 }
 0x1b8   : > { %v2942_v53 = vadd.f32 %v10236_v23, %v2941_v43  ;;  %v2943_v30 = vpop.f32.mrb[21].mxu0 }
 0x1b9   : > { %v2944_v34 = vpop.f32.mrb[22].mxu0  ;;  %3263 = vperm.xlu0 %8720, %v366_v19   ;;  %3268 = vperm.xlu1 %8719, %v367_v39  }
 0x1ba   : > { %v3053_v36 = vmul.f32 %v10249_v25, %v2942_v53  ;;  %v2945_v37 = vadd.f32 %v10236_v23, %v2944_v34  ;;  %v2946_v38 = vpop.f32.mrb[23].mxu0 }
 0x1bc   : > { %v3087_v35 = vmax.f32 %v2942_v53, %v3053_v36  ;;  %v3054_v13 = vmul.f32 %v10249_v25, %v2945_v37 }
 0x1be   : > { %v4466_v44 = vld [vmem:[#allocation4 + $0x30] sm:$0xff]  ;;  %v3088_v33 = vmax.f32 %v2945_v37, %v3054_v13  ;;  %v3291_v60 = vmul.f32 %v10428_v22, %v3087_v35  ;;  %v10467_v13 = vpop.permute.xlu0 %3173 }
 0x1bf   : > { %v3461_v51 = vld [vmem:[#allocation4 + $0x30] sm:$0xff]  ;;  %v4504_v55 = vrot.slane %v4466_v44, 1  ;;  %v4279_v57 = vshll.u32 %v4466_v44, 16  ;;  %4223 = vst.msk [vmem:[#allocation3 + $0x90] sm:$0xff] %vm370_vm12, %v4466_v44  ;;  %3964 = vst.msk [vmem:[#allocation3 + $0xb0] sm:$0xff] %vm370_vm12, %v4466_v44  ;;  %v4283_v53 = vshrl.u32 %v4466_v44, 16  ;;  %v10469_v44 = vpop.permute.xlu1 %3178 }
 0x1c0   : > { %v3519_v50 = vshrl.u32 %v3461_v51, 16  ;;  %3705 = vst.msk [vmem:[#allocation3 + $0xd0] sm:$0xff] %vm370_vm12, %v3461_v51  ;;  %v3292_v27 = vmul.f32 %v10430_v7, %v3088_v33  ;;  %v3397_v61 = vrot.slane %v3461_v51, 7  ;;  %v3522_v4 = vshll.u32 %v3461_v51, 16 }
 0x1c1   : > { %v4281_v31 = vrot.slane %v4279_v57, 1  ;;  %v4505_v6 = vsel %vm2633_vm4, %v4502_v5, %v4504_v55  ;;  %v368_v5 = vld [vmem:[%s13904_s1 + $0x100] sm:$0xff] }
 0x1c2   : > { %v3521_v52 = vrot.slane %v3519_v50, 7  ;;  %v3320_v8 = vpack.c.bf16 %v3292_v27, %v3291_v60  ;;  %v3398_v9 = vsel %vm3385_vm13, %v3395_v56, %v3397_v61  ;;  %4553 = vst.msk [vmem:[#allocation3 + $0x70] sm:$0xff] %vm370_vm12, %v4505_v6  ;;  %v369_v56 = vld [vmem:[%s13904_s1 + $0x108] sm:$0xff] }
 0x1c3   : > { %v4282_v11 = vsel %vm1780_vm1, %v4277_v54, %v4281_v31  ;;  %3443 = vst.msk [vmem:[#allocation3 + $0xc8] sm:$0xff] %vm370_vm12, %v3398_v9  ;;  %v4285_v38 = vor.u32 %v4283_v53, %v4281_v31 }
 0x1c4   : > { %v3524_v40 = vor.u32 %v3522_v4, %v3521_v52  ;;  %3337 = vst.msk [vmem:[#allocation4 + $0x38] sm:$0xff] %vm370_vm12, %v3320_v8  ;;  %4399 = vrot.lane.b32.xlu0 %v4282_v11, %s9112_s22  ;;  %4141 = vrot.lane.b32.xlu1 %v4282_v11, %s9112_s22 }
 0x1c6   : > { %v10452_v62 = vsel %vm3473_vm14, %v3513_v18, %v3524_v40  ;;  %v2949_v46 = vpop.f32.mrb[24].mxu0 }
 0x1c7   : > { %v2950_v14 = vadd.f32 %v10236_v23, %v2949_v46  ;;  %v2951_v48 = vpop.f32.mrb[25].mxu0 }
 0x1c8   : > { %v2952_v26 = vpop.f32.mrb[26].mxu0  ;;  %3273 = vperm.xlu0 %8720, %v368_v5   ;;  %3278 = vperm.xlu1 %8719, %v369_v56  }
 0x1c9   : > { %v3055_v15 = vmul.f32 %v10249_v25, %v2950_v14  ;;  %v2953_v12 = vadd.f32 %v10236_v23, %v2952_v26  ;;  %v2954_v1 = vpop.f32.mrb[27].mxu0 }
 0x1ca   : > { %v10498_v1 = vpop.permute.xlu1 %3188 }
 0x1cb   : > { %v10457_v19 = vld [vmem:[#allocation4 + $0x38] sm:$0xff]  ;;  %v3089_v39 = vmax.f32 %v2950_v14, %v3055_v15  ;;  %v3056_v43 = vmul.f32 %v10249_v25, %v2953_v12  ;;  %14001 = vst [vmem:[#allocation7_spill] sm:$0xff] %v10498_v1 }
 0x1cc   : > { %v3462_v18 = vld [vmem:[#allocation4 + $0x38] sm:$0xff]  ;;  %v4506_v30 = vrot.slane %v10457_v19, 1  ;;  %v4287_v34 = vshll.u32 %v10457_v19, 16  ;;  %4224 = vst.msk [vmem:[#allocation3 + $0xb8] sm:$0xff] %vm370_vm12, %v10457_v19  ;;  %3965 = vst.msk [vmem:[#allocation3 + $0xd8] sm:$0xff] %vm370_vm12, %v10457_v19  ;;  %v4291_v26 = vshrl.u32 %v10457_v19, 16 }
 0x1cd   : > { %v3527_v36 = vshrl.u32 %v3462_v18, 16  ;;  %3706 = vst.msk [vmem:[#allocation3 + $0xf8] sm:$0xff] %vm370_vm12, %v3462_v18  ;;  %v3090_v37 = vmax.f32 %v2953_v12, %v3056_v43  ;;  %v3399_v35 = vrot.slane %v3462_v18, 7  ;;  %v3530_v51 = vshll.u32 %v3462_v18, 16  ;;  %v10496_v12 = vpop.permute.xlu0 %3183 }
 0x1ce   : > { %v4289_v33 = vrot.slane %v4287_v34, 1  ;;  %v4507_v57 = vsel %vm2633_vm4, %v4504_v55, %v4506_v30  ;;  %v3293_v50 = vmul.f32 %v10467_v13, %v3089_v39  ;;  %v337_v55 = vld [vmem:[%s13904_s1 + $0x8] sm:$0xff] }
 0x1cf   : > { %v3529_v45 = vrot.slane %v3527_v36, 7  ;;  %v3294_v60 = vmul.f32 %v10469_v44, %v3090_v37  ;;  %v3400_v27 = vsel %vm3385_vm13, %v3397_v61, %v3399_v35  ;;  %4554 = vst.msk [vmem:[#allocation3 + $0x98] sm:$0xff] %vm370_vm12, %v4507_v57 }
 0x1d0   : > { %v4290_v54 = vsel %vm1780_vm1, %v4285_v38, %v4289_v33  ;;  %3444 = vst.msk [vmem:[#allocation3 + $0xf0] sm:$0xff] %vm370_vm12, %v3400_v27  ;;  %v4293_v34 = vor.u32 %v4291_v26, %v4289_v33 }
 0x1d1   : > { %v3532_v31 = vor.u32 %v3530_v51, %v3529_v45  ;;  %v3321_v4 = vpack.c.bf16 %v3294_v60, %v3293_v50  ;;  %4401 = vrot.lane.b32.xlu0 %v4290_v54, %s9112_s22  ;;  %4143 = vrot.lane.b32.xlu1 %v4290_v54, %s9112_s22 }
 0x1d3   : > { %v10484_v6 = vsel %vm3473_vm14, %v3521_v52, %v3532_v31  ;;  %3338 = vst.msk [vmem:[#allocation4 + $0x40] sm:$0xff] %vm370_vm12, %v3321_v4  ;;  %v2957_v61 = vpop.f32.mrb[28].mxu0 }
 0x1d4   : > { %v2958_v8 = vadd.f32 %v10236_v23, %v2957_v61  ;;  %v2959_v9 = vpop.f32.mrb[29].mxu0 }
 0x1d5   : > { %v2960_v11 = vpop.f32.mrb[30].mxu0  ;;  %3118 = vperm.xlu1 %8719, %v337_v55  }
 0x1d6   : > { %v3057_v40 = vmul.f32 %v10249_v25, %v2958_v8  ;;  %v2961_v5 = vadd.f32 %v10236_v23, %v2960_v11  ;;  %v2962_v56 = vpop.f32.mrb[31].mxu0 }
 0x1d8   : > { %v3091_v46 = vmax.f32 %v2958_v8, %v3057_v40  ;;  %v3058_v14 = vmul.f32 %v10249_v25, %v2961_v5 }
 0x1da   : > { %v10491_v48 = vld [vmem:[#allocation4 + $0x40] sm:$0xff]  ;;  %v3092_v52 = vmax.f32 %v2961_v5, %v3058_v14  ;;  %v3295_v19 = vmul.f32 %v10496_v12, %v3091_v46 }
 0x1db   : > { %v10494_v15 = vld [vmem:[#allocation4 + $0x40] sm:$0xff]  ;;  %v4508_v39 = vrot.slane %v10491_v48, 1  ;;  %v4295_v43 = vshll.u32 %v10491_v48, 16  ;;  %3966 = vst.msk [vmem:[#allocation3 + $0x100] sm:$0xff] %vm370_vm12, %v10491_v48  ;;  %4225 = vst.msk [vmem:[#allocation3 + $0xe0] sm:$0xff] %vm370_vm12, %v10491_v48  ;;  %v4299_v46 = vshrl.u32 %v10491_v48, 16 }
 0x1dc   : > { %v3535_v53 = vshrl.u32 %v10494_v15, 16  ;;  %3707 = vst.msk [vmem:[#allocation3 + $0x120] sm:$0xff] %vm370_vm12, %v10494_v15  ;;  %v3296_v18 = vmul.f32 %v10498_v1, %v3092_v52  ;;  %v3401_v36 = vrot.slane %v10494_v15, 7  ;;  %v3538_v51 = vshll.u32 %v10494_v15, 16  ;;  %v8905_v52 = vld [vmem:[%s13908_s5] sm:$0xff]   ;;  %v10551_v15 = vpop.permute.xlu0 %3193 }
 0x1dd   : > { %v4297_v37 = vrot.slane %v4295_v43, 1  ;;  %v4509_v57 = vsel %vm2633_vm4, %v4506_v30, %v4508_v39  ;;  %v336_v30 = vld [vmem:[%s13904_s1] sm:$0xff]  ;;  %14002 = vst [vmem:[#allocation8_spill] sm:$0xff] %v10551_v15  ;;  %v10553_v43 = vld [vmem:[#allocation4 + $0x98] sm:$0xff]  ;;  %5000 = vmatpush1.bf16.msra.mxu0 %v8905_v52 }
 0x1de   : > { %v10512_v38 = vrot.slane %v3535_v53, 7  ;;  %v3322_v50 = vpack.c.bf16 %v3296_v18, %v3295_v19  ;;  %v3402_v60 = vsel %vm3385_vm13, %v3399_v35, %v3401_v36  ;;  %4555 = vst.msk [vmem:[#allocation3 + $0xc0] sm:$0xff] %vm370_vm12, %v4509_v57  ;;  %v10555_v53 = vld [vmem:[#allocation4 + $0x8] sm:$0xff]  ;;  %v10558_v18 = vpop.permute.xlu1 %3198  ;;  %4236 = vst.msk [vmem:[#allocation3 + $0x298] sm:$0xff] %vm370_vm12, %v10553_v43  ;;  %5001 = vmatprep.subr.bf16.mxu0 %v13915_v2 }
 0x1df   : > { %v4298_v27 = vsel %vm1780_vm1, %v4293_v34, %v4297_v37  ;;  %3445 = vst.msk [vmem:[#allocation3 + $0x118] sm:$0xff] %vm370_vm12, %v3402_v60  ;;  %14003 = vst [vmem:[#allocation9_spill] sm:$0xff] %v10558_v18 }
 0x1e0   : > { %v3540_v54 = vor.u32 %v3538_v51, %v10512_v38  ;;  %3339 = vst.msk [vmem:[#allocation4 + $0x48] sm:$0xff] %vm370_vm12, %v3322_v50  ;;  %4403 = vrot.lane.b32.xlu0 %v4298_v27, %s9112_s22  ;;  %4145 = vrot.lane.b32.xlu1 %v4298_v27, %s9112_s22  ;;  %v4301_v51 = vor.u32 %v4299_v46, %v4297_v37  ;;  %3700 = vst.msk [vmem:[#allocation3 + $0x8] sm:$0xff] %vm370_vm12, %v10555_v53 }
 0x1e2   : > { %v10528_v35 = vsel %vm3473_vm14, %v3529_v45, %v3540_v54  ;;  %v2965_v33 = vpop.f32.mrb[32].mxu0 }
 0x1e3   : > { %v2966_v31 = vadd.f32 %v10236_v23, %v2965_v33  ;;  %v2967_v4 = vpop.f32.mrb[33].mxu0 }
 0x1e4   : > { %v2968_v55 = vpop.f32.mrb[34].mxu0  ;;  %3113 = vperm.xlu0 %8720, %v336_v30  }
 0x1e5   : > { %v3059_v61 = vmul.f32 %v10249_v25, %v2966_v31  ;;  %v2969_v8 = vadd.f32 %v10236_v23, %v2968_v55  ;;  %v2970_v9 = vpop.f32.mrb[35].mxu0 }
 0x1e7   : > { %v10533_v11 = vld [vmem:[#allocation4 + $0x48] sm:$0xff]  ;;  %v3093_v40 = vmax.f32 %v2966_v31, %v3059_v61  ;;  %v3060_v5 = vmul.f32 %v10249_v25, %v2969_v8 }
 0x1e8   : > { %v10536_v56 = vld [vmem:[#allocation4 + $0x48] sm:$0xff]  ;;  %v4510_v45 = vrot.slane %v10533_v11, 1  ;;  %v4303_v14 = vshll.u32 %v10533_v11, 16  ;;  %4226 = vst.msk [vmem:[#allocation3 + $0x108] sm:$0xff] %vm370_vm12, %v10533_v11  ;;  %3967 = vst.msk [vmem:[#allocation3 + $0x128] sm:$0xff] %vm370_vm12, %v10533_v11 }
 0x1e9   : > { %v3543_v26 = vshrl.u32 %v10536_v56, 16  ;;  %3708 = vst.msk [vmem:[#allocation3 + $0x148] sm:$0xff] %vm370_vm12, %v10536_v56  ;;  %v3094_v48 = vmax.f32 %v2969_v8, %v3060_v5  ;;  %v3403_v19 = vrot.slane %v10536_v56, 7  ;;  %v3297_v34 = vmul.f32 %v10551_v15, %v3093_v40  ;;  %v8906_v5 = vld [vmem:[%s13908_s5 + $0x8] sm:$0xff]  }
 0x1ea   : > { %v4305_v57 = vrot.slane %v4303_v14, 1  ;;  %v4511_v54 = vsel %vm2633_vm4, %v4508_v39, %v4510_v45  ;;  %v3546_v30 = vshll.u32 %v10536_v56, 16  ;;  %5002 = vmatpush1.bf16.msra.mxu0 %v8906_v5 }
 0x1eb   : > { %v3298_v50 = vmul.f32 %v10558_v18, %v3094_v48  ;;  %v3545_v60 = vrot.slane %v3543_v26, 7  ;;  %v3404_v27 = vsel %vm3385_vm13, %v3401_v36, %v3403_v19  ;;  %4556 = vst.msk [vmem:[#allocation3 + $0xe8] sm:$0xff] %vm370_vm12, %v4511_v54  ;;  %5003 = vmatprep.subr.bf16.mxu0 %v13915_v2  ;;  %v10594_v26 = vpop.permute.xlu0 %3203  ;;  %v10596_v48 = vpop.permute.xlu1 %3208 }
 0x1ec   : > { %v4306_v37 = vsel %vm1780_vm1, %v4301_v51, %v4305_v57  ;;  %3446 = vst.msk [vmem:[#allocation3 + $0x140] sm:$0xff] %vm370_vm12, %v3404_v27  ;;  %14004 = vst [vmem:[#allocation10_spill] sm:$0xff] %v10594_v26  ;;  %v4307_v51 = vshrl.u32 %v10533_v11, 16  ;;  %v8907_v11 = vld [vmem:[%s13908_s5 + $0x10] sm:$0xff]  }
 0x1ed   : > { %v3323_v33 = vpack.c.bf16 %v3298_v50, %v3297_v34  ;;  %4405 = vrot.lane.b32.xlu0 %v4306_v37, %s9112_s22  ;;  %4147 = vrot.lane.b32.xlu1 %v4306_v37, %s9112_s22  ;;  %v3548_v31 = vor.u32 %v3546_v30, %v3545_v60  ;;  %14005 = vst [vmem:[#allocation11_spill] sm:$0xff] %v10596_v48 }
 0x1ee   : > { %v4309_v30 = vor.u32 %v4307_v51, %v4305_v57  ;;  %5004 = vmatpush1.bf16.msra.mxu0 %v8907_v11 }
 0x1ef   : > { %3340 = vst.msk [vmem:[#allocation4 + $0x50] sm:$0xff] %vm370_vm12, %v3323_v33  ;;  %v2973_v36 = vpop.f32.mrb[36].mxu0  ;;  %v10581_v55 = vsel %vm3473_vm14, %v10512_v38, %v3548_v31  ;;  %5005 = vmatprep.subr.bf16.mxu0 %v13915_v2 }
 0x1f0   : > { %v2974_v4 = vadd.f32 %v10236_v23, %v2973_v36  ;;  %v2975_v39 = vpop.f32.mrb[37].mxu0 }
 0x1f1   : > { %v2976_v61 = vpop.f32.mrb[38].mxu0 }
 0x1f2   : > { %v3061_v8 = vmul.f32 %v10249_v25, %v2974_v4  ;;  %v2977_v9 = vadd.f32 %v10236_v23, %v2976_v61  ;;  %v2978_v40 = vpop.f32.mrb[39].mxu0 }
 0x1f4   : > { %v3095_v56 = vmax.f32 %v2974_v4, %v3061_v8  ;;  %v3062_v46 = vmul.f32 %v10249_v25, %v2977_v9 }
 0x1f6   : > { %v10590_v14 = vld [vmem:[#allocation4 + $0x50] sm:$0xff]  ;;  %v3096_v38 = vmax.f32 %v2977_v9, %v3062_v46  ;;  %v3299_v27 = vmul.f32 %v10594_v26, %v3095_v56 }
 0x1f7   : > { %v10592_v52 = vld [vmem:[#allocation4 + $0x50] sm:$0xff]  ;;  %v4512_v34 = vrot.slane %v10590_v14, 1  ;;  %v4311_v50 = vshll.u32 %v10590_v14, 16  ;;  %4227 = vst.msk [vmem:[#allocation3 + $0x130] sm:$0xff] %vm370_vm12, %v10590_v14  ;;  %3968 = vst.msk [vmem:[#allocation3 + $0x150] sm:$0xff] %vm370_vm12, %v10590_v14 }
 0x1f8   : > { %3709 = vst.msk [vmem:[#allocation3 + $0x170] sm:$0xff] %vm370_vm12, %v10592_v52  ;;  %v3300_v54 = vmul.f32 %v10596_v48, %v3096_v38  ;;  %v3551_v37 = vshrl.u32 %v10592_v52, 16  ;;  %v3405_v31 = vrot.slane %v10592_v52, 7  ;;  %v3554_v61 = vshll.u32 %v10592_v52, 16 }
 0x1f9   : > { %v4313_v33 = vrot.slane %v4311_v50, 1  ;;  %v4513_v36 = vsel %vm2633_vm4, %v4510_v45, %v4512_v34 }
 0x1fa   : > { %v3324_v4 = vpack.c.bf16 %v3300_v54, %v3299_v27  ;;  %v3553_v39 = vrot.slane %v3551_v37, 7  ;;  %4557 = vst.msk [vmem:[#allocation3 + $0x110] sm:$0xff] %vm370_vm12, %v4513_v36  ;;  %v3406_v9 = vsel %vm3385_vm13, %v3403_v19, %v3405_v31  ;;  %v4315_v54 = vshrl.u32 %v10590_v14, 16 }
 0x1fb   : > { %v4314_v8 = vsel %vm1780_vm1, %v4309_v30, %v4313_v33  ;;  %3447 = vst.msk [vmem:[#allocation3 + $0x168] sm:$0xff] %vm370_vm12, %v3406_v9  ;;  %v10638_v30 = vpop.permute.xlu1 %3218 }
 0x1fc   : > { %3341 = vst.msk [vmem:[#allocation4 + $0x58] sm:$0xff] %vm370_vm12, %v3324_v4  ;;  %4407 = vrot.lane.b32.xlu0 %v4314_v8, %s9112_s22  ;;  %4149 = vrot.lane.b32.xlu1 %v4314_v8, %s9112_s22  ;;  %v3556_v45 = vor.u32 %v3554_v61, %v3553_v39  ;;  %14006 = vst [vmem:[#allocation12_spill] sm:$0xff] %v10638_v30  ;;  %v8908_v61 = vld [vmem:[%s13908_s5 + $0x18] sm:$0xff]   ;;  %v4317_v9 = vor.u32 %v4315_v54, %v4313_v33 }
 0x1fd   : > { %5006 = vmatpush1.bf16.msra.mxu0 %v8908_v61 }
 0x1fe   : > { %v2981_v57 = vpop.f32.mrb[40].mxu0  ;;  %v10626_v40 = vsel %vm3473_vm14, %v3545_v60, %v3556_v45  ;;  %v10652_v45 = vpop.permute.xlu0 %3213  ;;  %5007 = vmatprep.subr.bf16.mxu0 %v13915_v2 }
 0x1ff   : > { %v2982_v19 = vadd.f32 %v10236_v23, %v2981_v57  ;;  %v2983_v5 = vpop.f32.mrb[41].mxu0  ;;  %14007 = vst [vmem:[#allocation13_spill] sm:$0xff] %v10652_v45 }
 0x200   : > { %v2984_v56 = vpop.f32.mrb[42].mxu0 }
 0x201   : > { %v3063_v46 = vmul.f32 %v10249_v25, %v2982_v19  ;;  %v2985_v38 = vadd.f32 %v10236_v23, %v2984_v56  ;;  %v2986_v52 = vpop.f32.mrb[43].mxu0 }
 0x203   : > { %v10632_v51 = vld [vmem:[#allocation4 + $0x58] sm:$0xff]  ;;  %v3097_v50 = vmax.f32 %v2982_v19, %v3063_v46  ;;  %v3064_v27 = vmul.f32 %v10249_v25, %v2985_v38 }
 0x204   : > { %v10636_v60 = vld [vmem:[#allocation4 + $0x58] sm:$0xff]  ;;  %v4514_v36 = vrot.slane %v10632_v51, 1  ;;  %v4319_v4 = vshll.u32 %v10632_v51, 16 }
 0x205   : > { %v3693_v37 = vld [vmem:[#allocation4 + $0x58] sm:$0xff]  ;;  %4228 = vst.msk [vmem:[#allocation3 + $0x158] sm:$0xff] %vm370_vm12, %v10636_v60  ;;  %3969 = vst.msk [vmem:[#allocation3 + $0x178] sm:$0xff] %vm370_vm12, %v10636_v60  ;;  %v3559_v14 = vshrl.u32 %v10636_v60, 16  ;;  %v3098_v8 = vmax.f32 %v2985_v38, %v3064_v27  ;;  %v3407_v11 = vrot.slane %v10636_v60, 7  ;;  %v3562_v5 = vshll.u32 %v10636_v60, 16 }
 0x206   : > { %3710 = vst.msk [vmem:[#allocation3 + $0x198] sm:$0xff] %vm370_vm12, %v3693_v37  ;;  %v4321_v57 = vrot.slane %v4319_v4, 1  ;;  %v4515_v56 = vsel %vm2633_vm4, %v4512_v34, %v4514_v36  ;;  %v3301_v46 = vmul.f32 %v10652_v45, %v3097_v50  ;;  %v10670_v34 = vpop.permute.xlu1 %3228  ;;  %v8909_v4 = vld [vmem:[%s13908_s5 + $0x20] sm:$0xff]  }
 0x207   : > { %v10654_v19 = vrot.slane %v3559_v14, 7  ;;  %v3302_v52 = vmul.f32 %v10638_v30, %v3098_v8  ;;  %v3408_v33 = vsel %vm3385_vm13, %v3405_v31, %v3407_v11  ;;  %4558 = vst.msk [vmem:[#allocation3 + $0x138] sm:$0xff] %vm370_vm12, %v4515_v56  ;;  %14008 = vst [vmem:[#allocation14_spill] sm:$0xff] %v10670_v34  ;;  %5008 = vmatpush1.bf16.msra.mxu0 %v8909_v4 }
 0x208   : > { %v4322_v38 = vsel %vm1780_vm1, %v4317_v9, %v4321_v57  ;;  %3448 = vst.msk [vmem:[#allocation3 + $0x190] sm:$0xff] %vm370_vm12, %v3408_v33  ;;  %5009 = vmatprep.subr.bf16.mxu0 %v13915_v2 }
 0x209   : > { %v3564_v27 = vor.u32 %v3562_v5, %v10654_v19  ;;  %v3325_v54 = vpack.c.bf16 %v3302_v52, %v3301_v46  ;;  %4409 = vrot.lane.b32.xlu0 %v4322_v38, %s9112_s22  ;;  %4151 = vrot.lane.b32.xlu1 %v4322_v38, %s9112_s22  ;;  %v10686_v46 = vpop.permute.xlu0 %3223  ;;  %v4323_v38 = vshrl.u32 %v10632_v51, 16 }
 0x20a   : > { %14010 = vst [vmem:[#allocation16_spill] sm:$0xff] %v10686_v46 }
 0x20b   : > { %v10673_v50 = vsel %vm3473_vm14, %v3553_v39, %v3564_v27  ;;  %3342 = vst.msk [vmem:[#allocation4 + $0x60] sm:$0xff] %vm370_vm12, %v3325_v54  ;;  %v2989_v31 = vpop.f32.mrb[44].mxu0  ;;  %v10683_v39 = vpop.permute.xlu1 %3238 }
 0x20c   : > { %v2990_v60 = vadd.f32 %v10236_v23, %v2989_v31  ;;  %v2991_v37 = vpop.f32.mrb[45].mxu0  ;;  %14009 = vst [vmem:[#allocation15_spill] sm:$0xff] %v10683_v39 }
 0x20d   : > { %v2992_v61 = vpop.f32.mrb[46].mxu0 }
 0x20e   : > { %v3065_v14 = vmul.f32 %v10249_v25, %v2990_v60  ;;  %v2993_v8 = vadd.f32 %v10236_v23, %v2992_v61  ;;  %v2994_v9 = vpop.f32.mrb[47].mxu0  ;;  %v4325_v61 = vor.u32 %v4323_v38, %v4321_v57 }
 0x20f   : > { %v10712_v2 = vpop.permute.xlu1 %3248 }
 0x210   : > { %v3099_v5 = vmax.f32 %v2990_v60, %v3065_v14  ;;  %v3066_v56 = vmul.f32 %v10249_v25, %v2993_v8  ;;  %v8910_v14 = vld [vmem:[%s13908_s5 + $0x28] sm:$0xff]   ;;  %14011 = vst [vmem:[#allocation17_spill] sm:$0xff] %v10712_v2 }
 0x211   : > { %5010 = vmatpush1.bf16.msra.mxu0 %v8910_v14 }
 0x212   : > { %v10688_v52 = vld [vmem:[#allocation4 + $0x60] sm:$0xff]  ;;  %v3100_v33 = vmax.f32 %v2993_v8, %v3066_v56  ;;  %v3303_v37 = vmul.f32 %v10686_v46, %v3099_v5 }
 0x213   : > { %v10691_v27 = vld [vmem:[#allocation4 + $0x60] sm:$0xff]  ;;  %v4516_v54 = vrot.slane %v10688_v52, 1  ;;  %v4327_v31 = vshll.u32 %v10688_v52, 16 }
 0x214   : > { %4229 = vst.msk [vmem:[#allocation3 + $0x180] sm:$0xff] %vm370_vm12, %v10691_v27  ;;  %3970 = vst.msk [vmem:[#allocation3 + $0x1a0] sm:$0xff] %vm370_vm12, %v10691_v27  ;;  %v3567_v60 = vshrl.u32 %v10691_v27, 16  ;;  %v3304_v4 = vmul.f32 %v10670_v34, %v3100_v33  ;;  %v3409_v8 = vrot.slane %v10691_v27, 7  ;;  %v3570_v29 = vshll.u32 %v10691_v27, 16  ;;  %v10716_v33 = vpop.permute.xlu0 %3233 }
 0x215   : > { %3711 = vst.msk [vmem:[#allocation3 + $0x1c0] sm:$0xff] %vm370_vm12, %v10691_v27  ;;  %v4329_v9 = vrot.slane %v4327_v31, 1  ;;  %v4517_v21 = vsel %vm2633_vm4, %v4514_v36, %v4516_v54  ;;  %14012 = vst [vmem:[#allocation18_spill] sm:$0xff] %v10716_v33  ;;  %v14013_v31 = vmov 0  }
 0x216   : > { %v3569_v56 = vrot.slane %v3567_v60, 7  ;;  %v3326_v5 = vpack.c.bf16 %v3304_v4, %v3303_v37  ;;  %v3410_v57 = vsel %vm3385_vm13, %v3407_v11, %v3409_v8  ;;  %4559 = vst.msk [vmem:[#allocation3 + $0x160] sm:$0xff] %vm370_vm12, %v4517_v21  ;;  %5011 = vmatprep.subr.bf16.mxu0 %v14013_v31  ;;  %v8911_v37 = vld [vmem:[%s13908_s5 + $0x30] sm:$0xff]  }
 0x217   : > { %v4330_v38 = vsel %vm1780_vm1, %v4325_v61, %v4329_v9  ;;  %3449 = vst.msk [vmem:[#allocation3 + $0x1b8] sm:$0xff] %vm370_vm12, %v3410_v57  ;;  %5012 = vmatpush1.bf16.msra.mxu0 %v8911_v37 }
 0x218   : > { %v3572_v60 = vor.u32 %v3570_v29, %v3569_v56  ;;  %3343 = vst.msk [vmem:[#allocation4 + $0x68] sm:$0xff] %vm370_vm12, %v3326_v5  ;;  %4411 = vrot.lane.b32.xlu0 %v4330_v38, %s9112_s22  ;;  %4153 = vrot.lane.b32.xlu1 %v4330_v38, %s9112_s22  ;;  %v10733_v4 = vpop.permute.xlu0 %3243 }
 0x219   : > { %14014 = vst [vmem:[#allocation19_spill] sm:$0xff] %v10733_v4  ;;  %5013 = vmatprep.subr.bf16.mxu0 %v14013_v31 }
 0x21a   : > { %v10726_v51 = vsel %vm3473_vm14, %v10654_v19, %v3572_v60  ;;  %v2997_v21 = vpop.f32.mrb[48].mxu0  ;;  %v4138_v36 = vpop.permute.xlu1 %4137  ;;  %v4331_v60 = vshrl.u32 %v10688_v52, 16 }
 0x21b   : > { %v2998_v11 = vadd.f32 %v10236_v23, %v2997_v21  ;;  %4187 = vst.msk [vmem:[#allocation3 + $0x38] sm:$0xff] %vm3665_vm15, %v4138_v36  ;;  %v2999_v29 = vpop.f32.mrb[49].mxu0 }
 0x21c   : > { %v3000_v27 = vpop.f32.mrb[50].mxu0 }
 0x21d   : > { %v3067_v61 = vmul.f32 %v10249_v25, %v2998_v11  ;;  %v3001_v14 = vadd.f32 %v10236_v23, %v3000_v27  ;;  %v3002_v19 = vpop.f32.mrb[51].mxu0 }
 0x21e   : > { %v10760_v19 = vpop.permute.xlu0 %3253 }
 0x21f   : > { %v10737_v5 = vld [vmem:[#allocation4 + $0x68] sm:$0xff]  ;;  %v3101_v57 = vmax.f32 %v2998_v11, %v3067_v61  ;;  %v3068_v38 = vmul.f32 %v10249_v25, %v3001_v14  ;;  %v4333_v25 = vor.u32 %v4331_v60, %v4329_v9  ;;  %14015 = vst [vmem:[#allocation20_spill] sm:$0xff] %v10760_v19  ;;  %v8912_v60 = vld [vmem:[%s13908_s5 + $0x38] sm:$0xff]  }
 0x220   : > { %v10741_v21 = vld [vmem:[#allocation4 + $0x68] sm:$0xff]  ;;  %v13921_v36 = vrot.slane %v10737_v5, 1  ;;  %v4335_v29 = vshll.u32 %v10737_v5, 16  ;;  %5014 = vmatpush1.bf16.msra.mxu0 %v8912_v60  ;;  %v4339_v60 = vshrl.u32 %v10737_v5, 16  ;;  %v14018_v26 = vrot.slane %v10737_v5, 1 }
 0x221   : > { %v3575_v34 = vshrl.u32 %v10741_v21, 16  ;;  %4230 = vst.msk [vmem:[#allocation3 + $0x1a8] sm:$0xff] %vm370_vm12, %v10741_v21  ;;  %3971 = vst.msk [vmem:[#allocation3 + $0x1c8] sm:$0xff] %vm370_vm12, %v10741_v21  ;;  %v3102_v23 = vmax.f32 %v3001_v14, %v3068_v38  ;;  %v13920_v52 = vrot.slane %v10741_v21, 7  ;;  %v3578_v37 = vshll.u32 %v10741_v21, 16  ;;  %5015 = vmatprep.subr.bf16.mxu0 %v14013_v31 }
 0x222   : > { %3712 = vst.msk [vmem:[#allocation3 + $0x1e8] sm:$0xff] %vm370_vm12, %v10741_v21  ;;  %v4337_v11 = vrot.slane %v4335_v29, 1  ;;  %v4519_v61 = vsel %vm2633_vm4, %v4516_v54, %v13921_v36  ;;  %v3305_v46 = vmul.f32 %v10716_v33, %v3101_v57  ;;  %v10783_v29 = vld [vmem:[%s13907_s4] ss:$0 sm:$0xff] }
 0x223   : > { %v10754_v27 = vrot.slane %v3575_v34, 7  ;;  %v3306_v30 = vmul.f32 %v10683_v39, %v3102_v23  ;;  %v3412_v9 = vsel %vm3385_vm13, %v3409_v8, %v13920_v52  ;;  %4560 = vst.msk [vmem:[#allocation3 + $0x188] sm:$0xff] %vm370_vm12, %v4519_v61  ;;  %v10790_v23 = vld [vmem:[%s13905_s2] ss:$0 sm:$0xff] }
 0x224   : > { %v4338_v34 = vsel %vm1780_vm1, %v4333_v25, %v4337_v11  ;;  %3450 = vst.msk [vmem:[#allocation3 + $0x1e0] sm:$0xff] %vm370_vm12, %v3412_v9  ;;  %v4341_v36 = vor.u32 %v4339_v60, %v4337_v11 }
 0x225   : > { %v3580_v14 = vor.u32 %v3578_v37, %v10754_v27  ;;  %v3327_v38 = vpack.c.bf16 %v3306_v30, %v3305_v46  ;;  %4413 = vrot.lane.b32.xlu0 %v4338_v34, %s9112_s22  ;;  %4155 = vrot.lane.b32.xlu1 %v4338_v34, %s9112_s22 }
 0x227   : > { %v10774_v54 = vsel %vm3473_vm14, %v3569_v56, %v3580_v14  ;;  %3344 = vst.msk [vmem:[#allocation4 + $0x70] sm:$0xff] %vm370_vm12, %v3327_v38  ;;  %v3005_v57 = vpop.f32.mrb[52].mxu0  ;;  %v4398_v8 = vpop.permute.xlu0 %4397  ;;  %v8913_v38 = vld [vmem:[%s13908_s5 + $0x40] sm:$0xff]  }
 0x228   : > { %v3006_v30 = vadd.f32 %v10783_v29, %v3005_v57  ;;  %4447 = vst.msk [vmem:[#allocation3 + $0x40] sm:$0xff] %vm3665_vm15, %v4398_v8  ;;  %v3007_v46 = vpop.f32.mrb[53].mxu0  ;;  %5016 = vmatpush1.bf16.msra.mxu0 %v8913_v38  ;;  %v4575_v38 = vld [vmem:[#allocation3 + $0x38] sm:$0xff] }
 0x229   : > { %v3008_v56 = vpop.f32.mrb[54].mxu0  ;;  %5017 = vmatprep.subr.bf16.mxu0 %v14013_v31 }
 0x22a   : > { %v3069_v25 = vmul.f32 %v10790_v23, %v3006_v30  ;;  %v3009_v37 = vadd.f32 %v10783_v29, %v3008_v56  ;;  %v3010_v61 = vpop.f32.mrb[55].mxu0 }
 0x22b   : > { %v10795_v9 = vpop.permute.xlu1 %3258 }
 0x22c   : > { %14016 = vst [vmem:[#allocation21_spill] sm:$0xff] %v10795_v9  ;;  %v3103_v34 = vmax.f32 %v3006_v30, %v3069_v25  ;;  %v3070_v14 = vmul.f32 %v10790_v23, %v3009_v37 }
 0x22e   : > { %v10801_v57 = vld [vmem:[#allocation4 + $0x70] sm:$0xff]  ;;  %v3104_v8 = vmax.f32 %v3009_v37, %v3070_v14  ;;  %v3307_v37 = vmul.f32 %v10733_v4, %v3103_v34 }
 0x22f   : > { %v10804_v46 = vld [vmem:[#allocation4 + $0x70] sm:$0xff]  ;;  %v4140_v61 = vpop.permute.xlu1 %4139  ;;  %v4576_v52 = vld [vmem:[#allocation3 + $0x40] sm:$0xff]  ;;  %v4343_v30 = vshll.u32 %v10801_v57, 16  ;;  %v14017_v48 = vrot.slane %v10801_v57, 1 }
 0x230   : > { %v3583_v25 = vshrl.u32 %v10804_v46, 16  ;;  %4231 = vst.msk [vmem:[#allocation3 + $0x1d0] sm:$0xff] %vm370_vm12, %v10804_v46  ;;  %3972 = vst.msk [vmem:[#allocation3 + $0x1f0] sm:$0xff] %vm370_vm12, %v10804_v46  ;;  %v3308_v14 = vmul.f32 %v10712_v2, %v3104_v8  ;;  %5208 = vmatprep.mubr.bf16.mxu1 %v4576_v52  ;;  %v13927_v56 = vrot.slane %v10804_v46, 7  ;;  %v3586_v45 = vshll.u32 %v10804_v46, 16 }
 0x231   : > { %3713 = vst.msk [vmem:[#allocation3 + $0x210] sm:$0xff] %vm370_vm12, %v10804_v46  ;;  %5209 = vmatmul.mubr.bf16.vlgmr.msra.gmra.mrb[0].mxu1 %v4575_v38  ;;  %v4345_v39 = vrot.slane %v4343_v30, 1  ;;  %v4521_v34 = vsel %vm2633_vm4, %v14018_v26, %v14017_v48  ;;  %v14019_v52 = vrot.slane %v10741_v21, 7 }
 0x232   : > { %4188 = vst.msk [vmem:[#allocation3 + $0x60] sm:$0xff] %vm3665_vm15, %v4140_v61  ;;  %v10820_v33 = vrot.slane %v3583_v25, 7  ;;  %v3328_v8 = vpack.c.bf16 %v3308_v14, %v3307_v37 }
 0x233   : > { %v3414_v11 = vsel %vm3385_vm13, %v14019_v52, %v13927_v56  ;;  %4561 = vst.msk [vmem:[#allocation3 + $0x1b0] sm:$0xff] %vm370_vm12, %v4521_v34  ;;  %v4346_v60 = vsel %vm1780_vm1, %v4341_v36, %v4345_v39  ;;  %v4347_v52 = vshrl.u32 %v10801_v57, 16  ;;  %v8915_v56 = vld [vmem:[%s13908_s5 + $0x100] sm:$0xff]  }
 0x234   : > { %v3588_v61 = vor.u32 %v3586_v45, %v10820_v33  ;;  %3451 = vst.msk [vmem:[#allocation3 + $0x208] sm:$0xff] %vm370_vm12, %v3414_v11  ;;  %3345 = vst.msk [vmem:[#allocation4 + $0x78] sm:$0xff] %vm370_vm12, %v3328_v8  ;;  %4415 = vrot.lane.b32.xlu0 %v4346_v60, %s9112_s22  ;;  %4157 = vrot.lane.b32.xlu1 %v4346_v60, %s9112_s22  ;;  %v8914_v45 = vld [vmem:[%s13908_s5 + $0x48] sm:$0xff]  }
 0x235   : > { %5018 = vmatpush1.bf16.msra.mxu0 %v8914_v45 }
 0x236   : > { %v10842_v26 = vsel %vm3473_vm14, %v10754_v27, %v3588_v61  ;;  %v3013_v48 = vpop.f32.mrb[56].mxu0  ;;  %5019 = vmatprep.subr.bf16.mxu0 %v14013_v31 }
 0x237   : > { %v3014_v5 = vadd.f32 %v10783_v29, %v3013_v48  ;;  %v3015_v21 = vpop.f32.mrb[57].mxu0 }
 0x238   : > { %v3016_v36 = vpop.f32.mrb[58].mxu0  ;;  %v10848_v30 = vpop.permute.xlu0 %3263 }
 0x239   : > { %14020 = vst [vmem:[#allocation22_spill] sm:$0xff] %v10848_v30  ;;  %v3071_v25 = vmul.f32 %v10790_v23, %v3014_v5  ;;  %v3017_v37 = vadd.f32 %v10783_v29, %v3016_v36  ;;  %v10852_v14 = vpop.permute.xlu1 %3268  ;;  %v3018_v38 = vpop.f32.mrb[59].mxu0 }
 0x23a   : > { %14021 = vst [vmem:[#allocation23_spill] sm:$0xff] %v10852_v14 }
 0x23b   : > { %v10855_v27 = vld [vmem:[#allocation4 + $0x78] sm:$0xff]  ;;  %v3105_v34 = vmax.f32 %v3014_v5, %v3071_v25  ;;  %v3072_v8 = vmul.f32 %v10790_v23, %v3017_v37  ;;  %v4349_v25 = vor.u32 %v4347_v52, %v4345_v39 }
 0x23c   : > { %v10859_v11 = vld [vmem:[#allocation4 + $0x78] sm:$0xff]  ;;  %v4400_v61 = vpop.permute.xlu0 %4399  ;;  %v4351_v48 = vshll.u32 %v10855_v27, 16  ;;  %v13930_v21 = vshrl.u32 %v10855_v27, 16 }
 0x23d   : > { %v3844_v45 = vshrl.u32 %v10859_v11, 16  ;;  %4232 = vst.msk [vmem:[#allocation3 + $0x1f8] sm:$0xff] %vm370_vm12, %v10859_v11  ;;  %3973 = vst.msk [vmem:[#allocation3 + $0x218] sm:$0xff] %vm370_vm12, %v10859_v11  ;;  %v3106_v5 = vmax.f32 %v3017_v37, %v3072_v8  ;;  %v4142_v36 = vpop.permute.xlu1 %4141  ;;  %v3847_v38 = vshll.u32 %v10859_v11, 16  ;;  %v13932_v37 = vmov 0.0  }
 0x23e   : > { %3714 = vst.msk [vmem:[#allocation3 + $0x238] sm:$0xff] %vm370_vm12, %v10859_v11  ;;  %v4353_v60 = vrot.slane %v4351_v48, 1  ;;  %v10879_v2 = vrot.slane %v13930_v21, 7  ;;  %8455 = vmatprep.subr.bf16.mxu1 %v13932_v37  ;;  %v3415_v39 = vrot.slane %v10859_v11, 7  ;;  %v3309_v8 = vmul.f32 %v10760_v19, %v3105_v34 }
 0x23f   : > { %4448 = vst.msk [vmem:[#allocation3 + $0x68] sm:$0xff] %vm3665_vm15, %v4400_v61  ;;  %4189 = vst.msk [vmem:[#allocation3 + $0x88] sm:$0xff] %vm3665_vm15, %v4142_v36  ;;  %v10881_v4 = vrot.slane %v3844_v45, 7  ;;  %v3310_v52 = vmul.f32 %v10795_v9, %v3106_v5  ;;  %8456 = vmatpush3.bf16.msra.mxu1 %v8915_v56  ;;  %v8916_v61 = vld [vmem:[%s13908_s5 + $0x50] sm:$0xff]   ;;  %v14022_v36 = vrot.slane %v10855_v27, 1  ;;  %v14023_v21 = vrot.slane %v10801_v57, 1 }
 0x240   : > { %v4354_v18 = vsel %vm1780_vm1, %v4349_v25, %v4353_v60  ;;  %v3596_v37 = vor.u32 %v4351_v48, %v10879_v2  ;;  %v14024_v34 = vmov 0.0   ;;  %v14025_v5 = vrot.slane %v10804_v46, 7  ;;  %5020 = vmatpush1.bf16.msra.mxu0 %v8916_v61 }
 0x241   : > { %v4523_v45 = vsel %vm2633_vm4, %v14023_v21, %v14022_v36  ;;  %v3849_v11 = vor.u32 %v3847_v38, %v10881_v4  ;;  %8457 = vmatprep.subr.bf16.mxu1 %v14024_v34  ;;  %v3329_v56 = vpack.c.bf16 %v3310_v52, %v3309_v8  ;;  %4417 = vrot.lane.b32.xlu0 %v4354_v18, %s9112_s22 }
 0x242   : > { %4562 = vst.msk [vmem:[#allocation3 + $0x1d8] sm:$0xff] %vm370_vm12, %v4523_v45  ;;  %4159 = vrot.lane.b32.xlu1 %v4354_v18, %s9112_s22  ;;  %v3416_v57 = vsel %vm3385_vm13, %v14025_v5, %v3415_v39  ;;  %v10907_v21 = vsel %vm3473_vm14, %v10820_v33, %v3596_v37  ;;  %5021 = vmatprep.subr.bf16.mxu0 %v14013_v31  ;;  %v8917_v18 = vld [vmem:[%s13908_s5 + $0x58] sm:$0xff]  }
 0x243   : > { %v10911_v48 = vsel %vm3473_vm14, %v10820_v33, %v3849_v11  ;;  %3452 = vst.msk [vmem:[#allocation3 + $0x230] sm:$0xff] %vm370_vm12, %v3416_v57  ;;  %3346 = vst.msk [vmem:[#allocation4 + $0x80] sm:$0xff] %vm370_vm12, %v3329_v56  ;;  %v3021_v25 = vpop.f32.mrb[60].mxu0  ;;  %v4580_v33 = vld [vmem:[#allocation3 + $0x60] sm:$0xff] }
 0x244   : > { %v3022_v46 = vadd.f32 %v10783_v29, %v3021_v25  ;;  %v3023_v38 = vpop.f32.mrb[61].mxu0  ;;  %5022 = vmatpush1.bf16.msra.mxu0 %v8917_v18 }
 0x245   : > { %v3024_v8 = vpop.f32.mrb[62].mxu0  ;;  %5023 = vmatprep.subr.bf16.mxu0 %v14013_v31 }
 0x246   : > { %v4581_v37 = vld [vmem:[#allocation3 + $0x68] sm:$0xff]  ;;  %v3073_v52 = vmul.f32 %v10790_v23, %v3022_v46  ;;  %v3025_v61 = vadd.f32 %v10783_v29, %v3024_v8  ;;  %v3026_v36 = vpop.f32.mrb[63].mxu0 }
 0x247   : > { %5216 = vmatprep.mubr.bf16.mxu1 %v4581_v37  ;;  %v10922_v45 = vpop.permute.xlu0 %3273  ;;  %v10924_v11 = vpop.permute.xlu1 %3278 }
 0x248   : > { %5217 = vmatmul.mubr.bf16.gmra.mrb[4].mxu1 %v4580_v33  ;;  %14026 = vst [vmem:[#allocation24_spill] sm:$0xff] %v10922_v45  ;;  %14027 = vst [vmem:[#allocation25_spill] sm:$0xff] %v10924_v11  ;;  %v3107_v56 = vmax.f32 %v3022_v46, %v3073_v52  ;;  %v3074_v5 = vmul.f32 %v10790_v23, %v3025_v61 }
 0x24a   : > { %v10928_v57 = vld [vmem:[#allocation4 + $0x80] sm:$0xff]  ;;  %v3108_v25 = vmax.f32 %v3025_v61, %v3074_v5  ;;  %v3311_v52 = vmul.f32 %v10848_v30, %v3107_v56  ;;  %v14028_v5 = vshrl.u32 %v10855_v27, 16  ;;  %v14030_v56 = vrot.slane %v10855_v27, 1 }
 0x24b   : > { %v10930_v38 = vld [vmem:[#allocation4 + $0x80] sm:$0xff]  ;;  %v4402_v8 = vpop.permute.xlu0 %4401  ;;  %v4144_v33 = vpop.permute.xlu1 %4143  ;;  %v4359_v18 = vshll.u32 %v10928_v57, 16  ;;  %v4363_v36 = vshrl.u32 %v10928_v57, 16 }
 0x24c   : > { %4233 = vst.msk [vmem:[#allocation3 + $0x220] sm:$0xff] %vm370_vm12, %v10930_v38  ;;  %3974 = vst.msk [vmem:[#allocation3 + $0x240] sm:$0xff] %vm370_vm12, %v10930_v38  ;;  %v3417_v46 = vrot.slane %v10930_v38, 7  ;;  %v3312_v61 = vmul.f32 %v10852_v14, %v3108_v25  ;;  %v4357_v37 = vor.u32 %v14028_v5, %v4353_v60 }
 0x24d   : > { %3715 = vst.msk [vmem:[#allocation3 + $0x260] sm:$0xff] %vm370_vm12, %v10930_v38  ;;  %v4361_v9 = vrot.slane %v4359_v18, 1  ;;  %v10948_v19 = vrot.slane %v4363_v36, 7  ;;  %v14029_v38 = vrot.slane %v10928_v57, 1 }
 0x24e   : > { %4449 = vst.msk [vmem:[#allocation3 + $0x90] sm:$0xff] %vm3665_vm15, %v4402_v8  ;;  %4190 = vst.msk [vmem:[#allocation3 + $0xb0] sm:$0xff] %vm3665_vm15, %v4144_v33  ;;  %v3418_v15 = vsel %vm3385_vm13, %v3415_v39, %v3417_v46  ;;  %v3330_v1 = vpack.c.bf16 %v3312_v61, %v3311_v52 }
 0x24f   : > { %3453 = vst.msk [vmem:[#allocation3 + $0x258] sm:$0xff] %vm370_vm12, %v3418_v15  ;;  %v4525_v25 = vsel %vm2633_vm4, %v14030_v56, %v14029_v38  ;;  %v4362_v8 = vsel %vm1780_vm1, %v4357_v37, %v4361_v9  ;;  %v3604_v33 = vor.u32 %v4359_v18, %v10948_v19  ;;  %v8918_v15 = vld [vmem:[%s13908_s5 + $0x60] sm:$0xff]  }
 0x250   : > { %4563 = vst.msk [vmem:[#allocation3 + $0x200] sm:$0xff] %vm370_vm12, %v4525_v25  ;;  %3347 = vst.msk [vmem:[#allocation4 + $0x88] sm:$0xff] %vm370_vm12, %v3330_v1  ;;  %4419 = vrot.lane.b32.xlu0 %v4362_v8, %s9112_s22  ;;  %4161 = vrot.lane.b32.xlu1 %v4362_v8, %s9112_s22 }
 0x251   : > { %v10968_v27 = vsel %vm3473_vm14, %v10879_v2, %v3604_v33  ;;  %v10972_v60 = vsel %vm3473_vm14, %v10881_v4, %v3604_v33  ;;  %5024 = vmatpush1.bf16.msra.mxu0 %v8918_v15  ;;  %v4585_v2 = vld [vmem:[#allocation3 + $0x88] sm:$0xff] }
 0x252   : > { %v3029_v39 = vpop.f32.mrb[64].mxu0  ;;  %v4404_v37 = vpop.permute.xlu0 %4403  ;;  %5025 = vmatprep.subr.bf16.mxu0 %v14013_v31 }
 0x253   : > { %v3030_v1 = vadd.f32 %v10783_v29, %v3029_v39  ;;  %4450 = vst.msk [vmem:[#allocation3 + $0xb8] sm:$0xff] %vm3665_vm15, %v4404_v37  ;;  %v3031_v18 = vpop.f32.mrb[65].mxu0  ;;  %v8919_v37 = vld [vmem:[%s13908_s5 + $0x68] sm:$0xff]  }
 0x254   : > { %v3032_v61 = vpop.f32.mrb[66].mxu0  ;;  %v10977_v5 = vpop.permute.xlu1 %3118 }
 0x255   : > { %v4586_v52 = vld [vmem:[#allocation3 + $0x90] sm:$0xff]  ;;  %v3075_v38 = vmul.f32 %v10790_v23, %v3030_v1  ;;  %v3033_v4 = vadd.f32 %v10783_v29, %v3032_v61  ;;  %v3034_v56 = vpop.f32.mrb[67].mxu0  ;;  %5026 = vmatpush1.bf16.msra.mxu0 %v8919_v37 }
 0x256   : > { %5224 = vmatprep.mubr.bf16.mxu1 %v4586_v52  ;;  %v4365_v56 = vor.u32 %v4363_v36, %v4361_v9  ;;  %v4590_v37 = vld [vmem:[#allocation3 + $0xb0] sm:$0xff]  ;;  %5027 = vmatprep.subr.bf16.mxu0 %v14013_v31 }
 0x257   : > { %5225 = vmatmul.mubr.bf16.gmra.mrb[8].mxu1 %v4585_v2  ;;  %v10981_v25 = vld [vmem:[#allocation4 + $0x88] sm:$0xff]  ;;  %v3109_v8 = vmax.f32 %v3030_v1, %v3075_v38  ;;  %v3076_v33 = vmul.f32 %v10790_v23, %v3033_v4  ;;  %v2902_v1 = vadd.f32 %v10783_v29, %v10219_v10  ;;  %v2905_v2 = vadd.f32 %v10783_v29, %v10223_v59 }
 0x258   : > { %v4217_v15 = vld [vmem:[#allocation4 + $0x88] sm:$0xff]  ;;  %v4146_v18 = vpop.permute.xlu1 %4145  ;;  %v4367_v14 = vshll.u32 %v10981_v25, 16  ;;  %v14031_v30 = vshrl.u32 %v10981_v25, 16  ;;  %v14032_v36 = vrot.slane %v10981_v25, 1 }
 0x259   : > { %v3366_v39 = vld [vmem:[#allocation4 + $0x88] sm:$0x7f]  ;;  %4234 = vst.msk [vmem:[#allocation3 + $0x248] sm:$0xff] %vm370_vm12, %v4217_v15  ;;  %3975 = vst.msk [vmem:[#allocation3 + $0x268] sm:$0xff] %vm370_vm12, %v4217_v15  ;;  %v3110_v38 = vmax.f32 %v3033_v4, %v3076_v33  ;;  %v3313_v29 = vmul.f32 %v10922_v45, %v3109_v8  ;;  %v14033_v4 = vrot.slane %v10928_v57, 1 }
 0x25a   : > { %v3419_v61 = vrot.slane %v3366_v39, 7  ;;  %3716 = vst.msk [vmem:[#allocation3 + $0x288] sm:$0xff] %vm370_vm12, %v4217_v15  ;;  %v8920_v39 = vld [vmem:[%s13908_s5 + $0x108] sm:$0xff]   ;;  %v4369_v15 = vrot.slane %v4367_v14, 1  ;;  %v11003_v10 = vrot.slane %v14031_v30, 7 }
 0x25b   : > { %4191 = vst.msk [vmem:[#allocation3 + $0xd8] sm:$0xff] %vm3665_vm15, %v4146_v18  ;;  %v4591_v52 = vld [vmem:[#allocation3 + $0xb8] sm:$0xff]  ;;  %v3314_v9 = vmul.f32 %v10924_v11, %v3110_v38  ;;  %v4527_v33 = vsel %vm2633_vm4, %v14033_v4, %v14032_v36  ;;  %8458 = vmatpush3.bf16.msra.mxu1 %v8920_v39  ;;  %v8921_v38 = vld [vmem:[%s13908_s5 + $0x70] sm:$0xff]   ;;  %v3482_v36 = vshll.u32 %v10555_v53, 16  ;;  %v3349_v4 = vld [vmem:[#allocation4] sm:$0x80] }
 0x25c   : > { %v3420_v59 = vsel %vm3385_vm13, %v3417_v46, %v3419_v61  ;;  %5232 = vmatprep.mubr.bf16.mxu1 %v4591_v52  ;;  %v4370_v18 = vsel %vm1780_vm1, %v4365_v56, %v4369_v15  ;;  %v3612_v30 = vor.u32 %v4367_v14, %v11003_v10  ;;  %4564 = vst.msk [vmem:[#allocation3 + $0x228] sm:$0xff] %vm370_vm12, %v4527_v33  ;;  %v3479_v61 = vshrl.u32 %v10555_v53, 16  ;;  %v11034_v39 = vld [vmem:[#allocation4 + $0x98] sm:$0xff] }
 0x25d   : > { %3454 = vst.msk [vmem:[#allocation3 + $0x280] sm:$0xff] %vm370_vm12, %v3420_v59  ;;  %v3043_v46 = vmul.f32 %v10790_v23, %v2902_v1  ;;  %v3331_v8 = vpack.c.bf16 %v3314_v9, %v3313_v29  ;;  %4421 = vrot.lane.b32.xlu0 %v4370_v18, %s9112_s22  ;;  %4163 = vrot.lane.b32.xlu1 %v4370_v18, %s9112_s22  ;;  %v3994_v11 = vld [vmem:[#allocation4 + $0x98] sm:$0x1] }
 0x25e   : > { %v3044_v52 = vmul.f32 %v10790_v23, %v2905_v2  ;;  %v11023_v57 = vsel %vm3473_vm14, %v10948_v19, %v3612_v30  ;;  %8459 = vmatprep.subr.bf16.mxu1 %v14024_v34  ;;  %v3455_v23 = vld [vmem:[#allocation4] sm:$0x80]  ;;  %5028 = vmatpush1.bf16.msra.mxu0 %v8921_v38  ;;  %v11038_v9 = vrot.slane %v3479_v61, 7  ;;  %v3386_v30 = vrot.slane %v3349_v4, 7 }
 0x25f   : > { %5233 = vmatmul.mubr.bf16.gmra.mrb[12].mxu1 %v4590_v37  ;;  %3348 = vst.msk [vmem:[#allocation4 + $0x90] sm:$0xff] %vm370_vm12, %v3331_v8  ;;  %v4148_v14 = vpop.permute.xlu1 %4147  ;;  %v3077_v56 = vmax.f32 %v2902_v1, %v3043_v46  ;;  %5029 = vmatprep.subr.bf16.mxu0 %v14013_v31  ;;  %v3475_v29 = vshrl.u32 %v3455_v23, 16  ;;  %v13941_v1 = vrot.slane %v10555_v53, 7  ;;  %v4131_v45 = vshll.u32 %v3994_v11, 16 }
 0x260   : > { %4192 = vst.msk [vmem:[#allocation3 + $0x100] sm:$0xff] %vm3665_vm15, %v4148_v14  ;;  %v3078_v19 = vmax.f32 %v2905_v2, %v3044_v52 }
 0x261   : > { %v3388_v52 = vsel %vm3385_vm13, %v3386_v30, %v13941_v1  ;;  %v14035_v1 = vrot.slane %v10981_v25, 1 }
 0x262   : > { %v3282_v33 = vmul.f32 %v10977_v5, %v3078_v19  ;;  %v4383_v19 = vshll.u32 %v10553_v43, 16  ;;  %3438 = vst.msk [vmem:[#allocation3] sm:$0xff] %vm370_vm12, %v3388_v52  ;;  %v14036_v52 = vrot.slane %v11034_v39, 1 }
 0x263   : > { %v11036_v59 = vpop.permute.xlu0 %3113 }
 0x264   : > { %v3281_v18 = vmul.f32 %v11036_v59, %v3077_v56  ;;  %v14034_v56 = vshrl.u32 %v10981_v25, 16  ;;  %v8922_v25 = vld [vmem:[%s13908_s5 + $0x78] sm:$0xff]  }
 0x265   : > { %5030 = vmatpush1.bf16.msra.mxu0 %v8922_v25 }
 0x266   : > { %v4478_v46 = vld [vmem:[#allocation4 + $0x90] sm:$0xff]  ;;  %v3315_v8 = vpack.c.bf16 %v3282_v33, %v3281_v18  ;;  %v4373_v4 = vor.u32 %v14034_v56, %v4369_v15  ;;  %v3477_v33 = vrot.slane %v3475_v29, 7  ;;  %v3484_v18 = vor.u32 %v3482_v36, %v11038_v9  ;;  %5168 = vmatprep.subr.bf16.mxu0 %v14013_v31 }
 0x267   : > { %v4218_v37 = vld [vmem:[#allocation4 + $0x90] sm:$0xff]  ;;  %v4528_v14 = vrot.slane %v4478_v46, 1  ;;  %v4406_v61 = vpop.permute.xlu0 %4405  ;;  %v4375_v38 = vshll.u32 %v4478_v46, 16  ;;  %v4379_v23 = vshrl.u32 %v4478_v46, 16  ;;  %v4385_v36 = vrot.slane %v4383_v19, 1 }
 0x268   : > { %4235 = vst.msk [vmem:[#allocation3 + $0x270] sm:$0xff] %vm370_vm12, %v4218_v37  ;;  %3976 = vst.msk [vmem:[#allocation3 + $0x290] sm:$0xff] %vm370_vm12, %v4218_v37  ;;  %v3485_v11 = vsel %vm3473_vm14, %v3477_v33, %v3484_v18  ;;  %v4387_v18 = vshrl.u32 %v10553_v43, 16  ;;  %v14037_v43 = vrot.slane %v10555_v53, 7 }
 0x269   : > { %3332 = vst.msk [vmem:[#allocation4 + $0x10] sm:$0xff] %vm370_vm12, %v3315_v8  ;;  %v4377_v30 = vrot.slane %v4375_v38, 1  ;;  %v3870_v46 = vrot.slane %v4379_v23, 7  ;;  %v4529_v2 = vsel %vm2633_vm4, %v14035_v1, %v4528_v14  ;;  %v4531_v37 = vsel %vm2633_vm4, %v4528_v14, %v14036_v52  ;;  %v3717_v8 = vld [vmem:[#allocation4 + $0x8] sm:$0x80] }
 0x26a   : > { %4451 = vst.msk [vmem:[#allocation3 + $0xe0] sm:$0xff] %vm3665_vm15, %v4406_v61  ;;  %v3736_v1 = vshrl.u32 %v3717_v8, 16  ;;  %v4254_v14 = vld [vmem:[#allocation4 + $0xa0] sm:$0x1]  ;;  %v4595_v8 = vld [vmem:[#allocation3 + $0xd8] sm:$0xff] }
 0x26b   : > { %4565 = vst.msk [vmem:[#allocation3 + $0x250] sm:$0xff] %vm370_vm12, %v4529_v2  ;;  %4566 = vst.msk [vmem:[#allocation3 + $0x278] sm:$0xff] %vm370_vm12, %v4531_v37  ;;  %v4378_v15 = vsel %vm1780_vm1, %v4373_v4, %v4377_v30  ;;  %v4381_v29 = vor.u32 %v4379_v23, %v4377_v30  ;;  %v3873_v61 = vor.u32 %v4375_v38, %v3870_v46  ;;  %v4133_v4 = vrot.slane %v4131_v45, 1 }
 0x26c   : > { %4423 = vrot.lane.b32.xlu0 %v4378_v15, %s9112_s22  ;;  %4165 = vrot.lane.b32.xlu1 %v4378_v15, %s9112_s22  ;;  %v4391_v52 = vshll.u32 %v4254_v14, 16  ;;  %v3738_v15 = vrot.slane %v3736_v1, 7 }
 0x26d   : > { %v11074_v2 = vsel %vm3473_vm14, %v11003_v10, %v3873_v61  ;;  %v4386_v38 = vsel %vm1780_vm1, %v4381_v29, %v4385_v36  ;;  %v4134_v14 = vsel %vm1780_vm1, %v4381_v29, %v4133_v4  ;;  %v4600_v4 = vld [vmem:[#allocation3 + $0x100] sm:$0xff] }
 0x26e   : > { %v4408_v23 = vpop.permute.xlu0 %4407  ;;  %v4150_v19 = vpop.permute.xlu1 %4149 }
 0x26f   : > { %4452 = vst.msk [vmem:[#allocation3 + $0x108] sm:$0xff] %vm3665_vm15, %v4408_v23  ;;  %4193 = vst.msk [vmem:[#allocation3 + $0x128] sm:$0xff] %vm3665_vm15, %v4150_v19  ;;  %v4389_v19 = vor.u32 %v4387_v18, %v4385_v36  ;;  %v8923_v36 = vld [vmem:[%s13908_s5 + $0x110] sm:$0xff]   ;;  %v14039_v18 = vshll.u32 %v10285_v3, 16 }
 0x270   : > { %v3718_v33 = vld [vmem:[#allocation4 + $0x10] sm:$0xff]  ;;  %4425 = vrot.lane.b32.xlu0 %v4386_v38, %s9112_s22  ;;  %3614 = vrot.lane.b32.xlu1 %v3485_v11, %s9112_s22  ;;  %v14038_v11 = vrot.slane %v10285_v3, 7  ;;  %v4393_v38 = vrot.slane %v4391_v52, 1 }
 0x271   : > { %v4596_v56 = vld [vmem:[#allocation3 + $0xe0] sm:$0xff]  ;;  %v3943_v30 = vld [vmem:[#allocation4 + $0x10] sm:$0xff]  ;;  %v3740_v10 = vshrl.u32 %v3718_v33, 16  ;;  %v3743_v46 = vshll.u32 %v3718_v33, 16  ;;  %v3389_v37 = vrot.slane %v3718_v33, 7  ;;  %3701 = vst.msk [vmem:[#allocation3 + $0x30] sm:$0xff] %vm370_vm12, %v3718_v33  ;;  %8460 = vmatpush3.bf16.msra.mxu1 %v8923_v36 }
 0x272   : > { %3960 = vst.msk [vmem:[#allocation3 + $0x10] sm:$0xff] %vm370_vm12, %v3943_v30  ;;  %5240 = vmatprep.mubr.bf16.mxu1 %v4596_v56  ;;  %v4394_v29 = vsel %vm1780_vm1, %v4389_v19, %v4393_v38  ;;  %8461 = vmatprep.subr.bf16.mxu1 %v14024_v34 }
 0x273   : > { %5241 = vmatmul.mubr.bf16.gmra.mrb[16].mxu1 %v4595_v8  ;;  %v3742_v45 = vrot.slane %v3740_v10, 7  ;;  %v4000_v61 = vrot.slane %v3743_v46, 1  ;;  %v3390_v25 = vsel %vm3385_vm13, %v14037_v43, %v3389_v37  ;;  %v3392_v23 = vsel %vm3385_vm13, %v3389_v37, %v14038_v11  ;;  %v8924_v37 = vld [vmem:[%s13908_s5 + $0x118] sm:$0xff]  }
 0x274   : > { %3439 = vst.msk [vmem:[#allocation3 + $0x28] sm:$0xff] %vm370_vm12, %v3390_v25  ;;  %3440 = vst.msk [vmem:[#allocation3 + $0x50] sm:$0xff] %vm370_vm12, %v3392_v23  ;;  %4167 = vrot.lane.b32.xlu1 %v4134_v14, %s9112_s22 }
 0x275   : > { %v3745_v1 = vor.u32 %v3743_v46, %v3742_v45  ;;  %v11095_v56 = vor.u32 %v4000_v61, %v3740_v10  ;;  %v3500_v10 = vor.u32 %v14039_v18, %v10354_v32  ;;  %8462 = vmatpush3.bf16.msra.mxu1 %v8924_v37 }
 0x276   : > { %v4601_v53 = vld [vmem:[#allocation3 + $0x108] sm:$0xff] }
 0x277   : > { %v3746_v33 = vsel %vm3473_vm14, %v3738_v15, %v3745_v1  ;;  %v3493_v30 = vsel %vm3473_vm14, %v11038_v9, %v3745_v1  ;;  %5248 = vmatprep.mubr.bf16.mxu1 %v4601_v53  ;;  %v3501_v9 = vsel %vm3473_vm14, %v3742_v45, %v3500_v10  ;;  %v4605_v32 = vld [vmem:[#allocation3 + $0x128] sm:$0xff] }
 0x278   : > { %3875 = vrot.lane.b32.xlu0 %v3746_v33, %s9112_s22  ;;  %3616 = vrot.lane.b32.xlu1 %v3493_v30, %s9112_s22 }
 0x27b   : > { %5249 = vmatmul.mubr.bf16.gmra.mrb[20].mxu1 %v4600_v4  ;;  %v4410_v46 = vpop.permute.xlu0 %4409  ;;  %v4152_v52 = vpop.permute.xlu1 %4151 }
 0x27c   : > { %4427 = vrot.lane.b32.xlu0 %v4394_v29, %s9112_s22  ;;  %4453 = vst.msk [vmem:[#allocation3 + $0x130] sm:$0xff] %vm3665_vm15, %v4410_v46  ;;  %4194 = vst.msk [vmem:[#allocation3 + $0x150] sm:$0xff] %vm3665_vm15, %v4152_v52  ;;  %3618 = vrot.lane.b32.xlu1 %v3501_v9, %s9112_s22 }
 0x280   : > { %3877 = vrot.lane.b32.xlu0 %v3501_v9, %s9112_s22  ;;  %3620 = vrot.lane.b32.xlu1 %v10371_v47, %s9112_s22  ;;  %v9067_v9 = vld [vmem:[%s13908_s5 + $0x80] sm:$0xff]  }
 0x283   : > { %v4606_v3 = vld [vmem:[#allocation3 + $0x130] sm:$0xff] }
 0x284   : > { %3879 = vrot.lane.b32.xlu0 %v10371_v47, %s9112_s22  ;;  %5256 = vmatprep.mubr.bf16.mxu1 %v4606_v3 }
 0x285   : > { %3622 = vrot.lane.b32.xlu1 %v10420_v28, %s9112_s22  ;;  %5257 = vmatmul.mubr.bf16.gmra.mrb[24].mxu1 %v4605_v32 }
 0x288   : > { %3881 = vrot.lane.b32.xlu0 %v10420_v28, %s9112_s22  ;;  %v4610_v28 = vld [vmem:[#allocation3 + $0x150] sm:$0xff] }
 0x289   : > { %3624 = vrot.lane.b32.xlu1 %v10452_v62, %s9112_s22 }
 0x28a   : > { %v4412_v8 = vpop.permute.xlu0 %4411  ;;  %v4154_v15 = vpop.permute.xlu1 %4153 }
 0x28b   : > { %4454 = vst.msk [vmem:[#allocation3 + $0x158] sm:$0xff] %vm3665_vm15, %v4412_v8  ;;  %4195 = vst.msk [vmem:[#allocation3 + $0x178] sm:$0xff] %vm3665_vm15, %v4154_v15  ;;  %v4480_v15 = vld [vmem:[#allocation4 + $0xa0] sm:$0x1] }
 0x28c   : > { %3883 = vrot.lane.b32.xlu0 %v10452_v62, %s9112_s22 }
 0x28d   : > { %3626 = vrot.lane.b32.xlu1 %v10484_v6, %s9112_s22 }
 0x290   : > { %3885 = vrot.lane.b32.xlu0 %v10484_v6, %s9112_s22 }
 0x291   : > { %3628 = vrot.lane.b32.xlu1 %v10528_v35, %s9112_s22 }
 0x292   : > { %v4611_v47 = vld [vmem:[#allocation3 + $0x158] sm:$0xff] }
 0x293   : > { %5264 = vmatprep.mubr.bf16.mxu1 %v4611_v47  ;;  %v9068_v47 = vld [vmem:[%s13908_s5 + $0x88] sm:$0xff]  }
 0x294   : > { %3887 = vrot.lane.b32.xlu0 %v10528_v35, %s9112_s22  ;;  %5265 = vmatmul.mubr.bf16.gmra.mrb[28].mxu1 %v4610_v28  ;;  %v4615_v35 = vld [vmem:[#allocation3 + $0x178] sm:$0xff]  ;;  %v4532_v28 = vrot.slane %v4480_v15, 1 }
 0x295   : > { %3630 = vrot.lane.b32.xlu1 %v10581_v55, %s9112_s22 }
 0x297   : > { %v4414_v62 = vpop.permute.xlu0 %4413  ;;  %v4156_v45 = vpop.permute.xlu1 %4155 }
 0x298   : > { %3889 = vrot.lane.b32.xlu0 %v10581_v55, %s9112_s22  ;;  %4455 = vst.msk [vmem:[#allocation3 + $0x180] sm:$0xff] %vm3665_vm15, %v4414_v62  ;;  %4196 = vst.msk [vmem:[#allocation3 + $0x1a0] sm:$0xff] %vm3665_vm15, %v4156_v45 }
 0x299   : > { %3632 = vrot.lane.b32.xlu1 %v10626_v40, %s9112_s22 }
 0x29c   : > { %3891 = vrot.lane.b32.xlu0 %v10626_v40, %s9112_s22 }
 0x29d   : > { %3634 = vrot.lane.b32.xlu1 %v10673_v50, %s9112_s22 }
 0x29f   : > { %v4616_v6 = vld [vmem:[#allocation3 + $0x180] sm:$0xff] }
 0x2a0   : > { %3893 = vrot.lane.b32.xlu0 %v10673_v50, %s9112_s22  ;;  %5272 = vmatprep.mubr.bf16.mxu1 %v4616_v6 }
 0x2a1   : > { %3636 = vrot.lane.b32.xlu1 %v10726_v51, %s9112_s22  ;;  %5273 = vmatmul.mubr.bf16.gmra.mrb[32].mxu1 %v4615_v35 }
 0x2a4   : > { %3895 = vrot.lane.b32.xlu0 %v10726_v51, %s9112_s22  ;;  %v4620_v51 = vld [vmem:[#allocation3 + $0x1a0] sm:$0xff] }
 0x2a5   : > { %3638 = vrot.lane.b32.xlu1 %v10774_v54, %s9112_s22 }
 0x2a6   : > { %v4416_v55 = vpop.permute.xlu0 %4415  ;;  %v4158_v40 = vpop.permute.xlu1 %4157 }
 0x2a7   : > { %4456 = vst.msk [vmem:[#allocation3 + $0x1a8] sm:$0xff] %vm3665_vm15, %v4416_v55  ;;  %4197 = vst.msk [vmem:[#allocation3 + $0x1c8] sm:$0xff] %vm3665_vm15, %v4158_v40  ;;  %v14040_v55 = vrot.slane %v11034_v39, 1  ;;  %v4572_v39 = vld [vmem:[#allocation3 + $0x20] sm:$0xff] }
 0x2a8   : > { %3897 = vrot.lane.b32.xlu0 %v10774_v54, %s9112_s22 }
 0x2a9   : > { %3640 = vrot.lane.b32.xlu1 %v10842_v26, %s9112_s22  ;;  %v4533_v40 = vsel %vm2633_vm4, %v14040_v55, %v4532_v28  ;;  %v4592_v28 = vld [vmem:[#allocation3 + $0xc0] sm:$0xff] }
 0x2aa   : > { %4567 = vst.msk [vmem:[#allocation3 + $0x2a0] sm:$0xff] %vm370_vm12, %v4533_v40  ;;  %v9079_v40 = vld [vmem:[%s13908_s5 + $0xe0] sm:$0xff]  }
 0x2ac   : > { %3899 = vrot.lane.b32.xlu0 %v10842_v26, %s9112_s22  ;;  %v4006_v26 = vsel %vm1780_vm1, %v11095_v56, %v10311_v17  ;;  %vm375_vm1 = vcmask 261120  }
 0x2ad   : > { %3642 = vrot.lane.b32.xlu1 %v10907_v21, %s9112_s22  ;;  %376 = vst.msk [vmem:[#allocation5] sm:$0xff] %vm375_vm1, %v14013_v31  ;;  %377 = vst.msk [vmem:[#allocation5 + $0x8] sm:$0xff] %vm375_vm1, %v14013_v31 }
 0x2ae   : > { %v4621_v50 = vld [vmem:[#allocation3 + $0x1a8] sm:$0xff]  ;;  %378 = vst.msk [vmem:[#allocation5 + $0x98] sm:$0xff] %vm375_vm1, %v14013_v31  ;;  %379 = vst.msk [vmem:[#allocation5 + $0xa0] sm:$0xff] %vm375_vm1, %v14013_v31 }
 0x2af   : > { %5280 = vmatprep.mubr.bf16.mxu1 %v4621_v50  ;;  %v9069_v50 = vld [vmem:[%s13908_s5 + $0x90] sm:$0xff]  }
 0x2b0   : > { %3901 = vrot.lane.b32.xlu0 %v10911_v48, %s9112_s22  ;;  %5281 = vmatmul.mubr.bf16.gmra.mrb[36].mxu1 %v4620_v51  ;;  %v4625_v48 = vld [vmem:[#allocation3 + $0x1c8] sm:$0xff] }
 0x2b1   : > { %3644 = vrot.lane.b32.xlu1 %v10968_v27, %s9112_s22 }
 0x2b3   : > { %v4418_v54 = vpop.permute.xlu0 %4417 }
 0x2b4   : > { %v4160_v61 = vpop.permute.xlu1 %4159  ;;  %3903 = vrot.lane.b32.xlu0 %v10972_v60, %s9112_s22  ;;  %4457 = vst.msk [vmem:[#allocation3 + $0x1d0] sm:$0xff] %vm3665_vm15, %v4418_v54 }
 0x2b5   : > { %4198 = vst.msk [vmem:[#allocation3 + $0x1f0] sm:$0xff] %vm3665_vm15, %v4160_v61  ;;  %3646 = vrot.lane.b32.xlu1 %v11023_v57, %s9112_s22 }
 0x2b8   : > { %3905 = vrot.lane.b32.xlu0 %v11023_v57, %s9112_s22 }
 0x2b9   : > { %4135 = vrot.lane.b32.xlu1 %v4006_v26, %s9112_s22  ;;  %v9070_v26 = vld [vmem:[%s13908_s5 + $0x98] sm:$0xff]  }
 0x2bb   : > { %v4626_v21 = vld [vmem:[#allocation3 + $0x1d0] sm:$0xff] }
 0x2bc   : > { %3907 = vrot.lane.b32.xlu0 %v11074_v2, %s9112_s22  ;;  %5288 = vmatprep.mubr.bf16.mxu1 %v4626_v21  ;;  %v4630_v17 = vld [vmem:[#allocation3 + $0x1f0] sm:$0xff] }
 0x2bd   : > { %5289 = vmatmul.mubr.bf16.gmra.mrb[40].mxu1 %v4625_v48 }
 0x2c0   : > { %4395 = vrot.lane.b32.xlu0 %v10358_v41, %s9112_s22 }
 0x2c2   : > { %v4420_v27 = vpop.permute.xlu0 %4419  ;;  %v4162_v60 = vpop.permute.xlu1 %4161 }
 0x2c3   : > { %4458 = vst.msk [vmem:[#allocation3 + $0x1f8] sm:$0xff] %vm3665_vm15, %v4420_v27  ;;  %4199 = vst.msk [vmem:[#allocation3 + $0x218] sm:$0xff] %vm3665_vm15, %v4162_v60 }
 0x2ca   : > { %v4631_v57 = vld [vmem:[#allocation3 + $0x1f8] sm:$0xff] }
 0x2cb   : > { %5296 = vmatprep.mubr.bf16.mxu1 %v4631_v57  ;;  %v4635_v11 = vld [vmem:[#allocation3 + $0x218] sm:$0xff]  ;;  %v9071_v57 = vld [vmem:[%s13908_s5 + $0xa0] sm:$0xff]  }
 0x2cc   : > { %5297 = vmatmul.mubr.bf16.gmra.mrb[44].mxu1 %v4630_v17 }
 0x2cf   : > { %v4422_v43 = vpop.permute.xlu0 %4421  ;;  %v4164_v25 = vpop.permute.xlu1 %4163 }
 0x2d0   : > { %4459 = vst.msk [vmem:[#allocation3 + $0x220] sm:$0xff] %vm3665_vm15, %v4422_v43  ;;  %4200 = vst.msk [vmem:[#allocation3 + $0x240] sm:$0xff] %vm3665_vm15, %v4164_v25  ;;  %v4577_v25 = vld [vmem:[#allocation3 + $0x48] sm:$0xff] }
 0x2d7   : > { %v4636_v2 = vld [vmem:[#allocation3 + $0x220] sm:$0xff] }
 0x2d8   : > { %5304 = vmatprep.mubr.bf16.mxu1 %v4636_v2  ;;  %v4640_v56 = vld [vmem:[#allocation3 + $0x240] sm:$0xff]  ;;  %v9072_v2 = vld [vmem:[%s13908_s5 + $0xa8] sm:$0xff]  }
 0x2d9   : > { %5305 = vmatmul.mubr.bf16.gmra.mrb[48].mxu1 %v4635_v11 }
 0x2de   : > { %v4424_v41 = vpop.permute.xlu0 %4423  ;;  %v4166_v23 = vpop.permute.xlu1 %4165 }
 0x2df   : > { %4460 = vst.msk [vmem:[#allocation3 + $0x248] sm:$0xff] %vm3665_vm15, %v4424_v41  ;;  %4201 = vst.msk [vmem:[#allocation3 + $0x268] sm:$0xff] %vm3665_vm15, %v4166_v23 }
 0x2e2   : > { %v4426_v14 = vpop.permute.xlu0 %4425  ;;  %v3615_v1 = vpop.permute.xlu1 %3614 }
 0x2e3   : > { %4461 = vst.msk [vmem:[#allocation3 + $0x270] sm:$0xff] %vm3665_vm15, %v4426_v14  ;;  %3666 = vst.msk [vmem:[#allocation3] sm:$0xff] %vm3665_vm15, %v3615_v1  ;;  %v9073_v1 = vld [vmem:[%s13908_s5 + $0xb0] sm:$0xff]  }
 0x2e6   : > { %v4168_v19 = vpop.permute.xlu1 %4167  ;;  %v4641_v38 = vld [vmem:[#allocation3 + $0x248] sm:$0xff] }
 0x2e7   : > { %4202 = vst.msk [vmem:[#allocation3 + $0x290] sm:$0xff] %vm3665_vm15, %v4168_v19  ;;  %5312 = vmatprep.mubr.bf16.mxu1 %v4641_v38  ;;  %v4645_v4 = vld [vmem:[#allocation3 + $0x268] sm:$0xff] }
 0x2e8   : > { %5313 = vmatmul.mubr.bf16.gmra.mrb[52].mxu1 %v4640_v56  ;;  %v4582_v56 = vld [vmem:[#allocation3 + $0x70] sm:$0xff] }
 0x2ea   : > { %v3876_v53 = vpop.permute.xlu0 %3875  ;;  %v3617_v33 = vpop.permute.xlu1 %3616  ;;  %v4646_v30 = vld [vmem:[#allocation3 + $0x270] sm:$0xff]  ;;  %v4568_v18 = vld [vmem:[#allocation3] sm:$0xff] }
 0x2eb   : > { %3926 = vst.msk [vmem:[#allocation3 + $0x8] sm:$0xff] %vm3665_vm15, %v3876_v53  ;;  %3667 = vst.msk [vmem:[#allocation3 + $0x28] sm:$0xff] %vm3665_vm15, %v3617_v33  ;;  %5320 = vmatprep.mubr.bf16.mxu1 %v4646_v30  ;;  %v9074_v53 = vld [vmem:[%s13908_s5 + $0xb8] sm:$0xff]  }
 0x2ee   : > { %v4428_v29 = vpop.permute.xlu0 %4427  ;;  %v3619_v36 = vpop.permute.xlu1 %3618  ;;  %v4650_v8 = vld [vmem:[#allocation3 + $0x290] sm:$0xff] }
 0x2ef   : > { %4462 = vst.msk [vmem:[#allocation3 + $0x298] sm:$0xff] %vm3665_vm15, %v4428_v29  ;;  %3668 = vst.msk [vmem:[#allocation3 + $0x50] sm:$0xff] %vm3665_vm15, %v3619_v36 }
 0x2f0   : > { %5321 = vmatmul.mubr.bf16.gmra.mrb[56].mxu1 %v4645_v4  ;;  %v9075_v4 = vld [vmem:[%s13908_s5 + $0xc0] sm:$0xff]  }
 0x2f2   : > { %v3878_v10 = vpop.permute.xlu0 %3877  ;;  %v4569_v46 = vld [vmem:[#allocation3 + $0x8] sm:$0xff]  ;;  %v3621_v52 = vpop.permute.xlu1 %3620 }
 0x2f3   : > { %3927 = vst.msk [vmem:[#allocation3 + $0x30] sm:$0xff] %vm3665_vm15, %v3878_v10  ;;  %5031 = vmatprep.mubr.bf16.mxu0 %v4569_v46  ;;  %3669 = vst.msk [vmem:[#allocation3 + $0x78] sm:$0xff] %vm3665_vm15, %v3621_v52  ;;  %v4573_v35 = vld [vmem:[#allocation3 + $0x28] sm:$0xff]  ;;  %v4587_v46 = vld [vmem:[#allocation3 + $0x98] sm:$0xff] }
 0x2f4   : > { %5032 = vmatmul.mubr.bf16.vlgmr.msra.gmra.mrb[68].mxu0 %v4568_v18  ;;  %v9076_v52 = vld [vmem:[%s13908_s5 + $0xc8] sm:$0xff]  }
 0x2f5   : > { %5169 = vmatpush1.bf16.msra.mxu0 %v9067_v9 }
 0x2f6   : > { %v3880_v37 = vpop.permute.xlu0 %3879  ;;  %v4651_v3 = vld [vmem:[#allocation3 + $0x298] sm:$0xff]  ;;  %5170 = vmatprep.subr.bf16.mxu0 %v14013_v31  ;;  %v4578_v27 = vld [vmem:[#allocation3 + $0x50] sm:$0xff] }
 0x2f7   : > { %3928 = vst.msk [vmem:[#allocation3 + $0x58] sm:$0xff] %vm3665_vm15, %v3880_v37  ;;  %5328 = vmatprep.mubr.bf16.mxu1 %v4651_v3  ;;  %v3623_v32 = vpop.permute.xlu1 %3622 }
 0x2f8   : > { %3670 = vst.msk [vmem:[#allocation3 + $0xa0] sm:$0xff] %vm3665_vm15, %v3623_v32  ;;  %5329 = vmatmul.mubr.bf16.gmra.mrb[60].mxu1 %v4650_v8  ;;  %v9077_v8 = vld [vmem:[%s13908_s5 + $0xd0] sm:$0xff]  }
 0x2f9   : > { %5171 = vmatpush1.bf16.msra.mxu0 %v9068_v47  ;;  %8463 = vmatprep.mubr.msk.bf16.mxu1 %vm9120_vm0, %v14024_v34 }
 0x2fa   : > { %v3882_v62 = vpop.permute.xlu0 %3881  ;;  %v4574_v45 = vld [vmem:[#allocation3 + $0x30] sm:$0xff]  ;;  %5172 = vmatprep.subr.bf16.mxu0 %v14013_v31  ;;  %v4583_v23 = vld [vmem:[#allocation3 + $0x78] sm:$0xff] }
 0x2fb   : > { %3929 = vst.msk [vmem:[#allocation3 + $0x80] sm:$0xff] %vm3665_vm15, %v3882_v62  ;;  %5039 = vmatprep.mubr.bf16.mxu0 %v4574_v45  ;;  %v3625_v6 = vpop.permute.xlu1 %3624  ;;  %v9078_v62 = vld [vmem:[%s13908_s5 + $0xd8] sm:$0xff]  }
 0x2fc   : > { %3671 = vst.msk [vmem:[#allocation3 + $0xc8] sm:$0xff] %vm3665_vm15, %v3625_v6  ;;  %5040 = vmatmul.mubr.bf16.gmra.mrb[72].mxu0 %v4573_v35 }
 0x2fd   : > { %5173 = vmatpush1.bf16.msra.mxu0 %v9069_v50 }
 0x2fe   : > { %v3884_v51 = vpop.permute.xlu0 %3883  ;;  %v4579_v54 = vld [vmem:[#allocation3 + $0x58] sm:$0xff]  ;;  %5174 = vmatprep.subr.bf16.mxu0 %v14013_v31 }
 0x2ff   : > { %3930 = vst.msk [vmem:[#allocation3 + $0xa8] sm:$0xff] %vm3665_vm15, %v3884_v51  ;;  %v3627_v61 = vpop.permute.xlu1 %3626  ;;  %5047 = vmatprep.mubr.bf16.mxu0 %v4579_v54  ;;  %v4588_v29 = vld [vmem:[#allocation3 + $0xa0] sm:$0xff]  ;;  %v4597_v54 = vld [vmem:[#allocation3 + $0xe8] sm:$0xff] }
 0x300   : > { %3672 = vst.msk [vmem:[#allocation3 + $0xf0] sm:$0xff] %vm3665_vm15, %v3627_v61  ;;  %8464 = vmatmul.mubr.msk.bf16.vlgmr.msra.gmra.mrb[64].mxu1 %vm370_vm12, %v4572_v39  ;;  %v9080_v61 = vld [vmem:[%s13908_s5 + $0xe8] sm:$0xff]  }
 0x301   : > { %5175 = vmatpush1.bf16.msra.mxu0 %v9070_v26  ;;  %8467 = vmatprep.mubr.msk.bf16.mxu1 %vm9120_vm0, %v14024_v34 }
 0x302   : > { %v3886_v21 = vpop.permute.xlu0 %3885  ;;  %5176 = vmatprep.subr.bf16.mxu0 %v14013_v31  ;;  %v4584_v60 = vld [vmem:[#allocation3 + $0x80] sm:$0xff] }
 0x303   : > { %3931 = vst.msk [vmem:[#allocation3 + $0xd0] sm:$0xff] %vm3665_vm15, %v3886_v21  ;;  %v3629_v48 = vpop.permute.xlu1 %3628  ;;  %v4593_v3 = vld [vmem:[#allocation3 + $0xc8] sm:$0xff] }
 0x304   : > { %3673 = vst.msk [vmem:[#allocation3 + $0x118] sm:$0xff] %vm3665_vm15, %v3629_v48  ;;  %5048 = vmatmul.mubr.bf16.gmra.mrb[76].mxu0 %v4578_v27  ;;  %v9081_v27 = vld [vmem:[%s13908_s5 + $0xf0] sm:$0xff]  }
 0x305   : > { %5055 = vmatprep.mubr.bf16.mxu0 %v4584_v60  ;;  %5177 = vmatpush1.bf16.msra.mxu0 %v9071_v57  ;;  %v4602_v57 = vld [vmem:[#allocation3 + $0x110] sm:$0xff] }
 0x306   : > { %v3888_v17 = vpop.permute.xlu0 %3887  ;;  %5178 = vmatprep.subr.bf16.mxu0 %v14013_v31  ;;  %v4589_v14 = vld [vmem:[#allocation3 + $0xa8] sm:$0xff] }
 0x307   : > { %3932 = vst.msk [vmem:[#allocation3 + $0xf8] sm:$0xff] %vm3665_vm15, %v3888_v17  ;;  %v3631_v43 = vpop.permute.xlu1 %3630  ;;  %v4598_v35 = vld [vmem:[#allocation3 + $0xf0] sm:$0xff]  ;;  %v9082_v17 = vld [vmem:[%s13908_s5 + $0xf8] sm:$0xff]  }
 0x308   : > { %3674 = vst.msk [vmem:[#allocation3 + $0x140] sm:$0xff] %vm3665_vm15, %v3631_v43  ;;  %8468 = vmatmul.mubr.msk.bf16.gmra.mrb[0].mxu1 %vm370_vm12, %v4577_v25 }
 0x309   : > { %5179 = vmatpush1.bf16.msra.mxu0 %v9072_v2  ;;  %8471 = vmatprep.mubr.msk.bf16.mxu1 %vm9120_vm0, %v14024_v34 }
 0x30a   : > { %v3890_v11 = vpop.permute.xlu0 %3889  ;;  %5180 = vmatprep.subr.bf16.mxu0 %v14013_v31  ;;  %v4594_v36 = vld [vmem:[#allocation3 + $0xd0] sm:$0xff] }
 0x30b   : > { %3933 = vst.msk [vmem:[#allocation3 + $0x120] sm:$0xff] %vm3665_vm15, %v3890_v11  ;;  %v3633_v41 = vpop.permute.xlu1 %3632  ;;  %v4603_v21 = vld [vmem:[#allocation3 + $0x118] sm:$0xff] }
 0x30c   : > { %3675 = vst.msk [vmem:[#allocation3 + $0x168] sm:$0xff] %vm3665_vm15, %v3633_v41  ;;  %5056 = vmatmul.mubr.bf16.gmra.mrb[80].mxu0 %v4583_v23  ;;  %v4607_v11 = vld [vmem:[#allocation3 + $0x138] sm:$0xff] }
 0x30d   : > { %5063 = vmatprep.mubr.bf16.mxu0 %v4589_v14  ;;  %5181 = vmatpush1.bf16.msra.mxu0 %v9073_v1  ;;  %v4612_v14 = vld [vmem:[#allocation3 + $0x160] sm:$0xff] }
 0x30e   : > { %v3892_v19 = vpop.permute.xlu0 %3891  ;;  %5182 = vmatprep.subr.bf16.mxu0 %v14013_v31  ;;  %v4599_v32 = vld [vmem:[#allocation3 + $0xf8] sm:$0xff] }
 0x30f   : > { %3934 = vst.msk [vmem:[#allocation3 + $0x148] sm:$0xff] %vm3665_vm15, %v3892_v19  ;;  %v3635_v38 = vpop.permute.xlu1 %3634  ;;  %v4608_v25 = vld [vmem:[#allocation3 + $0x140] sm:$0xff] }
 0x310   : > { %3676 = vst.msk [vmem:[#allocation3 + $0x190] sm:$0xff] %vm3665_vm15, %v3635_v38  ;;  %8472 = vmatmul.mubr.msk.bf16.gmra.mrb[4].mxu1 %vm370_vm12, %v4582_v56  ;;  %v4617_v38 = vld [vmem:[#allocation3 + $0x188] sm:$0xff] }
 0x311   : > { %5183 = vmatpush1.bf16.msra.mxu0 %v9074_v53  ;;  %8475 = vmatprep.mubr.msk.bf16.mxu1 %vm9120_vm0, %v14024_v34 }
 0x312   : > { %v3894_v33 = vpop.permute.xlu0 %3893  ;;  %5184 = vmatprep.subr.bf16.mxu0 %v14013_v31  ;;  %v4604_v55 = vld [vmem:[#allocation3 + $0x120] sm:$0xff] }
 0x313   : > { %3935 = vst.msk [vmem:[#allocation3 + $0x170] sm:$0xff] %vm3665_vm15, %v3894_v33  ;;  %v3637_v30 = vpop.permute.xlu1 %3636  ;;  %v4613_v41 = vld [vmem:[#allocation3 + $0x168] sm:$0xff]  ;;  %v4622_v33 = vld [vmem:[#allocation3 + $0x1b0] sm:$0xff] }
 0x314   : > { %3677 = vst.msk [vmem:[#allocation3 + $0x1b8] sm:$0xff] %vm3665_vm15, %v3637_v30  ;;  %5064 = vmatmul.mubr.bf16.gmra.mrb[84].mxu0 %v4588_v29 }
 0x315   : > { %5071 = vmatprep.mubr.bf16.mxu0 %v4594_v36  ;;  %5185 = vmatpush1.bf16.msra.mxu0 %v9075_v4  ;;  %v4627_v36 = vld [vmem:[#allocation3 + $0x1d8] sm:$0xff] }
 0x316   : > { %v3896_v18 = vpop.permute.xlu0 %3895  ;;  %5186 = vmatprep.subr.bf16.mxu0 %v14013_v31  ;;  %v4609_v48 = vld [vmem:[#allocation3 + $0x148] sm:$0xff] }
 0x317   : > { %3936 = vst.msk [vmem:[#allocation3 + $0x198] sm:$0xff] %vm3665_vm15, %v3896_v18  ;;  %v3639_v10 = vpop.permute.xlu1 %3638  ;;  %v4618_v1 = vld [vmem:[#allocation3 + $0x190] sm:$0xff] }
 0x318   : > { %3678 = vst.msk [vmem:[#allocation3 + $0x1e0] sm:$0xff] %vm3665_vm15, %v3639_v10  ;;  %8476 = vmatmul.mubr.msk.bf16.gmra.mrb[8].mxu1 %vm370_vm12, %v4587_v46  ;;  %v4632_v10 = vld [vmem:[#allocation3 + $0x200] sm:$0xff] }
 0x319   : > { %5187 = vmatpush1.bf16.msra.mxu0 %v9076_v52  ;;  %8479 = vmatprep.mubr.msk.bf16.mxu1 %vm9120_vm0, %v14024_v34 }
 0x31a   : > { %v3898_v9 = vpop.permute.xlu0 %3897  ;;  %5188 = vmatprep.subr.bf16.mxu0 %v14013_v31  ;;  %v4614_v2 = vld [vmem:[#allocation3 + $0x170] sm:$0xff] }
 0x31b   : > { %3937 = vst.msk [vmem:[#allocation3 + $0x1c0] sm:$0xff] %vm3665_vm15, %v3898_v9  ;;  %v3641_v37 = vpop.permute.xlu1 %3640  ;;  %v4623_v56 = vld [vmem:[#allocation3 + $0x1b8] sm:$0xff]  ;;  %v4637_v9 = vld [vmem:[#allocation3 + $0x228] sm:$0xff] }
 0x31c   : > { %3679 = vst.msk [vmem:[#allocation3 + $0x208] sm:$0xff] %vm3665_vm15, %v3641_v37  ;;  %5072 = vmatmul.mubr.bf16.gmra.mrb[88].mxu0 %v4593_v3 }
 0x31d   : > { %5079 = vmatprep.mubr.bf16.mxu0 %v4599_v32  ;;  %5189 = vmatpush1.bf16.msra.mxu0 %v9077_v8  ;;  %v4642_v32 = vld [vmem:[#allocation3 + $0x250] sm:$0xff] }
 0x31e   : > { %v3900_v15 = vpop.permute.xlu0 %3899  ;;  %5190 = vmatprep.subr.bf16.mxu0 %v14013_v31  ;;  %v4619_v23 = vld [vmem:[#allocation3 + $0x198] sm:$0xff] }
 0x31f   : > { %3938 = vst.msk [vmem:[#allocation3 + $0x1e8] sm:$0xff] %vm3665_vm15, %v3900_v15  ;;  %v3643_v47 = vpop.permute.xlu1 %3642  ;;  %v4628_v30 = vld [vmem:[#allocation3 + $0x1e0] sm:$0xff]  ;;  %v4647_v15 = vld [vmem:[#allocation3 + $0x278] sm:$0xff] }
 0x320   : > { %3680 = vst.msk [vmem:[#allocation3 + $0x230] sm:$0xff] %vm3665_vm15, %v3643_v47  ;;  %8480 = vmatmul.mubr.msk.bf16.gmra.mrb[12].mxu1 %vm370_vm12, %v4592_v28  ;;  %v4652_v28 = vld [vmem:[#allocation3 + $0x2a0] sm:$0xff] }
 0x321   : > { %5191 = vmatpush1.bf16.msra.mxu0 %v9078_v62  ;;  %8483 = vmatprep.mubr.msk.bf16.mxu1 %vm9120_vm0, %v14024_v34 }
 0x322   : > { %v3902_v45 = vpop.permute.xlu0 %3901  ;;  %5192 = vmatprep.subr.bf16.mxu0 %v14013_v31  ;;  %v4624_v19 = vld [vmem:[#allocation3 + $0x1c0] sm:$0xff] }
 0x323   : > { %3939 = vst.msk [vmem:[#allocation3 + $0x210] sm:$0xff] %vm3665_vm15, %v3902_v45  ;;  %v3645_v6 = vpop.permute.xlu1 %3644  ;;  %v4633_v4 = vld [vmem:[#allocation3 + $0x208] sm:$0xff] }
 0x324   : > { %3681 = vst.msk [vmem:[#allocation3 + $0x258] sm:$0xff] %vm3665_vm15, %v3645_v6  ;;  %5080 = vmatmul.mubr.bf16.gmra.mrb[92].mxu0 %v4598_v35 }
 0x325   : > { %5087 = vmatprep.mubr.bf16.mxu0 %v4604_v55  ;;  %5193 = vmatpush1.bf16.msra.mxu0 %v9079_v40 }
 0x326   : > { %v3904_v50 = vpop.permute.xlu0 %3903  ;;  %5194 = vmatprep.subr.bf16.mxu0 %v14013_v31  ;;  %v4629_v53 = vld [vmem:[#allocation3 + $0x1e8] sm:$0xff] }
 0x327   : > { %3940 = vst.msk [vmem:[#allocation3 + $0x238] sm:$0xff] %vm3665_vm15, %v3904_v50  ;;  %v3647_v51 = vpop.permute.xlu1 %3646  ;;  %v4638_v46 = vld [vmem:[#allocation3 + $0x230] sm:$0xff] }
 0x328   : > { %3682 = vst.msk [vmem:[#allocation3 + $0x280] sm:$0xff] %vm3665_vm15, %v3647_v51  ;;  %8484 = vmatmul.mubr.msk.bf16.gmra.mrb[16].mxu1 %vm370_vm12, %v4597_v54 }
 0x329   : > { %5195 = vmatpush1.bf16.msra.mxu0 %v9080_v61  ;;  %8487 = vmatprep.mubr.msk.bf16.mxu1 %vm9120_vm0, %v14024_v34 }
 0x32a   : > { %v3906_v39 = vpop.permute.xlu0 %3905  ;;  %5196 = vmatprep.subr.bf16.mxu0 %v14013_v31  ;;  %v4634_v29 = vld [vmem:[#allocation3 + $0x210] sm:$0xff] }
 0x32b   : > { %3941 = vst.msk [vmem:[#allocation3 + $0x260] sm:$0xff] %vm3665_vm15, %v3906_v39  ;;  %v4136_v26 = vpop.permute.xlu1 %4135  ;;  %v4643_v37 = vld [vmem:[#allocation3 + $0x258] sm:$0xff] }
 0x32c   : > { %4186 = vst.msk [vmem:[#allocation3 + $0x10] sm:$0xff] %vm3665_vm15, %v4136_v26  ;;  %5088 = vmatmul.mubr.bf16.gmra.mrb[96].mxu0 %v4603_v21 }
 0x32d   : > { %5095 = vmatprep.mubr.bf16.mxu0 %v4609_v48  ;;  %5197 = vmatpush1.bf16.msra.mxu0 %v9081_v27 }
 0x32e   : > { %v3908_v60 = vpop.permute.xlu0 %3907  ;;  %5198 = vmatprep.subr.bf16.mxu0 %v14013_v31  ;;  %v4639_v18 = vld [vmem:[#allocation3 + $0x238] sm:$0xff] }
 0x32f   : > { %3942 = vst.msk [vmem:[#allocation3 + $0x288] sm:$0xff] %vm3665_vm15, %v3908_v60  ;;  %v4648_v31 = vld [vmem:[#allocation3 + $0x280] sm:$0xff] }
 0x330   : > { %8488 = vmatmul.mubr.msk.bf16.gmra.mrb[20].mxu1 %vm370_vm12, %v4602_v57 }
 0x331   : > { %5199 = vmatpush1.bf16.msra.mxu0 %v9082_v17  ;;  %8491 = vmatprep.mubr.msk.bf16.mxu1 %vm9120_vm0, %v14024_v34 }
 0x332   : > { %v4396_v43 = vpop.permute.xlu0 %4395  ;;  %v4644_v52 = vld [vmem:[#allocation3 + $0x260] sm:$0xff] }
 0x333   : > { %4446 = vst.msk [vmem:[#allocation3 + $0x18] sm:$0xff] %vm3665_vm15, %v4396_v43  ;;  %v4570_v47 = vld [vmem:[#allocation3 + $0x10] sm:$0xff] }
 0x334   : > { %5096 = vmatmul.mubr.bf16.gmra.mrb[100].mxu0 %v4608_v25 }
 0x335   : > { %5103 = vmatprep.mubr.bf16.mxu0 %v4614_v2 }
 0x336   : > { %v4649_v3 = vld [vmem:[#allocation3 + $0x288] sm:$0xff] }
 0x338   : > { %8492 = vmatmul.mubr.msk.bf16.gmra.mrb[24].mxu1 %vm370_vm12, %v4607_v11 }
 0x339   : > { %8495 = vmatprep.mubr.msk.bf16.mxu1 %vm9120_vm0, %v14024_v34 }
 0x33a   : > { %v4571_v8 = vld [vmem:[#allocation3 + $0x18] sm:$0xff] }
 0x33c   : > { %5104 = vmatmul.mubr.bf16.gmra.mrb[104].mxu0 %v4613_v41 }
 0x33d   : > { %5111 = vmatprep.mubr.bf16.mxu0 %v4619_v23  ;;  %v5608_v23 = vld [vmem:[#allocation5] sm:$0x80] }
 0x340   : > { %8496 = vmatmul.mubr.msk.bf16.gmra.mrb[28].mxu1 %vm370_vm12, %v4612_v14  ;;  %v11373_v14 = vld [vmem:[#allocation5 + $0x8] sm:$0xff] }
 0x341   : > { %8499 = vmatprep.mubr.msk.bf16.mxu1 %vm9120_vm0, %v14024_v34 }
 0x344   : > { %5112 = vmatmul.mubr.bf16.gmra.mrb[108].mxu0 %v4618_v1 }
 0x345   : > { %5119 = vmatprep.mubr.bf16.mxu0 %v4624_v19 }
 0x348   : > { %8500 = vmatmul.mubr.msk.bf16.gmra.mrb[32].mxu1 %vm370_vm12, %v4617_v38 }
 0x349   : > { %8503 = vmatprep.mubr.msk.bf16.mxu1 %vm9120_vm0, %v14024_v34 }
 0x34c   : > { %5120 = vmatmul.mubr.bf16.gmra.mrb[112].mxu0 %v4623_v56 }
 0x34d   : > { %5127 = vmatprep.mubr.bf16.mxu0 %v4629_v53 }
 0x350   : > { %8504 = vmatmul.mubr.msk.bf16.gmra.mrb[36].mxu1 %vm370_vm12, %v4622_v33 }
 0x351   : > { %8507 = vmatprep.mubr.msk.bf16.mxu1 %vm9120_vm0, %v14024_v34 }
 0x354   : > { %5128 = vmatmul.mubr.bf16.gmra.mrb[116].mxu0 %v4628_v30  ;;  %v5645_v30 = vrot.slane %v5608_v23, 4 }
 0x355   : > { %5135 = vmatprep.mubr.bf16.mxu0 %v4634_v29  ;;  %v13944_v29 = vrot.slane %v11373_v14, 4 }
 0x358   : > { %8508 = vmatmul.mubr.msk.bf16.gmra.mrb[40].mxu1 %vm370_vm12, %v4627_v36 }
 0x359   : > { %8511 = vmatprep.mubr.msk.bf16.mxu1 %vm9120_vm0, %v14024_v34 }
 0x35c   : > { %5136 = vmatmul.mubr.bf16.gmra.mrb[120].mxu0 %v4633_v4  ;;  %v6037_v4 = vunpack.c.l.bf16 %v11373_v14 }
 0x35d   : > { %5143 = vmatprep.mubr.bf16.mxu0 %v4639_v18 }
 0x360   : > { %8512 = vmatmul.mubr.msk.bf16.gmra.mrb[44].mxu1 %vm370_vm12, %v4632_v10 }
 0x361   : > { %8515 = vmatprep.mubr.msk.bf16.mxu1 %vm9120_vm0, %v14024_v34 }
 0x364   : > { %5144 = vmatmul.mubr.bf16.gmra.mrb[124].mxu0 %v4638_v46 }
 0x365   : > { %5151 = vmatprep.mubr.bf16.mxu0 %v4644_v52 }
 0x368   : > { %8516 = vmatmul.mubr.msk.bf16.gmra.mrb[48].mxu1 %vm370_vm12, %v4637_v9  ;;  %v11384_v9 = vsel %vm5644_vm3, %v5645_v30, %v13944_v29 }
 0x369   : > { %8519 = vmatprep.mubr.msk.bf16.mxu1 %vm9120_vm0, %v14024_v34 }
 0x36c   : > { %5152 = vmatmul.mubr.bf16.gmra.mrb[128].mxu0 %v4643_v37  ;;  %v5699_v37 = vunpack.c.h.bf16 %v11384_v9 }
 0x36d   : > { %5159 = vmatprep.mubr.bf16.mxu0 %v4649_v3  ;;  %v11391_v3 = vld [vmem:[%s13910_s7 + $0x2] ss:$0 sm:$0xff] }
 0x370   : > { %8520 = vmatmul.mubr.msk.bf16.gmra.mrb[52].mxu1 %vm370_vm12, %v4642_v32 }
 0x371   : > { %8523 = vmatprep.mubr.msk.bf16.mxu1 %vm9120_vm0, %v14024_v34 }
 0x374   : > { %5160 = vmatmul.mubr.bf16.gmra.mrb[132].mxu0 %v4648_v31 }
 0x375   : > { %5200 = vmatprep.mubr.bf16.mxu0 %v4571_v8 }
 0x378   : > { %8524 = vmatmul.mubr.msk.bf16.gmra.mrb[56].mxu1 %vm370_vm12, %v4647_v15 }
 0x379   : > { %8527 = vmatprep.mubr.msk.bf16.mxu1 %vm9120_vm0, %v14024_v34  ;;  %v11369_v34 = vld [vmem:[%s13909_s6] ss:$0 sm:$0xff] }
 0x37c   : > { %5201 = vmatmul.mubr.bf16.vlgmr.msra.gmra.mrb[68].mxu0 %v4570_v47  ;;  %v11397_v47 = vld [vmem:[%s13910_s7 + $0x1] ss:$0 sm:$0xff] }
 0x380   : > { %8528 = vmatmul.mubr.msk.bf16.gmra.mrb[60].mxu1 %vm370_vm12, %v4652_v28 }
 0x3cf   : > { %v5041_v62 = vpop.f32.mrb[72].mxu0 }
 0x3d0   : > { %v5043_v45 = vpop.f32.mrb[73].mxu0  ;;  %v5042_v21 = vadd.f32 %v11369_v34, %v5041_v62  ;;  %v11402_v62 = vld [vmem:[%s13910_s7] ss:$0 sm:$0xff] }
 0x3d1   : > { %v5044_v6 = vpop.f32.mrb[74].mxu0 }
 0x3d2   : > { %v5046_v35 = vpop.f32.mrb[75].mxu0  ;;  %v5045_v27 = vadd.f32 %v11369_v34, %v5044_v6  ;;  %v11408_v6 = vmul.f32 %v11397_v47, %v5699_v37 }
 0x3d3   : > { %v11362_v55 = vpop.f32.mrb[64].mxu1  ;;  %v11411_v35 = vmul.f32 %v11391_v3, %v6037_v4 }
 0x3d4   : > { %v8465_v40 = vpop.f32.mrb[65].mxu1  ;;  %14041 = vst [vmem:[#allocation26_spill] sm:$0xff] %v11408_v6 }
 0x3d5   : > { %v11364_v50 = vpop.f32.mrb[66].mxu1  ;;  %v6038_v40 = vunpack.c.h.bf16 %v11373_v14 }
 0x3d6   : > { %v8466_v54 = vpop.f32.mrb[67].mxu1 }
 0x3d7   : > { %v5049_v51 = vpop.f32.mrb[76].mxu0 }
 0x3d8   : > { %v5051_v61 = vpop.f32.mrb[77].mxu0  ;;  %v5050_v38 = vadd.f32 %v11369_v34, %v5049_v51 }
 0x3d9   : > { %v5052_v39 = vpop.f32.mrb[78].mxu0 }
 0x3da   : > { %v5054_v26 = vpop.f32.mrb[79].mxu0  ;;  %v5053_v18 = vadd.f32 %v11369_v34, %v5052_v39 }
 0x3db   : > { %v5379_v48 = vpop.f32.mrb[0].mxu1 }
 0x3dc   : > { %v8568_v60 = vadd.f32 %v5379_v48, %v5042_v21  ;;  %v8469_v57 = vpop.f32.mrb[1].mxu1  ;;  %v13943_v21 = vrot.slane %v11408_v6, 1 }
 0x3dd   : > { %v5382_v17 = vpop.f32.mrb[2].mxu1  ;;  %v11419_v57 = vld [vmem:[#allocation5 + $0x8] sm:$0x80] }
 0x3de   : > { %v5508_v43 = vmax.f32 %v8568_v60, 0.0  ;;  %v8570_v25 = vadd.f32 %v5382_v17, %v5045_v27  ;;  %v8470_v11 = vpop.f32.mrb[3].mxu1 }
 0x3df   : > { %v5057_v2 = vpop.f32.mrb[80].mxu0  ;;  %v11426_v11 = vmul.f32 %v11391_v3, %v6038_v40 }
 0x3e0   : > { %v5059_v41 = vpop.f32.mrb[81].mxu0  ;;  %v5509_v1 = vmax.f32 %v8570_v25, 0.0  ;;  %v5542_v53 = vmul.f32 %v5508_v43, %v10256_v58  ;;  %v5058_v48 = vadd.f32 %v11369_v34, %v5057_v2  ;;  %v6148_v25 = vrot.slane %v11411_v35, 2 }
 0x3e1   : > { %v5060_v19 = vpop.f32.mrb[82].mxu0  ;;  %14042 = vst [vmem:[#allocation27_spill] sm:$0xff] %v11426_v11 }
 0x3e2   : > { %v5062_v56 = vpop.f32.mrb[83].mxu0  ;;  %v5543_v33 = vmul.f32 %v5509_v1, %v10262_v0  ;;  %v5698_v0 = vunpack.c.l.bf16 %v11384_v9  ;;  %v5061_v41 = vadd.f32 %v11369_v34, %v5060_v19 }
 0x3e3   : > { %v5387_v36 = vpop.f32.mrb[4].mxu1  ;;  %v11442_v56 = vld [vmem:[%s13910_s7 + $0x7] ss:$0 sm:$0xff] }
 0x3e4   : > { %v5575_v10 = vpack.c.bf16 %v5543_v33, %v5542_v53  ;;  %v8572_v46 = vadd.f32 %v5387_v36, %v5050_v38  ;;  %v8473_v52 = vpop.f32.mrb[5].mxu1  ;;  %v5827_v45 = vmul.f32 %v11397_v47, %v5698_v0  ;;  %v5740_v61 = vmul.f32 %v11402_v62, %v5698_v0  ;;  %v11437_v38 = vld [vmem:[%s13910_s7 + $0x6] ss:$0 sm:$0xff]  ;;  %v11456_v0 = vld [vmem:[%s13910_s7 + $0x8] ss:$0 sm:$0xff] }
 0x3e5   : > { %v5390_v58 = vpop.f32.mrb[6].mxu1 }
 0x3e6   : > { %5592 = vst.msk [vmem:[#allocation5 + $0x18] sm:$0xff] %vm375_vm1, %v5575_v10  ;;  %v5510_v32 = vmax.f32 %v8572_v46, 0.0  ;;  %v8574_v31 = vadd.f32 %v5390_v58, %v5053_v18  ;;  %v8474_v15 = vpop.f32.mrb[7].mxu1  ;;  %v5898_v26 = vrot.slane %v5827_v45, 1  ;;  %v13947_v45 = vrot.slane %v11426_v11, 2 }
 0x3e7   : > { %v5065_v8 = vpop.f32.mrb[84].mxu0  ;;  %v11468_v15 = vld [vmem:[%s13910_s7 + $0x5] ss:$0 sm:$0xff] }
 0x3e8   : > { %v5067_v28 = vpop.f32.mrb[85].mxu0  ;;  %v5511_v51 = vmax.f32 %v8574_v31, 0.0  ;;  %v5544_v27 = vmul.f32 %v5510_v32, %v10243_v24  ;;  %v5900_v43 = vsel %vm2633_vm4, %v5898_v26, %v13943_v21  ;;  %v5066_v19 = vadd.f32 %v11369_v34, %v5065_v8 }
 0x3e9   : > { %v5068_v54 = vpop.f32.mrb[86].mxu0  ;;  %v6002_v24 = vadd.f32 %v5900_v43, %v5740_v61 }
 0x3ea   : > { %v5070_v39 = vpop.f32.mrb[87].mxu0  ;;  %v5545_v60 = vmul.f32 %v5511_v51, %v10283_v49  ;;  %v11432_v49 = vld [vmem:[%s13910_s7 + $0x4] ss:$0 sm:$0xff]  ;;  %v5069_v4 = vadd.f32 %v11369_v34, %v5068_v54 }
 0x3eb   : > { %v5395_v17 = vpop.f32.mrb[8].mxu1  ;;  %v11463_v8 = vadd.f32 %v6148_v25, %v6002_v24 }
 0x3ec   : > { %v5576_v23 = vpack.c.bf16 %v5545_v60, %v5544_v27  ;;  %v8576_v2 = vadd.f32 %v5395_v17, %v5058_v48  ;;  %v8477_v1 = vpop.f32.mrb[9].mxu1 }
 0x3ed   : > { %v5398_v53 = vpop.f32.mrb[10].mxu1  ;;  %v11445_v33 = vld [vmem:[#allocation5 + $0x18] sm:$0xff]  ;;  %14043 = vst [vmem:[#allocation28_spill] sm:$0xff] %v11463_v8 }
 0x3ee   : > { %v7388_v36 = vld [vmem:[#allocation5 + $0x18] sm:$0xfe]  ;;  %5593 = vst.msk [vmem:[#allocation5 + $0x20] sm:$0xff] %vm375_vm1, %v5576_v23  ;;  %v5512_v18 = vmax.f32 %v8576_v2, 0.0  ;;  %v8578_v10 = vadd.f32 %v5398_v53, %v5061_v41  ;;  %v8478_v52 = vpop.f32.mrb[11].mxu1  ;;  %v11451_v58 = vunpack.c.l.bf16 %v11445_v33  ;;  %v13948_v27 = vrot.slane %v11445_v33, 4 }
 0x3ef   : > { %v5073_v46 = vpop.f32.mrb[88].mxu0  ;;  %v7389_v28 = vunpack.c.l.bf16 %v7388_v36  ;;  %v7390_v39 = vunpack.c.h.bf16 %v7388_v36  ;;  %v11484_v60 = vunpack.c.h.bf16 %v11445_v33 }
 0x3f0   : > { %v11459_v32 = vadd.f32 %v11369_v34, %v5073_v46  ;;  %v5075_v31 = vpop.f32.mrb[89].mxu0  ;;  %v5513_v40 = vmax.f32 %v8578_v10, 0.0  ;;  %v11473_v54 = vmul.f32 %v11437_v38, %v11451_v58  ;;  %v11477_v61 = vmul.f32 %v11442_v56, %v11451_v58 }
 0x3f1   : > { %v5076_v51 = vpop.f32.mrb[90].mxu0  ;;  %v11480_v48 = vmul.f32 %v11456_v0, %v7389_v28  ;;  %v11488_v17 = vmul.f32 %v11432_v49, %v11451_v58  ;;  %v5546_v43 = vmul.f32 %v5512_v18, %v10320_v20  ;;  %v11495_v2 = vmul.f32 %v11468_v15, %v11451_v58 }
 0x3f2   : > { %14044 = vst [vmem:[#allocation29_spill] sm:$0xff] %v11473_v54  ;;  %14045 = vst [vmem:[#allocation30_spill] sm:$0xff] %v11477_v61  ;;  %v5078_v26 = vpop.f32.mrb[91].mxu0  ;;  %v5547_v41 = vmul.f32 %v5513_v40, %v10322_v42  ;;  %v5077_v23 = vadd.f32 %v11369_v34, %v5076_v51  ;;  %v13945_v24 = vrot.slane %v11473_v54, 2  ;;  %v13946_v53 = vrot.slane %v11477_v61, 3 }
 0x3f3   : > { %14046 = vst [vmem:[#allocation31_spill] sm:$0xff] %v11480_v48  ;;  %14047 = vst [vmem:[#allocation32_spill] sm:$0xff] %v11488_v17  ;;  %v5403_v1 = vpop.f32.mrb[12].mxu1  ;;  %v6965_v36 = vmul.f32 %v11437_v38, %v11484_v60  ;;  %v7180_v10 = vmul.f32 %v11442_v56, %v11484_v60  ;;  %v13950_v46 = vrot.slane %v11480_v48, 4  ;;  %v7400_v52 = vmul.f32 %v11456_v0, %v7390_v39 }
 0x3f4   : > { %14048 = vst [vmem:[#allocation33_spill] sm:$0xff] %v11495_v2  ;;  %v5577_v20 = vpack.c.bf16 %v5547_v41, %v5546_v43  ;;  %v8580_v18 = vadd.f32 %v5403_v1, %v5066_v19  ;;  %v8481_v42 = vpop.f32.mrb[13].mxu1  ;;  %v11516_v39 = vmul.f32 %v11402_v62, %v5699_v37 }
 0x3f5   : > { %v5406_v31 = vpop.f32.mrb[14].mxu1  ;;  %v11505_v28 = vld [vmem:[#allocation5 + $0x20] sm:$0xff]  ;;  %v7033_v26 = vrot.slane %v6965_v36, 2  ;;  %v7250_v21 = vrot.slane %v7180_v10, 3  ;;  %v7471_v36 = vrot.slane %v7400_v52, 4 }
 0x3f6   : > { %5594 = vst.msk [vmem:[#allocation5 + $0x28] sm:$0xff] %vm375_vm1, %v5577_v20  ;;  %v5514_v29 = vmax.f32 %v8580_v18, 0.0  ;;  %v8582_v30 = vadd.f32 %v5406_v31, %v5069_v4  ;;  %v8482_v19 = vpop.f32.mrb[15].mxu1  ;;  %v11511_v41 = vunpack.c.l.bf16 %v11505_v28  ;;  %14049 = vst [vmem:[#allocation34_spill] sm:$0xff] %v11516_v39  ;;  %v11526_v4 = vsel %vm6147_vm5, %v6148_v25, %v13947_v45 }
 0x3f7   : > { %v5081_v43 = vpop.f32.mrb[92].mxu0  ;;  %14050 = vst [vmem:[#allocation35_spill] sm:$0xff] %v11526_v4  ;;  %v11531_v10 = vsel %vm6147_vm5, %v13945_v24, %v7033_v26  ;;  %v11542_v35 = vsel %vm503_vm2, %v13946_v53, %v7250_v21  ;;  %v11556_v53 = vunpack.c.h.bf16 %v11505_v28 }
 0x3f8   : > { %v11519_v1 = vadd.f32 %v11369_v34, %v5081_v43  ;;  %v5083_v42 = vpop.f32.mrb[93].mxu0  ;;  %14051 = vst [vmem:[#allocation36_spill] sm:$0xff] %v11531_v10  ;;  %v5515_v9 = vmax.f32 %v8582_v30, 0.0  ;;  %v6966_v20 = vmul.f32 %v11437_v38, %v11511_v41  ;;  %v11537_v18 = vmul.f32 %v11442_v56, %v11511_v41  ;;  %14052 = vst [vmem:[#allocation37_spill] sm:$0xff] %v11542_v35 }
 0x3f9   : > { %v5084_v37 = vpop.f32.mrb[94].mxu0  ;;  %v5548_v25 = vmul.f32 %v5514_v29, %v10396_v63  ;;  %v11550_v30 = vmul.f32 %v11456_v0, %v11511_v41  ;;  %v13949_v43 = vrot.slane %v11505_v28, 4 }
 0x3fa   : > { %v11546_v52 = vadd.f32 %v11369_v34, %v5084_v37  ;;  %v5086_v31 = vpop.f32.mrb[95].mxu0  ;;  %v5549_v19 = vmul.f32 %v5515_v9, %v10398_v16  ;;  %v7035_v42 = vrot.slane %v6966_v20, 2  ;;  %v7252_v24 = vrot.slane %v11537_v18, 3 }
 0x3fb   : > { %v5411_v45 = vpop.f32.mrb[16].mxu1  ;;  %v7473_v63 = vrot.slane %v11550_v30, 4  ;;  %v5653_v29 = vsel %vm5644_vm3, %v13948_v27, %v13949_v43  ;;  %v11566_v37 = vmul.f32 %v11432_v49, %v11484_v60  ;;  %v11570_v16 = vmul.f32 %v11468_v15, %v11484_v60  ;;  %v11576_v31 = vld [vmem:[%s13910_s7 + $0x3] ss:$0 sm:$0xff] }
 0x3fc   : > { %v5578_v9 = vpack.c.bf16 %v5549_v19, %v5548_v25  ;;  %v8584_v20 = vadd.f32 %v5411_v45, %v11459_v32  ;;  %v8485_v18 = vpop.f32.mrb[17].mxu1  ;;  %v11579_v30 = vsel %vm6147_vm5, %v7033_v26, %v7035_v42  ;;  %v11584_v27 = vsel %vm5644_vm3, %v13950_v46, %v7471_v36 }
 0x3fd   : > { %14053 = vst [vmem:[#allocation38_spill] sm:$0xff] %v11579_v30  ;;  %14054 = vst [vmem:[#allocation39_spill] sm:$0xff] %v11584_v27  ;;  %v5414_v43 = vpop.f32.mrb[18].mxu1  ;;  %v11587_v51 = vsel %vm503_vm2, %v7250_v21, %v7252_v24  ;;  %v11589_v25 = vunpack.c.l.bf16 %v5653_v29  ;;  %v6601_v32 = vrot.slane %v11566_v37, 2  ;;  %v6819_v45 = vrot.slane %v11570_v16, 3 }
 0x3fe   : > { %14055 = vst [vmem:[#allocation40_spill] sm:$0xff] %v11587_v51  ;;  %5595 = vst.msk [vmem:[#allocation5 + $0x30] sm:$0xff] %vm375_vm1, %v5578_v9  ;;  %v5516_v19 = vmax.f32 %v8584_v20, 0.0  ;;  %v8586_v26 = vadd.f32 %v5414_v43, %v5077_v23  ;;  %v8486_v40 = vpop.f32.mrb[19].mxu1  ;;  %v6967_v46 = vmul.f32 %v11437_v38, %v11556_v53  ;;  %v11598_v27 = vmul.f32 %v11442_v56, %v11556_v53  ;;  %v11615_v43 = vld [vmem:[#allocation5 + $0x28] sm:$0xff] }
 0x3ff   : > { %v5089_v18 = vpop.f32.mrb[96].mxu0  ;;  %v11604_v37 = vsel %vm5644_vm3, %v7471_v36, %v7473_v63  ;;  %v11608_v16 = vmul.f32 %v11576_v31, %v11589_v25  ;;  %v14058_v23 = vrot.slane %v11488_v17, 2 }
 0x400   : > { %v11601_v21 = vadd.f32 %v11369_v34, %v5089_v18  ;;  %v5091_v35 = vpop.f32.mrb[97].mxu0  ;;  %14056 = vst [vmem:[#allocation41_spill] sm:$0xff] %v11604_v37  ;;  %v5550_v9 = vmul.f32 %v5516_v19, %v10428_v22  ;;  %v5517_v20 = vmax.f32 %v8586_v26, 0.0  ;;  %v7037_v37 = vrot.slane %v6967_v46, 2 }
 0x401   : > { %14057 = vst [vmem:[#allocation42_spill] sm:$0xff] %v11608_v16  ;;  %v11613_v40 = vsel %vm6147_vm5, %v14058_v23, %v6601_v32  ;;  %v5092_v18 = vpop.f32.mrb[98].mxu0  ;;  %v14060_v35 = vrot.slane %v11495_v2, 3  ;;  %v7254_v30 = vrot.slane %v11598_v27, 3  ;;  %v11629_v23 = vmul.f32 %v11456_v0, %v11556_v53 }
 0x402   : > { %14059 = vst [vmem:[#allocation43_spill] sm:$0xff] %v11613_v40  ;;  %v11624_v51 = vadd.f32 %v11369_v34, %v5092_v18  ;;  %v5094_v10 = vpop.f32.mrb[99].mxu0  ;;  %v11631_v40 = vunpack.c.h.bf16 %v5653_v29  ;;  %v5551_v22 = vmul.f32 %v5517_v20, %v10430_v7  ;;  %v11636_v26 = vsel %vm6147_vm5, %v7035_v42, %v7037_v37 }
 0x403   : > { %v11621_v36 = vsel %vm503_vm2, %v14060_v35, %v6819_v45  ;;  %14062 = vst [vmem:[#allocation45_spill] sm:$0xff] %v11636_v26  ;;  %v11639_v46 = vunpack.c.l.bf16 %v11615_v43  ;;  %v5419_v18 = vpop.f32.mrb[20].mxu1  ;;  %v11644_v27 = vmul.f32 %v11391_v3, %v11451_v58  ;;  %v11652_v7 = vmul.f32 %v11432_v49, %v11511_v41 }
 0x404   : > { %14061 = vst [vmem:[#allocation44_spill] sm:$0xff] %v11621_v36  ;;  %v11648_v29 = vmul.f32 %v11576_v31, %v11631_v40  ;;  %v5579_v42 = vpack.c.bf16 %v5551_v22, %v5550_v9  ;;  %v8588_v20 = vadd.f32 %v5419_v18, %v11519_v1  ;;  %v8489_v35 = vpop.f32.mrb[21].mxu1  ;;  %v11657_v19 = vmul.f32 %v11468_v15, %v11511_v41 }
 0x405   : > { %14063 = vst [vmem:[#allocation46_spill] sm:$0xff] %v11644_v27  ;;  %v11661_v58 = vmul.f32 %v11437_v38, %v11639_v46  ;;  %v5422_v10 = vpop.f32.mrb[22].mxu1  ;;  %v11664_v26 = vsel %vm503_vm2, %v7252_v24, %v7254_v30  ;;  %v14065_v36 = vrot.slane %v11629_v23, 4  ;;  %v6603_v9 = vrot.slane %v11652_v7, 2 }
 0x406   : > { %14064 = vst [vmem:[#allocation47_spill] sm:$0xff] %v11664_v26  ;;  %v13954_v1 = vrot.slane %v11648_v29, 1  ;;  %5596 = vst.msk [vmem:[#allocation5 + $0x38] sm:$0xff] %vm375_vm1, %v5579_v42  ;;  %v5518_v22 = vmax.f32 %v8588_v20, 0.0  ;;  %v8590_v18 = vadd.f32 %v5422_v10, %v11546_v52  ;;  %v8490_v61 = vpop.f32.mrb[23].mxu1  ;;  %v6821_v54 = vrot.slane %v11657_v19, 3 }
 0x407   : > { %v11669_v48 = vsel %vm5644_vm3, %v7473_v63, %v14065_v36  ;;  %v5097_v35 = vpop.f32.mrb[100].mxu0  ;;  %v13955_v24 = vrot.slane %v11661_v58, 2  ;;  %v14067_v7 = vrot.slane %v11608_v16, 1  ;;  %v11690_v61 = vmul.f32 %v11442_v56, %v11639_v46 }
 0x408   : > { %14066 = vst [vmem:[#allocation48_spill] sm:$0xff] %v11669_v48  ;;  %v11678_v26 = vadd.f32 %v11369_v34, %v5097_v35  ;;  %v5099_v63 = vpop.f32.mrb[101].mxu0  ;;  %v5552_v52 = vmul.f32 %v5518_v22, %v10467_v13  ;;  %v5519_v19 = vmax.f32 %v8590_v18, 0.0  ;;  %v11694_v20 = vsel %vm6147_vm5, %v6601_v32, %v6603_v9 }
 0x409   : > { %v11686_v42 = vsel %vm2633_vm4, %v14067_v7, %v13954_v1  ;;  %v5100_v10 = vpop.f32.mrb[102].mxu0  ;;  %14069 = vst [vmem:[#allocation50_spill] sm:$0xff] %v11694_v20  ;;  %v11697_v35 = vsel %vm503_vm2, %v6819_v45, %v6821_v54  ;;  %v11702_v7 = vsel %vm6147_vm5, %v7037_v37, %v13955_v24  ;;  %v7256_v1 = vrot.slane %v11690_v61, 3 }
 0x40a   : > { %14068 = vst [vmem:[#allocation49_spill] sm:$0xff] %v11686_v42  ;;  %14070 = vst [vmem:[#allocation51_spill] sm:$0xff] %v11697_v35  ;;  %v5102_v63 = vpop.f32.mrb[103].mxu0  ;;  %v11707_v36 = vmul.f32 %v11456_v0, %v11639_v46  ;;  %v13956_v13 = vrot.slane %v11615_v43, 4  ;;  %v5553_v32 = vmul.f32 %v5519_v19, %v10469_v44  ;;  %v11713_v45 = vmul.f32 %v11397_v47, %v11589_v25 }
 0x40b   : > { %14071 = vst [vmem:[#allocation52_spill] sm:$0xff] %v11702_v7  ;;  %v11716_v22 = vunpack.c.h.bf16 %v11615_v43  ;;  %v11720_v37 = vmul.f32 %v11391_v3, %v11484_v60  ;;  %v5101_v18 = vadd.f32 %v11369_v34, %v5100_v10  ;;  %v5427_v61 = vpop.f32.mrb[24].mxu1  ;;  %v14073_v44 = vrot.slane %v11505_v28, 4 }
 0x40c   : > { %14072 = vst [vmem:[#allocation53_spill] sm:$0xff] %v11713_v45  ;;  %v11731_v24 = vmul.f32 %v11432_v49, %v11556_v53  ;;  %v5580_v48 = vpack.c.bf16 %v5553_v32, %v5552_v52  ;;  %v8592_v7 = vadd.f32 %v5427_v61, %v11601_v21  ;;  %v8493_v60 = vpop.f32.mrb[25].mxu1  ;;  %v11735_v35 = vsel %vm503_vm2, %v7254_v30, %v7256_v1 }
 0x40d   : > { %v5655_v19 = vsel %vm5644_vm3, %v14073_v44, %v13956_v13  ;;  %14074 = vst [vmem:[#allocation54_spill] sm:$0xff] %v11735_v35  ;;  %v5430_v63 = vpop.f32.mrb[26].mxu1  ;;  %v11744_v13 = vmul.f32 %v11468_v15, %v11556_v53  ;;  %v11752_v60 = vmul.f32 %v11437_v38, %v11716_v22  ;;  %v14075_v28 = vrot.slane %v11707_v36, 4 }
 0x40e   : > { %v11737_v10 = vunpack.c.l.bf16 %v5655_v19  ;;  %5597 = vst.msk [vmem:[#allocation5 + $0x40] sm:$0xff] %vm375_vm1, %v5580_v48  ;;  %v5520_v21 = vmax.f32 %v8592_v7, 0.0  ;;  %v8594_v52 = vadd.f32 %v5430_v63, %v11624_v51  ;;  %v8494_v32 = vpop.f32.mrb[27].mxu1  ;;  %v14076_v48 = vrot.slane %v11629_v23, 4 }
 0x40f   : > { %v5105_v30 = vpop.f32.mrb[104].mxu0  ;;  %v14078_v51 = vrot.slane %v11720_v37, 2  ;;  %v14079_v63 = vrot.slane %v11644_v27, 2  ;;  %v13958_v35 = vrot.slane %v11744_v13, 3  ;;  %v13959_v23 = vrot.slane %v11752_v60, 2 }
 0x410   : > { %v6315_v61 = vmul.f32 %v11576_v31, %v11737_v10  ;;  %v11755_v20 = vadd.f32 %v11369_v34, %v5105_v30  ;;  %v5107_v44 = vpop.f32.mrb[105].mxu0  ;;  %v11762_v7 = vsel %vm5644_vm3, %v14076_v48, %v14075_v28  ;;  %v5521_v42 = vmax.f32 %v8594_v52, 0.0 }
 0x411   : > { %14077 = vst [vmem:[#allocation55_spill] sm:$0xff] %v11762_v7  ;;  %v11769_v32 = vsel %vm6147_vm5, %v14079_v63, %v14078_v51  ;;  %v5108_v30 = vpop.f32.mrb[106].mxu0  ;;  %v14081_v44 = vrot.slane %v11731_v24, 2  ;;  %v5554_v28 = vmul.f32 %v5520_v21, %v10496_v12  ;;  %v11784_v51 = vmul.f32 %v11442_v56, %v11716_v22  ;;  %v11801_v21 = vld [vmem:[#allocation5 + $0x30] sm:$0xff] }
 0x412   : > { %14080 = vst [vmem:[#allocation56_spill] sm:$0xff] %v11769_v32  ;;  %v6390_v16 = vrot.slane %v6315_v61, 1  ;;  %v11780_v48 = vadd.f32 %v11369_v34, %v5108_v30  ;;  %v5110_v7 = vpop.f32.mrb[107].mxu0  ;;  %v11788_v52 = vmul.f32 %v11456_v0, %v11716_v22  ;;  %v14083_v61 = vld [vmem:[#allocation7_spill] sm:$0xff]  ;;  %v11799_v12 = vsel %vm503_vm2, %v6821_v54, %v13958_v35 }
 0x413   : > { %v11775_v4 = vsel %vm6147_vm5, %v6603_v9, %v14081_v44  ;;  %v5555_v63 = vmul.f32 %v5521_v42, %v14083_v61  ;;  %v14084_v9 = vrot.slane %v11648_v29, 1  ;;  %14086 = vst [vmem:[#allocation58_spill] sm:$0xff] %v11799_v12  ;;  %v11803_v7 = vunpack.c.h.bf16 %v5655_v19  ;;  %v5435_v30 = vpop.f32.mrb[28].mxu1 }
 0x414   : > { %14082 = vst [vmem:[#allocation57_spill] sm:$0xff] %v11775_v4  ;;  %v14087_v4 = vrot.slane %v11661_v58, 2  ;;  %v13960_v29 = vrot.slane %v11784_v51, 3  ;;  %v11816_v54 = vmul.f32 %v11397_v47, %v11631_v40  ;;  %v8596_v19 = vadd.f32 %v5435_v30, %v11678_v26  ;;  %v8497_v35 = vpop.f32.mrb[29].mxu1 }
 0x415   : > { %v11794_v44 = vsel %vm2633_vm4, %v14084_v9, %v6390_v16  ;;  %v5581_v9 = vpack.c.bf16 %v5555_v63, %v5554_v28  ;;  %v5746_v12 = vmul.f32 %v11402_v62, %v11589_v25  ;;  %v11823_v58 = vmul.f32 %v11391_v3, %v11511_v41 }
 0x416   : > { %14085 = vst [vmem:[#allocation7_spill] sm:$0xff] %v11794_v44  ;;  %v11810_v42 = vsel %vm6147_vm5, %v14087_v4, %v13959_v23  ;;  %v5438_v4 = vpop.f32.mrb[30].mxu1  ;;  %v11828_v23 = vsel %vm503_vm2, %v7256_v1, %v13960_v29  ;;  %v11832_v28 = vunpack.c.l.bf16 %v11801_v21  ;;  %v11836_v26 = vmul.f32 %v11576_v31, %v11803_v7 }
 0x417   : > { %14088 = vst [vmem:[#allocation59_spill] sm:$0xff] %v11810_v42  ;;  %14089 = vst [vmem:[#allocation60_spill] sm:$0xff] %v11828_v23  ;;  %v5522_v25 = vmax.f32 %v8596_v19, 0.0  ;;  %v8598_v41 = vadd.f32 %v5438_v4, %v5101_v18  ;;  %v5113_v35 = vpop.f32.mrb[108].mxu0  ;;  %v8498_v63 = vpop.f32.mrb[31].mxu1  ;;  %v11842_v1 = vmul.f32 %v11432_v49, %v11639_v46  ;;  %v14090_v61 = vrot.slane %v11788_v52, 4 }
 0x418   : > { %5598 = vst.msk [vmem:[#allocation5 + $0x48] sm:$0xff] %vm375_vm1, %v5581_v9  ;;  %v5115_v29 = vpop.f32.mrb[109].mxu0  ;;  %v14091_v23 = vrot.slane %v11707_v36, 4  ;;  %v14093_v9 = vrot.slane %v11816_v54, 1  ;;  %v14094_v18 = vrot.slane %v11713_v45, 1  ;;  %v13963_v4 = vrot.slane %v11836_v26, 1 }
 0x419   : > { %v11859_v63 = vmul.f32 %v11468_v15, %v11639_v46  ;;  %v14095_v29 = vld [vmem:[#allocation8_spill] sm:$0xff]  ;;  %v5523_v44 = vmax.f32 %v8598_v41, 0.0  ;;  %v5114_v36 = vadd.f32 %v11369_v34, %v5113_v35  ;;  %v5116_v32 = vpop.f32.mrb[110].mxu0  ;;  %v14097_v45 = vrot.slane %v11720_v37, 2  ;;  %v14098_v41 = vld [vmem:[#allocation9_spill] sm:$0xff] }
 0x41a   : > { %v11849_v42 = vsel %vm5644_vm3, %v14091_v23, %v14090_v61  ;;  %v5912_v19 = vsel %vm2633_vm4, %v14094_v18, %v14093_v9  ;;  %v5556_v30 = vmul.f32 %v5522_v25, %v14095_v29  ;;  %v5118_v61 = vpop.f32.mrb[111].mxu0  ;;  %v6393_v18 = vsel %vm2633_vm4, %v6390_v16, %v13963_v4 }
 0x41b   : > { %14092 = vst [vmem:[#allocation61_spill] sm:$0xff] %v11849_v42  ;;  %v6008_v23 = vadd.f32 %v5912_v19, %v5746_v12  ;;  %v14096_v42 = vrot.slane %v11823_v58, 2  ;;  %v13965_v27 = vrot.slane %v11842_v1, 2  ;;  %v5557_v29 = vmul.f32 %v5523_v44, %v14098_v41 }
 0x41c   : > { %v11876_v12 = vmul.f32 %v11437_v38, %v11832_v28  ;;  %v11880_v37 = vmul.f32 %v11442_v56, %v11832_v28  ;;  %v14099_v16 = vrot.slane %v11731_v24, 2  ;;  %v11890_v44 = vmul.f32 %v11456_v0, %v11832_v28 }
 0x41d   : > { %v6160_v9 = vsel %vm6147_vm5, %v14097_v45, %v14096_v42  ;;  %v5117_v45 = vadd.f32 %v11369_v34, %v5116_v32  ;;  %v5443_v42 = vpop.f32.mrb[32].mxu1  ;;  %v5582_v61 = vpack.c.bf16 %v5557_v29, %v5556_v30  ;;  %v14100_v2 = vrot.slane %v11859_v63, 3 }
 0x41e   : > { %v6256_v35 = vadd.f32 %v6160_v9, %v6008_v23  ;;  %v6608_v19 = vsel %vm6147_vm5, %v14099_v16, %v13965_v27  ;;  %v13967_v23 = vrot.slane %v11801_v21, 4  ;;  %v8600_v9 = vadd.f32 %v5443_v42, %v11755_v20  ;;  %v8501_v41 = vpop.f32.mrb[33].mxu1 }
 0x41f   : > { %v13970_v32 = vrot.slane %v11876_v12, 2  ;;  %v5446_v25 = vpop.f32.mrb[34].mxu1  ;;  %v14101_v24 = vrot.slane %v11744_v13, 3  ;;  %v13969_v27 = vrot.slane %v11880_v37, 3  ;;  %v13968_v17 = vrot.slane %v11890_v44, 4  ;;  %5599 = vst.msk [vmem:[#allocation5 + $0x50] sm:$0xff] %vm375_vm1, %v5582_v61 }
 0x420   : > { %v6489_v4 = vadd.f32 %v6393_v18, %v6256_v35  ;;  %v14102_v30 = vrot.slane %v11615_v43, 4  ;;  %v5524_v18 = vmax.f32 %v8600_v9, 0.0  ;;  %v8602_v29 = vadd.f32 %v5446_v25, %v11780_v48  ;;  %v5121_v35 = vpop.f32.mrb[112].mxu0  ;;  %v8502_v13 = vpop.f32.mrb[35].mxu1 }
 0x421   : > { %v6826_v16 = vsel %vm503_vm2, %v14101_v24, %v14100_v2  ;;  %v5747_v2 = vmul.f32 %v11402_v62, %v11631_v40  ;;  %v11914_v41 = vadd.f32 %v11369_v34, %v5121_v35  ;;  %v5123_v24 = vpop.f32.mrb[113].mxu0  ;;  %v14103_v43 = vrot.slane %v11752_v60, 2  ;;  %v14106_v13 = vld [vmem:[#allocation10_spill] sm:$0xff] }
 0x422   : > { %v11907_v20 = vsel %vm5644_vm3, %v14102_v30, %v13967_v23  ;;  %v6704_v42 = vadd.f32 %v6608_v19, %v6489_v4  ;;  %v14104_v48 = vrot.slane %v11784_v51, 3  ;;  %v5525_v40 = vmax.f32 %v8602_v29, 0.0  ;;  %v5124_v19 = vpop.f32.mrb[114].mxu0 }
 0x423   : > { %v7044_v30 = vsel %vm6147_vm5, %v14103_v43, %v13970_v32  ;;  %v11927_v4 = vunpack.c.l.bf16 %v11907_v20  ;;  %v14105_v9 = vrot.slane %v11788_v52, 4  ;;  %v11936_v35 = vmul.f32 %v11397_v47, %v11737_v10  ;;  %v5126_v24 = vpop.f32.mrb[115].mxu0  ;;  %v14107_v52 = vld [vmem:[#allocation11_spill] sm:$0xff] }
 0x424   : > { %v7261_v25 = vsel %vm503_vm2, %v14104_v48, %v13969_v27  ;;  %v6924_v61 = vadd.f32 %v6826_v16, %v6704_v42  ;;  %v5558_v51 = vmul.f32 %v5524_v18, %v14106_v13  ;;  %v11940_v43 = vunpack.c.h.bf16 %v11801_v21  ;;  %v5451_v13 = vpop.f32.mrb[36].mxu1 }
 0x425   : > { %v7482_v60 = vsel %vm5644_vm3, %v14105_v9, %v13968_v17  ;;  %v11944_v29 = vmul.f32 %v11391_v3, %v11556_v53  ;;  %v11948_v16 = vmul.f32 %v11576_v31, %v11927_v4  ;;  %v5559_v42 = vmul.f32 %v5525_v40, %v14107_v52 }
 0x426   : > { %v7140_v48 = vadd.f32 %v7044_v30, %v6924_v61  ;;  %v5913_v9 = vrot.slane %v11936_v35, 1  ;;  %v11954_v18 = vmul.f32 %v11432_v49, %v11716_v22  ;;  %v11960_v53 = vmul.f32 %v11468_v15, %v11716_v22  ;;  %v8505_v61 = vpop.f32.mrb[37].mxu1 }
 0x427   : > { %v11964_v17 = vmul.f32 %v11437_v38, %v11940_v43  ;;  %v5583_v30 = vpack.c.bf16 %v5559_v42, %v5558_v51  ;;  %v8604_v40 = vadd.f32 %v5451_v13, %v5114_v36  ;;  %v14108_v27 = vrot.slane %v11816_v54, 1  ;;  %v5454_v24 = vpop.f32.mrb[38].mxu1  ;;  %v5129_v42 = vpop.f32.mrb[116].mxu0  ;;  %v14113_v13 = vld [vmem:[#allocation13_spill] sm:$0xff] }
 0x428   : > { %v7359_v52 = vadd.f32 %v7261_v25, %v7140_v48  ;;  %v14109_v39 = vrot.slane %v11944_v29, 2  ;;  %v14110_v11 = vrot.slane %v11823_v58, 2  ;;  %v14111_v8 = vrot.slane %v11948_v16, 1 }
 0x429   : > { %v5914_v32 = vsel %vm2633_vm4, %v14108_v27, %v5913_v9  ;;  %v14112_v36 = vrot.slane %v11836_v26, 1  ;;  %v6609_v51 = vrot.slane %v11954_v18, 2  ;;  %5600 = vst.msk [vmem:[#allocation5 + $0x58] sm:$0xff] %vm375_vm1, %v5583_v30  ;;  %v5526_v54 = vmax.f32 %v8604_v40, 0.0 }
 0x42a   : > { %v6009_v23 = vadd.f32 %v5914_v32, %v5747_v2  ;;  %v6162_v6 = vsel %vm6147_vm5, %v14110_v11, %v14109_v39  ;;  %v8606_v27 = vadd.f32 %v5454_v24, %v5117_v45  ;;  %v8506_v32 = vpop.f32.mrb[39].mxu1  ;;  %v7580_v2 = vadd.f32 %v7482_v60, %v7359_v52  ;;  %v5131_v39 = vpop.f32.mrb[117].mxu0 }
 0x42b   : > { %v6395_v25 = vsel %vm2633_vm4, %v14112_v36, %v14111_v8  ;;  %v13974_v48 = vrot.slane %v11960_v53, 3  ;;  %v5125_v58 = vadd.f32 %v11369_v34, %v5124_v19  ;;  %v11986_v11 = vadd.f32 %v11369_v34, %v5129_v42  ;;  %v5132_v30 = vpop.f32.mrb[118].mxu0  ;;  %v5459_v39 = vpop.f32.mrb[40].mxu1 }
 0x42c   : > { %v6257_v26 = vadd.f32 %v6162_v6, %v6009_v23  ;;  %v13973_v8 = vrot.slane %v11964_v17, 2  ;;  %v5560_v61 = vmul.f32 %v5526_v54, %v14113_v13  ;;  %v5527_v36 = vmax.f32 %v8606_v27, 0.0  ;;  %v5134_v40 = vpop.f32.mrb[119].mxu0  ;;  %v14117_v27 = vld [vmem:[#allocation12_spill] sm:$0xff] }
 0x42d   : > { %v11991_v45 = vsel %vm375_vm1, %v7580_v2, 0.0  ;;  %v14115_v60 = vrot.slane %v11842_v1, 2  ;;  %v11999_v24 = vadd.f32 %v11369_v34, %v5132_v30  ;;  %v14116_v23 = vrot.slane %v11859_v63, 3  ;;  %v12020_v2 = vld [vmem:[#allocation5 + $0x38] sm:$0xff]  ;;  %v8509_v40 = vpop.f32.mrb[41].mxu1 }
 0x42e   : > { %14114 = vst [vmem:[#allocation8_spill] sm:$0xff] %v11991_v45  ;;  %v6490_v6 = vadd.f32 %v6395_v25, %v6257_v26  ;;  %v12008_v54 = vmul.f32 %v11442_v56, %v11940_v43  ;;  %v5561_v42 = vmul.f32 %v5527_v36, %v14117_v27  ;;  %v14118_v1 = vrot.slane %v11876_v12, 2 }
 0x42f   : > { %v6610_v19 = vsel %vm6147_vm5, %v14115_v60, %v6609_v51  ;;  %v6828_v52 = vsel %vm503_vm2, %v14116_v23, %v13974_v48  ;;  %v12018_v25 = vmul.f32 %v11456_v0, %v11940_v43  ;;  %v12023_v63 = vunpack.c.h.bf16 %v11907_v20 }
 0x430   : > { %v7046_v32 = vsel %vm6147_vm5, %v14118_v1, %v13973_v8  ;;  %v6705_v26 = vadd.f32 %v6610_v19, %v6490_v6  ;;  %v13975_v13 = vrot.slane %v12008_v54, 3  ;;  %v5748_v36 = vmul.f32 %v11402_v62, %v11737_v10  ;;  %v5462_v19 = vpop.f32.mrb[42].mxu1 }
 0x431   : > { %v12030_v12 = vmul.f32 %v11397_v47, %v11803_v7  ;;  %v5584_v30 = vpack.c.bf16 %v5561_v42, %v5560_v61  ;;  %v8608_v60 = vadd.f32 %v5459_v39, %v11914_v41  ;;  %v7483_v23 = vrot.slane %v12018_v25, 4  ;;  %v5137_v42 = vpop.f32.mrb[120].mxu0  ;;  %v8510_v39 = vpop.f32.mrb[43].mxu1 }
 0x432   : > { %v12036_v20 = vmul.f32 %v11391_v3, %v11639_v46  ;;  %v6925_v6 = vadd.f32 %v6828_v52, %v6705_v26  ;;  %v12040_v10 = vunpack.c.l.bf16 %v12020_v2  ;;  %v12044_v1 = vmul.f32 %v11576_v31, %v12023_v63  ;;  %v5139_v40 = vpop.f32.mrb[121].mxu0 }
 0x433   : > { %v5915_v27 = vrot.slane %v12030_v12, 1  ;;  %5601 = vst.msk [vmem:[#allocation5 + $0x60] sm:$0xff] %vm375_vm1, %v5584_v30  ;;  %v5528_v41 = vmax.f32 %v8608_v60, 0.0  ;;  %v8610_v61 = vadd.f32 %v5462_v19, %v5125_v58  ;;  %v14119_v46 = vrot.slane %v11880_v37, 3  ;;  %v14121_v60 = vld [vmem:[#allocation16_spill] sm:$0xff] }
 0x434   : > { %v13977_v26 = vrot.slane %v12036_v20, 2  ;;  %v7141_v8 = vadd.f32 %v7046_v32, %v6925_v6  ;;  %v14120_v48 = vrot.slane %v11890_v44, 4  ;;  %v13976_v37 = vrot.slane %v12044_v1, 1  ;;  %v5140_v32 = vpop.f32.mrb[122].mxu0 }
 0x435   : > { %v7263_v52 = vsel %vm503_vm2, %v14119_v46, %v13975_v13  ;;  %v5916_v58 = vsel %vm2633_vm4, %v5913_v9, %v5915_v27  ;;  %v5562_v19 = vmul.f32 %v5528_v41, %v14121_v60  ;;  %v5529_v39 = vmax.f32 %v8610_v61, 0.0  ;;  %v5142_v40 = vpop.f32.mrb[123].mxu0  ;;  %v14124_v61 = vld [vmem:[#allocation14_spill] sm:$0xff] }
 0x436   : > { %v7484_v30 = vsel %vm5644_vm3, %v14120_v48, %v7483_v23  ;;  %v5138_v46 = vadd.f32 %v11369_v34, %v5137_v42  ;;  %v6010_v6 = vadd.f32 %v5916_v58, %v5748_v36  ;;  %v7360_v13 = vadd.f32 %v7263_v52, %v7141_v8  ;;  %v5467_v52 = vpop.f32.mrb[44].mxu1 }
 0x437   : > { %v14122_v44 = vrot.slane %v11944_v29, 2  ;;  %v14123_v35 = vrot.slane %v11948_v16, 1  ;;  %v12078_v41 = vmul.f32 %v11432_v49, %v11832_v28  ;;  %v5563_v36 = vmul.f32 %v5529_v39, %v14124_v61 }
 0x438   : > { %v12083_v8 = vmul.f32 %v11468_v15, %v11832_v28  ;;  %v12087_v29 = vmul.f32 %v11437_v38, %v12040_v10  ;;  %v7581_v58 = vadd.f32 %v7484_v30, %v7360_v13  ;;  %v12092_v60 = vmul.f32 %v11442_v56, %v12040_v10 }
 0x439   : > { %v6164_v48 = vsel %vm6147_vm5, %v14122_v44, %v13977_v26  ;;  %v6397_v9 = vsel %vm2633_vm4, %v14123_v35, %v13976_v37  ;;  %v6611_v16 = vrot.slane %v12078_v41, 2  ;;  %v12096_v39 = vmul.f32 %v11456_v0, %v12040_v10  ;;  %v8513_v44 = vpop.f32.mrb[45].mxu1 }
 0x43a   : > { %v6258_v42 = vadd.f32 %v6164_v48, %v6010_v6  ;;  %v5585_v6 = vpack.c.bf16 %v5563_v36, %v5562_v19  ;;  %v8612_v40 = vadd.f32 %v5467_v52, %v11986_v11  ;;  %v13983_v35 = vrot.slane %v12083_v8, 3  ;;  %v5470_v13 = vpop.f32.mrb[46].mxu1 }
 0x43b   : > { %v5141_v61 = vadd.f32 %v11369_v34, %v5140_v32  ;;  %v6612_v30 = vsel %vm6147_vm5, %v6609_v51, %v6611_v16  ;;  %v13982_v37 = vrot.slane %v12087_v29, 2  ;;  %v13980_v26 = vrot.slane %v12092_v60, 3  ;;  %v8514_v36 = vpop.f32.mrb[47].mxu1 }
 0x43c   : > { %v6491_v48 = vadd.f32 %v6397_v9, %v6258_v42  ;;  %5602 = vst.msk [vmem:[#allocation5 + $0x68] sm:$0xff] %vm375_vm1, %v5585_v6  ;;  %v5530_v11 = vmax.f32 %v8612_v40, 0.0  ;;  %v8614_v19 = vadd.f32 %v5470_v13, %v11999_v24  ;;  %v5145_v9 = vpop.f32.mrb[124].mxu0  ;;  %v12111_v32 = vsel %vm375_vm1, %v7581_v58, 0.0  ;;  %v14129_v36 = vld [vmem:[#allocation18_spill] sm:$0xff] }
 0x43d   : > { %14125 = vst [vmem:[#allocation9_spill] sm:$0xff] %v12111_v32  ;;  %v12114_v52 = vadd.f32 %v11369_v34, %v5145_v9  ;;  %v5147_v18 = vpop.f32.mrb[125].mxu0  ;;  %v14126_v51 = vrot.slane %v11960_v53, 3  ;;  %v14127_v24 = vrot.slane %v11964_v17, 2  ;;  %v13979_v58 = vrot.slane %v12096_v39, 4 }
 0x43e   : > { %v6706_v42 = vadd.f32 %v6612_v30, %v6491_v48  ;;  %v5531_v40 = vmax.f32 %v8614_v19, 0.0  ;;  %v5148_v48 = vpop.f32.mrb[126].mxu0  ;;  %v14128_v30 = vrot.slane %v12008_v54, 3  ;;  %v13978_v53 = vrot.slane %v12020_v2, 4  ;;  %v14130_v54 = vld [vmem:[#allocation15_spill] sm:$0xff] }
 0x43f   : > { %v6830_v44 = vsel %vm503_vm2, %v14126_v51, %v13983_v35  ;;  %v7048_v6 = vsel %vm6147_vm5, %v14127_v24, %v13982_v37  ;;  %v5564_v18 = vmul.f32 %v5530_v11, %v14129_v36  ;;  %v5150_v51 = vpop.f32.mrb[127].mxu0  ;;  %v7486_v17 = vsel %vm5644_vm3, %v7483_v23, %v13979_v58  ;;  %v5475_v23 = vpop.f32.mrb[48].mxu1 }
 0x440   : > { %v6926_v13 = vadd.f32 %v6830_v44, %v6706_v42  ;;  %v7265_v9 = vsel %vm503_vm2, %v14128_v30, %v13980_v26  ;;  %v5749_v19 = vmul.f32 %v11402_v62, %v11803_v7  ;;  %v12143_v42 = vmul.f32 %v11397_v47, %v11927_v4 }
 0x441   : > { %v5565_v44 = vmul.f32 %v5531_v40, %v14130_v54  ;;  %v14131_v11 = vrot.slane %v11801_v21, 4  ;;  %v12152_v25 = vunpack.c.h.bf16 %v12020_v2  ;;  %v12159_v51 = vmul.f32 %v11391_v3, %v11716_v22 }
 0x442   : > { %v7142_v24 = vadd.f32 %v7048_v6, %v6926_v13  ;;  %v13981_v7 = vrot.slane %v12143_v42, 1  ;;  %v12163_v6 = vmul.f32 %v11432_v49, %v11940_v43  ;;  %v8616_v21 = vadd.f32 %v5475_v23, %v5138_v46  ;;  %v8517_v13 = vpop.f32.mrb[49].mxu1 }
 0x443   : > { %v5659_v30 = vsel %vm5644_vm3, %v14131_v11, %v13978_v53  ;;  %v5586_v40 = vpack.c.bf16 %v5565_v44, %v5564_v18  ;;  %v12167_v11 = vmul.f32 %v11468_v15, %v11940_v43  ;;  %v5478_v53 = vpop.f32.mrb[50].mxu1  ;;  %v6165_v58 = vrot.slane %v12159_v51, 2  ;;  %v5153_v44 = vpop.f32.mrb[128].mxu0 }
 0x444   : > { %v12154_v36 = vunpack.c.l.bf16 %v5659_v30  ;;  %v7361_v54 = vadd.f32 %v7265_v9, %v7142_v24  ;;  %v5918_v22 = vsel %vm2633_vm4, %v5915_v27, %v13981_v7  ;;  %v6613_v46 = vrot.slane %v12163_v6, 2  ;;  %v8518_v24 = vpop.f32.mrb[51].mxu1  ;;  %v5155_v7 = vpop.f32.mrb[129].mxu0 }
 0x445   : > { %5603 = vst.msk [vmem:[#allocation5 + $0x70] sm:$0xff] %vm375_vm1, %v5586_v40  ;;  %v5532_v9 = vmax.f32 %v8616_v21, 0.0  ;;  %v8618_v18 = vadd.f32 %v5478_v53, %v5141_v61  ;;  %v6011_v13 = vadd.f32 %v5918_v22, %v5749_v19  ;;  %v5149_v12 = vadd.f32 %v11369_v34, %v5148_v48  ;;  %v14133_v21 = vld [vmem:[#allocation19_spill] sm:$0xff]  ;;  %v5156_v24 = vpop.f32.mrb[130].mxu0 }
 0x446   : > { %v12177_v26 = vmul.f32 %v11576_v31, %v12154_v36  ;;  %v7582_v23 = vadd.f32 %v7486_v17, %v7361_v54  ;;  %v12183_v27 = vadd.f32 %v11369_v34, %v5153_v44  ;;  %v14132_v37 = vrot.slane %v12036_v20, 2  ;;  %v5158_v48 = vpop.f32.mrb[131].mxu0  ;;  %v14136_v54 = vld [vmem:[#allocation17_spill] sm:$0xff]  ;;  %v5483_v44 = vpop.f32.mrb[52].mxu1 }
 0x447   : > { %v5566_v61 = vmul.f32 %v5532_v9, %v14133_v21  ;;  %v5533_v53 = vmax.f32 %v8618_v18, 0.0  ;;  %v6614_v34 = vsel %vm6147_vm5, %v6611_v16, %v6613_v46  ;;  %v14135_v20 = vrot.slane %v12044_v1, 1  ;;  %v12222_v1 = vld [vmem:[%s13909_s6] ss:$0 sm:$0xff] }
 0x448   : > { %v6166_v35 = vsel %vm6147_vm5, %v14132_v37, %v6165_v58  ;;  %v6398_v40 = vrot.slane %v12177_v26, 1  ;;  %v12198_v19 = vsel %vm375_vm1, %v7582_v23, 0.0  ;;  %v13984_v7 = vrot.slane %v12167_v11, 3  ;;  %v12231_v21 = vld [vmem:[#allocation5 + $0x40] sm:$0xff] }
 0x449   : > { %v6259_v17 = vadd.f32 %v6166_v35, %v6011_v13  ;;  %14134 = vst [vmem:[#allocation10_spill] sm:$0xff] %v12198_v19  ;;  %v12208_v35 = vmul.f32 %v11437_v38, %v12152_v25  ;;  %v5567_v41 = vmul.f32 %v5533_v53, %v14136_v54  ;;  %v12213_v16 = vmul.f32 %v11442_v56, %v12152_v25  ;;  %v14161_v19 = vld [vmem:[#allocation26_spill] sm:$0xff] }
 0x44a   : > { %v6399_v37 = vsel %vm2633_vm4, %v14135_v20, %v6398_v40  ;;  %v12217_v9 = vmul.f32 %v11456_v0, %v12152_v25  ;;  %v5157_v18 = vadd.f32 %v12222_v1, %v5156_v24  ;;  %v14137_v23 = vrot.slane %v12083_v8, 3  ;;  %v8521_v20 = vpop.f32.mrb[53].mxu1 }
 0x44b   : > { %v6492_v22 = vadd.f32 %v6399_v37, %v6259_v17  ;;  %v7049_v56 = vrot.slane %v12208_v35, 2  ;;  %v12233_v53 = vunpack.c.h.bf16 %v5659_v30  ;;  %v5587_v17 = vpack.c.bf16 %v5567_v41, %v5566_v61  ;;  %v5486_v54 = vpop.f32.mrb[54].mxu1  ;;  %v5161_v41 = vpop.f32.mrb[132].mxu0 }
 0x44c   : > { %v6832_v13 = vsel %vm503_vm2, %v14137_v23, %v13984_v7  ;;  %v8620_v48 = vadd.f32 %v5483_v44, %v12114_v52  ;;  %v7266_v24 = vrot.slane %v12213_v16, 3  ;;  %v14138_v8 = vrot.slane %v12087_v29, 2 }
 0x44d   : > { %v6707_v37 = vadd.f32 %v6614_v34, %v6492_v22  ;;  %v13985_v7 = vrot.slane %v12217_v9, 4  ;;  %v5750_v30 = vmul.f32 %v11402_v62, %v11927_v4  ;;  %v12247_v61 = vmul.f32 %v11397_v47, %v12023_v63  ;;  %5604 = vst.msk [vmem:[#allocation5 + $0x78] sm:$0xff] %vm375_vm1, %v5587_v17  ;;  %v8522_v22 = vpop.f32.mrb[55].mxu1 }
 0x44e   : > { %v7050_v23 = vsel %vm6147_vm5, %v14138_v8, %v7049_v56  ;;  %v5534_v52 = vmax.f32 %v8620_v48, 0.0  ;;  %v8622_v34 = vadd.f32 %v5486_v54, %v5149_v12  ;;  %v12251_v29 = vunpack.c.l.bf16 %v12231_v21  ;;  %v5163_v8 = vpop.f32.mrb[133].mxu0 }
 0x44f   : > { %v6927_v44 = vadd.f32 %v6832_v13, %v6707_v37  ;;  %v12254_v20 = vadd.f32 %v12222_v1, %v5161_v41  ;;  %v14140_v62 = vrot.slane %v12092_v60, 3  ;;  %v5919_v4 = vrot.slane %v12247_v61, 1  ;;  %v5164_v17 = vpop.f32.mrb[134].mxu0  ;;  %v14142_v41 = vld [vmem:[#allocation20_spill] sm:$0xff] }
 0x450   : > { %14139 = vst [vmem:[#allocation11_spill] sm:$0xff] %v12251_v29  ;;  %v12264_v12 = vmul.f32 %v11391_v3, %v11832_v28  ;;  %v5535_v13 = vmax.f32 %v8622_v34, 0.0  ;;  %v14141_v37 = vrot.slane %v12096_v39, 4  ;;  %v12273_v60 = vmul.f32 %v11576_v31, %v12233_v53  ;;  %v5166_v8 = vpop.f32.mrb[135].mxu0  ;;  %v14144_v34 = vld [vmem:[#allocation21_spill] sm:$0xff] }
 0x451   : > { %v7267_v47 = vsel %vm503_vm2, %v14140_v62, %v7266_v24  ;;  %v7143_v48 = vadd.f32 %v7050_v23, %v6927_v44  ;;  %v5568_v22 = vmul.f32 %v5534_v52, %v14142_v41  ;;  %v14143_v3 = vrot.slane %v12143_v42, 1  ;;  %v5491_v52 = vpop.f32.mrb[56].mxu1 }
 0x452   : > { %v7488_v54 = vsel %vm5644_vm3, %v14141_v37, %v13985_v7  ;;  %v6167_v23 = vrot.slane %v12264_v12, 2  ;;  %v12284_v39 = vmul.f32 %v11432_v49, %v12040_v10  ;;  %v5569_v44 = vmul.f32 %v5535_v13, %v14144_v34  ;;  %v8525_v13 = vpop.f32.mrb[57].mxu1  ;;  %v5202_v34 = vpop.f32.mrb[68].mxu0  ;;  %v12444_v12 = vld [vmem:[%s13910_s7 + $0x6] ss:$0 sm:$0xff] }
 0x453   : > { %v5920_v28 = vsel %vm2633_vm4, %v14143_v3, %v5919_v4  ;;  %v7362_v62 = vadd.f32 %v7267_v47, %v7143_v48  ;;  %v6400_v7 = vrot.slane %v12273_v60, 1  ;;  %v12296_v8 = vmul.f32 %v11468_v15, %v12040_v10  ;;  %14153 = vst [vmem:[#allocation12_spill] sm:$0xff] %v12444_v12 }
 0x454   : > { %v6012_v37 = vadd.f32 %v5920_v28, %v5750_v30  ;;  %v6168_v42 = vsel %vm6147_vm5, %v6165_v58, %v6167_v23  ;;  %v6615_v41 = vrot.slane %v12284_v39, 2  ;;  %v12300_v49 = vmul.f32 %v11437_v38, %v12251_v29  ;;  %v5494_v28 = vpop.f32.mrb[58].mxu1 }
 0x455   : > { %v5588_v30 = vpack.c.bf16 %v5569_v44, %v5568_v22  ;;  %v8624_v47 = vadd.f32 %v5491_v52, %v12183_v27  ;;  %v7583_v48 = vadd.f32 %v7488_v54, %v7362_v62  ;;  %v5165_v51 = vadd.f32 %v12222_v1, %v5164_v17  ;;  %v8526_v54 = vpop.f32.mrb[59].mxu1  ;;  %v12329_v52 = vld [vmem:[%s13910_s7 + $0x7] ss:$0 sm:$0xff] }
 0x456   : > { %v6260_v3 = vadd.f32 %v6168_v42, %v6012_v37  ;;  %v6401_v15 = vsel %vm2633_vm4, %v6398_v40, %v6400_v7  ;;  %v6833_v58 = vrot.slane %v12296_v8, 3  ;;  %v7051_v38 = vrot.slane %v12300_v49, 2  ;;  %v5204_v40 = vpop.f32.mrb[69].mxu0  ;;  %v14148_v54 = vld [vmem:[#allocation23_spill] sm:$0xff] }
 0x457   : > { %5605 = vst.msk [vmem:[#allocation5 + $0x80] sm:$0xff] %vm375_vm1, %v5588_v30  ;;  %v5536_v22 = vmax.f32 %v8624_v47, 0.0  ;;  %v8626_v27 = vadd.f32 %v5494_v28, %v5157_v18  ;;  %v6616_v17 = vsel %vm6147_vm5, %v6613_v46, %v6615_v41  ;;  %v8563_v26 = vadd.f32 %v12222_v1, %v5202_v34  ;;  %v5205_v42 = vpop.f32.mrb[70].mxu0  ;;  %v5499_v40 = vpop.f32.mrb[60].mxu1 }
 0x458   : > { %v6493_v44 = vadd.f32 %v6401_v15, %v6260_v3  ;;  %v12319_v62 = vsel %vm375_vm1, %v7583_v48, 0.0  ;;  %v14146_v37 = vrot.slane %v12167_v11, 3  ;;  %v12333_v6 = vmul.f32 %v12329_v52, %v12251_v29  ;;  %v5207_v3 = vpop.f32.mrb[71].mxu0 }
 0x459   : > { %14145 = vst [vmem:[#allocation13_spill] sm:$0xff] %v12319_v62  ;;  %v5537_v46 = vmax.f32 %v8626_v27, 0.0  ;;  %v7052_v11 = vsel %vm6147_vm5, %v7049_v56, %v7051_v38  ;;  %v12342_v47 = vmul.f32 %v11456_v0, %v12251_v29  ;;  %v8564_v13 = vadd.f32 %v8563_v26, %v11362_v55  ;;  %v14147_v27 = vld [vmem:[#allocation22_spill] sm:$0xff]  ;;  %v14160_v62 = vld [vmem:[#allocation28_spill] sm:$0xff] }
 0x45a   : > { %v6834_v18 = vsel %vm503_vm2, %v14146_v37, %v6833_v58  ;;  %v6708_v30 = vadd.f32 %v6616_v17, %v6493_v44  ;;  %v8565_v48 = vadd.f32 %v12222_v1, %v5205_v42  ;;  %v7268_v28 = vrot.slane %v12333_v6, 3 }
 0x45b   : > { %v13990_v15 = vrot.slane %v12231_v21, 4  ;;  %v5570_v34 = vmul.f32 %v5536_v22, %v14147_v27  ;;  %v5571_v44 = vmul.f32 %v5537_v46, %v14148_v54  ;;  %v7489_v56 = vrot.slane %v12342_v47, 4  ;;  %v12389_v54 = vld [vmem:[%s13910_s7 + $0x2] ss:$0 sm:$0xff] }
 0x45c   : > { %v6928_v35 = vadd.f32 %v6834_v18, %v6708_v30  ;;  %v5506_v17 = vmax.f32 %v8564_v13, 0.0  ;;  %v8566_v0 = vadd.f32 %v8565_v48, %v11364_v50  ;;  %v7269_v55 = vsel %vm503_vm2, %v7266_v24, %v7268_v28  ;;  %v8529_v18 = vpop.f32.mrb[61].mxu1 }
 0x45d   : > { %v14149_v1 = vrot.slane %v12020_v2, 4  ;;  %v5589_v26 = vpack.c.bf16 %v5571_v44, %v5570_v34  ;;  %v8628_v37 = vadd.f32 %v5499_v40, %v12254_v20  ;;  %v14150_v50 = vrot.slane %v12217_v9, 4  ;;  %v5502_v30 = vpop.f32.mrb[62].mxu1  ;;  %v12374_v2 = vld [vmem:[%s13910_s7 + $0x1] ss:$0 sm:$0xff]  ;;  %v14152_v18 = vld [vmem:[#allocation25_spill] sm:$0xff] }
 0x45e   : > { %v7144_v46 = vadd.f32 %v7052_v11, %v6928_v35  ;;  %v5540_v16 = vmul.f32 %v5506_v17, %v11036_v59  ;;  %v5507_v24 = vmax.f32 %v8566_v0, 0.0  ;;  %v12378_v20 = vmul.f32 %v12374_v2, %v12154_v36  ;;  %v8530_v48 = vpop.f32.mrb[63].mxu1  ;;  %v12409_v40 = vld [vmem:[%s13910_s7 + $0x4] ss:$0 sm:$0xff] }
 0x45f   : > { %v5661_v22 = vsel %vm5644_vm3, %v14149_v1, %v13990_v15  ;;  %v7490_v42 = vsel %vm5644_vm3, %v14150_v50, %v7489_v56  ;;  %5606 = vst.msk [vmem:[#allocation5 + $0x88] sm:$0xff] %vm375_vm1, %v5589_v26  ;;  %v5538_v9 = vmax.f32 %v8628_v37, 0.0  ;;  %v8630_v11 = vadd.f32 %v5502_v30, %v5165_v51  ;;  %v14151_v37 = vld [vmem:[#allocation24_spill] sm:$0xff] }
 0x460   : > { %v12369_v13 = vunpack.c.l.bf16 %v5661_v22  ;;  %v7363_v3 = vadd.f32 %v7269_v55, %v7144_v46  ;;  %v12382_v59 = vunpack.c.h.bf16 %v12231_v21  ;;  %v5541_v27 = vmul.f32 %v5507_v24, %v10977_v5  ;;  %v12402_v5 = vld [vmem:[%s13910_s7] ss:$0 sm:$0xff] }
 0x461   : > { %v5921_v34 = vrot.slane %v12378_v20, 1  ;;  %v12393_v44 = vmul.f32 %v12389_v54, %v11940_v43  ;;  %v5539_v35 = vmax.f32 %v8630_v11, 0.0  ;;  %v5751_v0 = vmul.f32 %v12402_v5, %v12023_v63 }
 0x462   : > { %v12397_v51 = vmul.f32 %v11576_v31, %v12369_v13  ;;  %v7584_v17 = vadd.f32 %v7490_v42, %v7363_v3  ;;  %v12413_v43 = vmul.f32 %v12409_v40, %v12152_v25  ;;  %v5574_v31 = vpack.c.bf16 %v5541_v27, %v5540_v16  ;;  %v12464_v3 = vld [vmem:[%s13910_s7 + $0x8] ss:$0 sm:$0xff] }
 0x463   : > { %v5922_v55 = vsel %vm2633_vm4, %v5919_v4, %v5921_v34  ;;  %v6169_v1 = vrot.slane %v12393_v44, 2  ;;  %v5572_v63 = vmul.f32 %v5538_v9, %v14151_v37  ;;  %v5573_v46 = vmul.f32 %v5539_v35, %v14152_v18  ;;  %v12435_v4 = vld [vmem:[%s13910_s7 + $0x5] ss:$0 sm:$0xff]  ;;  %v12457_v9 = vld [vmem:[#allocation5 + $0x48] sm:$0xff] }
 0x464   : > { %v13994_v26 = vrot.slane %v12397_v51, 1  ;;  %v6013_v50 = vadd.f32 %v5922_v55, %v5751_v0  ;;  %v13993_v42 = vrot.slane %v12413_v43, 2  ;;  %5591 = vst.msk [vmem:[#allocation5 + $0x10] sm:$0xff] %vm375_vm1, %v5574_v31  ;;  %v12439_v24 = vmul.f32 %v12435_v4, %v12152_v25 }
 0x465   : > { %v6170_v16 = vsel %vm6147_vm5, %v6167_v23, %v6169_v1  ;;  %v12448_v23 = vmul.f32 %v12444_v12, %v12382_v59  ;;  %v5590_v60 = vpack.c.bf16 %v5573_v46, %v5572_v63  ;;  %v12455_v20 = vmul.f32 %v12329_v52, %v12382_v59 }
 0x466   : > { %v6403_v61 = vsel %vm2633_vm4, %v6400_v7, %v13994_v26  ;;  %v12451_v7 = vsel %vm375_vm1, %v7584_v17, 0.0  ;;  %v6261_v30 = vadd.f32 %v6170_v16, %v6013_v50  ;;  %v13992_v11 = vrot.slane %v12439_v24, 3 }
 0x467   : > { %14154 = vst [vmem:[#allocation16_spill] sm:$0xff] %v12451_v7  ;;  %v13991_v48 = vrot.slane %v12448_v23, 2  ;;  %v12468_v27 = vmul.f32 %v12464_v3, %v12382_v59  ;;  %v12470_v44 = vunpack.c.h.bf16 %v5661_v22  ;;  %5607 = vst.msk [vmem:[#allocation5 + $0x90] sm:$0xff] %vm375_vm1, %v5590_v60  ;;  %v6618_v17 = vsel %vm6147_vm5, %v6615_v41, %v13993_v42 }
 0x468   : > { %v6494_v35 = vadd.f32 %v6403_v61, %v6261_v30  ;;  %v13989_v0 = vrot.slane %v12455_v20, 3  ;;  %v12481_v31 = vmul.f32 %v12374_v2, %v12233_v53  ;;  %v6836_v22 = vsel %vm503_vm2, %v6833_v58, %v13992_v11  ;;  %v12521_v58 = vld [vmem:[%s13910_s7 + $0x3] ss:$0 sm:$0xff] }
 0x469   : > { %14155 = vst [vmem:[#allocation14_spill] sm:$0xff] %v12470_v44  ;;  %v13988_v55 = vrot.slane %v12468_v27, 4  ;;  %v5752_v37 = vmul.f32 %v12402_v5, %v12154_v36  ;;  %v12492_v39 = vunpack.c.l.bf16 %v12457_v9  ;;  %v7054_v63 = vsel %vm6147_vm5, %v7051_v38, %v13991_v48 }
 0x46a   : > { %v6709_v41 = vadd.f32 %v6618_v17, %v6494_v35  ;;  %v13986_v18 = vrot.slane %v12481_v31, 1  ;;  %v12502_v8 = vmul.f32 %v12389_v54, %v12040_v10  ;;  %v12509_v36 = vsel %vm503_vm2, %v7268_v28, %v13989_v0 }
 0x46b   : > { %v12516_v49 = vsel %vm5644_vm3, %v7489_v56, %v13988_v55  ;;  %v12525_v10 = vmul.f32 %v12521_v58, %v12470_v44  ;;  %v12529_v38 = vmul.f32 %v12409_v40, %v12251_v29  ;;  %v5610_v6 = vld [vmem:[#allocation5 + $0x10] sm:$0xff]  ;;  %v12537_v46 = vmul.f32 %v12435_v4, %v12251_v29 }
 0x46c   : > { %14156 = vst [vmem:[#allocation18_spill] sm:$0xff] %v12502_v8  ;;  %v6929_v28 = vadd.f32 %v6836_v22, %v6709_v41  ;;  %v5924_v47 = vsel %vm2633_vm4, %v5921_v34, %v13986_v18  ;;  %v13987_v56 = vrot.slane %v12502_v8, 2  ;;  %v5648_v50 = vrot.slane %v5610_v6, 4 }
 0x46d   : > { %v6039_v16 = vunpack.c.l.bf16 %v5610_v6  ;;  %v6040_v61 = vunpack.c.h.bf16 %v5610_v6  ;;  %v12541_v60 = vmul.f32 %v12444_v12, %v12492_v39  ;;  %v12545_v35 = vadd.f32 %v5924_v47, %v5752_v37 }
 0x46e   : > { %v12543_v30 = vadd.f32 %v7054_v63, %v6929_v28  ;;  %v12550_v34 = vsel %vm6147_vm5, %v6169_v1, %v13987_v56  ;;  %v14157_v41 = vrot.slane %v11419_v57, 4  ;;  %v14158_v47 = vrot.slane %v11373_v14, 4 }
 0x46f   : > { %v12554_v22 = vmul.f32 %v12389_v54, %v6039_v16  ;;  %v6528_v18 = vmul.f32 %v12409_v40, %v6039_v16  ;;  %v6743_v63 = vmul.f32 %v12435_v4, %v6039_v16  ;;  %v14159_v56 = vrot.slane %v11445_v33, 4 }
 0x470   : > { %v6290_v6 = vsel %vm5644_vm3, %v14157_v41, %v5648_v50  ;;  %v5649_v1 = vsel %vm5644_vm3, %v14158_v47, %v5648_v50  ;;  %v6744_v7 = vmul.f32 %v12435_v4, %v6040_v61  ;;  %v14162_v32 = vrot.slane %v14161_v19, 1 }
 0x471   : > { %v6296_v37 = vunpack.c.l.bf16 %v6290_v6  ;;  %v6297_v28 = vunpack.c.h.bf16 %v6290_v6  ;;  %v5651_v55 = vsel %vm5644_vm3, %v5648_v50, %v14159_v56  ;;  %v6596_v0 = vrot.slane %v6528_v18, 2 }
 0x472   : > { %v5700_v15 = vunpack.c.l.bf16 %v5649_v1  ;;  %v5701_v48 = vunpack.c.h.bf16 %v5649_v1  ;;  %v5702_v16 = vunpack.c.l.bf16 %v5651_v55  ;;  %v5703_v42 = vunpack.c.h.bf16 %v5651_v55 }
 0x473   : > { %v6309_v41 = vmul.f32 %v12521_v58, %v6296_v37  ;;  %v6310_v11 = vmul.f32 %v12521_v58, %v6297_v28  ;;  %v6814_v6 = vrot.slane %v6743_v63, 3  ;;  %v6151_v33 = vrot.slane %v12554_v22, 2 }
 0x474   : > { %v5829_v14 = vmul.f32 %v12374_v2, %v5700_v15  ;;  %v5830_v47 = vmul.f32 %v12374_v2, %v5701_v48  ;;  %v6311_v18 = vmul.f32 %v12521_v58, %v5702_v16  ;;  %v6312_v50 = vmul.f32 %v12521_v58, %v5703_v42 }
 0x475   : > { %v6379_v26 = vrot.slane %v6309_v41, 1  ;;  %v6380_v56 = vrot.slane %v6310_v11, 1  ;;  %v5742_v1 = vmul.f32 %v12402_v5, %v5700_v15  ;;  %v6529_v28 = vmul.f32 %v12409_v40, %v6040_v61 }
 0x476   : > { %v5901_v37 = vrot.slane %v5829_v14, 1  ;;  %v5903_v57 = vrot.slane %v5830_v47, 1  ;;  %v6382_v63 = vrot.slane %v6311_v18, 1  ;;  %v6384_v17 = vrot.slane %v6312_v50, 1  ;;  %v14163_v14 = vld [vmem:[#allocation27_spill] sm:$0xff]  ;;  %v14165_v18 = vld [vmem:[#allocation34_spill] sm:$0xff] }
 0x477   : > { %v6381_v55 = vsel %vm2633_vm4, %v6379_v26, %v6380_v56  ;;  %v6597_v41 = vrot.slane %v6529_v28, 2  ;;  %v14164_v47 = vrot.slane %v14163_v14, 2  ;;  %v6815_v26 = vrot.slane %v6744_v7, 3 }
 0x478   : > { %v6483_v22 = vadd.f32 %v6381_v55, %v14160_v62  ;;  %v5904_v11 = vsel %vm2633_vm4, %v5901_v37, %v5903_v57  ;;  %v5902_v29 = vsel %vm2633_vm4, %v14162_v32, %v5901_v37  ;;  %v6385_v12 = vsel %vm2633_vm4, %v6382_v63, %v6384_v17  ;;  %v14166_v62 = vld [vmem:[#allocation32_spill] sm:$0xff]  ;;  %v14168_v32 = vld [vmem:[#allocation33_spill] sm:$0xff] }
 0x479   : > { %v6004_v15 = vadd.f32 %v5904_v11, %v5742_v1  ;;  %v6152_v44 = vsel %vm6147_vm5, %v14164_v47, %v6151_v33  ;;  %v6003_v50 = vadd.f32 %v5902_v29, %v14165_v18  ;;  %v14167_v55 = vrot.slane %v14166_v62, 2  ;;  %v14170_v11 = vld [vmem:[#allocation35_spill] sm:$0xff] }
 0x47a   : > { %v6698_v45 = vadd.f32 %v6596_v0, %v6483_v22  ;;  %v6383_v19 = vsel %vm2633_vm4, %v6380_v56, %v6382_v63  ;;  %v14169_v37 = vrot.slane %v14168_v32, 3  ;;  %v6598_v7 = vsel %vm6147_vm5, %v6596_v0, %v6597_v41  ;;  %v14173_v32 = vld [vmem:[#allocation29_spill] sm:$0xff] }
 0x47b   : > { %v6600_v28 = vsel %vm6147_vm5, %v6597_v41, %v14167_v55  ;;  %v6252_v8 = vadd.f32 %v6152_v44, %v6004_v15  ;;  %v6251_v14 = vadd.f32 %v14170_v11, %v6003_v50  ;;  %v6816_v29 = vsel %vm503_vm2, %v6814_v6, %v6815_v26  ;;  %v14171_v44 = vld [vmem:[#allocation42_spill] sm:$0xff] }
 0x47c   : > { %v6818_v1 = vsel %vm503_vm2, %v6815_v26, %v14169_v37  ;;  %v6918_v47 = vadd.f32 %v6814_v6, %v6698_v45  ;;  %v5831_v22 = vmul.f32 %v12374_v2, %v5702_v16  ;;  %v6082_v18 = vmul.f32 %v12389_v54, %v6040_v61 }
 0x47d   : > { %v6485_v62 = vadd.f32 %v6385_v12, %v6252_v8  ;;  %v6484_v55 = vadd.f32 %v6383_v19, %v6251_v14  ;;  %v5743_v56 = vmul.f32 %v12402_v5, %v5701_v48  ;;  %v14172_v63 = vrot.slane %v14171_v44, 1  ;;  %v14175_v8 = vld [vmem:[#allocation30_spill] sm:$0xff] }
 0x47e   : > { %v14174_v37 = vrot.slane %v14173_v32, 2  ;;  %v5905_v11 = vrot.slane %v5831_v22, 1  ;;  %v6153_v0 = vrot.slane %v6082_v18, 2  ;;  %v5832_v45 = vmul.f32 %v12374_v2, %v5703_v42  ;;  %v14181_v32 = vld [vmem:[#allocation53_spill] sm:$0xff] }
 0x47f   : > { %v6387_v15 = vsel %vm2633_vm4, %v6384_v17, %v14172_v63  ;;  %v6700_v6 = vadd.f32 %v6600_v28, %v6485_v62  ;;  %v6699_v41 = vadd.f32 %v6598_v7, %v6484_v55  ;;  %v5744_v26 = vmul.f32 %v12402_v5, %v5702_v16  ;;  %v14177_v28 = vld [vmem:[#allocation31_spill] sm:$0xff] }
 0x480   : > { %v7134_v50 = vadd.f32 %v14174_v37, %v6918_v47  ;;  %v5745_v12 = vmul.f32 %v12402_v5, %v5703_v42  ;;  %v14176_v61 = vrot.slane %v14175_v8, 3  ;;  %v5906_v19 = vsel %vm2633_vm4, %v5903_v57, %v5905_v11  ;;  %v14179_v42 = vld [vmem:[#allocation46_spill] sm:$0xff]  ;;  %v14186_v8 = vld [vmem:[#allocation37_spill] sm:$0xff] }
 0x481   : > { %v5907_v14 = vrot.slane %v5832_v45, 1  ;;  %v7364_v17 = vadd.f32 %v12509_v36, %v12543_v30  ;;  %v6920_v47 = vadd.f32 %v6818_v1, %v6700_v6  ;;  %v6919_v22 = vadd.f32 %v6816_v29, %v6699_v41  ;;  %v14184_v30 = vld [vmem:[#allocation36_spill] sm:$0xff] }
 0x482   : > { %v7353_v48 = vadd.f32 %v14176_v61, %v7134_v50  ;;  %v6005_v18 = vadd.f32 %v5906_v19, %v5743_v56  ;;  %v6154_v44 = vsel %vm6147_vm5, %v6151_v33, %v6153_v0  ;;  %v14178_v7 = vrot.slane %v14177_v28, 4  ;;  %v14183_v50 = vld [vmem:[#allocation38_spill] sm:$0xff] }
 0x483   : > { %v5908_v16 = vsel %vm2633_vm4, %v5905_v11, %v5907_v14  ;;  %v14180_v55 = vrot.slane %v14179_v42, 2  ;;  %v14182_v57 = vrot.slane %v14181_v32, 1  ;;  %v7136_v36 = vadd.f32 %v14183_v50, %v6920_v47 }
 0x484   : > { %v7574_v62 = vadd.f32 %v14178_v7, %v7353_v48  ;;  %v7135_v1 = vadd.f32 %v14184_v30, %v6919_v22  ;;  %v6253_v29 = vadd.f32 %v6154_v44, %v6005_v18  ;;  %v6006_v56 = vadd.f32 %v5908_v16, %v5744_v26  ;;  %v14192_v18 = vld [vmem:[#allocation41_spill] sm:$0xff]  ;;  %v14194_v7 = vld [vmem:[#allocation43_spill] sm:$0xff] }
 0x485   : > { %v6156_v63 = vsel %vm6147_vm5, %v6153_v0, %v14180_v55  ;;  %v5910_v37 = vsel %vm2633_vm4, %v5907_v14, %v14182_v57  ;;  %v12629_v6 = vadd.f32 %v12516_v49, %v7364_v17  ;;  %v6262_v11 = vadd.f32 %v12550_v34, %v12545_v35  ;;  %v14185_v0 = vld [vmem:[#allocation40_spill] sm:$0xff]  ;;  %v14195_v16 = vld [vmem:[#allocation49_spill] sm:$0xff]  ;;  %v14196_v55 = vld [vmem:[#allocation7_spill] sm:$0xff] }
 0x486   : > { %v7610_v33 = vsel %vm7609_vm6, %v7574_v62, 0.0  ;;  %v6007_v45 = vadd.f32 %v5910_v37, %v5745_v12  ;;  %v7355_v41 = vadd.f32 %v14185_v0, %v7136_v36  ;;  %v7354_v61 = vadd.f32 %v14186_v8, %v7135_v1  ;;  %v14187_v14 = vld [vmem:[#allocation56_spill] sm:$0xff]  ;;  %v14199_v1 = vld [vmem:[#allocation50_spill] sm:$0xff] }
 0x487   : > { %7611 = vadd.xlane.f32.xlu0 %v7610_v33  ;;  %v6486_v48 = vadd.f32 %v6387_v15, %v6253_v29  ;;  %v6254_v19 = vadd.f32 %v6156_v63, %v6006_v56  ;;  %v14188_v26 = vrot.slane %v12525_v10, 1  ;;  %v14189_v22 = vrot.slane %v12397_v51, 1  ;;  %v14193_v15 = vld [vmem:[#allocation39_spill] sm:$0xff]  ;;  %v14198_v36 = vld [vmem:[#allocation44_spill] sm:$0xff]  ;;  %v14200_v56 = vld [vmem:[#allocation57_spill] sm:$0xff] }
 0x488   : > { %v6255_v47 = vadd.f32 %v14187_v14, %v6007_v45  ;;  %v14190_v49 = vrot.slane %v12529_v38, 2  ;;  %v14191_v17 = vrot.slane %v12413_v43, 2  ;;  %v6837_v34 = vrot.slane %v12537_v46, 3 }
 0x489   : > { %v6405_v12 = vsel %vm2633_vm4, %v14189_v22, %v14188_v26  ;;  %v7576_v44 = vadd.f32 %v14192_v18, %v7355_v41  ;;  %v7575_v28 = vadd.f32 %v14193_v15, %v7354_v61  ;;  %v6701_v62 = vadd.f32 %v14194_v7, %v6486_v48  ;;  %v14202_v41 = vld [vmem:[#allocation45_spill] sm:$0xff]  ;;  %v14203_v61 = vld [vmem:[#allocation51_spill] sm:$0xff]  ;;  %v14207_v18 = vld [vmem:[#allocation52_spill] sm:$0xff] }
 0x48a   : > { %v6620_v35 = vsel %vm6147_vm5, %v14191_v17, %v14190_v49  ;;  %v6487_v42 = vadd.f32 %v14195_v16, %v6254_v19  ;;  %v6488_v51 = vadd.f32 %v14196_v55, %v6255_v47  ;;  %v6495_v63 = vadd.f32 %v6405_v12, %v6262_v11  ;;  %v14204_v47 = vld [vmem:[#allocation58_spill] sm:$0xff]  ;;  %v14206_v17 = vld [vmem:[#allocation47_spill] sm:$0xff]  ;;  %v14209_v55 = vld [vmem:[#allocation48_spill] sm:$0xff] }
 0x48b   : > { %v14197_v32 = vrot.slane %v12439_v24, 3  ;;  %v7055_v57 = vrot.slane %v12541_v60, 2  ;;  %v7616_v37 = vsel %vm375_vm1, %v7576_v44, 0.0  ;;  %v7613_v50 = vsel %vm375_vm1, %v7575_v28, 0.0  ;;  %v14208_v7 = vld [vmem:[#allocation59_spill] sm:$0xff] }
 0x48c   : > { %v6921_v30 = vadd.f32 %v14198_v36, %v6701_v62  ;;  %v6702_v29 = vadd.f32 %v14199_v1, %v6487_v42  ;;  %7617 = vadd.xlane.f32.xlu0 %v7616_v37  ;;  %7614 = vadd.xlane.f32.xlu1 %v7613_v50  ;;  %v6703_v33 = vadd.f32 %v14200_v56, %v6488_v51  ;;  %v14201_v24 = vrot.slane %v12448_v23, 2  ;;  %v14213_v36 = vld [vmem:[#allocation60_spill] sm:$0xff] }
 0x48d   : > { %v6838_v43 = vsel %vm503_vm2, %v14197_v32, %v6837_v34  ;;  %v6710_v45 = vadd.f32 %v6620_v35, %v6495_v63  ;;  %v5662_v0 = vrot.slane %v12457_v9, 4  ;;  %v12673_v19 = vmul.f32 %v12329_v52, %v12492_v39 }
 0x48e   : > { %v7056_v11 = vsel %vm6147_vm5, %v14201_v24, %v7055_v57  ;;  %v7137_v8 = vadd.f32 %v14202_v41, %v6921_v30  ;;  %v6922_v48 = vadd.f32 %v14203_v61, %v6702_v29  ;;  %v12677_v14 = vmul.f32 %v12464_v3, %v12492_v39 }
 0x48f   : > { %v6923_v26 = vadd.f32 %v14204_v47, %v6703_v33  ;;  %v6930_v22 = vadd.f32 %v6838_v43, %v6710_v45  ;;  %v14205_v23 = vrot.slane %v12231_v21, 4  ;;  %v5753_v49 = vmul.f32 %v12402_v5, %v12233_v53  ;;  %v14210_v53 = vld [vmem:[#allocation54_spill] sm:$0xff]  ;;  %v14214_v45 = vld [vmem:[#allocation55_spill] sm:$0xff] }
 0x490   : > { %v7356_v35 = vadd.f32 %v14206_v17, %v7137_v8  ;;  %v7138_v44 = vadd.f32 %v14207_v18, %v6922_v48  ;;  %v7272_v15 = vrot.slane %v12673_v19, 3  ;;  %v7493_v28 = vrot.slane %v12677_v14, 4  ;;  %v14217_v18 = vld [vmem:[#allocation18_spill] sm:$0xff] }
 0x491   : > { %v5663_v12 = vsel %vm5644_vm3, %v14205_v23, %v5662_v0  ;;  %v7139_v62 = vadd.f32 %v14208_v7, %v6923_v26  ;;  %v7146_v16 = vadd.f32 %v7056_v11, %v6930_v22  ;;  %v12696_v21 = vmul.f32 %v12374_v2, %v12369_v13  ;;  %v14215_v11 = vld [vmem:[#allocation61_spill] sm:$0xff] }
 0x492   : > { %v12692_v42 = vunpack.c.l.bf16 %v5663_v12  ;;  %v7577_v51 = vadd.f32 %v14209_v55, %v7356_v35  ;;  %v7357_v63 = vadd.f32 %v14210_v53, %v7138_v44  ;;  %v14211_v32 = vrot.slane %v12455_v20, 3 }
 0x493   : > { %v14212_v37 = vrot.slane %v12468_v27, 4  ;;  %v7358_v30 = vadd.f32 %v14213_v36, %v7139_v62  ;;  %v5925_v29 = vrot.slane %v12696_v21, 1  ;;  %v12711_v56 = vunpack.c.h.bf16 %v12457_v9 }
 0x494   : > { %v7273_v43 = vsel %vm503_vm2, %v14211_v32, %v7272_v15  ;;  %v7619_v33 = vsel %vm375_vm1, %v7577_v51, 0.0  ;;  %v7578_v20 = vadd.f32 %v14214_v45, %v7357_v63  ;;  %v6092_v24 = vmul.f32 %v12389_v54, %v12152_v25  ;;  %v12746_v32 = vld [vmem:[#allocation5 + $0x50] sm:$0xff] }
 0x495   : > { %v7494_v50 = vsel %vm5644_vm3, %v14212_v37, %v7493_v28  ;;  %v7365_v1 = vadd.f32 %v7273_v43, %v7146_v16  ;;  %v6323_v27 = vmul.f32 %v12521_v58, %v12692_v42  ;;  %7620 = vadd.xlane.f32.xlu0 %v7619_v33  ;;  %v7579_v41 = vadd.f32 %v14215_v11, %v7358_v30  ;;  %v14220_v16 = vld [vmem:[#allocation12_spill] sm:$0xff]  ;;  %v14224_v11 = vld [vmem:[#allocation11_spill] sm:$0xff] }
 0x496   : > { %v14216_v61 = vrot.slane %v12481_v31, 1  ;;  %v6541_v19 = vmul.f32 %v12409_v40, %v12382_v59  ;;  %v7622_v47 = vsel %vm375_vm1, %v7578_v20, 0.0  ;;  %v6173_v22 = vrot.slane %v6092_v24, 2  ;;  %v14222_v30 = vld [vmem:[#allocation8_spill] sm:$0xff]  ;;  %v14223_v20 = vld [vmem:[#allocation14_spill] sm:$0xff] }
 0x497   : > { %v7586_v8 = vadd.f32 %v7494_v50, %v7365_v1  ;;  %v6406_v23 = vrot.slane %v6323_v27, 1  ;;  %7623 = vadd.xlane.f32.xlu1 %v7622_v47  ;;  %v7625_v25 = vsel %vm375_vm1, %v7579_v41, 0.0  ;;  %v7643_v17 = vsel %vm375_vm1, %v12629_v6, 0.0  ;;  %v14225_v41 = vld [vmem:[#allocation9_spill] sm:$0xff]  ;;  %v14226_v47 = vld [vmem:[#allocation10_spill] sm:$0xff] }
 0x498   : > { %v5926_v48 = vsel %vm2633_vm4, %v14216_v61, %v5925_v29  ;;  %v6621_v35 = vrot.slane %v6541_v19, 2  ;;  %v6756_v31 = vmul.f32 %v12435_v4, %v12382_v59  ;;  %v14218_v44 = vrot.slane %v14217_v18, 2 }
 0x499   : > { %v6015_v26 = vadd.f32 %v5926_v48, %v5753_v49  ;;  %v14219_v62 = vrot.slane %v12525_v10, 1  ;;  %v6977_v21 = vmul.f32 %v14220_v16, %v12711_v56  ;;  %v7192_v55 = vmul.f32 %v12329_v52, %v12711_v56  ;;  %7626 = vadd.xlane.f32.xlu0 %v7625_v25 }
 0x49a   : > { %v6174_v7 = vsel %vm6147_vm5, %v14218_v44, %v6173_v22  ;;  %v7646_v6 = vsel %vm375_vm1, %v7586_v8, 0.0  ;;  %v6839_v53 = vrot.slane %v6756_v31, 3  ;;  %v12744_v63 = vmul.f32 %v12464_v3, %v12711_v56 }
 0x49b   : > { %v6407_v49 = vsel %vm2633_vm4, %v14219_v62, %v6406_v23  ;;  %v6263_v51 = vadd.f32 %v6174_v7, %v6015_v26  ;;  %v14221_v10 = vrot.slane %v12529_v38, 2  ;;  %v7057_v37 = vrot.slane %v6977_v21, 2  ;;  %7629 = vadd.xlane.f32.xlu1 %v14222_v30 }
 0x49c   : > { %v7274_v50 = vrot.slane %v7192_v55, 3  ;;  %v12751_v36 = vunpack.c.h.bf16 %v5663_v12  ;;  %v6840_v33 = vsel %vm503_vm2, %v6837_v34, %v6839_v53  ;;  %v5754_v45 = vmul.f32 %v12402_v5, %v12369_v13 }
 0x49d   : > { %v6622_v43 = vsel %vm6147_vm5, %v14221_v10, %v6621_v35  ;;  %v6496_v1 = vadd.f32 %v6407_v49, %v6263_v51  ;;  %v5842_v24 = vmul.f32 %v12374_v2, %v14223_v20  ;;  %v7058_v38 = vsel %vm6147_vm5, %v7055_v57, %v7057_v37  ;;  %7632 = vadd.xlane.f32.xlu0 %v14225_v41  ;;  %v14227_v49 = vld [vmem:[#allocation13_spill] sm:$0xff] }
 0x49e   : > { %v7495_v12 = vrot.slane %v12744_v63, 4  ;;  %v12766_v27 = vunpack.c.l.bf16 %v12746_v32  ;;  %v6093_v46 = vmul.f32 %v12389_v54, %v14224_v11  ;;  %v7275_v13 = vsel %vm503_vm2, %v7272_v15, %v7274_v50 }
 0x49f   : > { %v6711_v34 = vadd.f32 %v6622_v43, %v6496_v1  ;;  %v5927_v8 = vrot.slane %v5842_v24, 1  ;;  %v12774_v61 = vmul.f32 %v12521_v58, %v12751_v36  ;;  %v6542_v57 = vmul.f32 %v12409_v40, %v12492_v39  ;;  %7635 = vadd.xlane.f32.xlu1 %v14226_v47  ;;  %v14228_v1 = vld [vmem:[#allocation16_spill] sm:$0xff] }
 0x4a0   : > { %v6175_v60 = vrot.slane %v6093_v46, 2  ;;  %v12780_v48 = vmul.f32 %v12435_v4, %v12492_v39  ;;  %v12784_v19 = vmul.f32 %v14220_v16, %v12766_v27  ;;  %v12791_v31 = vmul.f32 %v12329_v52, %v12766_v27 }
 0x4a1   : > { %v6931_v15 = vadd.f32 %v6840_v33, %v6711_v34  ;;  %v5928_v26 = vsel %vm2633_vm4, %v5925_v29, %v5927_v8  ;;  %v6408_v25 = vrot.slane %v12774_v61, 1  ;;  %v6623_v7 = vrot.slane %v6542_v57, 2  ;;  %7638 = vadd.xlane.f32.xlu0 %v14227_v49 }
 0x4a2   : > { %v6016_v18 = vadd.f32 %v5928_v26, %v5754_v45  ;;  %v6176_v44 = vsel %vm6147_vm5, %v6173_v22, %v6175_v60  ;;  %v6841_v62 = vrot.slane %v12780_v48, 3  ;;  %v7059_v51 = vrot.slane %v12784_v19, 2 }
 0x4a3   : > { %v7147_v21 = vadd.f32 %v7058_v38, %v6931_v15  ;;  %v6409_v55 = vsel %vm2633_vm4, %v6406_v23, %v6408_v25  ;;  %v7276_v29 = vrot.slane %v12791_v31, 3  ;;  %v7496_v10 = vsel %vm5644_vm3, %v7493_v28, %v7495_v12  ;;  %7641 = vadd.xlane.f32.xlu1 %v14228_v1 }
 0x4a4   : > { %v6264_v43 = vadd.f32 %v6176_v44, %v6016_v18  ;;  %v6624_v22 = vsel %vm6147_vm5, %v6621_v35, %v6623_v7  ;;  %v12807_v30 = vmul.f32 %v12464_v3, %v12766_v27  ;;  %v6842_v33 = vsel %vm503_vm2, %v6839_v53, %v6841_v62 }
 0x4a5   : > { %v7366_v23 = vadd.f32 %v7275_v13, %v7147_v21  ;;  %v7060_v45 = vsel %vm6147_vm5, %v7057_v37, %v7059_v51  ;;  %v5664_v24 = vrot.slane %v12746_v32, 4  ;;  %v7277_v14 = vsel %vm503_vm2, %v7274_v50, %v7276_v29  ;;  %7644 = vadd.xlane.f32.xlu0 %v7643_v17 }
 0x4a6   : > { %v6497_v38 = vadd.f32 %v6409_v55, %v6264_v43  ;;  %v7497_v28 = vrot.slane %v12807_v30, 4  ;;  %v5843_v35 = vmul.f32 %v12374_v2, %v12692_v42  ;;  %v12823_v37 = vunpack.c.h.bf16 %v12746_v32  ;;  %v12854_v55 = vld [vmem:[#allocation5 + $0x58] sm:$0xff] }
 0x4a7   : > { %v7587_v11 = vadd.f32 %v7496_v10, %v7366_v23  ;;  %v5665_v53 = vsel %vm5644_vm3, %v5662_v0, %v5664_v24  ;;  %v6094_v46 = vmul.f32 %v12389_v54, %v12382_v59  ;;  %v5755_v34 = vmul.f32 %v12402_v5, %v14223_v20  ;;  %7647 = vadd.xlane.f32.xlu1 %v7646_v6 }
 0x4a8   : > { %v6712_v50 = vadd.f32 %v6624_v22, %v6497_v38  ;;  %v12827_v41 = vunpack.c.l.bf16 %v5665_v53  ;;  %v5929_v17 = vrot.slane %v5843_v35, 1  ;;  %v6543_v9 = vmul.f32 %v12409_v40, %v12711_v56 }
 0x4a9   : > { %v7649_v13 = vsel %vm375_vm1, %v7587_v11, 0.0  ;;  %v6177_v61 = vrot.slane %v6094_v46, 2  ;;  %v6758_v0 = vmul.f32 %v12435_v4, %v12711_v56  ;;  %v6979_v20 = vmul.f32 %v14220_v16, %v12823_v37 }
 0x4aa   : > { %v6932_v57 = vadd.f32 %v6842_v33, %v6712_v50  ;;  %v5930_v59 = vsel %vm2633_vm4, %v5927_v8, %v5929_v17  ;;  %v6325_v48 = vmul.f32 %v12521_v58, %v12827_v41  ;;  %7650 = vadd.xlane.f32.xlu0 %v7649_v13  ;;  %v6625_v47 = vrot.slane %v6543_v9, 2 }
 0x4ab   : > { %v6017_v6 = vadd.f32 %v5930_v59, %v5755_v34  ;;  %v6178_v19 = vsel %vm6147_vm5, %v6175_v60, %v6177_v61  ;;  %v6843_v15 = vrot.slane %v6758_v0, 3  ;;  %v7061_v18 = vrot.slane %v6979_v20, 2 }
 0x4ac   : > { %v7148_v26 = vadd.f32 %v7060_v45, %v6932_v57  ;;  %v6410_v31 = vrot.slane %v6325_v48, 1  ;;  %v7194_v44 = vmul.f32 %v12329_v52, %v12823_v37  ;;  %v7498_v8 = vsel %vm5644_vm3, %v7495_v12, %v7497_v28 }
 0x4ad   : > { %v6265_v49 = vadd.f32 %v6178_v19, %v6017_v6  ;;  %v6626_v21 = vsel %vm6147_vm5, %v6623_v7, %v6625_v47  ;;  %v12852_v60 = vmul.f32 %v12464_v3, %v12823_v37  ;;  %v6844_v22 = vsel %vm503_vm2, %v6841_v62, %v6843_v15 }
 0x4ae   : > { %v7367_v10 = vadd.f32 %v7277_v14, %v7148_v26  ;;  %v6411_v43 = vsel %vm2633_vm4, %v6408_v25, %v6410_v31  ;;  %v7278_v1 = vrot.slane %v7194_v44, 3  ;;  %v7062_v63 = vsel %vm6147_vm5, %v7059_v51, %v7061_v18 }
 0x4af   : > { %v6498_v23 = vadd.f32 %v6411_v43, %v6265_v49  ;;  %v7499_v12 = vrot.slane %v12852_v60, 4  ;;  %v12860_v33 = vunpack.c.h.bf16 %v5665_v53  ;;  %v5756_v45 = vmul.f32 %v12402_v5, %v12692_v42 }
 0x4b0   : > { %v7588_v7 = vadd.f32 %v7498_v8, %v7367_v10  ;;  %v5844_v38 = vmul.f32 %v12374_v2, %v12751_v36  ;;  %v12867_v14 = vunpack.c.l.bf16 %v12854_v55  ;;  %v7279_v62 = vsel %vm503_vm2, %v7276_v29, %v7278_v1 }
 0x4b1   : > { %v6713_v25 = vadd.f32 %v6626_v21, %v6498_v23  ;;  %v6095_v51 = vmul.f32 %v12389_v54, %v12492_v39  ;;  %v6326_v35 = vmul.f32 %v12521_v58, %v12860_v33  ;;  %v6544_v42 = vmul.f32 %v12409_v40, %v12766_v27 }
 0x4b2   : > { %v7652_v11 = vsel %vm375_vm1, %v7588_v7, 0.0  ;;  %v5931_v53 = vrot.slane %v5844_v38, 1  ;;  %v12879_v46 = vmul.f32 %v12435_v4, %v12766_v27  ;;  %v6980_v39 = vmul.f32 %v14220_v16, %v12867_v14 }
 0x4b3   : > { %7653 = vadd.xlane.f32.xlu1 %v7652_v11  ;;  %v6933_v50 = vadd.f32 %v6844_v22, %v6713_v25  ;;  %v6179_v34 = vrot.slane %v6095_v51, 2  ;;  %v6412_v29 = vrot.slane %v6326_v35, 1  ;;  %v6627_v9 = vrot.slane %v6544_v42, 2 }
 0x4b4   : > { %v5932_v13 = vsel %vm2633_vm4, %v5929_v17, %v5931_v53  ;;  %v6845_v0 = vrot.slane %v12879_v46, 3  ;;  %v7195_v57 = vmul.f32 %v12329_v52, %v12867_v14  ;;  %v7500_v48 = vsel %vm5644_vm3, %v7497_v28, %v7499_v12 }
 0x4b5   : > { %v7149_v59 = vadd.f32 %v7062_v63, %v6933_v50  ;;  %v6018_v20 = vadd.f32 %v5932_v13, %v5756_v45  ;;  %v6180_v6 = vsel %vm6147_vm5, %v6177_v61, %v6179_v34  ;;  %v6413_v19 = vsel %vm2633_vm4, %v6410_v31, %v6412_v29 }
 0x4b6   : > { %v6628_v17 = vsel %vm6147_vm5, %v6625_v47, %v6627_v9  ;;  %v7063_v26 = vrot.slane %v6980_v39, 2  ;;  %v7280_v44 = vrot.slane %v7195_v57, 3  ;;  %v12897_v21 = vmul.f32 %v12464_v3, %v12867_v14 }
 0x4b7   : > { %v7368_v8 = vadd.f32 %v7279_v62, %v7149_v59  ;;  %v6266_v49 = vadd.f32 %v6180_v6, %v6018_v20  ;;  %v5666_v10 = vrot.slane %v12854_v55, 4  ;;  %v6846_v30 = vsel %vm503_vm2, %v6843_v15, %v6845_v0 }
 0x4b8   : > { %v7064_v28 = vsel %vm6147_vm5, %v7061_v18, %v7063_v26  ;;  %v7281_v61 = vsel %vm503_vm2, %v7278_v1, %v7280_v44  ;;  %v5845_v31 = vmul.f32 %v12374_v2, %v12827_v41  ;;  %v5757_v23 = vmul.f32 %v12402_v5, %v12751_v36 }
 0x4b9   : > { %v7589_v47 = vadd.f32 %v7500_v48, %v7368_v8  ;;  %v6499_v43 = vadd.f32 %v6413_v19, %v6266_v49  ;;  %v5667_v22 = vsel %vm5644_vm3, %v5664_v24, %v5666_v10  ;;  %v12915_v18 = vunpack.c.h.bf16 %v12854_v55  ;;  %v12945_v19 = vld [vmem:[#allocation5 + $0x60] sm:$0xff] }
 0x4ba   : > { %v12912_v63 = vunpack.c.l.bf16 %v5667_v22  ;;  %v5933_v15 = vrot.slane %v5845_v31, 1  ;;  %v6096_v1 = vmul.f32 %v12389_v54, %v12711_v56  ;;  %v7501_v38 = vrot.slane %v12897_v21, 4 }
 0x4bb   : > { %v7655_v7 = vsel %vm375_vm1, %v7589_v47, 0.0  ;;  %v6714_v45 = vadd.f32 %v6628_v17, %v6499_v43  ;;  %v6545_v32 = vmul.f32 %v12409_v40, %v12823_v37  ;;  %v6760_v62 = vmul.f32 %v12435_v4, %v12823_v37 }
 0x4bc   : > { %7656 = vadd.xlane.f32.xlu0 %v7655_v7  ;;  %v5934_v36 = vsel %vm2633_vm4, %v5931_v53, %v5933_v15  ;;  %v6181_v24 = vrot.slane %v6096_v1, 2  ;;  %v6327_v25 = vmul.f32 %v12521_v58, %v12912_v63  ;;  %v6981_v11 = vmul.f32 %v14220_v16, %v12915_v18 }
 0x4bd   : > { %v6934_v51 = vadd.f32 %v6846_v30, %v6714_v45  ;;  %v6019_v56 = vadd.f32 %v5934_v36, %v5757_v23  ;;  %v6629_v35 = vrot.slane %v6545_v32, 2  ;;  %v6847_v50 = vrot.slane %v6760_v62, 3 }
 0x4be   : > { %v6182_v42 = vsel %vm6147_vm5, %v6179_v34, %v6181_v24  ;;  %v6414_v46 = vrot.slane %v6327_v25, 1  ;;  %v12933_v53 = vmul.f32 %v12329_v52, %v12915_v18  ;;  %v7502_v13 = vsel %vm5644_vm3, %v7499_v12, %v7501_v38 }
 0x4bf   : > { %v7150_v39 = vadd.f32 %v7064_v28, %v6934_v51  ;;  %v6267_v57 = vadd.f32 %v6182_v42, %v6019_v56  ;;  %v7065_v59 = vrot.slane %v6981_v11, 2  ;;  %v6630_v20 = vsel %vm6147_vm5, %v6627_v9, %v6629_v35 }
 0x4c0   : > { %v6415_v48 = vsel %vm2633_vm4, %v6412_v29, %v6414_v46  ;;  %v7282_v6 = vrot.slane %v12933_v53, 3  ;;  %v12943_v34 = vmul.f32 %v12464_v3, %v12915_v18  ;;  %v6848_v60 = vsel %vm503_vm2, %v6845_v0, %v6847_v50 }
 0x4c1   : > { %v7369_v17 = vadd.f32 %v7281_v61, %v7150_v39  ;;  %v6500_v8 = vadd.f32 %v6415_v48, %v6267_v57  ;;  %v12948_v49 = vunpack.c.h.bf16 %v5667_v22  ;;  %v7066_v12 = vsel %vm6147_vm5, %v7063_v26, %v7065_v59 }
 0x4c2   : > { %v7283_v29 = vsel %vm503_vm2, %v7280_v44, %v7282_v6  ;;  %v7503_v9 = vrot.slane %v12943_v34, 4  ;;  %v5846_v21 = vmul.f32 %v12374_v2, %v12860_v33  ;;  %v12956_v31 = vunpack.c.l.bf16 %v12945_v19 }
 0x4c3   : > { %v7590_v30 = vadd.f32 %v7502_v13, %v7369_v17  ;;  %v6715_v28 = vadd.f32 %v6630_v20, %v6500_v8  ;;  %v6097_v61 = vmul.f32 %v12389_v54, %v12766_v27  ;;  %v5758_v0 = vmul.f32 %v12402_v5, %v12827_v41 }
 0x4c4   : > { %v5935_v47 = vrot.slane %v5846_v21, 1  ;;  %v12964_v26 = vmul.f32 %v12521_v58, %v12948_v49  ;;  %v6546_v44 = vmul.f32 %v12409_v40, %v12867_v14  ;;  %v6761_v1 = vmul.f32 %v12435_v4, %v12867_v14 }
 0x4c5   : > { %v7658_v43 = vsel %vm375_vm1, %v7590_v30, 0.0  ;;  %v6935_v22 = vadd.f32 %v6848_v60, %v6715_v28  ;;  %v6183_v23 = vrot.slane %v6097_v61, 2  ;;  %v6982_v45 = vmul.f32 %v14220_v16, %v12956_v31 }
 0x4c6   : > { %7659 = vadd.xlane.f32.xlu1 %v7658_v43  ;;  %v5936_v27 = vsel %vm2633_vm4, %v5933_v15, %v5935_v47  ;;  %v6416_v41 = vrot.slane %v12964_v26, 1  ;;  %v6631_v7 = vrot.slane %v6546_v44, 2  ;;  %v7504_v36 = vsel %vm5644_vm3, %v7501_v38, %v7503_v9 }
 0x4c7   : > { %v7151_v32 = vadd.f32 %v7066_v12, %v6935_v22  ;;  %v6020_v25 = vadd.f32 %v5936_v27, %v5758_v0  ;;  %v6849_v62 = vrot.slane %v6761_v1, 3  ;;  %v6184_v51 = vsel %vm6147_vm5, %v6181_v24, %v6183_v23 }
 0x4c8   : > { %v6417_v56 = vsel %vm2633_vm4, %v6414_v46, %v6416_v41  ;;  %v7067_v11 = vrot.slane %v6982_v45, 2  ;;  %v7197_v42 = vmul.f32 %v12329_v52, %v12956_v31  ;;  %v6632_v39 = vsel %vm6147_vm5, %v6629_v35, %v6631_v7 }
 0x4c9   : > { %v7370_v15 = vadd.f32 %v7283_v29, %v7151_v32  ;;  %v6268_v53 = vadd.f32 %v6184_v51, %v6020_v25  ;;  %v12983_v13 = vmul.f32 %v12464_v3, %v12956_v31  ;;  %v6850_v38 = vsel %vm503_vm2, %v6847_v50, %v6849_v62  ;;  %v13028_v51 = vld [vmem:[#allocation5 + $0x68] sm:$0xff] }
 0x4ca   : > { %v7068_v57 = vsel %vm6147_vm5, %v7065_v59, %v7067_v11  ;;  %v7284_v48 = vrot.slane %v7197_v42, 3  ;;  %v5668_v24 = vrot.slane %v12945_v19, 4  ;;  %v5759_v34 = vmul.f32 %v12402_v5, %v12860_v33 }
 0x4cb   : > { %v7591_v46 = vadd.f32 %v7504_v36, %v7370_v15  ;;  %v6501_v20 = vadd.f32 %v6417_v56, %v6268_v53  ;;  %v5847_v17 = vmul.f32 %v12374_v2, %v12912_v63  ;;  %v7505_v35 = vrot.slane %v12983_v13, 4 }
 0x4cc   : > { %v5669_v50 = vsel %vm5644_vm3, %v5666_v10, %v5668_v24  ;;  %v12999_v59 = vunpack.c.h.bf16 %v12945_v19  ;;  %v6098_v8 = vmul.f32 %v12389_v54, %v12823_v37  ;;  %v7285_v12 = vsel %vm503_vm2, %v7282_v6, %v7284_v48 }
 0x4cd   : > { %v7661_v60 = vsel %vm375_vm1, %v7591_v46, 0.0  ;;  %v6716_v33 = vadd.f32 %v6632_v39, %v6501_v20  ;;  %v13005_v29 = vunpack.c.l.bf16 %v5669_v50  ;;  %v5937_v21 = vrot.slane %v5847_v17, 1 }
 0x4ce   : > { %7662 = vadd.xlane.f32.xlu0 %v7661_v60  ;;  %v6185_v30 = vrot.slane %v6098_v8, 2  ;;  %v6547_v55 = vmul.f32 %v12409_v40, %v12915_v18  ;;  %v6762_v10 = vmul.f32 %v12435_v4, %v12915_v18  ;;  %v6983_v61 = vmul.f32 %v14220_v16, %v12999_v59 }
 0x4cf   : > { %v6936_v28 = vadd.f32 %v6850_v38, %v6716_v33  ;;  %v6329_v37 = vmul.f32 %v12521_v58, %v13005_v29  ;;  %v13017_v6 = vmul.f32 %v12329_v52, %v12999_v59  ;;  %v7506_v0 = vsel %vm5644_vm3, %v7503_v9, %v7505_v35 }
 0x4d0   : > { %v5938_v26 = vsel %vm2633_vm4, %v5935_v47, %v5937_v21  ;;  %v6633_v44 = vrot.slane %v6547_v55, 2  ;;  %v6851_v43 = vrot.slane %v6762_v10, 3  ;;  %v7069_v45 = vrot.slane %v6983_v61, 2  ;;  %v13065_v55 = vld [vmem:[%s13910_s7 + $0x7] ss:$0 sm:$0xff] }
 0x4d1   : > { %v7152_v22 = vadd.f32 %v7068_v57, %v6936_v28  ;;  %v6021_v1 = vadd.f32 %v5938_v26, %v5759_v34  ;;  %v6418_v27 = vrot.slane %v6329_v37, 1  ;;  %v6186_v32 = vsel %vm6147_vm5, %v6183_v23, %v6185_v30 }
 0x4d2   : > { %v6634_v36 = vsel %vm6147_vm5, %v6631_v7, %v6633_v44  ;;  %v7286_v25 = vrot.slane %v13017_v6, 3  ;;  %v13026_v52 = vmul.f32 %v12464_v3, %v12999_v59  ;;  %v6852_v42 = vsel %vm503_vm2, %v6849_v62, %v6851_v43 }
 0x4d3   : > { %v7371_v9 = vadd.f32 %v7285_v12, %v7152_v22  ;;  %v6269_v47 = vadd.f32 %v6186_v32, %v6021_v1  ;;  %v6419_v56 = vsel %vm2633_vm4, %v6416_v41, %v6418_v27  ;;  %v7070_v15 = vsel %vm6147_vm5, %v7067_v11, %v7069_v45 }
 0x4d4   : > { %v7287_v23 = vsel %vm503_vm2, %v7284_v48, %v7286_v25  ;;  %v7507_v7 = vrot.slane %v13026_v52, 4  ;;  %v13035_v53 = vunpack.c.h.bf16 %v5669_v50  ;;  %v5848_v38 = vmul.f32 %v12374_v2, %v12948_v49 }
 0x4d5   : > { %v7592_v39 = vadd.f32 %v7506_v0, %v7371_v9  ;;  %v6502_v13 = vadd.f32 %v6419_v56, %v6269_v47  ;;  %v13040_v57 = vunpack.c.l.bf16 %v13028_v51  ;;  %v5760_v41 = vmul.f32 %v12402_v5, %v12912_v63 }
 0x4d6   : > { %v6099_v62 = vmul.f32 %v12389_v54, %v12867_v14  ;;  %v13048_v11 = vmul.f32 %v12521_v58, %v13035_v53  ;;  %v6548_v48 = vmul.f32 %v12409_v40, %v12956_v31  ;;  %v5939_v34 = vrot.slane %v5848_v38, 1 }
 0x4d7   : > { %v7664_v46 = vsel %vm375_vm1, %v7592_v39, 0.0  ;;  %v6717_v20 = vadd.f32 %v6634_v36, %v6502_v13  ;;  %v13055_v17 = vmul.f32 %v12435_v4, %v12956_v31  ;;  %v6984_v8 = vmul.f32 %v14220_v16, %v13040_v57 }
 0x4d8   : > { %7665 = vadd.xlane.f32.xlu1 %v7664_v46  ;;  %v6187_v63 = vrot.slane %v6099_v62, 2  ;;  %v6420_v50 = vrot.slane %v13048_v11, 1  ;;  %v6635_v14 = vrot.slane %v6548_v48, 2  ;;  %v5940_v33 = vsel %vm2633_vm4, %v5937_v21, %v5939_v34 }
 0x4d9   : > { %v6937_v60 = vadd.f32 %v6852_v42, %v6717_v20  ;;  %v6853_v12 = vrot.slane %v13055_v17, 3  ;;  %v13069_v10 = vmul.f32 %v13065_v55, %v13040_v57  ;;  %v7508_v28 = vsel %vm5644_vm3, %v7505_v35, %v7507_v7 }
 0x4da   : > { %v6022_v37 = vadd.f32 %v5940_v33, %v5760_v41  ;;  %v6188_v61 = vsel %vm6147_vm5, %v6185_v30, %v6187_v63  ;;  %v6421_v21 = vsel %vm2633_vm4, %v6418_v27, %v6420_v50  ;;  %v6636_v0 = vsel %vm6147_vm5, %v6633_v44, %v6635_v14  ;;  %v13140_v33 = vld [vmem:[#allocation5 + $0x70] sm:$0xff] }
 0x4db   : > { %v7153_v6 = vadd.f32 %v7070_v15, %v6937_v60  ;;  %v7071_v26 = vrot.slane %v6984_v8, 2  ;;  %v7288_v22 = vrot.slane %v13069_v10, 3  ;;  %v6854_v32 = vsel %vm503_vm2, %v6851_v43, %v6853_v12 }
 0x4dc   : > { %v6270_v1 = vadd.f32 %v6188_v61, %v6022_v37  ;;  %v13081_v36 = vmul.f32 %v12464_v3, %v13040_v57  ;;  %v5670_v35 = vrot.slane %v13028_v51, 4  ;;  %v5761_v27 = vmul.f32 %v12402_v5, %v12948_v49  ;;  %v13157_v61 = vld [vmem:[%s13910_s7 + $0x1] ss:$0 sm:$0xff] }
 0x4dd   : > { %v7372_v9 = vadd.f32 %v7287_v23, %v7153_v6  ;;  %v7072_v30 = vsel %vm6147_vm5, %v7069_v45, %v7071_v26  ;;  %v13089_v44 = vmul.f32 %v12374_v2, %v13005_v29  ;;  %v7289_v56 = vsel %vm503_vm2, %v7286_v25, %v7288_v22 }
 0x4de   : > { %v6503_v47 = vadd.f32 %v6421_v21, %v6270_v1  ;;  %v5671_v43 = vsel %vm5644_vm3, %v5668_v24, %v5670_v35  ;;  %v13098_v42 = vunpack.c.h.bf16 %v13028_v51  ;;  %v13105_v2 = vmul.f32 %v12389_v54, %v12915_v18 }
 0x4df   : > { %v7593_v45 = vadd.f32 %v7508_v28, %v7372_v9  ;;  %v13100_v15 = vunpack.c.l.bf16 %v5671_v43  ;;  %v5941_v5 = vrot.slane %v13089_v44, 1  ;;  %v7509_v25 = vrot.slane %v13081_v36, 4  ;;  %v13184_v9 = vld [vmem:[%s13910_s7 + $0x4] ss:$0 sm:$0xff] }
 0x4e0   : > { %v6718_v49 = vadd.f32 %v6636_v0, %v6503_v47  ;;  %v13110_v19 = vmul.f32 %v12409_v40, %v12999_v59  ;;  %v13114_v24 = vmul.f32 %v12435_v4, %v12999_v59  ;;  %v6189_v13 = vrot.slane %v13105_v2, 2 }
 0x4e1   : > { %v7667_v23 = vsel %vm375_vm1, %v7593_v45, 0.0  ;;  %v5942_v39 = vsel %vm2633_vm4, %v5939_v34, %v5941_v5  ;;  %v6331_v54 = vmul.f32 %v12521_v58, %v13100_v15  ;;  %v6985_v11 = vmul.f32 %v14220_v16, %v13098_v42  ;;  %v13204_v45 = vld [vmem:[%s13910_s7 + $0x6] ss:$0 sm:$0xff] }
 0x4e2   : > { %7668 = vadd.xlane.f32.xlu0 %v7667_v23  ;;  %v6938_v18 = vadd.f32 %v6854_v32, %v6718_v49  ;;  %v6023_v38 = vadd.f32 %v5942_v39, %v5761_v27  ;;  %v6637_v41 = vrot.slane %v13110_v19, 2  ;;  %v6855_v40 = vrot.slane %v13114_v24, 3 }
 0x4e3   : > { %v6190_v62 = vsel %vm6147_vm5, %v6187_v63, %v6189_v13  ;;  %v6422_v4 = vrot.slane %v6331_v54, 1  ;;  %v13128_v48 = vmul.f32 %v13065_v55, %v13098_v42  ;;  %v7510_v20 = vsel %vm5644_vm3, %v7507_v7, %v7509_v25 }
 0x4e4   : > { %v7154_v46 = vadd.f32 %v7072_v30, %v6938_v18  ;;  %v6271_v34 = vadd.f32 %v6190_v62, %v6023_v38  ;;  %v6638_v17 = vsel %vm6147_vm5, %v6635_v14, %v6637_v41  ;;  %v7073_v60 = vrot.slane %v6985_v11, 2 }
 0x4e5   : > { %v6423_v8 = vsel %vm2633_vm4, %v6420_v50, %v6422_v4  ;;  %v7290_v63 = vrot.slane %v13128_v48, 3  ;;  %v13138_v16 = vmul.f32 %v12464_v3, %v13098_v42  ;;  %v6856_v52 = vsel %vm503_vm2, %v6853_v12, %v6855_v40  ;;  %v13150_v50 = vld [vmem:[%s13910_s7] ss:$0 sm:$0xff]  ;;  %v13220_v48 = vld [vmem:[%s13910_s7 + $0x8] ss:$0 sm:$0xff] }
 0x4e6   : > { %v7373_v10 = vadd.f32 %v7289_v56, %v7154_v46  ;;  %v6504_v28 = vadd.f32 %v6423_v8, %v6271_v34  ;;  %v13143_v37 = vunpack.c.h.bf16 %v5671_v43  ;;  %v7074_v7 = vsel %vm6147_vm5, %v7071_v26, %v7073_v60  ;;  %v13169_v26 = vld [vmem:[%s13910_s7 + $0x2] ss:$0 sm:$0xff] }
 0x4e7   : > { %v7511_v14 = vrot.slane %v13138_v16, 4  ;;  %v5762_v3 = vmul.f32 %v13150_v50, %v13005_v29  ;;  %v13161_v12 = vmul.f32 %v13157_v61, %v13035_v53  ;;  %v13164_v0 = vunpack.c.l.bf16 %v13140_v33  ;;  %v13273_v16 = vld [vmem:[#allocation5 + $0x78] sm:$0xff] }
 0x4e8   : > { %v7594_v21 = vadd.f32 %v7510_v20, %v7373_v10  ;;  %v6719_v6 = vadd.f32 %v6638_v17, %v6504_v28  ;;  %v13173_v29 = vmul.f32 %v13169_v26, %v12956_v31  ;;  %v7291_v1 = vsel %vm503_vm2, %v7288_v22, %v7290_v63  ;;  %v13193_v22 = vld [vmem:[%s13910_s7 + $0x5] ss:$0 sm:$0xff] }
 0x4e9   : > { %v5943_v32 = vrot.slane %v13161_v12, 1  ;;  %v13179_v36 = vmul.f32 %v12521_v58, %v13143_v37  ;;  %v6550_v30 = vmul.f32 %v13184_v9, %v13040_v57  ;;  %v13197_v58 = vmul.f32 %v13193_v22, %v13040_v57 }
 0x4ea   : > { %v7670_v27 = vsel %vm375_vm1, %v7594_v21, 0.0  ;;  %v6939_v31 = vadd.f32 %v6856_v52, %v6719_v6  ;;  %v6191_v44 = vrot.slane %v13173_v29, 2  ;;  %v6986_v2 = vmul.f32 %v13204_v45, %v13164_v0 }
 0x4eb   : > { %7671 = vadd.xlane.f32.xlu1 %v7670_v27  ;;  %v5944_v47 = vsel %vm2633_vm4, %v5941_v5, %v5943_v32  ;;  %v6424_v56 = vrot.slane %v13179_v36, 1  ;;  %v6639_v43 = vrot.slane %v6550_v30, 2  ;;  %v7512_v19 = vsel %vm5644_vm3, %v7509_v25, %v7511_v14 }
 0x4ec   : > { %v7155_v49 = vadd.f32 %v7074_v7, %v6939_v31  ;;  %v6024_v24 = vadd.f32 %v5944_v47, %v5762_v3  ;;  %v6857_v23 = vrot.slane %v13197_v58, 3  ;;  %v6192_v5 = vsel %vm6147_vm5, %v6189_v13, %v6191_v44 }
 0x4ed   : > { %v6425_v39 = vsel %vm2633_vm4, %v6422_v4, %v6424_v56  ;;  %v7075_v54 = vrot.slane %v6986_v2, 2  ;;  %v7201_v18 = vmul.f32 %v13065_v55, %v13164_v0  ;;  %v6640_v11 = vsel %vm6147_vm5, %v6637_v41, %v6639_v43 }
 0x4ee   : > { %v7374_v38 = vadd.f32 %v7291_v1, %v7155_v49  ;;  %v6272_v62 = vadd.f32 %v6192_v5, %v6024_v24  ;;  %v13224_v25 = vmul.f32 %v13220_v48, %v13164_v0  ;;  %v6858_v13 = vsel %vm503_vm2, %v6855_v40, %v6857_v23 }
 0x4ef   : > { %v7076_v4 = vsel %vm6147_vm5, %v7073_v60, %v7075_v54  ;;  %v7292_v46 = vrot.slane %v7201_v18, 3  ;;  %v5672_v20 = vrot.slane %v13140_v33, 4  ;;  %v5763_v41 = vmul.f32 %v13150_v50, %v13035_v53 }
 0x4f0   : > { %v7595_v34 = vadd.f32 %v7512_v19, %v7374_v38  ;;  %v6505_v17 = vadd.f32 %v6425_v39, %v6272_v62  ;;  %v5851_v8 = vmul.f32 %v13157_v61, %v13100_v15  ;;  %v7513_v10 = vrot.slane %v13224_v25, 4 }
 0x4f1   : > { %v5673_v40 = vsel %vm5644_vm3, %v5670_v35, %v5672_v20  ;;  %v13240_v60 = vunpack.c.h.bf16 %v13140_v33  ;;  %v6102_v28 = vmul.f32 %v13169_v26, %v12999_v59  ;;  %v7293_v7 = vsel %vm503_vm2, %v7290_v63, %v7292_v46  ;;  %v13255_v59 = vld [vmem:[%s13910_s7 + $0x3] ss:$0 sm:$0xff] }
 0x4f2   : > { %v7673_v52 = vsel %vm375_vm1, %v7595_v34, 0.0  ;;  %v6720_v53 = vadd.f32 %v6640_v11, %v6505_v17  ;;  %v13246_v3 = vunpack.c.l.bf16 %v5673_v40  ;;  %v5945_v12 = vrot.slane %v5851_v8, 1 }
 0x4f3   : > { %7674 = vadd.xlane.f32.xlu0 %v7673_v52  ;;  %v6193_v21 = vrot.slane %v6102_v28, 2  ;;  %v6551_v51 = vmul.f32 %v13184_v9, %v13098_v42  ;;  %v6766_v35 = vmul.f32 %v13193_v22, %v13098_v42  ;;  %v6987_v29 = vmul.f32 %v13204_v45, %v13240_v60 }
 0x4f4   : > { %v6940_v6 = vadd.f32 %v6858_v13, %v6720_v53  ;;  %v6333_v63 = vmul.f32 %v13255_v59, %v13246_v3  ;;  %v7202_v1 = vmul.f32 %v13065_v55, %v13240_v60  ;;  %v7514_v36 = vsel %vm5644_vm3, %v7511_v14, %v7513_v10 }
 0x4f5   : > { %v5946_v30 = vsel %vm2633_vm4, %v5943_v32, %v5945_v12  ;;  %v6641_v27 = vrot.slane %v6551_v51, 2  ;;  %v6859_v31 = vrot.slane %v6766_v35, 3  ;;  %v7077_v49 = vrot.slane %v6987_v29, 2 }
 0x4f6   : > { %v7156_v58 = vadd.f32 %v7076_v4, %v6940_v6  ;;  %v6025_v47 = vadd.f32 %v5946_v30, %v5763_v41  ;;  %v6426_v2 = vrot.slane %v6333_v63, 1  ;;  %v6194_v19 = vsel %vm6147_vm5, %v6191_v44, %v6193_v21 }
 0x4f7   : > { %v6642_v24 = vsel %vm6147_vm5, %v6639_v43, %v6641_v27  ;;  %v7294_v5 = vrot.slane %v7202_v1, 3  ;;  %v13271_v39 = vmul.f32 %v13220_v48, %v13240_v60  ;;  %v6860_v38 = vsel %vm503_vm2, %v6857_v23, %v6859_v31 }
 0x4f8   : > { %v7375_v14 = vadd.f32 %v7293_v7, %v7156_v58  ;;  %v6273_v18 = vadd.f32 %v6194_v19, %v6025_v47  ;;  %v6427_v32 = vsel %vm2633_vm4, %v6424_v56, %v6426_v2  ;;  %v7078_v62 = vsel %vm6147_vm5, %v7075_v54, %v7077_v49 }
 0x4f9   : > { %v7295_v11 = vsel %vm503_vm2, %v7292_v46, %v7294_v5  ;;  %v7515_v44 = vrot.slane %v13271_v39, 4  ;;  %v13280_v43 = vunpack.c.h.bf16 %v5673_v40  ;;  %v5852_v4 = vmul.f32 %v13157_v61, %v13143_v37 }
 0x4fa   : > { %v7596_v25 = vadd.f32 %v7514_v36, %v7375_v14  ;;  %v6506_v13 = vadd.f32 %v6427_v32, %v6273_v18  ;;  %v13285_v34 = vunpack.c.l.bf16 %v13273_v16  ;;  %v5764_v56 = vmul.f32 %v13150_v50, %v13100_v15 }
 0x4fb   : > { %v6103_v23 = vmul.f32 %v13169_v26, %v13040_v57  ;;  %v6334_v54 = vmul.f32 %v13255_v59, %v13280_v43  ;;  %v6552_v46 = vmul.f32 %v13184_v9, %v13164_v0  ;;  %v5947_v8 = vrot.slane %v5852_v4, 1 }
 0x4fc   : > { %v7676_v17 = vsel %vm375_vm1, %v7596_v25, 0.0  ;;  %v6721_v41 = vadd.f32 %v6642_v24, %v6506_v13  ;;  %v13298_v40 = vmul.f32 %v13193_v22, %v13164_v0  ;;  %v6988_v57 = vmul.f32 %v13204_v45, %v13285_v34 }
 0x4fd   : > { %7677 = vadd.xlane.f32.xlu1 %v7676_v17  ;;  %v6195_v28 = vrot.slane %v6103_v23, 2  ;;  %v6428_v15 = vrot.slane %v6334_v54, 1  ;;  %v6643_v52 = vrot.slane %v6552_v46, 2  ;;  %v5948_v7 = vsel %vm2633_vm4, %v5945_v12, %v5947_v8 }
 0x4fe   : > { %v6941_v53 = vadd.f32 %v6860_v38, %v6721_v41  ;;  %v6861_v51 = vrot.slane %v13298_v40, 3  ;;  %v13306_v35 = vmul.f32 %v13065_v55, %v13285_v34  ;;  %v7516_v6 = vsel %vm5644_vm3, %v7513_v10, %v7515_v44 }
 0x4ff   : > { %v6026_v63 = vadd.f32 %v5948_v7, %v5764_v56  ;;  %v6196_v29 = vsel %vm6147_vm5, %v6193_v21, %v6195_v28  ;;  %v6429_v1 = vsel %vm2633_vm4, %v6426_v2, %v6428_v15  ;;  %v6644_v30 = vsel %vm6147_vm5, %v6641_v27, %v6643_v52 }
 0x500   : > { %v7157_v36 = vadd.f32 %v7078_v62, %v6941_v53  ;;  %v7079_v58 = vrot.slane %v6988_v57, 2  ;;  %v7296_v12 = vrot.slane %v13306_v35, 3  ;;  %v6862_v19 = vsel %vm503_vm2, %v6859_v31, %v6861_v51 }
 0x501   : > { %v6274_v47 = vadd.f32 %v6196_v29, %v6026_v63  ;;  %v13318_v24 = vmul.f32 %v13220_v48, %v13285_v34  ;;  %v5674_v10 = vrot.slane %v13273_v16, 4  ;;  %v5765_v2 = vmul.f32 %v13150_v50, %v13143_v37 }
 0x502   : > { %v7376_v14 = vadd.f32 %v7295_v11, %v7157_v36  ;;  %v7080_v21 = vsel %vm6147_vm5, %v7077_v49, %v7079_v58  ;;  %v5853_v27 = vmul.f32 %v13157_v61, %v13246_v3  ;;  %v7297_v32 = vsel %vm503_vm2, %v7294_v5, %v7296_v12  ;;  %v5624_v36 = vld [vmem:[#allocation5 + $0x80] sm:$0xff] }
 0x503   : > { %v6507_v18 = vadd.f32 %v6429_v1, %v6274_v47  ;;  %v5675_v31 = vsel %vm5644_vm3, %v5672_v20, %v5674_v10  ;;  %v13333_v38 = vunpack.c.h.bf16 %v13273_v16  ;;  %v6104_v37 = vmul.f32 %v13169_v26, %v13098_v42 }
 0x504   : > { %v7597_v62 = vadd.f32 %v7516_v6, %v7376_v14  ;;  %v13335_v49 = vunpack.c.l.bf16 %v5675_v31  ;;  %v5949_v11 = vrot.slane %v5853_v27, 1  ;;  %v7517_v13 = vrot.slane %v13318_v24, 4 }
 0x505   : > { %v6722_v25 = vadd.f32 %v6644_v30, %v6507_v18  ;;  %v6553_v5 = vmul.f32 %v13184_v9, %v13240_v60  ;;  %v6768_v33 = vmul.f32 %v13193_v22, %v13240_v60  ;;  %v6197_v56 = vrot.slane %v6104_v37, 2 }
 0x506   : > { %v7679_v20 = vsel %vm375_vm1, %v7597_v62, 0.0  ;;  %v5950_v4 = vsel %vm2633_vm4, %v5947_v8, %v5949_v11  ;;  %v6335_v23 = vmul.f32 %v13255_v59, %v13335_v49  ;;  %v6989_v57 = vmul.f32 %v13204_v45, %v13333_v38 }
 0x507   : > { %7680 = vadd.xlane.f32.xlu0 %v7679_v20  ;;  %v6942_v54 = vadd.f32 %v6862_v19, %v6722_v25  ;;  %v6027_v42 = vadd.f32 %v5950_v4, %v5765_v2  ;;  %v6645_v46 = vrot.slane %v6553_v5, 2  ;;  %v6863_v17 = vrot.slane %v6768_v33, 3 }
 0x508   : > { %v6198_v41 = vsel %vm6147_vm5, %v6195_v28, %v6197_v56  ;;  %v6430_v40 = vrot.slane %v6335_v23, 1  ;;  %v13353_v53 = vmul.f32 %v13065_v55, %v13333_v38  ;;  %v7518_v7 = vsel %vm5644_vm3, %v7515_v44, %v7517_v13 }
 0x509   : > { %v7158_v8 = vadd.f32 %v7080_v21, %v6942_v54  ;;  %v6275_v35 = vadd.f32 %v6198_v41, %v6027_v42  ;;  %v6646_v6 = vsel %vm6147_vm5, %v6643_v52, %v6645_v46  ;;  %v7081_v29 = vrot.slane %v6989_v57, 2 }
 0x50a   : > { %v6431_v63 = vsel %vm2633_vm4, %v6428_v15, %v6430_v40  ;;  %v7298_v28 = vrot.slane %v13353_v53, 3  ;;  %v13363_v1 = vmul.f32 %v13220_v48, %v13333_v38  ;;  %v6864_v19 = vsel %vm503_vm2, %v6861_v51, %v6863_v17 }
 0x50b   : > { %v7377_v30 = vadd.f32 %v7297_v32, %v7158_v8  ;;  %v6508_v47 = vadd.f32 %v6431_v63, %v6275_v35  ;;  %v13366_v39 = vunpack.c.h.bf16 %v5675_v31  ;;  %v7082_v44 = vsel %vm6147_vm5, %v7079_v58, %v7081_v29 }
 0x50c   : > { %v7519_v52 = vrot.slane %v13363_v1, 4  ;;  %v5766_v15 = vmul.f32 %v13150_v50, %v13246_v3  ;;  %v5854_v24 = vmul.f32 %v13157_v61, %v13280_v43  ;;  %v13374_v2 = vunpack.c.l.bf16 %v5624_v36 }
 0x50d   : > { %v7598_v14 = vadd.f32 %v7518_v7, %v7377_v30  ;;  %v6723_v21 = vadd.f32 %v6646_v6, %v6508_v47  ;;  %v6105_v27 = vmul.f32 %v13169_v26, %v13164_v0  ;;  %v7299_v51 = vsel %vm503_vm2, %v7296_v12, %v7298_v28 }
 0x50e   : > { %v5951_v18 = vrot.slane %v5854_v24, 1  ;;  %v13381_v58 = vmul.f32 %v13255_v59, %v13366_v39  ;;  %v6554_v3 = vmul.f32 %v13184_v9, %v13285_v34  ;;  %v6769_v37 = vmul.f32 %v13193_v22, %v13285_v34 }
 0x50f   : > { %v7682_v32 = vsel %vm375_vm1, %v7598_v14, 0.0  ;;  %v6943_v31 = vadd.f32 %v6864_v19, %v6723_v21  ;;  %v6199_v62 = vrot.slane %v6105_v27, 2  ;;  %v6990_v5 = vmul.f32 %v13204_v45, %v13374_v2 }
 0x510   : > { %7683 = vadd.xlane.f32.xlu1 %v7682_v32  ;;  %v5952_v0 = vsel %vm2633_vm4, %v5949_v11, %v5951_v18  ;;  %v6432_v12 = vrot.slane %v13381_v58, 1  ;;  %v6647_v25 = vrot.slane %v6554_v3, 2  ;;  %v7520_v20 = vsel %vm5644_vm3, %v7517_v13, %v7519_v52 }
 0x511   : > { %v7159_v33 = vadd.f32 %v7082_v44, %v6943_v31  ;;  %v6028_v4 = vadd.f32 %v5952_v0, %v5766_v15  ;;  %v6865_v23 = vrot.slane %v6769_v37, 3  ;;  %v6200_v54 = vsel %vm6147_vm5, %v6197_v56, %v6199_v62 }
 0x512   : > { %v6433_v42 = vsel %vm2633_vm4, %v6430_v40, %v6432_v12  ;;  %v7083_v41 = vrot.slane %v6990_v5, 2  ;;  %v7205_v57 = vmul.f32 %v13065_v55, %v13374_v2  ;;  %v6648_v8 = vsel %vm6147_vm5, %v6645_v46, %v6647_v25 }
 0x513   : > { %v7378_v11 = vadd.f32 %v7299_v51, %v7159_v33  ;;  %v6276_v53 = vadd.f32 %v6200_v54, %v6028_v4  ;;  %v13400_v7 = vmul.f32 %v13220_v48, %v13374_v2  ;;  %v6866_v13 = vsel %vm503_vm2, %v6863_v17, %v6865_v23  ;;  %v5810_v54 = vld [vmem:[#allocation5 + $0x88] sm:$0xff] }
 0x514   : > { %v7084_v35 = vsel %vm6147_vm5, %v7081_v29, %v7083_v41  ;;  %v7300_v6 = vrot.slane %v7205_v57, 3  ;;  %v13404_v56 = vrot.slane %v5624_v36, 4  ;;  %v5767_v1 = vmul.f32 %v13150_v50, %v13280_v43 }
 0x515   : > { %v7599_v40 = vadd.f32 %v7520_v20, %v7378_v11  ;;  %v6509_v63 = vadd.f32 %v6433_v42, %v6276_v53  ;;  %v5855_v30 = vmul.f32 %v13157_v61, %v13335_v49  ;;  %v7521_v46 = vrot.slane %v13400_v7, 4 }
 0x516   : > { %v5677_v17 = vsel %vm5644_vm3, %v5674_v10, %v13404_v56  ;;  %v13415_v47 = vunpack.c.h.bf16 %v5624_v36  ;;  %v6106_v29 = vmul.f32 %v13169_v26, %v13240_v60  ;;  %v7301_v43 = vsel %vm503_vm2, %v7298_v28, %v7300_v6 }
 0x517   : > { %v7685_v19 = vsel %vm375_vm1, %v7599_v40, 0.0  ;;  %v6724_v44 = vadd.f32 %v6648_v8, %v6509_v63  ;;  %v13421_v15 = vunpack.c.l.bf16 %v5677_v17  ;;  %v5953_v24 = vrot.slane %v5855_v30, 1 }
 0x518   : > { %7686 = vadd.xlane.f32.xlu0 %v7685_v19  ;;  %v6201_v14 = vrot.slane %v6106_v29, 2  ;;  %v6555_v16 = vmul.f32 %v13184_v9, %v13333_v38  ;;  %v6770_v10 = vmul.f32 %v13193_v22, %v13333_v38  ;;  %v6991_v21 = vmul.f32 %v13204_v45, %v13415_v47 }
 0x519   : > { %v6944_v36 = vadd.f32 %v6866_v13, %v6724_v44  ;;  %v6337_v60 = vmul.f32 %v13255_v59, %v13421_v15  ;;  %v7206_v28 = vmul.f32 %v13065_v55, %v13415_v47  ;;  %v7522_v27 = vsel %vm5644_vm3, %v7519_v52, %v7521_v46 }
 0x51a   : > { %v5954_v51 = vsel %vm2633_vm4, %v5951_v18, %v5953_v24  ;;  %v6649_v58 = vrot.slane %v6555_v16, 2  ;;  %v6867_v3 = vrot.slane %v6770_v10, 3  ;;  %v7085_v0 = vrot.slane %v6991_v21, 2 }
 0x51b   : > { %v7160_v32 = vadd.f32 %v7084_v35, %v6944_v36  ;;  %v6029_v31 = vadd.f32 %v5954_v51, %v5767_v1  ;;  %v6434_v37 = vrot.slane %v6337_v60, 1  ;;  %v6202_v5 = vsel %vm6147_vm5, %v6199_v62, %v6201_v14 }
 0x51c   : > { %v6650_v33 = vsel %vm6147_vm5, %v6647_v25, %v6649_v58  ;;  %v7302_v20 = vrot.slane %v7206_v28, 3  ;;  %v13439_v4 = vmul.f32 %v13220_v48, %v13415_v47  ;;  %v6868_v57 = vsel %vm503_vm2, %v6865_v23, %v6867_v3 }
 0x51d   : > { %v7379_v42 = vadd.f32 %v7301_v43, %v7160_v32  ;;  %v6277_v52 = vadd.f32 %v6202_v5, %v6029_v31  ;;  %v6435_v18 = vsel %vm2633_vm4, %v6432_v12, %v6434_v37  ;;  %v7086_v11 = vsel %vm6147_vm5, %v7083_v41, %v7085_v0 }
 0x51e   : > { %v7303_v53 = vsel %vm503_vm2, %v7300_v6, %v7302_v20  ;;  %v7523_v62 = vrot.slane %v13439_v4, 4  ;;  %v13446_v8 = vunpack.c.h.bf16 %v5677_v17  ;;  %v5856_v13 = vmul.f32 %v13157_v61, %v13366_v39 }
 0x51f   : > { %v7600_v25 = vadd.f32 %v7522_v27, %v7379_v42  ;;  %v6510_v7 = vadd.f32 %v6435_v18, %v6277_v52  ;;  %v13450_v35 = vunpack.c.l.bf16 %v5810_v54  ;;  %v5768_v12 = vmul.f32 %v13150_v50, %v13335_v49 }
 0x520   : > { %v6107_v23 = vmul.f32 %v13169_v26, %v13285_v34  ;;  %v6338_v41 = vmul.f32 %v13255_v59, %v13446_v8  ;;  %v6556_v6 = vmul.f32 %v13184_v9, %v13374_v2  ;;  %v5955_v1 = vrot.slane %v5856_v13, 1 }
 0x521   : > { %v7688_v40 = vsel %vm375_vm1, %v7600_v25, 0.0  ;;  %v6725_v63 = vadd.f32 %v6650_v33, %v6510_v7  ;;  %v13463_v30 = vmul.f32 %v13193_v22, %v13374_v2  ;;  %v6992_v34 = vmul.f32 %v13204_v45, %v13450_v35 }
 0x522   : > { %7689 = vadd.xlane.f32.xlu1 %v7688_v40  ;;  %v6203_v17 = vrot.slane %v6107_v23, 2  ;;  %v6436_v49 = vrot.slane %v6338_v41, 1  ;;  %v6651_v29 = vrot.slane %v6556_v6, 2  ;;  %v5956_v44 = vsel %vm2633_vm4, %v5953_v24, %v5955_v1 }
 0x523   : > { %v6945_v19 = vadd.f32 %v6868_v57, %v6725_v63  ;;  %v6869_v43 = vrot.slane %v13463_v30, 3  ;;  %v7207_v16 = vmul.f32 %v13065_v55, %v13450_v35  ;;  %v7524_v10 = vsel %vm5644_vm3, %v7521_v46, %v7523_v62 }
 0x524   : > { %v6030_v36 = vadd.f32 %v5956_v44, %v5768_v12  ;;  %v6204_v60 = vsel %vm6147_vm5, %v6201_v14, %v6203_v17  ;;  %v6437_v21 = vsel %vm2633_vm4, %v6434_v37, %v6436_v49  ;;  %v6652_v27 = vsel %vm6147_vm5, %v6649_v58, %v6651_v29 }
 0x525   : > { %v7161_v28 = vadd.f32 %v7086_v11, %v6945_v19  ;;  %v7087_v51 = vrot.slane %v6992_v34, 2  ;;  %v7304_v32 = vrot.slane %v7207_v16, 3  ;;  %v6870_v31 = vsel %vm503_vm2, %v6867_v3, %v6869_v43 }
 0x526   : > { %v6278_v24 = vadd.f32 %v6204_v60, %v6030_v36  ;;  %v13480_v5 = vmul.f32 %v13220_v48, %v13450_v35  ;;  %v13482_v33 = vrot.slane %v5810_v54, 4  ;;  %v5769_v14 = vmul.f32 %v13150_v50, %v13366_v39 }
 0x527   : > { %v7380_v46 = vadd.f32 %v7303_v53, %v7161_v28  ;;  %v7088_v42 = vsel %vm6147_vm5, %v7085_v0, %v7087_v51  ;;  %v5857_v58 = vmul.f32 %v13157_v61, %v13421_v15  ;;  %v7305_v52 = vsel %vm503_vm2, %v7302_v20, %v7304_v32 }
 0x528   : > { %v6511_v37 = vadd.f32 %v6437_v21, %v6278_v24  ;;  %v13493_v3 = vsel %vm5644_vm3, %v13404_v56, %v13482_v33  ;;  %v13495_v18 = vunpack.c.h.bf16 %v5810_v54  ;;  %v6108_v39 = vmul.f32 %v13169_v26, %v13333_v38 }
 0x529   : > { %v7601_v57 = vadd.f32 %v7524_v10, %v7380_v46  ;;  %v5816_v11 = vunpack.c.l.bf16 %v13493_v3  ;;  %v5957_v0 = vrot.slane %v5857_v58, 1  ;;  %v7525_v25 = vrot.slane %v13480_v5, 4 }
 0x52a   : > { %v6726_v53 = vadd.f32 %v6652_v27, %v6511_v37  ;;  %v13503_v20 = vmul.f32 %v13184_v9, %v13415_v47  ;;  %v13507_v7 = vmul.f32 %v13193_v22, %v13415_v47  ;;  %v6205_v12 = vrot.slane %v6108_v39, 2 }
 0x52b   : > { %v7691_v54 = vsel %vm375_vm1, %v7601_v57, 0.0  ;;  %v5958_v13 = vsel %vm2633_vm4, %v5955_v1, %v5957_v0  ;;  %v6339_v38 = vmul.f32 %v13255_v59, %v5816_v11  ;;  %v6993_v34 = vmul.f32 %v13204_v45, %v13495_v18 }
 0x52c   : > { %7692 = vadd.xlane.f32.xlu0 %v7691_v54  ;;  %v6946_v23 = vadd.f32 %v6870_v31, %v6726_v53  ;;  %v6031_v41 = vadd.f32 %v5958_v13, %v5769_v14  ;;  %v6653_v6 = vrot.slane %v13503_v20, 2  ;;  %v6871_v40 = vrot.slane %v13507_v7, 3  ;;  %v13535_v31 = vld [vmem:[#allocation5 + $0x90] sm:$0xff] }
 0x52d   : > { %v6206_v63 = vsel %vm6147_vm5, %v6203_v17, %v6205_v12  ;;  %v6438_v30 = vrot.slane %v6339_v38, 1  ;;  %v13521_v1 = vmul.f32 %v13065_v55, %v13495_v18  ;;  %v7526_v44 = vsel %vm5644_vm3, %v7523_v62, %v7525_v25 }
 0x52e   : > { %v7162_v19 = vadd.f32 %v7088_v42, %v6946_v23  ;;  %v6279_v16 = vadd.f32 %v6206_v63, %v6031_v41  ;;  %v6654_v10 = vsel %vm6147_vm5, %v6651_v29, %v6653_v6  ;;  %v7089_v60 = vrot.slane %v6993_v34, 2 }
 0x52f   : > { %v6439_v36 = vsel %vm2633_vm4, %v6436_v49, %v6438_v30  ;;  %v7306_v17 = vrot.slane %v13521_v1, 3  ;;  %v13531_v21 = vmul.f32 %v13220_v48, %v13495_v18  ;;  %v6872_v24 = vsel %vm503_vm2, %v6869_v43, %v6871_v40 }
 0x530   : > { %v7381_v28 = vadd.f32 %v7305_v52, %v7162_v19  ;;  %v6512_v27 = vadd.f32 %v6439_v36, %v6279_v16  ;;  %v5817_v4 = vunpack.c.h.bf16 %v13493_v3  ;;  %v7090_v62 = vsel %vm6147_vm5, %v7087_v51, %v7089_v60 }
 0x531   : > { %v7307_v49 = vsel %vm503_vm2, %v7304_v32, %v7306_v17  ;;  %v5770_v29 = vmul.f32 %v13150_v50, %v13421_v15  ;;  %v5858_v5 = vmul.f32 %v13157_v61, %v13446_v8  ;;  %v7527_v43 = vrot.slane %v13531_v21, 4  ;;  %v13583_v21 = vpop.xlane.xlu0 %7611 }
 0x532   : > { %v7602_v46 = vadd.f32 %v7526_v44, %v7381_v28  ;;  %v6727_v42 = vadd.f32 %v6654_v10, %v6512_v27  ;;  %v13548_v14 = vmul.f32 %v13169_v26, %v13374_v2  ;;  %v6291_v51 = vrot.slane %v13535_v31, 4 }
 0x533   : > { %v5959_v58 = vrot.slane %v5858_v5, 1  ;;  %v13554_v32 = vmul.f32 %v13255_v59, %v5817_v4  ;;  %v13557_v15 = vunpack.c.l.bf16 %v13535_v31  ;;  %v6558_v2 = vmul.f32 %v13184_v9, %v13450_v35 }
 0x534   : > { %v7694_v37 = vsel %vm375_vm1, %v7602_v46, 0.0  ;;  %v6947_v52 = vadd.f32 %v6872_v24, %v6727_v42  ;;  %v6207_v57 = vrot.slane %v13548_v14, 2  ;;  %v6773_v20 = vmul.f32 %v13193_v22, %v13450_v35 }
 0x535   : > { %7695 = vadd.xlane.f32.xlu1 %v7694_v37  ;;  %v5960_v39 = vsel %vm2633_vm4, %v5957_v0, %v5959_v58  ;;  %v6440_v53 = vrot.slane %v13554_v32, 1  ;;  %v6994_v7 = vmul.f32 %v13204_v45, %v13557_v15  ;;  %v6655_v23 = vrot.slane %v6558_v2, 2 }
 0x536   : > { %v7163_v54 = vadd.f32 %v7090_v62, %v6947_v52  ;;  %v6032_v13 = vadd.f32 %v5960_v39, %v5770_v29  ;;  %v6208_v38 = vsel %vm6147_vm5, %v6205_v12, %v6207_v57  ;;  %v6873_v63 = vrot.slane %v6773_v20, 3 }
 0x537   : > { %v6441_v41 = vsel %vm2633_vm4, %v6438_v30, %v6440_v53  ;;  %v7091_v34 = vrot.slane %v6994_v7, 2  ;;  %v13573_v0 = vmul.f32 %v13065_v55, %v13557_v15  ;;  %v13577_v16 = vmul.f32 %v13220_v48, %v13557_v15 }
 0x538   : > { %v7382_v19 = vadd.f32 %v7307_v49, %v7163_v54  ;;  %v6280_v44 = vadd.f32 %v6208_v38, %v6032_v13  ;;  %v7528_v10 = vsel %vm5644_vm3, %v7525_v25, %v7527_v43  ;;  %v6656_v36 = vsel %vm6147_vm5, %v6653_v6, %v6655_v23 }
 0x539   : > { %v6874_v12 = vsel %vm503_vm2, %v6871_v40, %v6873_v63  ;;  %v7092_v30 = vsel %vm6147_vm5, %v7089_v60, %v7091_v34  ;;  %v7308_v24 = vrot.slane %v13573_v0, 3  ;;  %v5859_v62 = vmul.f32 %v13157_v61, %v5816_v11 }
 0x53a   : > { %v7603_v28 = vadd.f32 %v7528_v10, %v7382_v19  ;;  %v6513_v27 = vadd.f32 %v6441_v41, %v6280_v44  ;;  %v5771_v49 = vmul.f32 %v13150_v50, %v13446_v8  ;;  %v13593_v25 = vmul.f32 %v13169_v26, %v13415_v47  ;;  %v13634_v19 = vld [vmem:[#allocation5 + $0x88] sm:$0x7f] }
 0x53b   : > { %v6292_v6 = vsel %vm5644_vm3, %v13482_v33, %v6291_v51  ;;  %v13600_v40 = vunpack.c.h.bf16 %v13535_v31  ;;  %v7529_v11 = vrot.slane %v13577_v16, 4  ;;  %v5961_v5 = vrot.slane %v5859_v62, 1 }
 0x53c   : > { %v7697_v60 = vsel %vm375_vm1, %v7603_v28, 0.0  ;;  %v6728_v29 = vadd.f32 %v6656_v36, %v6513_v27  ;;  %v6209_v8 = vrot.slane %v13593_v25, 2  ;;  %v6298_v46 = vunpack.c.l.bf16 %v6292_v6 }
 0x53d   : > { %7698 = vadd.xlane.f32.xlu0 %v7697_v60  ;;  %v13607_v47 = vmul.f32 %v13184_v9, %v13495_v18  ;;  %v13611_v42 = vmul.f32 %v13193_v22, %v13495_v18  ;;  %v5962_v32 = vsel %vm2633_vm4, %v5959_v58, %v5961_v5  ;;  %v13616_v37 = vmul.f32 %v13204_v45, %v13600_v40  ;;  %v13629_v58 = vpop.xlane.xlu0 %7617 }
 0x53e   : > { %v6948_v14 = vadd.f32 %v6874_v12, %v6728_v29  ;;  %v13620_v52 = vmul.f32 %v13065_v55, %v13600_v40  ;;  %v7309_v2 = vsel %vm503_vm2, %v7306_v17, %v7308_v24  ;;  %v6033_v39 = vadd.f32 %v5962_v32, %v5771_v49 }
 0x53f   : > { %v6341_v20 = vmul.f32 %v13255_v59, %v6298_v46  ;;  %v6657_v7 = vrot.slane %v13607_v47, 2  ;;  %v7530_v13 = vsel %vm5644_vm3, %v7527_v43, %v7529_v11  ;;  %v6875_v38 = vrot.slane %v13611_v42, 3 }
 0x540   : > { %v7164_v54 = vadd.f32 %v7092_v30, %v6948_v14  ;;  %v7093_v41 = vrot.slane %v13616_v37, 2  ;;  %v6210_v1 = vsel %vm6147_vm5, %v6207_v57, %v6209_v8  ;;  %v7310_v44 = vrot.slane %v13620_v52, 3  ;;  %v13646_v30 = vpop.xlane.xlu1 %7614 }
 0x541   : > { %v6442_v17 = vrot.slane %v6341_v20, 1  ;;  %v13642_v16 = vmul.f32 %v13220_v48, %v13600_v40  ;;  %v6281_v36 = vadd.f32 %v6210_v1, %v6033_v39  ;;  %v6658_v43 = vsel %vm6147_vm5, %v6655_v23, %v6657_v7  ;;  %v13672_v46 = vpop.xlane.xlu0 %7620 }
 0x542   : > { %v7383_v10 = vadd.f32 %v7309_v2, %v7164_v54  ;;  %v6876_v12 = vsel %vm503_vm2, %v6873_v63, %v6875_v38  ;;  %v7094_v57 = vsel %vm6147_vm5, %v7091_v34, %v7093_v41  ;;  %v5678_v27 = vrot.slane %v13634_v19, 4 }
 0x543   : > { %v6443_v28 = vsel %vm2633_vm4, %v6440_v53, %v6442_v17  ;;  %v13656_v62 = vmul.f32 %v13157_v61, %v5817_v4  ;;  %v13660_v23 = vmul.f32 %v13169_v26, %v13450_v35  ;;  %v6299_v63 = vunpack.c.h.bf16 %v6292_v6  ;;  %v6953_v4 = vld [vmem:[#allocation5 + $0x98] sm:$0xff] }
 0x544   : > { %v7604_v49 = vadd.f32 %v7530_v13, %v7383_v10  ;;  %v6514_v60 = vadd.f32 %v6443_v28, %v6281_v36  ;;  %v7531_v53 = vrot.slane %v13642_v16, 4  ;;  %v5679_v34 = vsel %vm5644_vm3, %v13404_v56, %v5678_v27 }
 0x545   : > { %v5963_v29 = vrot.slane %v13656_v62, 1  ;;  %v13670_v3 = vmul.f32 %v13184_v9, %v13557_v15  ;;  %v5730_v6 = vunpack.c.l.bf16 %v5679_v34  ;;  %v6211_v42 = vrot.slane %v13660_v23, 2 }
 0x546   : > { %v7700_v35 = vsel %vm375_vm1, %v7604_v49, 0.0  ;;  %v6729_v47 = vadd.f32 %v6658_v43, %v6514_v60  ;;  %v13680_v14 = vmul.f32 %v13255_v59, %v6299_v63  ;;  %v13685_v2 = vmul.f32 %v13193_v22, %v13557_v15  ;;  %v13714_v49 = vpop.xlane.xlu0 %7626 }
 0x547   : > { %7701 = vadd.xlane.f32.xlu1 %v7700_v35  ;;  %v5964_v56 = vsel %vm2633_vm4, %v5961_v5, %v5963_v29  ;;  %v6659_v32 = vrot.slane %v13670_v3, 2  ;;  %v7311_v20 = vsel %vm503_vm2, %v7308_v24, %v7310_v44  ;;  %v5772_v54 = vmul.f32 %v13150_v50, %v5730_v6  ;;  %v13693_v5 = vpop.xlane.xlu1 %7623 }
 0x548   : > { %v6949_v39 = vadd.f32 %v6876_v12, %v6729_v47  ;;  %v6954_v13 = vunpack.c.l.bf16 %v6953_v4  ;;  %v7532_v1 = vsel %vm5644_vm3, %v7529_v11, %v7531_v53  ;;  %v6444_v16 = vrot.slane %v13680_v14, 1 }
 0x549   : > { %v6877_v10 = vrot.slane %v13685_v2, 3  ;;  %v5731_v15 = vunpack.c.h.bf16 %v5679_v34  ;;  %v6034_v43 = vadd.f32 %v5964_v56, %v5772_v54  ;;  %v6212_v24 = vsel %vm6147_vm5, %v6209_v8, %v6211_v42 }
 0x54a   : > { %v7165_v36 = vadd.f32 %v7094_v57, %v6949_v39  ;;  %v6996_v12 = vmul.f32 %v13204_v45, %v6954_v13  ;;  %v13700_v0 = vmul.f32 %v13065_v55, %v6954_v13  ;;  %v6445_v11 = vsel %vm2633_vm4, %v6442_v17, %v6444_v16 }
 0x54b   : > { %v6660_v28 = vsel %vm6147_vm5, %v6657_v7, %v6659_v32  ;;  %v13712_v57 = vmul.f32 %v13220_v48, %v6954_v13  ;;  %v6282_v55 = vadd.f32 %v6212_v24, %v6034_v43  ;;  %v6878_v63 = vsel %vm503_vm2, %v6875_v38, %v6877_v10  ;;  %v13727_v14 = vpop.xlane.xlu1 %7629  ;;  %v13742_v13 = vpop.xlane.xlu0 %7632  ;;  %v6733_v43 = vld [vmem:[#allocation5 + $0x98] sm:$0x1] }
 0x54c   : > { %v7384_v60 = vadd.f32 %v7311_v20, %v7165_v36  ;;  %v7095_v25 = vrot.slane %v6996_v12, 2  ;;  %v7312_v8 = vrot.slane %v13700_v0, 3  ;;  %v5818_v17 = vunpack.c.l.bf16 %v13482_v33  ;;  %v7169_v12 = vld [vmem:[#allocation5 + $0xa0] sm:$0x1] }
 0x54d   : > { %v6112_v34 = vmul.f32 %v13169_v26, %v13495_v18  ;;  %v6300_v7 = vunpack.c.l.bf16 %v6291_v51  ;;  %v6515_v47 = vadd.f32 %v6445_v11, %v6282_v55  ;;  %v7533_v6 = vrot.slane %v13712_v57, 4 }
 0x54e   : > { %v7605_v35 = vadd.f32 %v7532_v1, %v7384_v60  ;;  %v5773_v56 = vmul.f32 %v13150_v50, %v5731_v15  ;;  %v7096_v38 = vsel %vm6147_vm5, %v7093_v41, %v7095_v25  ;;  %v5861_v33 = vmul.f32 %v13157_v61, %v5818_v17 }
 0x54f   : > { %v6213_v39 = vrot.slane %v6112_v34, 2  ;;  %v6343_v26 = vmul.f32 %v13255_v59, %v6300_v7  ;;  %v6730_v31 = vadd.f32 %v6660_v28, %v6515_v47  ;;  %v6561_v51 = vmul.f32 %v13184_v9, %v13600_v40  ;;  %v7636_v62 = vpop.xlane.xlu1 %7635 }
 0x550   : > { %v7703_v18 = vsel %vm375_vm1, %v7605_v35, 0.0  ;;  %v6776_v20 = vmul.f32 %v13193_v22, %v13600_v40  ;;  %v7313_v37 = vsel %vm503_vm2, %v7310_v44, %v7312_v8  ;;  %v5965_v41 = vrot.slane %v5861_v33, 1  ;;  %v9102_v44 = vld [vmem:[%s13910_s7 + $0x7] ss:$0 sm:$0xff]  ;;  %v13771_v35 = vld [vmem:[#allocation6] ss:$0 sm:$0xff] }
 0x551   : > { %7704 = vadd.xlane.f32.xlu0 %v7703_v18  ;;  %v6446_v54 = vrot.slane %v6343_v26, 1  ;;  %v6955_v61 = vunpack.c.h.bf16 %v6953_v4  ;;  %v6950_v59 = vadd.f32 %v6878_v63, %v6730_v31  ;;  %v7534_v1 = vsel %vm5644_vm3, %v7531_v53, %v7533_v6  ;;  %v7639_v63 = vpop.xlane.xlu0 %7638 }
 0x552   : > { %v6661_v15 = vrot.slane %v6561_v51, 2  ;;  %v5732_v9 = vunpack.c.l.bf16 %v5678_v27  ;;  %v5966_v40 = vsel %vm2633_vm4, %v5963_v29, %v5965_v41  ;;  %v6879_v36 = vrot.slane %v6776_v20, 3 }
 0x553   : > { %v13751_v52 = vmul.f32 %v13204_v45, %v6955_v61  ;;  %v7212_v4 = vmul.f32 %v9102_v44, %v6955_v61  ;;  %v7166_v53 = vadd.f32 %v7096_v38, %v6950_v59  ;;  %v6035_v0 = vadd.f32 %v5966_v40, %v5773_v56  ;;  %v7642_v26 = vpop.xlane.xlu1 %7641 }
 0x554   : > { %v6214_v19 = vsel %vm6147_vm5, %v6211_v42, %v6213_v39  ;;  %v6447_v27 = vsel %vm2633_vm4, %v6444_v16, %v6446_v54  ;;  %v6662_v45 = vsel %vm6147_vm5, %v6659_v32, %v6661_v15  ;;  %v7432_v24 = vmul.f32 %v13220_v48, %v6955_v61 }
 0x555   : > { %v7097_v29 = vrot.slane %v13751_v52, 2  ;;  %v5774_v11 = vmul.f32 %v13150_v50, %v5732_v9  ;;  %v7385_v28 = vadd.f32 %v7313_v37, %v7166_v53  ;;  %v6283_v57 = vadd.f32 %v6214_v19, %v6035_v0  ;;  %v7645_v59 = vpop.xlane.xlu0 %7644 }
 0x556   : > { %v6734_v60 = vunpack.c.l.bf16 %v6733_v43  ;;  %v7170_v55 = vunpack.c.l.bf16 %v7169_v12  ;;  %v6880_v23 = vsel %vm503_vm2, %v6877_v10, %v6879_v36  ;;  %v7314_v16 = vrot.slane %v7212_v4, 3 }
 0x557   : > { %v7098_v42 = vsel %vm6147_vm5, %v7095_v25, %v7097_v29  ;;  %v6036_v3 = vadd.f32 %v5965_v41, %v5774_v11  ;;  %v7606_v32 = vadd.f32 %v7534_v1, %v7385_v28  ;;  %v6516_v17 = vadd.f32 %v6447_v27, %v6283_v57  ;;  %v7648_v4 = vpop.xlane.xlu1 %7647 }
 0x558   : > { %v6777_v34 = vmul.f32 %v13193_v22, %v6734_v60  ;;  %v7213_v7 = vmul.f32 %v9102_v44, %v7170_v55  ;;  %v7315_v50 = vsel %vm503_vm2, %v7312_v8, %v7314_v16  ;;  %v7535_v47 = vrot.slane %v7432_v24, 4 }
 0x559   : > { %v6284_v56 = vadd.f32 %v6213_v39, %v6036_v3  ;;  %v7433_v2 = vmul.f32 %v13220_v48, %v7170_v55  ;;  %v7706_v10 = vsel %vm375_vm1, %v7606_v32, 0.0  ;;  %v6731_v38 = vadd.f32 %v6662_v45, %v6516_v17  ;;  %v7651_v27 = vpop.xlane.xlu0 %7650 }
 0x55a   : > { %v6881_v25 = vrot.slane %v6777_v34, 3  ;;  %v7316_v33 = vrot.slane %v7213_v7, 3  ;;  %7707 = vadd.xlane.f32.xlu1 %v7706_v10  ;;  %v7536_v18 = vsel %vm5644_vm3, %v7533_v6, %v7535_v47  ;;  %v7723_v51 = vadd.f32 %v13771_v35, %v13583_v21 }
 0x55b   : > { %v6517_v31 = vadd.f32 %v6446_v54, %v6284_v56  ;;  %v7537_v22 = vrot.slane %v7433_v2, 4  ;;  %v6951_v20 = vadd.f32 %v6880_v23, %v6731_v38  ;;  %vm7712_vm4 = vcmask 259072   ;;  %v7654_v57 = vpop.xlane.xlu1 %7653 }
 0x55c   : > { %v6882_v8 = vsel %vm503_vm2, %v6879_v36, %v6881_v25  ;;  %v7317_v39 = vsel %vm503_vm2, %v7314_v16, %v7316_v33  ;;  %v8397_v41 = vmul.f32 -1.442695, %v7723_v51  ;;  %v7725_v61 = vadd.f32 %v13771_v35, %v13629_v58 }
 0x55d   : > { %v6732_v48 = vadd.f32 %v6661_v15, %v6517_v31  ;;  %v7538_v37 = vsel %vm5644_vm3, %v7535_v47, %v7537_v22  ;;  %v7167_v6 = vadd.f32 %v7098_v42, %v6951_v20  ;;  %v7724_v54 = vadd.f32 %v13771_v35, %v13646_v30  ;;  %v7657_v3 = vpop.xlane.xlu0 %7656 }
 0x55e   : > { %v7726_v21 = vadd.f32 %v13771_v35, %v13672_v46  ;;  %v7727_v1 = vadd.f32 %v13771_v35, %v13693_v5  ;;  %8925 = vpow2.f32 %v8397_v41  ;;  %v8399_v15 = vmul.f32 -1.442695, %v7725_v61 }
 0x55f   : > { %v6952_v9 = vadd.f32 %v6882_v8, %v6732_v48  ;;  %v7728_v40 = vadd.f32 %v13771_v35, %v13714_v49  ;;  %v7386_v36 = vadd.f32 %v7315_v50, %v7167_v6  ;;  %v8398_v52 = vmul.f32 -1.442695, %v7724_v54  ;;  %v7660_v7 = vpop.xlane.xlu1 %7659 }
 0x560   : > { %v8400_v58 = vmul.f32 -1.442695, %v7726_v21  ;;  %v8401_v44 = vmul.f32 -1.442695, %v7727_v1  ;;  %8927 = vpow2.f32 %v8399_v15  ;;  %v7729_v46 = vadd.f32 %v13771_v35, %v13727_v14 }
 0x561   : > { %v7168_v43 = vadd.f32 %v7097_v29, %v6952_v9  ;;  %v8402_v30 = vmul.f32 -1.442695, %v7728_v40  ;;  %v7607_v12 = vadd.f32 %v7536_v18, %v7386_v36  ;;  %8929 = vpow2.f32 %v8398_v52  ;;  %v7663_v25 = vpop.xlane.xlu0 %7662 }
 0x562   : > { %v7730_v5 = vadd.f32 %v13771_v35, %v13742_v13  ;;  %v7731_v53 = vadd.f32 %v13771_v35, %v7636_v62  ;;  %8931 = vpow2.f32 %v8400_v58  ;;  %v8403_v49 = vmul.f32 -1.442695, %v7729_v46 }
 0x563   : > { %v7387_v0 = vadd.f32 %v7317_v39, %v7168_v43  ;;  %v7732_v19 = vadd.f32 %v13771_v35, %v7639_v63  ;;  %v7709_v45 = vsel %vm375_vm1, %v7607_v12, 0.0  ;;  %8933 = vpow2.f32 %v8401_v44 }
 0x564   : > { %v8404_v29 = vmul.f32 -1.442695, %v7730_v5  ;;  %v8405_v24 = vmul.f32 -1.442695, %v7731_v53  ;;  %7710 = vadd.xlane.f32.xlu0 %v7709_v45  ;;  %8935 = vpow2.f32 %v8402_v30  ;;  %v7733_v28 = vadd.f32 %v13771_v35, %v7642_v26 }
 0x565   : > { %v7608_v14 = vadd.f32 %v7538_v37, %v7387_v0  ;;  %v8406_v11 = vmul.f32 -1.442695, %v7732_v19  ;;  %8937 = vpow2.f32 %v8403_v49  ;;  %v7734_v13 = vadd.f32 %v13771_v35, %v7645_v59  ;;  %v7666_v39 = vpop.xlane.xlu1 %7665 }
 0x566   : > { %v7735_v62 = vadd.f32 %v13771_v35, %v7648_v4  ;;  %8939 = vpow2.f32 %v8404_v29  ;;  %v8407_v55 = vmul.f32 -1.442695, %v7733_v28  ;;  %v7736_v22 = vadd.f32 %v13771_v35, %v7651_v27 }
 0x567   : > { %v7713_v60 = vsel %vm7712_vm4, %v7608_v14, 0.0  ;;  %8941 = vpow2.f32 %v8405_v24  ;;  %v8408_v23 = vmul.f32 -1.442695, %v7734_v13  ;;  %v7737_v8 = vadd.f32 %v13771_v35, %v7654_v57 }
 0x568   : > { %7714 = vadd.xlane.f32.xlu1 %v7713_v60  ;;  %v8926_v42 = vpop.eup %8925  ;;  %8943 = vpow2.f32 %v8406_v11  ;;  %v8409_v16 = vmul.f32 -1.442695, %v7735_v62  ;;  %v7738_v41 = vadd.f32 %v13771_v35, %v7657_v3  ;;  %v7739_v6 = vadd.f32 %v13771_v35, %v7660_v7 }
 0x569   : > { %v7863_v63 = vadd.f32 1.0, %v8926_v42  ;;  %8945 = vpow2.f32 %v8407_v55  ;;  %vm8038_vm2 = vcmask 7174   ;;  %v8410_v1 = vmul.f32 -1.442695, %v7736_v22 }
 0x56a   : > { %v8928_v32 = vpop.eup %8927  ;;  %8947 = vpow2.f32 %v8408_v23  ;;  %v8411_v36 = vmul.f32 -1.442695, %v7737_v8  ;;  %v7740_v52 = vadd.f32 %v13771_v35, %v7663_v25  ;;  %v8412_v4 = vmul.f32 -1.442695, %v7738_v41 }
 0x56b   : > { %v8930_v17 = vpop.eup %8929  ;;  %8949 = vrcp.f32 %v7863_v63  ;;  %v7865_v34 = vadd.f32 1.0, %v8928_v32  ;;  %v7741_v43 = vadd.f32 %v13771_v35, %v7666_v39  ;;  %v8413_v12 = vmul.f32 -1.442695, %v7739_v6 }
 0x56c   : > { %v8932_v50 = vpop.eup %8931  ;;  %v7864_v47 = vadd.f32 1.0, %v8930_v17  ;;  %8951 = vpow2.f32 %v8409_v16  ;;  %v8414_v24 = vmul.f32 -1.442695, %v7740_v52 }
 0x56d   : > { %v8934_v56 = vpop.eup %8933  ;;  %8953 = vrcp.f32 %v7865_v34  ;;  %v7866_v2 = vadd.f32 1.0, %v8932_v50  ;;  %v8415_v13 = vmul.f32 -1.442695, %v7741_v43 }
 0x56e   : > { %v8936_v10 = vpop.eup %8935  ;;  %8955 = vrcp.f32 %v7864_v47  ;;  %v7867_v38 = vadd.f32 1.0, %v8934_v56 }
 0x56f   : > { %v8938_v33 = vpop.eup %8937  ;;  %8957 = vrcp.f32 %v7866_v2  ;;  %v7868_v26 = vadd.f32 1.0, %v8936_v10  ;;  %v7669_v9 = vpop.xlane.xlu0 %7668 }
 0x570   : > { %v8940_v18 = vpop.eup %8939  ;;  %8959 = vrcp.f32 %v7867_v38  ;;  %v7869_v31 = vadd.f32 1.0, %v8938_v33  ;;  %v7742_v5 = vadd.f32 %v13771_v35, %v7669_v9 }
 0x571   : > { %v8942_v51 = vpop.eup %8941  ;;  %8961 = vrcp.f32 %v7868_v26  ;;  %v7870_v20 = vadd.f32 1.0, %v8940_v18 }
 0x572   : > { %v8944_v48 = vpop.eup %8943  ;;  %8963 = vrcp.f32 %v7869_v31  ;;  %v7871_v37 = vadd.f32 1.0, %v8942_v51  ;;  %v8416_v55 = vmul.f32 -1.442695, %v7742_v5 }
 0x573   : > { %v8946_v61 = vpop.eup %8945  ;;  %8965 = vrcp.f32 %v7870_v20  ;;  %v7872_v59 = vadd.f32 1.0, %v8944_v48 }
 0x574   : > { %v8948_v54 = vpop.eup %8947  ;;  %8967 = vrcp.f32 %v7871_v37  ;;  %v7873_v21 = vadd.f32 1.0, %v8946_v61 }
 0x575   : > { %v8950_v15 = vpop.eup %8949  ;;  %8969 = vrcp.f32 %v7872_v59  ;;  %v7874_v40 = vadd.f32 1.0, %v8948_v54 }
 0x576   : > { %v8952_v58 = vpop.eup %8951  ;;  %v7968_v44 = vmax.f32 %v8950_v15, 0.0001  ;;  %8971 = vrcp.f32 %v7873_v21 }
 0x577   : > { %v8954_v30 = vpop.eup %8953  ;;  %8973 = vrcp.f32 %v7874_v40  ;;  %v7875_v46 = vadd.f32 1.0, %v8952_v58 }
 0x578   : > { %v7672_v53 = vpop.xlane.xlu1 %7671  ;;  %v8956_v0 = vpop.eup %8955  ;;  %v8003_v49 = vmin.f32 %v7968_v44, 0.9999  ;;  %v7970_v19 = vmax.f32 %v8954_v30, 0.0001  ;;  %8975 = vpow2.f32 %v8410_v1 }
 0x579   : > { %v7743_v27 = vadd.f32 %v13771_v35, %v7672_v53  ;;  %v8958_v45 = vpop.eup %8957  ;;  %v7969_v29 = vmax.f32 %v8956_v0, 0.0001  ;;  %8977 = vrcp.f32 %v7875_v46 }
 0x57a   : > { %v8960_v14 = vpop.eup %8959  ;;  %8039 = vst.msk [vmem:[%s13813_s10 - $0x6] sm:$0xc0] %vm8038_vm2, %v8003_v49  ;;  %v8005_v11 = vmin.f32 %v7970_v19, 0.9999  ;;  %v7971_v28 = vmax.f32 %v8958_v45, 0.0001  ;;  %8979 = vpow2.f32 %v8411_v36 }
 0x57b   : > { %v8962_v62 = vpop.eup %8961  ;;  %v8004_v57 = vmin.f32 %v7969_v29, 0.9999  ;;  %v7972_v60 = vmax.f32 %v8960_v14, 0.0001  ;;  %8981 = vpow2.f32 %v8412_v4  ;;  %v8417_v3 = vmul.f32 -1.442695, %v7743_v27 }
 0x57c   : > { %v8964_v23 = vpop.eup %8963  ;;  %8042 = vst.msk [vmem:[%s13813_s10 + $0xa] sm:$0xff] %vm8040_vm7, %v8005_v11  ;;  %v8006_v42 = vmin.f32 %v7971_v28, 0.9999  ;;  %v7973_v16 = vmax.f32 %v8962_v62, 0.0001  ;;  %8983 = vpow2.f32 %v8413_v12 }
 0x57d   : > { %v8966_v63 = vpop.eup %8965  ;;  %8041 = vst.msk [vmem:[%s13813_s10 + $0x2] sm:$0xff] %vm8040_vm7, %v8004_v57  ;;  %v8007_v32 = vmin.f32 %v7972_v60, 0.9999  ;;  %v7974_v17 = vmax.f32 %v8964_v23, 0.0001  ;;  %8985 = vpow2.f32 %v8414_v24 }
 0x57e   : > { %v8968_v34 = vpop.eup %8967  ;;  %8043 = vst.msk [vmem:[%s13813_s10 + $0x12] sm:$0xff] %vm8040_vm7, %v8006_v42  ;;  %v8008_v7 = vmin.f32 %v7973_v16, 0.9999  ;;  %v7975_v50 = vmax.f32 %v8966_v63, 0.0001  ;;  %8987 = vpow2.f32 %v8415_v13 }
 0x57f   : > { %v8970_v47 = vpop.eup %8969  ;;  %8044 = vst.msk [vmem:[%s13813_s10 + $0x1a] sm:$0xff] %vm8040_vm7, %v8007_v32  ;;  %v8009_v56 = vmin.f32 %v7974_v17, 0.9999  ;;  %v7976_v2 = vmax.f32 %v8968_v34, 0.0001  ;;  %8989 = vpow2.f32 %v8416_v55 }
 0x580   : > { %v7675_v10 = vpop.xlane.xlu0 %7674  ;;  %v8972_v38 = vpop.eup %8971  ;;  %8045 = vst.msk [vmem:[%s13813_s10 + $0x22] sm:$0xff] %vm8040_vm7, %v8008_v7  ;;  %v8010_v25 = vmin.f32 %v7975_v50, 0.9999  ;;  %v7977_v33 = vmax.f32 %v8970_v47, 0.0001  ;;  %8991 = vpow2.f32 %v8417_v3 }
 0x581   : > { %v7744_v26 = vadd.f32 %v13771_v35, %v7675_v10  ;;  %v8974_v18 = vpop.eup %8973  ;;  %8046 = vst.msk [vmem:[%s13813_s10 + $0x2a] sm:$0xff] %vm8040_vm7, %v8009_v56  ;;  %v8011_v31 = vmin.f32 %v7976_v2, 0.9999  ;;  %v7978_v22 = vmax.f32 %v8972_v38, 0.0001 }
 0x582   : > { %v8976_v51 = vpop.eup %8975  ;;  %8047 = vst.msk [vmem:[%s13813_s10 + $0x32] sm:$0xff] %vm8040_vm7, %v8010_v25  ;;  %v8012_v20 = vmin.f32 %v7977_v33, 0.9999  ;;  %v7979_v8 = vmax.f32 %v8974_v18, 0.0001 }
 0x583   : > { %v8418_v39 = vmul.f32 -1.442695, %v7744_v26  ;;  %v8978_v48 = vpop.eup %8977  ;;  %8048 = vst.msk [vmem:[%s13813_s10 + $0x3a] sm:$0xff] %vm8040_vm7, %v8011_v31  ;;  %v8013_v37 = vmin.f32 %v7978_v22, 0.9999  ;;  %v7876_v41 = vadd.f32 1.0, %v8976_v51 }
 0x584   : > { %v8980_v61 = vpop.eup %8979  ;;  %8049 = vst.msk [vmem:[%s13813_s10 + $0x42] sm:$0xff] %vm8040_vm7, %v8012_v20  ;;  %v8014_v59 = vmin.f32 %v7979_v8, 0.9999  ;;  %v7980_v6 = vmax.f32 %v8978_v48, 0.0001 }
 0x585   : > { %8993 = vpow2.f32 %v8418_v39  ;;  %v8982_v54 = vpop.eup %8981  ;;  %8050 = vst.msk [vmem:[%s13813_s10 + $0x4a] sm:$0xff] %vm8040_vm7, %v8013_v37  ;;  %v7877_v21 = vadd.f32 1.0, %v8980_v61 }
 0x586   : > { %8995 = vrcp.f32 %v7876_v41  ;;  %v8984_v1 = vpop.eup %8983  ;;  %8051 = vst.msk [vmem:[%s13813_s10 + $0x52] sm:$0xff] %vm8040_vm7, %v8014_v59  ;;  %v8015_v9 = vmin.f32 %v7980_v6, 0.9999  ;;  %v7878_v15 = vadd.f32 1.0, %v8982_v54 }
 0x587   : > { %v8986_v40 = vpop.eup %8985  ;;  %8997 = vrcp.f32 %v7877_v21  ;;  %v7879_v36 = vadd.f32 1.0, %v8984_v1 }
 0x588   : > { %v8988_v52 = vpop.eup %8987  ;;  %8052 = vst.msk [vmem:[%s13813_s10 + $0x5a] sm:$0xff] %vm8040_vm7, %v8015_v9  ;;  %8999 = vrcp.f32 %v7878_v15  ;;  %v7880_v58 = vadd.f32 1.0, %v8986_v40 }
 0x589   : > { %v8990_v44 = vpop.eup %8989  ;;  %9001 = vrcp.f32 %v7879_v36  ;;  %v7881_v4 = vadd.f32 1.0, %v8988_v52 }
 0x58a   : > { %v7678_v43 = vpop.xlane.xlu1 %7677  ;;  %v8992_v30 = vpop.eup %8991  ;;  %9003 = vrcp.f32 %v7880_v58  ;;  %v7882_v46 = vadd.f32 1.0, %v8990_v44 }
 0x58b   : > { %v7745_v12 = vadd.f32 %v13771_v35, %v7678_v43  ;;  %9005 = vrcp.f32 %v7881_v4  ;;  %v7883_v5 = vadd.f32 1.0, %v8992_v30 }
 0x58c   : > { %9007 = vrcp.f32 %v7882_v46 }
 0x58d   : > { %v8419_v53 = vmul.f32 -1.442695, %v7745_v12  ;;  %9009 = vrcp.f32 %v7883_v5 }
 0x58f   : > { %v8994_v0 = vpop.eup %8993  ;;  %9011 = vpow2.f32 %v8419_v53 }
 0x590   : > { %v8996_v49 = vpop.eup %8995  ;;  %v7884_v19 = vadd.f32 1.0, %v8994_v0 }
 0x591   : > { %v7981_v27 = vmax.f32 %v8996_v49, 0.0001  ;;  %v8998_v45 = vpop.eup %8997 }
 0x592   : > { %9013 = vrcp.f32 %v7884_v19  ;;  %v9000_v29 = vpop.eup %8999  ;;  %v7982_v14 = vmax.f32 %v8998_v45, 0.0001 }
 0x593   : > { %v8016_v24 = vmin.f32 %v7981_v27, 0.9999  ;;  %v9002_v11 = vpop.eup %9001  ;;  %v7983_v28 = vmax.f32 %v9000_v29, 0.0001 }
 0x594   : > { %v7681_v13 = vpop.xlane.xlu0 %7680  ;;  %v9004_v62 = vpop.eup %9003  ;;  %v8017_v57 = vmin.f32 %v7982_v14, 0.9999  ;;  %v7984_v60 = vmax.f32 %v9002_v11, 0.0001 }
 0x595   : > { %8053 = vst.msk [vmem:[%s13813_s10 + $0x62] sm:$0xff] %vm8040_vm7, %v8016_v24  ;;  %v7746_v55 = vadd.f32 %v13771_v35, %v7681_v13  ;;  %v9006_v23 = vpop.eup %9005  ;;  %v8018_v42 = vmin.f32 %v7983_v28, 0.9999  ;;  %v7985_v16 = vmax.f32 %v9004_v62, 0.0001 }
 0x596   : > { %v9008_v3 = vpop.eup %9007  ;;  %8054 = vst.msk [vmem:[%s13813_s10 + $0x6a] sm:$0xff] %vm8040_vm7, %v8017_v57  ;;  %v8019_v63 = vmin.f32 %v7984_v60, 0.9999  ;;  %v7986_v32 = vmax.f32 %v9006_v23, 0.0001 }
 0x597   : > { %v8420_v17 = vmul.f32 -1.442695, %v7746_v55  ;;  %v9010_v34 = vpop.eup %9009  ;;  %8055 = vst.msk [vmem:[%s13813_s10 + $0x72] sm:$0xff] %vm8040_vm7, %v8018_v42  ;;  %v8020_v7 = vmin.f32 %v7985_v16, 0.9999 }
 0x598   : > { %v7987_v50 = vmax.f32 %v9008_v3, 0.0001  ;;  %8056 = vst.msk [vmem:[%s13813_s10 + $0x7a] sm:$0xff] %vm8040_vm7, %v8019_v63  ;;  %v8021_v56 = vmin.f32 %v7986_v32, 0.9999 }
 0x599   : > { %v9012_v47 = vpop.eup %9011  ;;  %v7988_v2 = vmax.f32 %v9010_v34, 0.0001  ;;  %9015 = vpow2.f32 %v8420_v17  ;;  %8057 = vst.msk [vmem:[%s13813_s10 + $0x82] sm:$0xff] %vm8040_vm7, %v8020_v7 }
 0x59a   : > { %v8022_v10 = vmin.f32 %v7987_v50, 0.9999  ;;  %v7885_v38 = vadd.f32 1.0, %v9012_v47  ;;  %8058 = vst.msk [vmem:[%s13813_s10 + $0x8a] sm:$0xff] %vm8040_vm7, %v8021_v56 }
 0x59b   : > { %v8023_v25 = vmin.f32 %v7988_v2, 0.9999 }
 0x59c   : > { %v9014_v33 = vpop.eup %9013  ;;  %8059 = vst.msk [vmem:[%s13813_s10 + $0x92] sm:$0xff] %vm8040_vm7, %v8022_v10  ;;  %9017 = vrcp.f32 %v7885_v38 }
 0x59d   : > { %8060 = vst.msk [vmem:[%s13813_s10 + $0x9a] sm:$0xff] %vm8040_vm7, %v8023_v25  ;;  %v7989_v26 = vmax.f32 %v9014_v33, 0.0001  ;;  %v7684_v18 = vpop.xlane.xlu1 %7683 }
 0x59e   : > { %v7747_v31 = vadd.f32 %v13771_v35, %v7684_v18 }
 0x59f   : > { %v8024_v22 = vmin.f32 %v7989_v26, 0.9999 }
 0x5a0   : > { %v8421_v51 = vmul.f32 -1.442695, %v7747_v31 }
 0x5a1   : > { %8061 = vst.msk [vmem:[%s13813_s10 + $0xa2] sm:$0xff] %vm8040_vm7, %v8024_v22 }
 0x5a2   : > { %9019 = vpow2.f32 %v8421_v51 }
 0x5a3   : > { %v9016_v20 = vpop.eup %9015 }
 0x5a4   : > { %v7886_v8 = vadd.f32 1.0, %v9016_v20 }
 0x5a5   : > { %v7687_v39 = vpop.xlane.xlu0 %7686 }
 0x5a6   : > { %v9018_v48 = vpop.eup %9017  ;;  %9021 = vrcp.f32 %v7886_v8  ;;  %v7748_v37 = vadd.f32 %v13771_v35, %v7687_v39 }
 0x5a7   : > { %v7990_v41 = vmax.f32 %v9018_v48, 0.0001 }
 0x5a8   : > { %v8422_v61 = vmul.f32 -1.442695, %v7748_v37 }
 0x5a9   : > { %v8025_v59 = vmin.f32 %v7990_v41, 0.9999 }
 0x5aa   : > { %9023 = vpow2.f32 %v8422_v61 }
 0x5ab   : > { %8062 = vst.msk [vmem:[%s13813_s10 + $0xaa] sm:$0xff] %vm8040_vm7, %v8025_v59 }
 0x5ac   : > { %v9020_v6 = vpop.eup %9019 }
 0x5ad   : > { %v7887_v54 = vadd.f32 1.0, %v9020_v6 }
 0x5af   : > { %9025 = vrcp.f32 %v7887_v54  ;;  %v7690_v21 = vpop.xlane.xlu1 %7689 }
 0x5b0   : > { %v9022_v1 = vpop.eup %9021  ;;  %v7749_v9 = vadd.f32 %v13771_v35, %v7690_v21 }
 0x5b1   : > { %v7991_v15 = vmax.f32 %v9022_v1, 0.0001 }
 0x5b2   : > { %v8423_v40 = vmul.f32 -1.442695, %v7749_v9 }
 0x5b3   : > { %v8026_v36 = vmin.f32 %v7991_v15, 0.9999 }
 0x5b4   : > { %v9024_v52 = vpop.eup %9023  ;;  %9027 = vpow2.f32 %v8423_v40 }
 0x5b5   : > { %8063 = vst.msk [vmem:[%s13813_s10 + $0xb2] sm:$0xff] %vm8040_vm7, %v8026_v36  ;;  %v7888_v58 = vadd.f32 1.0, %v9024_v52 }
 0x5b7   : > { %9029 = vrcp.f32 %v7888_v58 }
 0x5b9   : > { %v9026_v44 = vpop.eup %9025  ;;  %v7693_v4 = vpop.xlane.xlu0 %7692 }
 0x5ba   : > { %v7992_v43 = vmax.f32 %v9026_v44, 0.0001  ;;  %v7750_v30 = vadd.f32 %v13771_v35, %v7693_v4 }
 0x5bc   : > { %v8027_v46 = vmin.f32 %v7992_v43, 0.9999  ;;  %v8424_v12 = vmul.f32 -1.442695, %v7750_v30 }
 0x5be   : > { %v9028_v5 = vpop.eup %9027  ;;  %8064 = vst.msk [vmem:[%s13813_s10 + $0xba] sm:$0xff] %vm8040_vm7, %v8027_v46  ;;  %9031 = vpow2.f32 %v8424_v12 }
 0x5bf   : > { %v7889_v53 = vadd.f32 1.0, %v9028_v5 }
 0x5c1   : > { %v9030_v0 = vpop.eup %9029  ;;  %9033 = vrcp.f32 %v7889_v53 }
 0x5c2   : > { %v7993_v49 = vmax.f32 %v9030_v0, 0.0001  ;;  %v7696_v19 = vpop.xlane.xlu1 %7695 }
 0x5c3   : > { %v7751_v27 = vadd.f32 %v13771_v35, %v7696_v19 }
 0x5c4   : > { %v8028_v45 = vmin.f32 %v7993_v49, 0.9999 }
 0x5c5   : > { %v8425_v29 = vmul.f32 -1.442695, %v7751_v27 }
 0x5c6   : > { %8065 = vst.msk [vmem:[%s13813_s10 + $0xc2] sm:$0xff] %vm8040_vm7, %v8028_v45 }
 0x5c7   : > { %9035 = vpow2.f32 %v8425_v29 }
 0x5c8   : > { %v9032_v24 = vpop.eup %9031 }
 0x5c9   : > { %v7890_v14 = vadd.f32 1.0, %v9032_v24 }
 0x5ca   : > { %v7699_v11 = vpop.xlane.xlu0 %7698 }
 0x5cb   : > { %v9034_v28 = vpop.eup %9033  ;;  %9037 = vrcp.f32 %v7890_v14  ;;  %v7752_v13 = vadd.f32 %v13771_v35, %v7699_v11 }
 0x5cc   : > { %v7994_v62 = vmax.f32 %v9034_v28, 0.0001 }
 0x5cd   : > { %v8426_v57 = vmul.f32 -1.442695, %v7752_v13 }
 0x5ce   : > { %v8029_v60 = vmin.f32 %v7994_v62, 0.9999 }
 0x5cf   : > { %9039 = vpow2.f32 %v8426_v57 }
 0x5d0   : > { %8066 = vst.msk [vmem:[%s13813_s10 + $0xca] sm:$0xff] %vm8040_vm7, %v8029_v60 }
 0x5d1   : > { %v9036_v55 = vpop.eup %9035 }
 0x5d2   : > { %v7891_v23 = vadd.f32 1.0, %v9036_v55 }
 0x5d4   : > { %9041 = vrcp.f32 %v7891_v23  ;;  %v7702_v42 = vpop.xlane.xlu1 %7701 }
 0x5d5   : > { %v9038_v16 = vpop.eup %9037  ;;  %v7753_v3 = vadd.f32 %v13771_v35, %v7702_v42 }
 0x5d6   : > { %v7995_v63 = vmax.f32 %v9038_v16, 0.0001 }
 0x5d7   : > { %v8427_v32 = vmul.f32 -1.442695, %v7753_v3 }
 0x5d8   : > { %v8030_v17 = vmin.f32 %v7995_v63, 0.9999 }
 0x5d9   : > { %v9040_v34 = vpop.eup %9039  ;;  %9043 = vpow2.f32 %v8427_v32 }
 0x5da   : > { %8067 = vst.msk [vmem:[%s13813_s10 + $0xd2] sm:$0xff] %vm8040_vm7, %v8030_v17  ;;  %v7892_v7 = vadd.f32 1.0, %v9040_v34 }
 0x5dc   : > { %9045 = vrcp.f32 %v7892_v7 }
 0x5de   : > { %v9042_v50 = vpop.eup %9041  ;;  %v7705_v47 = vpop.xlane.xlu0 %7704 }
 0x5df   : > { %v7996_v56 = vmax.f32 %v9042_v50, 0.0001  ;;  %v7754_v2 = vadd.f32 %v13771_v35, %v7705_v47 }
 0x5e1   : > { %v8031_v10 = vmin.f32 %v7996_v56, 0.9999  ;;  %v8428_v38 = vmul.f32 -1.442695, %v7754_v2 }
 0x5e3   : > { %v9044_v25 = vpop.eup %9043  ;;  %8068 = vst.msk [vmem:[%s13813_s10 + $0xda] sm:$0xff] %vm8040_vm7, %v8031_v10  ;;  %9047 = vpow2.f32 %v8428_v38 }
 0x5e4   : > { %v7893_v33 = vadd.f32 1.0, %v9044_v25 }
 0x5e6   : > { %v9046_v26 = vpop.eup %9045  ;;  %9049 = vrcp.f32 %v7893_v33 }
 0x5e7   : > { %v7997_v18 = vmax.f32 %v9046_v26, 0.0001  ;;  %v7708_v31 = vpop.xlane.xlu1 %7707 }
 0x5e8   : > { %v7755_v51 = vadd.f32 %v13771_v35, %v7708_v31 }
 0x5e9   : > { %v8032_v22 = vmin.f32 %v7997_v18, 0.9999 }
 0x5ea   : > { %v8429_v20 = vmul.f32 -1.442695, %v7755_v51 }
 0x5eb   : > { %8069 = vst.msk [vmem:[%s13813_s10 + $0xe2] sm:$0xff] %vm8040_vm7, %v8032_v22 }
 0x5ec   : > { %9051 = vpow2.f32 %v8429_v20 }
 0x5ed   : > { %v9048_v8 = vpop.eup %9047 }
 0x5ee   : > { %v7894_v39 = vadd.f32 1.0, %v9048_v8 }
 0x5f0   : > { %v9050_v48 = vpop.eup %9049  ;;  %9053 = vrcp.f32 %v7894_v39 }
 0x5f1   : > { %v7998_v37 = vmax.f32 %v9050_v48, 0.0001  ;;  %v7711_v41 = vpop.xlane.xlu0 %7710 }
 0x5f2   : > { %v7756_v59 = vadd.f32 %v13771_v35, %v7711_v41 }
 0x5f3   : > { %v8033_v61 = vmin.f32 %v7998_v37, 0.9999 }
 0x5f4   : > { %v8430_v6 = vmul.f32 -1.442695, %v7756_v59 }
 0x5f5   : > { %8070 = vst.msk [vmem:[%s13813_s10 + $0xea] sm:$0xff] %vm8040_vm7, %v8033_v61  ;;  %v7715_v54 = vpop.xlane.xlu1 %7714 }
 0x5f6   : > { %v7757_v21 = vadd.f32 %v13771_v35, %v7715_v54  ;;  %v9052_v1 = vpop.eup %9051  ;;  %9055 = vpow2.f32 %v8430_v6 }
 0x5f7   : > { %v7895_v9 = vadd.f32 1.0, %v9052_v1 }
 0x5f8   : > { %v8431_v15 = vmul.f32 -1.442695, %v7757_v21 }
 0x5f9   : > { %9057 = vrcp.f32 %v7895_v9 }
 0x5fa   : > { %v9054_v40 = vpop.eup %9053  ;;  %9059 = vpow2.f32 %v8431_v15 }
 0x5fb   : > { %v7999_v36 = vmax.f32 %v9054_v40, 0.0001 }
 0x5fd   : > { %v8034_v52 = vmin.f32 %v7999_v36, 0.9999 }
 0x5ff   : > { %8071 = vst.msk [vmem:[%s13813_s10 + $0xf2] sm:$0xff] %vm8040_vm7, %v8034_v52 }
 0x600   : > { %v9056_v58 = vpop.eup %9055 }
 0x601   : > { %v7896_v44 = vadd.f32 1.0, %v9056_v58 }
 0x603   : > { %v9058_v4 = vpop.eup %9057  ;;  %9061 = vrcp.f32 %v7896_v44 }
 0x604   : > { %v9060_v43 = vpop.eup %9059  ;;  %v8000_v35 = vmax.f32 %v9058_v4, 0.0001 }
 0x605   : > { %v7897_v30 = vadd.f32 1.0, %v9060_v43 }
 0x606   : > { %v8035_v46 = vmin.f32 %v8000_v35, 0.9999 }
 0x607   : > { %9063 = vrcp.f32 %v7897_v30 }
 0x608   : > { %8072 = vst.msk [vmem:[%s13813_s10 + $0xfa] sm:$0xff] %vm8040_vm7, %v8035_v46 }
 0x60d   : > { %v9062_v12 = vpop.eup %9061 }
 0x60e   : > { %v8001_v5 = vmax.f32 %v9062_v12, 0.0001 }
 0x610   : > { %v8036_v53 = vmin.f32 %v8001_v5, 0.9999 }
 0x611   : > { %v9064_v0 = vpop.eup %9063 }
 0x612   : > { %8073 = vst.msk [vmem:[%s13813_s10 + $0x102] sm:$0xff] %vm8040_vm7, %v8036_v53  ;;  %v8002_v49 = vmax.f32 %v9064_v0, 0.0001 }
 0x614   : > { %v8037_v19 = vmin.f32 %v8002_v49, 0.9999 }
 0x616   : > { %8075 = vst.msk [vmem:[%s13813_s10 + $0x10a] sm:$0x3f] %vm8074_vm8, %v8037_v19 }
 0x617 PF: > { %s21_s11 = sadd.s32 1, %s9109_s11  }
 0x618   : > { %p18_p4 = scmp.ge.s32.totalorder %s21_s11, 4  }
 0x61a   :  { %20 = sbr.rel (!%p18_p4) target bundleno = 3 (0x3), region = 94 }

</bundles_post_ra>
